<compile_context>
chip_gen: v7x
topology: tpu7x:2x2x1
jax: 0.10.0
libtpu: 0.0.40
codegen_flags: <defaults>
</compile_context>

<pallas_src>
import jax
import jax.numpy as jnp
from jax.experimental import pallas as pl
from jax.experimental.pallas import tpu as pltpu

NUM_JOINTS = 24
GCN_FEAT = 131                         # gcn_feature_dim (use_surface_points=False)
FEAT = NUM_JOINTS * GCN_FEAT           # 3144
PAD = 3200                             # FEAT padded to a multiple of 128
TN = 640                               # output tile (128-aligned), PAD // 5
NT = PAD // TN                         # 5 N-tiles -> "parallel" grid axis
SHAPE_PARAMS_DIM = 10
GLOBAL_POSE_DIM = 9
HEAD_COORD = NUM_JOINTS * 3            # 72
HEAD_POSE = NUM_JOINTS * 9             # 216
HEAD_DIM = HEAD_COORD + HEAD_POSE + SHAPE_PARAMS_DIM + 9   # 307
HPAD = 384                             # head output padded to 3*128 (lane dense)

_VMEM_LIMIT = 32 * 1024 * 1024         # safe on v5e/v6e/v7x (<= physical VMEM)


# ---------------------------------------------------------------------------
# Kernel 1: dense layer, one output tile per grid step:
#   o[:, j*TN:(j+1)*TN] = relu(x @ W[:, j*TN:(j+1)*TN] + b[j*TN:(j+1)*TN])
# Weights are bf16 (halved HBM bytes); MXU accumulates in f32.
# Used for pos_mlp layer 1 (Linear(3144,3144) + ReLU).
# ---------------------------------------------------------------------------
def _dense_relu_kernel(x_ref, w_ref, b_ref, o_ref):
    x = x_ref[...].astype(jnp.bfloat16)                       # (B, PAD)
    acc = jnp.dot(x, w_ref[...], preferred_element_type=jnp.float32)
    o_ref[...] = jnp.maximum(acc + b_ref[...], 0.0)


def dense_relu(x_pad, w_t, b):
    B = x_pad.shape[0]
    return pl.pallas_call(
        _dense_relu_kernel,
        out_shape=jax.ShapeDtypeStruct((B, PAD), jnp.float32),
        grid_spec=pltpu.PrefetchScalarGridSpec(
            num_scalar_prefetch=0,
            grid=(NT,),
            in_specs=[
                pl.BlockSpec((B, PAD), lambda j: (0, 0)),          # x resident
                pl.BlockSpec((None, PAD, TN), lambda j: (j, 0, 0)),  # bf16 W slab
                pl.BlockSpec((1, TN), lambda j: (0, j)),           # bias tile
            ],
            out_specs=pl.BlockSpec((B, TN), lambda j: (0, j)),
        ),
        compiler_params=pltpu.CompilerParams(
            dimension_semantics=("parallel",),
            vmem_limit_bytes=_VMEM_LIMIT,
        ),
    )(x_pad, w_t, b)


# ---------------------------------------------------------------------------
# Kernel 2: pos_mlp layer 2 + fused regression head.
# Per N-tile j it computes h = relu(x @ W2[:, tile_j] + b2[tile_j]) and
# immediately the partial head product h @ W_head[tile_j rows, :].
# W_head is the block-diagonal densification of:
#   coord_regressors (grouped 1x1 conv 3144->72, groups=24),
#   pose_regressors  (grouped 1x1 conv 3144->216, groups=24),
#   shape_mlp        (Linear 3144->19),
# packed as lane-dense columns [coords | pose | gparam | pad] = 384.
# Partial products (one per N-tile) are summed in the wrapper; h2 never
# touches HBM.
# ---------------------------------------------------------------------------
def _dense_relu_head_kernel(x_ref, w_ref, b_ref, wh_ref, ph_ref):
    x = x_ref[...].astype(jnp.bfloat16)                       # (B, PAD)
    acc = jnp.dot(x, w_ref[...], preferred_element_type=jnp.float32)
    h = jnp.maximum(acc + b_ref[...], 0.0)                    # (B, TN) f32
    ph_ref[...] = jnp.dot(h.astype(jnp.bfloat16), wh_ref[...],
                          preferred_element_type=jnp.float32)  # (B, HPAD)


def dense_relu_head(x_pad, w_t, b, w_head):
    B = x_pad.shape[0]
    return pl.pallas_call(
        _dense_relu_head_kernel,
        out_shape=jax.ShapeDtypeStruct((NT, B, HPAD), jnp.float32),
        grid_spec=pltpu.PrefetchScalarGridSpec(
            num_scalar_prefetch=0,
            grid=(NT,),
            in_specs=[
                pl.BlockSpec((B, PAD), lambda j: (0, 0)),
                pl.BlockSpec((None, PAD, TN), lambda j: (j, 0, 0)),
                pl.BlockSpec((1, TN), lambda j: (0, j)),
                pl.BlockSpec((TN, HPAD), lambda j: (j, 0)),        # head rows tile
            ],
            out_specs=pl.BlockSpec((None, B, HPAD), lambda j: (j, 0, 0)),
        ),
        compiler_params=pltpu.CompilerParams(
            dimension_semantics=("parallel",),
            vmem_limit_bytes=_VMEM_LIMIT,
        ),
    )(x_pad, w_t, b, w_head)


# ---------------------------------------------------------------------------
# Parameters (deterministic, kaiming-style fan_in init; biases zero).
# Dense weights are packed into the kernel layouts at init time:
#   w{1,2}_t : (NT, PAD, TN) bf16  -- contiguous per-N-tile slabs
#   w_head   : (PAD, HPAD)  bf16  -- block-diagonal coord/pose + dense shape_mlp
# ---------------------------------------------------------------------------
def init_params(key):
    ks = jax.random.split(key, 6)

    def kaiming(k, shape, fan_in):
        return jax.random.normal(k, shape, jnp.float32) * (2.0 / fan_in) ** 0.5

    w1 = kaiming(ks[0], (FEAT, FEAT), FEAT)                        # pos_mlp layer 1 (in, out)
    w2 = kaiming(ks[1], (FEAT, FEAT), FEAT)                        # pos_mlp layer 2 (in, out)
    wc = kaiming(ks[2], (NUM_JOINTS, 3, GCN_FEAT), GCN_FEAT)       # coord_regressors
    wp = kaiming(ks[3], (NUM_JOINTS, 9, GCN_FEAT), GCN_FEAT)       # pose_regressors
    wsm = kaiming(ks[4], (FEAT, SHAPE_PARAMS_DIM + 9), FEAT)       # shape_mlp
    backbone_proj = kaiming(ks[5], (3, GCN_FEAT - 3), 3)

    def pack_dense(w):
        w_pad = jnp.zeros((PAD, PAD), jnp.float32).at[:FEAT, :FEAT].set(w)
        # (PAD, PAD) -> (NT, PAD, TN): each N-tile becomes one contiguous slab.
        return w_pad.reshape(PAD, NT, TN).transpose(1, 0, 2).astype(jnp.bfloat16)

    # Dense block-diagonal head weight.
    w_head = jnp.zeros((PAD, HPAD), jnp.float32)
    for j in range(NUM_JOINTS):
        r0 = j * GCN_FEAT
        w_head = w_head.at[r0:r0 + GCN_FEAT, j * 3:(j + 1) * 3].set(wc[j].T)
        w_head = w_head.at[r0:r0 + GCN_FEAT,
                           HEAD_COORD + j * 9:HEAD_COORD + (j + 1) * 9].set(wp[j].T)
    w_head = w_head.at[:FEAT, HEAD_COORD + HEAD_POSE:HEAD_DIM].set(wsm)

    return dict(
        backbone_proj=backbone_proj,
        w1_t=pack_dense(w1),
        b1=jnp.zeros((1, PAD), jnp.float32),
        w2_t=pack_dense(w2),
        b2=jnp.zeros((1, PAD), jnp.float32),
        w_head=w_head.astype(jnp.bfloat16),
        b_head=jnp.zeros((HPAD,), jnp.float32),   # [bc | bp | bsm | pad], all zero here
    )


# ---------------------------------------------------------------------------
# Forward pass (matches the reference forward() under the flags listed above).
# ---------------------------------------------------------------------------
@jax.jit
def votenet_forward(params, inputs, gt_segment):
    del gt_segment  # only consumed by the external ProposalModule (see TODO below)
    B = inputs.shape[0]
    end_points = {}

    # TODO(synk): Pointnet2Backbone / VotingModule / ProposalModule / GlobalAttention /
    # GCN are external submodules not defined in the reference source; their outputs
    # (fp4_xyz / fp4_features / votes / proposals / global_features) are synthesized
    # deterministically here instead of being translated.
    fp4_xyz = inputs[:, :NUM_JOINTS, :3]                              # (B, 24, 3)
    fp4_point_feats = jnp.tanh(fp4_xyz @ params["backbone_proj"])     # (B, 24, 128)
    fp4_features = jnp.transpose(fp4_point_feats, (0, 2, 1))          # (B, 128, 24), NCW as in torch
    end_points["fp4_xyz"] = fp4_xyz
    end_points["fp4_features"] = fp4_features

    # concatenate_features = cat(fp4_xyz, fp4_features.permute(0,2,1), dim=2)
    concatenate_features = jnp.concatenate([fp4_xyz, fp4_point_feats], axis=2)  # (B, 24, 131)
    end_points["concatenate_features"] = concatenate_features

    # pos_mlp (use_no_completion=False): two Linear(3144,3144)+ReLU.
    pose_feature_branch = concatenate_features.reshape(B, FEAT)       # (B, 3144)
    x_pad = jnp.pad(pose_feature_branch, ((0, 0), (0, PAD - FEAT)))   # (B, 3200)
    h1 = dense_relu(x_pad, params["w1_t"], params["b1"])              # (B, 3200)

    # pos_mlp layer 2 + fused head (coord/pose regressors + shape_mlp).
    # (use_no_gcn=True: pose_points_feature == key_points_feature_refined;
    #  use_no_global_edge_conv=True: shape_mlp sees the flattened features.)
    head_partial = dense_relu_head(h1, params["w2_t"], params["b2"],
                                   params["w_head"])                  # (NT, B, 384)
    head = jnp.sum(head_partial, axis=0) + params["b_head"]           # (B, 384)

    joints = head[:, :HEAD_COORD].reshape(B, NUM_JOINTS, 3)           # (B, 24, 3)
    smpl_pose = head[:, HEAD_COORD:HEAD_COORD + HEAD_POSE]            # (B, 216)
    gparam = head[:, HEAD_COORD + HEAD_POSE:HEAD_DIM]                 # (B, 19)

    end_points["refined_joints"] = joints

    smpl_shape = gparam[:, :SHAPE_PARAMS_DIM]                         # (B, 10)
    global_pose = gparam[:, SHAPE_PARAMS_DIM:]                        # (B, 9)
    smpl_pose = smpl_pose[:, GLOBAL_POSE_DIM:]                        # (B, 207)
    end_points["pred_param"] = jnp.concatenate(
        [smpl_shape, global_pose, smpl_pose], axis=1)                 # (B, 226)
    return end_points


if __name__ == "__main__":
    key = jax.random.PRNGKey(0)
    pkey, ikey = jax.random.split(key)
    params = init_params(pkey)

    B, N = 2, 128
    inputs = jax.random.normal(ikey, (B, N, 3), jnp.float32)   # (B, N, 3 + input_feature_dim), input_feature_dim=0
    gt_segment = jnp.zeros((B, N), jnp.int32)

    end_points = votenet_forward(params, inputs, gt_segment)
    jax.block_until_ready(end_points["pred_param"])

    assert end_points["refined_joints"].shape == (B, NUM_JOINTS, 3)
    assert end_points["pred_param"].shape == (
        B, SHAPE_PARAMS_DIM + 9 + NUM_JOINTS * 9 - GLOBAL_POSE_DIM)   # (2, 226)
    print("KERNEL_OK")
</pallas_src>

<mosaic_0001>
module attributes {stable_mosaic.version = 11 : i64} {
  func.func @_dense_relu_kernel(%arg0: i32, %arg1: memref<2x3200xf32, #tpu.memory_space<vmem>>, %arg2: memref<1x3200x640xbf16, #tpu.memory_space<vmem>>, %arg3: memref<1x640xf32, #tpu.memory_space<vmem>>, %arg4: memref<2x640xf32, #tpu.memory_space<vmem>>) attributes {dimension_semantics = [#tpu.dimension_semantics<parallel>], iteration_bounds = array<i64: 5>, scalar_prefetch = 0 : i64, scratch_operands = 0 : i64, tpu.core_type = #tpu.core_type<tc>, window_params = [{pipeline_mode = #tpu.pipeline_mode<synchronous>, transform_indices = @transform_0, window_bounds = array<i64: 2, 3200>}, {transform_indices = @transform_1, window_bounds = array<i64: 1, 3200, 640>}, {transform_indices = @transform_2, window_bounds = array<i64: 1, 640>}, {transform_indices = @transform_3, window_bounds = array<i64: 2, 640>}]} {
    %c0 = arith.constant 0 : index
    %c0_0 = arith.constant 0 : index
    %0 = vector.load %arg1[%c0, %c0_0] : memref<2x3200xf32, #tpu.memory_space<vmem>>, vector<2x3200xf32>
    %1 = arith.truncf %0 : vector<2x3200xf32> to vector<2x3200xbf16>
    %c0_1 = arith.constant 0 : index
    %c0_2 = arith.constant 0 : index
    %c0_3 = arith.constant 0 : index
    %2 = vector.load %arg2[%c0_1, %c0_2, %c0_3] : memref<1x3200x640xbf16, #tpu.memory_space<vmem>>, vector<1x3200x640xbf16>
    %3 = vector.shape_cast %2 : vector<1x3200x640xbf16> to vector<3200x640xbf16>
    %cst = arith.constant dense<0.000000e+00> : vector<2x640xf32>
    %4 = tpu.matmul %1, %3, %cst {dimension_numbers = #tpu.dot_dimension_numbers<[1], [0], [0], [1], [0, 0, 1, 1], [], []>} : vector<2x3200xbf16>, vector<3200x640xbf16>, vector<2x640xf32> -> vector<2x640xf32>
    %c0_4 = arith.constant 0 : index
    %c0_5 = arith.constant 0 : index
    %5 = vector.load %arg3[%c0_4, %c0_5] : memref<1x640xf32, #tpu.memory_space<vmem>>, vector<1x640xf32>
    %6 = vector.broadcast %5 : vector<1x640xf32> to vector<2x640xf32>
    %7 = arith.addf %4, %6 : vector<2x640xf32>
    %cst_6 = arith.constant 0.000000e+00 : f32
    %8 = vector.broadcast %cst_6 : f32 to vector<2x640xf32>
    %9 = arith.maximumf %7, %8 : vector<2x640xf32>
    %c0_7 = arith.constant 0 : index
    %c0_8 = arith.constant 0 : index
    %10 = vector.load %arg4[%c0_7, %c0_8] : memref<2x640xf32, #tpu.memory_space<vmem>>, vector<2x640xf32>
    tpu.vector_store %arg4[%c0_7, %c0_8], %9 {strides = array<i32>} : memref<2x640xf32, #tpu.memory_space<vmem>>, vector<2x640xf32>,
    return
  }
  func.func @transform_0(%arg0: i32) -> (i32, i32) {
    %c0_i32 = arith.constant 0 : i32
    %c0_i32_0 = arith.constant 0 : i32
    %c0_i32_1 = arith.constant 0 : i32
    return %c0_i32, %c0_i32_0 : i32, i32
  }
  func.func @transform_1(%arg0: i32) -> (i32, i32, i32) {
    %c0_i32 = arith.constant 0 : i32
    %c0_i32_0 = arith.constant 0 : i32
    %c0_i32_1 = arith.constant 0 : i32
    return %arg0, %c0_i32, %c0_i32_0 : i32, i32, i32
  }
  func.func @transform_2(%arg0: i32) -> (i32, i32) {
    %c0_i32 = arith.constant 0 : i32
    %c0_i32_0 = arith.constant 0 : i32
    return %c0_i32, %arg0 : i32, i32
  }
  func.func @transform_3(%arg0: i32) -> (i32, i32) {
    %c0_i32 = arith.constant 0 : i32
    %c0_i32_0 = arith.constant 0 : i32
    return %c0_i32, %arg0 : i32, i32
  }
}

module attributes {stable_mosaic.version = 11 : i64} {
  func.func @_dense_relu_head_kernel(%arg0: i32, %arg1: memref<2x3200xf32, #tpu.memory_space<vmem>>, %arg2: memref<1x3200x640xbf16, #tpu.memory_space<vmem>>, %arg3: memref<1x640xf32, #tpu.memory_space<vmem>>, %arg4: memref<640x384xbf16, #tpu.memory_space<vmem>>, %arg5: memref<1x2x384xf32, #tpu.memory_space<vmem>>) attributes {dimension_semantics = [#tpu.dimension_semantics<parallel>], iteration_bounds = array<i64: 5>, scalar_prefetch = 0 : i64, scratch_operands = 0 : i64, tpu.core_type = #tpu.core_type<tc>, window_params = [{pipeline_mode = #tpu.pipeline_mode<synchronous>, transform_indices = @transform_0, window_bounds = array<i64: 2, 3200>}, {transform_indices = @transform_1, window_bounds = array<i64: 1, 3200, 640>}, {transform_indices = @transform_2, window_bounds = array<i64: 1, 640>}, {transform_indices = @transform_3, window_bounds = array<i64: 640, 384>}, {transform_indices = @transform_4, window_bounds = array<i64: 1, 2, 384>}]} {
    %c0 = arith.constant 0 : index
    %c0_0 = arith.constant 0 : index
    %0 = vector.load %arg1[%c0, %c0_0] : memref<2x3200xf32, #tpu.memory_space<vmem>>, vector<2x3200xf32>
    %1 = arith.truncf %0 : vector<2x3200xf32> to vector<2x3200xbf16>
    %c0_1 = arith.constant 0 : index
    %c0_2 = arith.constant 0 : index
    %c0_3 = arith.constant 0 : index
    %2 = vector.load %arg2[%c0_1, %c0_2, %c0_3] : memref<1x3200x640xbf16, #tpu.memory_space<vmem>>, vector<1x3200x640xbf16>
    %3 = vector.shape_cast %2 : vector<1x3200x640xbf16> to vector<3200x640xbf16>
    %cst = arith.constant dense<0.000000e+00> : vector<2x640xf32>
    %4 = tpu.matmul %1, %3, %cst {dimension_numbers = #tpu.dot_dimension_numbers<[1], [0], [0], [1], [0, 0, 1, 1], [], []>} : vector<2x3200xbf16>, vector<3200x640xbf16>, vector<2x640xf32> -> vector<2x640xf32>
    %c0_4 = arith.constant 0 : index
    %c0_5 = arith.constant 0 : index
    %5 = vector.load %arg3[%c0_4, %c0_5] : memref<1x640xf32, #tpu.memory_space<vmem>>, vector<1x640xf32>
    %6 = vector.broadcast %5 : vector<1x640xf32> to vector<2x640xf32>
    %7 = arith.addf %4, %6 : vector<2x640xf32>
    %cst_6 = arith.constant 0.000000e+00 : f32
    %8 = vector.broadcast %cst_6 : f32 to vector<2x640xf32>
    %9 = arith.maximumf %7, %8 : vector<2x640xf32>
    %10 = arith.truncf %9 : vector<2x640xf32> to vector<2x640xbf16>
    %c0_7 = arith.constant 0 : index
    %c0_8 = arith.constant 0 : index
    %11 = vector.load %arg4[%c0_7, %c0_8] : memref<640x384xbf16, #tpu.memory_space<vmem>>, vector<640x384xbf16>
    %cst_9 = arith.constant dense<0.000000e+00> : vector<2x384xf32>
    %12 = tpu.matmul %10, %11, %cst_9 {dimension_numbers = #tpu.dot_dimension_numbers<[1], [0], [0], [1], [0, 0, 1, 1], [], []>} : vector<2x640xbf16>, vector<640x384xbf16>, vector<2x384xf32> -> vector<2x384xf32>
    %c0_10 = arith.constant 0 : index
    %c0_11 = arith.constant 0 : index
    %c0_12 = arith.constant 0 : index
    %13 = vector.load %arg5[%c0_10, %c0_11, %c0_12] : memref<1x2x384xf32, #tpu.memory_space<vmem>>, vector<1x2x384xf32>
    %14 = vector.shape_cast %13 : vector<1x2x384xf32> to vector<2x384xf32>
    %15 = vector.shape_cast %12 : vector<2x384xf32> to vector<1x2x384xf32>
    tpu.vector_store %arg5[%c0_10, %c0_11, %c0_12], %15 {strides = array<i32>} : memref<1x2x384xf32, #tpu.memory_space<vmem>>, vector<1x2x384xf32>,
    return
  }
  func.func @transform_0(%arg0: i32) -> (i32, i32) {
    %c0_i32 = arith.constant 0 : i32
    %c0_i32_0 = arith.constant 0 : i32
    %c0_i32_1 = arith.constant 0 : i32
    return %c0_i32, %c0_i32_0 : i32, i32
  }
  func.func @transform_1(%arg0: i32) -> (i32, i32, i32) {
    %c0_i32 = arith.constant 0 : i32
    %c0_i32_0 = arith.constant 0 : i32
    %c0_i32_1 = arith.constant 0 : i32
    return %arg0, %c0_i32, %c0_i32_0 : i32, i32, i32
  }
  func.func @transform_2(%arg0: i32) -> (i32, i32) {
    %c0_i32 = arith.constant 0 : i32
    %c0_i32_0 = arith.constant 0 : i32
    return %c0_i32, %arg0 : i32, i32
  }
  func.func @transform_3(%arg0: i32) -> (i32, i32) {
    %c0_i32 = arith.constant 0 : i32
    %c0_i32_0 = arith.constant 0 : i32
    return %arg0, %c0_i32 : i32, i32
  }
  func.func @transform_4(%arg0: i32) -> (i32, i32, i32) {
    %c0_i32 = arith.constant 0 : i32
    %c0_i32_0 = arith.constant 0 : i32
    %c0_i32_1 = arith.constant 0 : i32
    return %arg0, %c0_i32, %c0_i32_0 : i32, i32, i32
  }
}

</mosaic_0001>

<bundles_post_ra>
// kernel: votenet_forward.2
= control target key start
LH: loop header
LB: loop body
LE: loop exit
PB: predicated region body
PF: predicated region fallthrough
CT: control target
= control target key end

     0   :  { %8 = vsyncpa [#allocation3], 0  ;;  %s12959_s0 = inlined_call_operand.vmem [shape: f32[2,3200], index: 0, kind: input, shape index: {}]   ;;  %s12960_s1 = inlined_call_operand.hbm [shape: bf16[5,3200,640], index: 1, kind: input, shape index: {}]   ;;  %s12961_s2 = inlined_call_operand.hbm [shape: f32[1,3200], index: 2, kind: input, shape index: {}]   ;;  %s12962_s3 = inlined_call_operand.vmem [shape: f32[2,3200], index: 3, kind: output, shape index: {}]  }
   0x1   :  { %10 = vsyncpa [#allocation3 + $0x1], 0 }
   0x2   :  { %11 = vsyncpa [#allocation5], 0 }
   0x3   :  { %13 = vsyncpa [#allocation5 + $0x1], 0  ;;  %s11541_s12 = smov 0   ;;  %s11543_s13 = smov 0  }
   0x4   :  { %s11545_s14 = smov 0   ;;  %s11547_s15 = smov 0  }
   0x5 LB: > { %s8546_s16 = sadd.s32 4294967295, %s11511_s15   ;;  %s11561_s17 = sadd.s32 1, %s11511_s15   ;;  %s11511_s15 = sphi %s11547_s15, %s12973_s15   ;;  %s11507_s14 = sphi %s11545_s14, %s12972_s14   ;;  %s11503_s13 = sphi %s11543_s13, %s12971_s13   ;;  %s11499_s12 = sphi %s11541_s12, %s12970_s12  }
   0x6   : > { %s44_s18 = ssub.s32 %s11511_s15, %s11561_s17  ;;  %s47_s19 = sadd.s32 1, %s11507_s14 }
   0x7   : > { %p45_p0 = scmp.eq.s32.totalorder %s44_s18, 0  ;;  %p54_p1 = scmp.ne.s32.totalorder %s11507_s14, %s11503_s13 }
   0x8   : > { %p55_p2 = scmp.eq.s32.totalorder %s11511_s15, 0  ;;  %p60_p3 = scmp.ne.s32.totalorder %s11503_s13, %s11499_s12 }
   0x9   : > { %s11571_s20 = scalar_select %p45_p0, %s11507_s14, %s47_s19  }
   0xa   : > { %p56_p4 = por %p55_p2, %p54_p1  ;;  %p61_p5 = scmp.eq.s32.totalorder %s8546_s16, 0 }
   0xb   : > { %p9968_p6 = scmp.lt.s32.totalorder %s11511_s15, 5  ;;  %s11581_s22 = sand.u32 1, %s11507_s14  }
   0xc   : > { %p11576_p7 = por %p61_p5, %p60_p3  ;;  %s9952_s23 = smul.u32 8000, %s11581_s22 }
   0xd   : > { %s9953_s24 = smul.u32 128000, %s11511_s15  ;;  %p11585_p8 = pnand %p9968_p6, %p56_p4 }
   0xe   : > { %s12964_s21 = scalar_select %p11576_p7, 1, 0 }
   0xf   : > { %s11592_s28 = scalar_lea.hbm %s12960_s1, %s9953_s24  ;;  %s143_s29 = scalar_lea.vmem [#allocation2], %s9952_s23 }
  0x10   : > { %s150_s30 = sshll.u32 %s143_s29, 4  ;;  %s140_s4 = scalar_lea.sflag [#allocation3], %s11581_s22  ;;  %s11594_s30 = int_to_ptr.vmem [resolvable:$true] %s150_s30 }
  0x11   : > { %s11413_s5 = scalar_lea.hbm %s11592_s28, 128000  ;;  %p11415_p11 = pneg %p11585_p8 }
  0x12   : > { %p11414_p10 = scmp.ne.s32.totalorder %s11592_s28, %s11413_s5  ;;  %s11418_s8 = scalar_lea.hbm %s12960_s1, 640000 }
  0x13   : > { %p11419_p0 = scmp.lt.u32.totalorder %s11592_s28, %s12960_s1  ;;  %p11420_p1 = scmp.lt.u32.totalorder %s11418_s8, %s11413_s5 }
  0x14   : > { %p11416_p12 = pnand %p11415_p11, %p11414_p10  ;;  %p11422_p3 = scmp.lt.u32.totalorder %s11413_s5, %s11592_s28 }
  0x15   : > { %p11421_p2 = por %p11420_p1, %p11419_p0 }
  0x16   : > { %p11417_p13 = pneg %p11416_p12 }
  0x17   : > { %p11423_p4 = por %p11422_p3, %p11421_p2 }
  0x19   : > { %p11424_p5 = pnand %p11423_p4, %p11417_p13 }
  0x1b   : > { %11427 = shalt.err (!%p11424_p5)
}
  0x1c   : > { %s11428_s11 = scalar_lea.vmem %s11594_s30, 128000  ;;  %s11513_s12 = smov [#allocation2]  }
  0x1d   : > { %p11429_p6 = scmp.ne.s32.totalorder %s11594_s30, %s11428_s11  ;;  %s11433_s18 = sshll.u32 %s11513_s12, 4  ;;  %s11434_s18 = int_to_ptr.vmem [resolvable:$false] %s11433_s18 }
  0x1e   : > { %s11435_s19 = scalar_lea.vmem %s11434_s18, 256000  ;;  %p11436_p9 = scmp.lt.s32.totalorder %s11594_s30, %s11434_s18 }
  0x1f   : > { %p11431_p10 = pnand %p11429_p6, %p11415_p11  ;;  %p11437_p0 = scmp.lt.s32.totalorder %s11435_s19, %s11428_s11 }
  0x21   : > { %p11432_p12 = pneg %p11431_p10  ;;  %p11438_p1 = por %p11437_p0, %p11436_p9 }
  0x23   : > { %p11439_p2 = pnand %p11438_p1, %p11432_p12 }
  0x25   : > { %11442 = shalt.err (!%p11439_p2)
}
  0x26   : > { %s11514_s23 = smov 320   ;;  %s11515_s24 = smov 20  }
  0x27   : > { %9964 = dma.hbm_to_vmem [thread:$0]  (!%p11585_p8), %s11592_s28, 128000, %s11594_s30, %s140_s4, %s11514_s23, %s11514_s23, %s11515_s24  }
  0x28   : > { %p177_p13 = scmp.lt.s32.totalorder %s11511_s15, 6  ;;  %s9954_s26 = smul.u32 5, %s11581_s22 }
  0x29   : > { %p12966_p9 = scmp.ge.s32.totalorder %s11511_s15, 1  ;;  %s9558_s29 = smul.u32 80, %s11511_s15 }
  0x2a   : > { %s164_s8 = scalar_lea.vmem [#allocation4], %s9954_s26  ;;  %s161_s28 = scalar_lea.sflag [#allocation5], %s11581_s22 }
  0x2b   : > { %p11629_p3 = pnand %p12966_p9, %p177_p13  ;;  %s11637_s7 = scalar_lea.hbm %s12961_s2, %s9558_s29 }
  0x2c   : > { %s172_s9 = sshll.u32 %s164_s8, 4  ;;  %s11443_s30 = scalar_lea.hbm %s11637_s7, 80  ;;  %s173_s9 = int_to_ptr.vmem [resolvable:$true] %s172_s9 }
  0x2d   : > { %s12967_s27 = scalar_select %p11629_p3, 1, 0 }
  0x2e   : > { %p11444_p4 = scmp.ne.s32.totalorder %s11637_s7, %s11443_s30  ;;  %s11448_s11 = scalar_lea.hbm %s12961_s2, 400 }
  0x2f   : > { %p11449_p10 = scmp.lt.u32.totalorder %s11637_s7, %s12961_s2  ;;  %p11450_p12 = scmp.lt.u32.totalorder %s11448_s11, %s11443_s30 }
  0x30   : > { %p11446_p5 = pnand %p11444_p4, %p11415_p11  ;;  %p11452_p1 = scmp.lt.u32.totalorder %s11443_s30, %s11637_s7 }
  0x31   : > { %p11451_p0 = por %p11450_p12, %p11449_p10 }
  0x32   : > { %p11447_p6 = pneg %p11446_p5 }
  0x33   : > { %p11453_p2 = por %p11452_p1, %p11451_p0 }
  0x35   : > { %p11454_p13 = pnand %p11453_p2, %p11447_p6 }
  0x37   : > { %11457 = shalt.err (!%p11454_p13)
}
  0x38   : > { %s11458_s22 = scalar_lea.vmem %s173_s9, 80  ;;  %s11516_s19 = smov [#allocation4]  }
  0x39   : > { %p11459_p9 = scmp.ne.s32.totalorder %s173_s9, %s11458_s22  ;;  %s11463_s23 = sshll.u32 %s11516_s19, 4  ;;  %s11464_s23 = int_to_ptr.vmem [resolvable:$false] %s11463_s23 }
  0x3a   : > { %s11465_s24 = scalar_lea.vmem %s11464_s23, 160  ;;  %p11466_p7 = scmp.lt.s32.totalorder %s173_s9, %s11464_s23 }
  0x3b   : > { %p11461_p4 = pnand %p11459_p9, %p11415_p11  ;;  %p11467_p3 = scmp.lt.s32.totalorder %s11465_s24, %s11458_s22 }
  0x3d   : > { %p11462_p5 = pneg %p11461_p4  ;;  %p11468_p10 = por %p11467_p3, %p11466_p7 }
  0x3f   : > { %p11469_p12 = pnand %p11468_p10, %p11462_p5 }
  0x41   : > { %11472 = shalt.err (!%p11469_p12)
}
  0x42   : > { %9967 = dma.hbm_to_vmem [thread:$0]  (!%p11585_p8), %s11637_s7, 80, %s173_s9, %s161_s28  }
  0x43   : > { %p12968_p6 = scmp.ne.s32.totalorder %s12967_s27, 0 }
  0x44   : > { %s183_s26 = sand.u32 (!%p12968_p6), 1, %s11503_s13   ;;  %p12969_p11 = scmp.ne.s32.totalorder (!%p12968_p6), %s12964_s21, 0 }
  0x45   : > { %181 = sbr.rel (%p12968_p6) target bundleno = 1323 (0x52b), region = 32  ;;  %s184_s5 = scalar_lea.sflag (!%p12968_p6), [#allocation3], %s183_s26 }
  0x46   : > { %s9955_s29 = smul.u32 (!%p12968_p6), 8000, %s183_s26 }
  0x48   : > { %s11662_s6 = scalar_lea.vmem (!%p12968_p6), [#allocation2], %s9955_s29 }
  0x4c   : > { %11490 = dma.done.wait (%p12969_p11), %s184_s5, 128000  }
  0x4d   : > { %11492 = vsyncadd (%p12969_p11), %s184_s5, 4294839296  ;;  %s9956_s8 = smul.u32 5, %s183_s26  ;;  %s193_s25 = scalar_lea.sflag [#allocation5], %s183_s26 }
  0x4f   : > { %s11668_s30 = scalar_lea.vmem [#allocation4], %s9956_s8 }
  0x50   : > { %11494 = dma.done.wait (%p12969_p11), %s193_s25, 80  }
  0x51   : > { %11496 = vsyncadd (%p12969_p11), %s193_s25, 4294967216  ;;  %v10007_v0 = vld [vmem:[%s11662_s6 + $0x4] ss:$20 sps:$4 sm:$0xff]   ;;  %v10009_v1 = vld [vmem:[%s11662_s6 + $0xc] ss:$20 sps:$4 sm:$0xff]   ;;  %v250_v38 = vlaneseq  ;;  %vm11520_vm0 = vmmov 0  }
  0x52   : > { %6832 = vmatprep.subr.bf16.mxu0 %v10007_v0  ;;  %v10011_v2 = vld [vmem:[%s11662_s6] ss:$20 sps:$4 sm:$0xff]   ;;  %v10012_v3 = vld [vmem:[%s11662_s6 + $0x8] ss:$20 sps:$4 sm:$0xff]   ;;  %7365 = vmatprep.subr.bf16.mxu1 %v10009_v1  ;;  %v10018_v7 = vld [vmem:[%s11662_s6 + $0x30] ss:$20 sps:$4 sm:$0xff]  }
  0x53   : > { %v10013_v4 = vld [vmem:[%s11662_s6 + $0x2c] ss:$20 sps:$4 sm:$0xff]   ;;  %6833 = vmatpush1.bf16.msra.mxu0 %v10011_v2  ;;  %7366 = vmatpush1.bf16.msra.mxu1 %v10012_v3  ;;  %v10015_v5 = vld [vmem:[%s11662_s6 + $0x34] ss:$20 sps:$4 sm:$0xff]   ;;  %v10021_v9 = vld [vmem:[%s11662_s6 + $0x5c] ss:$20 sps:$4 sm:$0xff]  }
  0x54   : > { %v10017_v6 = vld [vmem:[%s11662_s6 + $0x28] ss:$20 sps:$4 sm:$0xff]   ;;  %6834 = vmatprep.subr.bf16.mxu0 %v10013_v4  ;;  %7367 = vmatprep.subr.bf16.mxu1 %v10015_v5  ;;  %v10023_v10 = vld [vmem:[%s11662_s6 + $0x50] ss:$20 sps:$4 sm:$0xff]   ;;  %v10024_v11 = vld [vmem:[%s11662_s6 + $0x58] ss:$20 sps:$4 sm:$0xff]  }
  0x55   : > { %v10019_v8 = vld [vmem:[%s11662_s6 + $0x54] ss:$20 sps:$4 sm:$0xff]   ;;  %v10025_v12 = vld [vmem:[%s11662_s6 + $0x7c] ss:$20 sps:$4 sm:$0xff]   ;;  %v10027_v13 = vld [vmem:[%s11662_s6 + $0x84] ss:$20 sps:$4 sm:$0xff]  }
  0x56   : > { %v10029_v14 = vld [vmem:[%s11662_s6 + $0x78] ss:$20 sps:$4 sm:$0xff]   ;;  %v10030_v15 = vld [vmem:[%s11662_s6 + $0x80] ss:$20 sps:$4 sm:$0xff]   ;;  %v10036_v19 = vld [vmem:[%s11662_s6 + $0xa8] ss:$20 sps:$4 sm:$0xff]  }
  0x57   : > { %6835 = vmatpush1.bf16.msra.mxu0 %v10017_v6  ;;  %7368 = vmatpush1.bf16.msra.mxu1 %v10018_v7  ;;  %v10031_v16 = vld [vmem:[%s11662_s6 + $0xa4] ss:$20 sps:$4 sm:$0xff]   ;;  %v10033_v17 = vld [vmem:[%s11662_s6 + $0xac] ss:$20 sps:$4 sm:$0xff]   ;;  %v10039_v21 = vld [vmem:[%s11662_s6 + $0xd4] ss:$20 sps:$4 sm:$0xff]  }
  0x58   : > { %6836 = vmatprep.subr.bf16.mxu0 %v10019_v8  ;;  %7369 = vmatprep.subr.bf16.mxu1 %v10021_v9  ;;  %v10035_v18 = vld [vmem:[%s11662_s6 + $0xa0] ss:$20 sps:$4 sm:$0xff]   ;;  %v10041_v22 = vld [vmem:[%s11662_s6 + $0xc8] ss:$20 sps:$4 sm:$0xff]   ;;  %v10042_v23 = vld [vmem:[%s11662_s6 + $0xd0] ss:$20 sps:$4 sm:$0xff]  }
  0x59   : > { %v10037_v20 = vld [vmem:[%s11662_s6 + $0xcc] ss:$20 sps:$4 sm:$0xff]   ;;  %v10043_v24 = vld [vmem:[%s11662_s6 + $0xf4] ss:$20 sps:$4 sm:$0xff]   ;;  %v10045_v25 = vld [vmem:[%s11662_s6 + $0xfc] ss:$20 sps:$4 sm:$0xff]  }
  0x5a   : > { %v10047_v26 = vld [vmem:[%s11662_s6 + $0xf0] ss:$20 sps:$4 sm:$0xff]   ;;  %v10048_v27 = vld [vmem:[%s11662_s6 + $0xf8] ss:$20 sps:$4 sm:$0xff]   ;;  %v10054_v31 = vld [vmem:[%s11662_s6 + $0x120] ss:$20 sps:$4 sm:$0xff]  }
  0x5b   : > { %6837 = vmatpush1.bf16.msra.mxu0 %v10023_v10  ;;  %7370 = vmatpush1.bf16.msra.mxu1 %v10024_v11  ;;  %v10049_v28 = vld [vmem:[%s11662_s6 + $0x11c] ss:$20 sps:$4 sm:$0xff]   ;;  %v10051_v29 = vld [vmem:[%s11662_s6 + $0x124] ss:$20 sps:$4 sm:$0xff]   ;;  %v10057_v33 = vld [vmem:[%s11662_s6 + $0x14c] ss:$20 sps:$4 sm:$0xff]  }
  0x5c   : > { %6838 = vmatprep.subr.bf16.mxu0 %v10025_v12  ;;  %7371 = vmatprep.subr.bf16.mxu1 %v10027_v13  ;;  %v10053_v30 = vld [vmem:[%s11662_s6 + $0x118] ss:$20 sps:$4 sm:$0xff]   ;;  %v10059_v34 = vld [vmem:[%s11662_s6 + $0x140] ss:$20 sps:$4 sm:$0xff]   ;;  %v10060_v35 = vld [vmem:[%s11662_s6 + $0x148] ss:$20 sps:$4 sm:$0xff]  }
  0x5d   : > { %v10055_v32 = vld [vmem:[%s11662_s6 + $0x144] ss:$20 sps:$4 sm:$0xff]   ;;  %v11517_v36 = vmov 1983009808   ;;  %v10061_v39 = vld [vmem:[%s11662_s6 + $0x16c] ss:$20 sps:$4 sm:$0xff]  }
  0x5e   : > { %v248_v37 = vunpack.c.l.s4 %v11517_v36  ;;  %v10063_v40 = vld [vmem:[%s11662_s6 + $0x174] ss:$20 sps:$4 sm:$0xff]   ;;  %v11713_v43 = vshrl.u32 %v250_v38, 7  ;;  %v10066_v44 = vld [vmem:[%s11662_s6 + $0x170] ss:$20 sps:$4 sm:$0xff]   ;;  %v232_v52 = vld [vmem:[%s12959_s0] sm:$0xff] }
  0x5f   : > { %6839 = vmatpush1.bf16.msra.mxu0 %v10029_v14  ;;  %7372 = vmatpush1.bf16.msra.mxu1 %v10030_v15  ;;  %v10065_v41 = vld [vmem:[%s11662_s6 + $0x168] ss:$20 sps:$4 sm:$0xff]   ;;  %v10071_v47 = vld [vmem:[%s11662_s6 + $0x190] ss:$20 sps:$4 sm:$0xff]   ;;  %v10072_v48 = vld [vmem:[%s11662_s6 + $0x198] ss:$20 sps:$4 sm:$0xff]   ;;  %v246_v4 = vcombine.high %v232_v52, %v232_v52 }
  0x60   : > { %6840 = vmatprep.subr.bf16.mxu0 %v10031_v16  ;;  %7373 = vmatprep.subr.bf16.mxu1 %v10033_v17  ;;  %v249_v42 = vunpack.c.0.s8 %v248_v37  ;;  %v10067_v45 = vld [vmem:[%s11662_s6 + $0x194] ss:$20 sps:$4 sm:$0xff]   ;;  %v10069_v46 = vld [vmem:[%s11662_s6 + $0x19c] ss:$20 sps:$4 sm:$0xff]   ;;  %v10075_v51 = vld [vmem:[%s11662_s6 + $0x1c4] ss:$20 sps:$4 sm:$0xff]  }
  0x61   : > { %v10073_v50 = vld [vmem:[%s11662_s6 + $0x1bc] ss:$20 sps:$4 sm:$0xff]   ;;  %v10077_v53 = vld [vmem:[%s11662_s6 + $0x1b8] ss:$20 sps:$4 sm:$0xff]   ;;  %v10078_v55 = vld [vmem:[%s11662_s6 + $0x1c0] ss:$20 sps:$4 sm:$0xff]  }
  0x62   : > { %v11721_v49 = vsub.s32 %v249_v42, %v11713_v43  ;;  %v10079_v56 = vld [vmem:[%s11662_s6 + $0x1e4] ss:$20 sps:$4 sm:$0xff]   ;;  %v10081_v57 = vld [vmem:[%s11662_s6 + $0x1ec] ss:$20 sps:$4 sm:$0xff]   ;;  %v10084_v61 = vld [vmem:[%s11662_s6 + $0x1e8] ss:$20 sps:$4 sm:$0xff]  }
  0x63   : > { %6841 = vmatpush1.bf16.msra.mxu0 %v10035_v18  ;;  %7374 = vmatpush1.bf16.msra.mxu1 %v10036_v19  ;;  %v10083_v59 = vld [vmem:[%s11662_s6 + $0x1e0] ss:$20 sps:$4 sm:$0xff]   ;;  %v10089_v0 = vld [vmem:[%s11662_s6 + $0x208] ss:$20 sps:$4 sm:$0xff]   ;;  %v10090_v1 = vld [vmem:[%s11662_s6 + $0x210] ss:$20 sps:$4 sm:$0xff]  }
  0x64   : > { %6842 = vmatprep.subr.bf16.mxu0 %v10037_v20  ;;  %7375 = vmatprep.subr.bf16.mxu1 %v10039_v21  ;;  %v253_v54 = vrot.slane %v232_v52, %v11721_v49  ;;  %v10085_v62 = vld [vmem:[%s11662_s6 + $0x20c] ss:$20 sps:$4 sm:$0xff]   ;;  %v10087_v63 = vld [vmem:[%s11662_s6 + $0x214] ss:$20 sps:$4 sm:$0xff]   ;;  %v10093_v3 = vld [vmem:[%s11662_s6 + $0x23c] ss:$20 sps:$4 sm:$0xff]   ;;  %v11750_v9 = vrot.slane %v246_v4, %v11721_v49 }
  0x65   : > { %v10091_v2 = vld [vmem:[%s11662_s6 + $0x234] ss:$20 sps:$4 sm:$0xff]   ;;  %v10095_v5 = vld [vmem:[%s11662_s6 + $0x230] ss:$20 sps:$4 sm:$0xff]   ;;  %v10096_v6 = vld [vmem:[%s11662_s6 + $0x238] ss:$20 sps:$4 sm:$0xff]  }
  0x66   : > { %v261_v58 = vcombine.high %v253_v54, %v253_v54  ;;  %v10097_v7 = vld [vmem:[%s11662_s6 + $0x25c] ss:$20 sps:$4 sm:$0xff]   ;;  %v10099_v8 = vld [vmem:[%s11662_s6 + $0x264] ss:$20 sps:$4 sm:$0xff]   ;;  %v10102_v11 = vld [vmem:[%s11662_s6 + $0x260] ss:$20 sps:$4 sm:$0xff]   ;;  %v262_v14 = vcombine.high %v11750_v9, %v11750_v9  ;;  %v11759_v16 = vpack.c.bf16 %v253_v54, %v253_v54 }
  0x67   : > { %6843 = vmatpush1.bf16.msra.mxu0 %v10041_v22  ;;  %7376 = vmatpush1.bf16.msra.mxu1 %v10042_v23  ;;  %v10101_v10 = vld [vmem:[%s11662_s6 + $0x258] ss:$20 sps:$4 sm:$0xff]   ;;  %v10103_v15 = vld [vmem:[%s11662_s6 + $0x280] ss:$20 sps:$4 sm:$0xff]   ;;  %v10106_v17 = vld [vmem:[%s11662_s6 + $0x288] ss:$20 sps:$4 sm:$0xff]  }
  0x68   : > { %6844 = vmatprep.subr.bf16.mxu0 %v10043_v24  ;;  %7377 = vmatprep.subr.bf16.mxu1 %v10045_v25  ;;  %v11734_v60 = vpack.c.bf16 %v261_v58, %v261_v58  ;;  %v10105_v12 = vld [vmem:[%s11662_s6 + $0x284] ss:$20 sps:$4 sm:$0xff]   ;;  %v10108_v13 = vld [vmem:[%s11662_s6 + $0x28c] ss:$20 sps:$4 sm:$0xff]   ;;  %v10114_v19 = vld [vmem:[%s11662_s6 + $0x2b4] ss:$20 sps:$4 sm:$0xff]   ;;  %v11764_v20 = vpack.c.bf16 %v262_v14, %v262_v14 }
  0x69   : > { %v10111_v18 = vld [vmem:[%s11662_s6 + $0x2ac] ss:$20 sps:$4 sm:$0xff]   ;;  %v10109_v21 = vld [vmem:[%s11662_s6 + $0x2a8] ss:$20 sps:$4 sm:$0xff]   ;;  %v10112_v22 = vld [vmem:[%s11662_s6 + $0x2b0] ss:$20 sps:$4 sm:$0xff]  }
  0x6a   : > { %6864 = vmatprep.mubr.bf16.mxu0 %v11734_v60  ;;  %7397 = vmatprep.mubr.bf16.mxu1 %v11734_v60  ;;  %v10117_v23 = vld [vmem:[%s11662_s6 + $0x2d4] ss:$20 sps:$4 sm:$0xff]   ;;  %v10120_v24 = vld [vmem:[%s11662_s6 + $0x2dc] ss:$20 sps:$4 sm:$0xff]   ;;  %v10142_v42 = vld [vmem:[%s11662_s6 + $0x378] ss:$20 sps:$4 sm:$0xff]  }
  0x6b   : > { %6845 = vmatpush1.bf16.msra.mxu0 %v10047_v26  ;;  %7378 = vmatpush1.bf16.msra.mxu1 %v10048_v27  ;;  %v10115_v25 = vld [vmem:[%s11662_s6 + $0x2d0] ss:$20 sps:$4 sm:$0xff]   ;;  %v10118_v26 = vld [vmem:[%s11662_s6 + $0x2d8] ss:$20 sps:$4 sm:$0xff]   ;;  %v10138_v36 = vld [vmem:[%s11662_s6 + $0x354] ss:$20 sps:$4 sm:$0xff]  }
  0x6c   : > { %6846 = vmatprep.subr.bf16.mxu0 %v10049_v28  ;;  %7379 = vmatprep.subr.bf16.mxu1 %v10051_v29  ;;  %v10123_v27 = vld [vmem:[%s11662_s6 + $0x2fc] ss:$20 sps:$4 sm:$0xff]   ;;  %v10126_v28 = vld [vmem:[%s11662_s6 + $0x304] ss:$20 sps:$4 sm:$0xff]   ;;  %v10162_v54 = vld [vmem:[%s11662_s6 + $0x3f4] ss:$20 sps:$4 sm:$0xff]  }
  0x6d   : > { %v10121_v29 = vld [vmem:[%s11662_s6 + $0x2f8] ss:$20 sps:$4 sm:$0xff]   ;;  %v10133_v37 = vld [vmem:[%s11662_s6 + $0x348] ss:$20 sps:$4 sm:$0xff]   ;;  %v10136_v38 = vld [vmem:[%s11662_s6 + $0x350] ss:$20 sps:$4 sm:$0xff]  }
  0x6e   : > { %v10154_v52 = vld [vmem:[%s11662_s6 + $0x3c8] ss:$20 sps:$4 sm:$0xff]   ;;  %v10175_v4 = vld [vmem:[%s11662_s6 + $0x460] ss:$20 sps:$4 sm:$0xff]   ;;  %v10190_v14 = vld [vmem:[%s11662_s6 + $0x4b8] ss:$20 sps:$4 sm:$0xff]  }
  0x6f   : > { %6847 = vmatpush1.bf16.msra.mxu0 %v10053_v30  ;;  %7380 = vmatpush1.bf16.msra.mxu1 %v10054_v31  ;;  %v10124_v30 = vld [vmem:[%s11662_s6 + $0x300] ss:$20 sps:$4 sm:$0xff]   ;;  %v10129_v31 = vld [vmem:[%s11662_s6 + $0x324] ss:$20 sps:$4 sm:$0xff]   ;;  %v10168_v58 = vld [vmem:[%s11662_s6 + $0x41c] ss:$20 sps:$4 sm:$0xff]  }
  0x70   : > { %6848 = vmatprep.subr.bf16.mxu0 %v10055_v32  ;;  %7381 = vmatprep.subr.bf16.mxu1 %v10057_v33  ;;  %v10132_v32 = vld [vmem:[%s11662_s6 + $0x32c] ss:$20 sps:$4 sm:$0xff]   ;;  %s225_s26 = smul.u32 5, %s8546_s16 }
  0x71   : > { %v10127_v33 = vld [vmem:[%s11662_s6 + $0x320] ss:$20 sps:$4 sm:$0xff]  }
  0x72   : > { %p226_p7 = scmp.lt.s32.totalorder %s225_s26, 24 }
  0x73   : > { %6849 = vmatpush1.bf16.msra.mxu0 %v10059_v34  ;;  %7382 = vmatpush1.bf16.msra.mxu1 %v10060_v35  ;;  %v10130_v34 = vld [vmem:[%s11662_s6 + $0x328] ss:$20 sps:$4 sm:$0xff]   ;;  %v10135_v35 = vld [vmem:[%s11662_s6 + $0x34c] ss:$20 sps:$4 sm:$0xff]  }
  0x74   : > { %6850 = vmatprep.subr.bf16.mxu0 %v10061_v39  ;;  %7383 = vmatprep.subr.bf16.mxu1 %v10063_v40  ;;  %v10141_v39 = vld [vmem:[%s11662_s6 + $0x374] ss:$20 sps:$4 sm:$0xff]   ;;  %v10144_v40 = vld [vmem:[%s11662_s6 + $0x37c] ss:$20 sps:$4 sm:$0xff]   ;;  %s12975_s26 = smov (!%p226_p7, %s225_s26), 24 }
  0x75   : > { %s8553_s15 = sshll.u32 %s12975_s26, 1 }
  0x76   : > { %s12940_s5 = scalar_lea.vmem %s12962_s3, %s8553_s15 }
  0x77   : > { %6851 = vmatpush1.bf16.msra.mxu0 %v10065_v41  ;;  %7384 = vmatpush1.bf16.msra.mxu1 %v10066_v44  ;;  %v10139_v41 = vld [vmem:[%s11662_s6 + $0x370] ss:$20 sps:$4 sm:$0xff]  }
  0x78   : > { %6852 = vmatprep.subr.bf16.mxu0 %v10067_v45  ;;  %7385 = vmatprep.subr.bf16.mxu1 %v10069_v46  ;;  %v10147_v44 = vld [vmem:[%s11662_s6 + $0x39c] ss:$20 sps:$4 sm:$0xff]   ;;  %v10150_v45 = vld [vmem:[%s11662_s6 + $0x3a4] ss:$20 sps:$4 sm:$0xff]  }
  0x79   : > { %v10145_v46 = vld [vmem:[%s11662_s6 + $0x398] ss:$20 sps:$4 sm:$0xff]  }
  0x7b   : > { %6853 = vmatpush1.bf16.msra.mxu0 %v10071_v47  ;;  %7386 = vmatpush1.bf16.msra.mxu1 %v10072_v48  ;;  %v10148_v47 = vld [vmem:[%s11662_s6 + $0x3a0] ss:$20 sps:$4 sm:$0xff]   ;;  %v10153_v48 = vld [vmem:[%s11662_s6 + $0x3c4] ss:$20 sps:$4 sm:$0xff]  }
  0x7c   : > { %6854 = vmatprep.subr.bf16.mxu0 %v10073_v50  ;;  %7387 = vmatprep.subr.bf16.mxu1 %v10075_v51  ;;  %v10156_v50 = vld [vmem:[%s11662_s6 + $0x3cc] ss:$20 sps:$4 sm:$0xff]  }
  0x7d   : > { %v10151_v51 = vld [vmem:[%s11662_s6 + $0x3c0] ss:$20 sps:$4 sm:$0xff]  }
  0x7f   : > { %6855 = vmatpush1.bf16.msra.mxu0 %v10077_v53  ;;  %7388 = vmatpush1.bf16.msra.mxu1 %v10078_v55  ;;  %v10159_v53 = vld [vmem:[%s11662_s6 + $0x3ec] ss:$20 sps:$4 sm:$0xff]   ;;  %v10157_v55 = vld [vmem:[%s11662_s6 + $0x3e8] ss:$20 sps:$4 sm:$0xff]  }
  0x80   : > { %6856 = vmatprep.subr.bf16.mxu0 %v10079_v56  ;;  %7389 = vmatprep.subr.bf16.mxu1 %v10081_v57  ;;  %v10160_v56 = vld [vmem:[%s11662_s6 + $0x3f0] ss:$20 sps:$4 sm:$0xff]   ;;  %v10165_v57 = vld [vmem:[%s11662_s6 + $0x414] ss:$20 sps:$4 sm:$0xff]  }
  0x83   : > { %6857 = vmatpush1.bf16.msra.mxu0 %v10083_v59  ;;  %7390 = vmatpush1.bf16.msra.mxu1 %v10084_v61  ;;  %v10163_v59 = vld [vmem:[%s11662_s6 + $0x410] ss:$20 sps:$4 sm:$0xff]   ;;  %v10166_v61 = vld [vmem:[%s11662_s6 + $0x418] ss:$20 sps:$4 sm:$0xff]  }
  0x84   : > { %6858 = vmatprep.subr.bf16.mxu0 %v10085_v62  ;;  %7391 = vmatprep.subr.bf16.mxu1 %v10087_v63  ;;  %v10171_v62 = vld [vmem:[%s11662_s6 + $0x43c] ss:$20 sps:$4 sm:$0xff]   ;;  %v10174_v63 = vld [vmem:[%s11662_s6 + $0x444] ss:$20 sps:$4 sm:$0xff]  }
  0x87   : > { %6859 = vmatpush1.bf16.msra.mxu0 %v10089_v0  ;;  %7392 = vmatpush1.bf16.msra.mxu1 %v10090_v1  ;;  %v10169_v0 = vld [vmem:[%s11662_s6 + $0x438] ss:$20 sps:$4 sm:$0xff]   ;;  %v10172_v1 = vld [vmem:[%s11662_s6 + $0x440] ss:$20 sps:$4 sm:$0xff]  }
  0x88   : > { %6860 = vmatprep.subr.bf16.mxu0 %v10091_v2  ;;  %7393 = vmatprep.subr.bf16.mxu1 %v10093_v3  ;;  %v10177_v2 = vld [vmem:[%s11662_s6 + $0x464] ss:$20 sps:$4 sm:$0xff]   ;;  %v10180_v3 = vld [vmem:[%s11662_s6 + $0x46c] ss:$20 sps:$4 sm:$0xff]  }
  0x8b   : > { %6861 = vmatpush1.bf16.msra.mxu0 %v10095_v5  ;;  %7394 = vmatpush1.bf16.msra.mxu1 %v10096_v6  ;;  %v10178_v5 = vld [vmem:[%s11662_s6 + $0x468] ss:$20 sps:$4 sm:$0xff]   ;;  %v10183_v6 = vld [vmem:[%s11662_s6 + $0x48c] ss:$20 sps:$4 sm:$0xff]  }
  0x8c   : > { %6862 = vmatprep.subr.bf16.mxu0 %v10097_v7  ;;  %7395 = vmatprep.subr.bf16.mxu1 %v10099_v8  ;;  %v10186_v7 = vld [vmem:[%s11662_s6 + $0x494] ss:$20 sps:$4 sm:$0xff]  }
  0x8d   : > { %v10181_v8 = vld [vmem:[%s11662_s6 + $0x488] ss:$20 sps:$4 sm:$0xff]  }
  0x8f   : > { %6863 = vmatpush1.bf16.msra.mxu0 %v10101_v10  ;;  %7396 = vmatpush1.bf16.msra.mxu1 %v10102_v11  ;;  %v10184_v10 = vld [vmem:[%s11662_s6 + $0x490] ss:$20 sps:$4 sm:$0xff]   ;;  %v10189_v11 = vld [vmem:[%s11662_s6 + $0x4b4] ss:$20 sps:$4 sm:$0xff]  }
  0x90   : > { %6873 = vmatprep.subr.bf16.mxu0 %v10105_v12  ;;  %7406 = vmatprep.subr.bf16.mxu1 %v10108_v13  ;;  %v10192_v12 = vld [vmem:[%s11662_s6 + $0x4bc] ss:$20 sps:$4 sm:$0xff]  }
  0x91   : > { %v10187_v13 = vld [vmem:[%s11662_s6 + $0x4b0] ss:$20 sps:$4 sm:$0xff]  }
  0x92   : > { %6865 = vmatmul.mubr.bf16.vlgmr.msra.gmra.mrb[0].mxu0 %v11759_v16  ;;  %7398 = vmatmul.mubr.bf16.vlgmr.msra.gmra.mrb[0].mxu1 %v11759_v16 }
  0x93   : > { %6874 = vmatpush1.bf16.msra.mxu0 %v10103_v15  ;;  %7407 = vmatpush1.bf16.msra.mxu1 %v10106_v17  ;;  %v10195_v15 = vld [vmem:[%s11662_s6 + $0x4dc] ss:$20 sps:$4 sm:$0xff]   ;;  %v10198_v17 = vld [vmem:[%s11662_s6 + $0x4e4] ss:$20 sps:$4 sm:$0xff]  }
  0x94   : > { %6875 = vmatprep.subr.bf16.mxu0 %v10111_v18  ;;  %7408 = vmatprep.subr.bf16.mxu1 %v10114_v19  ;;  %v10193_v18 = vld [vmem:[%s11662_s6 + $0x4d8] ss:$20 sps:$4 sm:$0xff]   ;;  %v10196_v19 = vld [vmem:[%s11662_s6 + $0x4e0] ss:$20 sps:$4 sm:$0xff]  }
  0x95   : > { %6905 = vmatprep.mubr.bf16.mxu0 %v11764_v20  ;;  %7438 = vmatprep.mubr.bf16.mxu1 %v11764_v20 }
  0x97   : > { %6876 = vmatpush1.bf16.msra.mxu0 %v10109_v21  ;;  %7409 = vmatpush1.bf16.msra.mxu1 %v10112_v22  ;;  %v10202_v21 = vld [vmem:[%s11662_s6 + $0x504] ss:$20 sps:$4 sm:$0xff]   ;;  %v10205_v22 = vld [vmem:[%s11662_s6 + $0x50c] ss:$20 sps:$4 sm:$0xff]  }
  0x98   : > { %6877 = vmatprep.subr.bf16.mxu0 %v10117_v23  ;;  %7410 = vmatprep.subr.bf16.mxu1 %v10120_v24  ;;  %v10200_v23 = vld [vmem:[%s11662_s6 + $0x500] ss:$20 sps:$4 sm:$0xff]   ;;  %v11833_v24 = vpack.c.bf16 %v11750_v9, %v11750_v9 }
  0x9b   : > { %6878 = vmatpush1.bf16.msra.mxu0 %v10115_v25  ;;  %7411 = vmatpush1.bf16.msra.mxu1 %v10118_v26  ;;  %v10203_v25 = vld [vmem:[%s11662_s6 + $0x508] ss:$20 sps:$4 sm:$0xff]   ;;  %v11839_v26 = vld [vmem:[%s12959_s0 + $0x8] sm:$0xff] }
  0x9c   : > { %6879 = vmatprep.subr.bf16.mxu0 %v10123_v27  ;;  %7412 = vmatprep.subr.bf16.mxu1 %v10126_v28  ;;  %v10208_v27 = vld [vmem:[%s11662_s6 + $0x52c] ss:$20 sps:$4 sm:$0xff]   ;;  %v10211_v28 = vld [vmem:[%s11662_s6 + $0x534] ss:$20 sps:$4 sm:$0xff]  }
  0x9f   : > { %6880 = vmatpush1.bf16.msra.mxu0 %v10121_v29  ;;  %7413 = vmatpush1.bf16.msra.mxu1 %v10124_v30  ;;  %v11845_v29 = vrot.slane %v11839_v26, %v11721_v49  ;;  %v10206_v30 = vld [vmem:[%s11662_s6 + $0x528] ss:$20 sps:$4 sm:$0xff]  }
  0xa0   : > { %6881 = vmatprep.subr.bf16.mxu0 %v10129_v31  ;;  %7414 = vmatprep.subr.bf16.mxu1 %v10132_v32  ;;  %v10209_v31 = vld [vmem:[%s11662_s6 + $0x530] ss:$20 sps:$4 sm:$0xff]   ;;  %v10214_v32 = vld [vmem:[%s11662_s6 + $0x554] ss:$20 sps:$4 sm:$0xff]  }
  0xa1   : > { %v278_v9 = vcombine.high %v11845_v29, %v11845_v29 }
  0xa3   : > { %6882 = vmatpush1.bf16.msra.mxu0 %v10127_v33  ;;  %7415 = vmatpush1.bf16.msra.mxu1 %v10130_v34  ;;  %v10217_v33 = vld [vmem:[%s11662_s6 + $0x55c] ss:$20 sps:$4 sm:$0xff]   ;;  %v11855_v34 = vpack.c.bf16 %v278_v9, %v278_v9  ;;  %v10287_v9 = vld [vmem:[%s11662_s6 + $0x738] ss:$20 sps:$4 sm:$0xff]  }
  0xa4   : > { %6883 = vmatprep.subr.bf16.mxu0 %v10135_v35  ;;  %7416 = vmatprep.subr.bf16.mxu1 %v10138_v36  ;;  %v10212_v35 = vld [vmem:[%s11662_s6 + $0x550] ss:$20 sps:$4 sm:$0xff]   ;;  %v10215_v36 = vld [vmem:[%s11662_s6 + $0x558] ss:$20 sps:$4 sm:$0xff]  }
  0xa7   : > { %6884 = vmatpush1.bf16.msra.mxu0 %v10133_v37  ;;  %7417 = vmatpush1.bf16.msra.mxu1 %v10136_v38  ;;  %v10220_v37 = vld [vmem:[%s11662_s6 + $0x57c] ss:$20 sps:$4 sm:$0xff]   ;;  %v10223_v38 = vld [vmem:[%s11662_s6 + $0x584] ss:$20 sps:$4 sm:$0xff]  }
  0xa8   : > { %6885 = vmatprep.subr.bf16.mxu0 %v10141_v39  ;;  %7418 = vmatprep.subr.bf16.mxu1 %v10144_v40  ;;  %v10218_v39 = vld [vmem:[%s11662_s6 + $0x578] ss:$20 sps:$4 sm:$0xff]   ;;  %v10221_v40 = vld [vmem:[%s11662_s6 + $0x580] ss:$20 sps:$4 sm:$0xff]  }
  0xab   : > { %6886 = vmatpush1.bf16.msra.mxu0 %v10139_v41  ;;  %7419 = vmatpush1.bf16.msra.mxu1 %v10142_v42  ;;  %v10226_v41 = vld [vmem:[%s11662_s6 + $0x5a4] ss:$20 sps:$4 sm:$0xff]   ;;  %v10229_v42 = vld [vmem:[%s11662_s6 + $0x5ac] ss:$20 sps:$4 sm:$0xff]  }
  0xac   : > { %6887 = vmatprep.subr.bf16.mxu0 %v10147_v44  ;;  %7420 = vmatprep.subr.bf16.mxu1 %v10150_v45  ;;  %v10224_v44 = vld [vmem:[%s11662_s6 + $0x5a0] ss:$20 sps:$4 sm:$0xff]   ;;  %v10227_v45 = vld [vmem:[%s11662_s6 + $0x5a8] ss:$20 sps:$4 sm:$0xff]  }
  0xaf   : > { %6888 = vmatpush1.bf16.msra.mxu0 %v10145_v46  ;;  %7421 = vmatpush1.bf16.msra.mxu1 %v10148_v47  ;;  %v10232_v46 = vld [vmem:[%s11662_s6 + $0x5cc] ss:$20 sps:$4 sm:$0xff]   ;;  %v10235_v47 = vld [vmem:[%s11662_s6 + $0x5d4] ss:$20 sps:$4 sm:$0xff]  }
  0xb0   : > { %6889 = vmatprep.subr.bf16.mxu0 %v10153_v48  ;;  %7422 = vmatprep.subr.bf16.mxu1 %v10156_v50  ;;  %v10230_v48 = vld [vmem:[%s11662_s6 + $0x5c8] ss:$20 sps:$4 sm:$0xff]   ;;  %v10233_v50 = vld [vmem:[%s11662_s6 + $0x5d0] ss:$20 sps:$4 sm:$0xff]  }
  0xb3   : > { %6890 = vmatpush1.bf16.msra.mxu0 %v10151_v51  ;;  %7423 = vmatpush1.bf16.msra.mxu1 %v10154_v52  ;;  %v10238_v51 = vld [vmem:[%s11662_s6 + $0x5f4] ss:$20 sps:$4 sm:$0xff]   ;;  %v10241_v52 = vld [vmem:[%s11662_s6 + $0x5fc] ss:$20 sps:$4 sm:$0xff]  }
  0xb4   : > { %6891 = vmatprep.subr.bf16.mxu0 %v10159_v53  ;;  %7424 = vmatprep.subr.bf16.mxu1 %v10162_v54  ;;  %v10236_v53 = vld [vmem:[%s11662_s6 + $0x5f0] ss:$20 sps:$4 sm:$0xff]   ;;  %v10239_v54 = vld [vmem:[%s11662_s6 + $0x5f8] ss:$20 sps:$4 sm:$0xff]  }
  0xb7   : > { %6892 = vmatpush1.bf16.msra.mxu0 %v10157_v55  ;;  %7425 = vmatpush1.bf16.msra.mxu1 %v10160_v56  ;;  %v10244_v55 = vld [vmem:[%s11662_s6 + $0x61c] ss:$20 sps:$4 sm:$0xff]   ;;  %v10247_v56 = vld [vmem:[%s11662_s6 + $0x624] ss:$20 sps:$4 sm:$0xff]  }
  0xb8   : > { %6893 = vmatprep.subr.bf16.mxu0 %v10165_v57  ;;  %7426 = vmatprep.subr.bf16.mxu1 %v10168_v58  ;;  %v10242_v57 = vld [vmem:[%s11662_s6 + $0x618] ss:$20 sps:$4 sm:$0xff]   ;;  %v10245_v58 = vld [vmem:[%s11662_s6 + $0x620] ss:$20 sps:$4 sm:$0xff]  }
  0xbb   : > { %6894 = vmatpush1.bf16.msra.mxu0 %v10163_v59  ;;  %7427 = vmatpush1.bf16.msra.mxu1 %v10166_v61  ;;  %v10250_v59 = vld [vmem:[%s11662_s6 + $0x644] ss:$20 sps:$4 sm:$0xff]   ;;  %v10253_v61 = vld [vmem:[%s11662_s6 + $0x64c] ss:$20 sps:$4 sm:$0xff]  }
  0xbc   : > { %6895 = vmatprep.subr.bf16.mxu0 %v10171_v62  ;;  %7428 = vmatprep.subr.bf16.mxu1 %v10174_v63  ;;  %v10248_v62 = vld [vmem:[%s11662_s6 + $0x640] ss:$20 sps:$4 sm:$0xff]   ;;  %v10251_v63 = vld [vmem:[%s11662_s6 + $0x648] ss:$20 sps:$4 sm:$0xff]  }
  0xbf   : > { %6896 = vmatpush1.bf16.msra.mxu0 %v10169_v0  ;;  %7429 = vmatpush1.bf16.msra.mxu1 %v10172_v1  ;;  %v10256_v0 = vld [vmem:[%s11662_s6 + $0x66c] ss:$20 sps:$4 sm:$0xff]   ;;  %v10259_v1 = vld [vmem:[%s11662_s6 + $0x674] ss:$20 sps:$4 sm:$0xff]  }
  0xc0   : > { %6897 = vmatprep.subr.bf16.mxu0 %v10177_v2  ;;  %7430 = vmatprep.subr.bf16.mxu1 %v10180_v3  ;;  %v10254_v2 = vld [vmem:[%s11662_s6 + $0x668] ss:$20 sps:$4 sm:$0xff]   ;;  %v10257_v3 = vld [vmem:[%s11662_s6 + $0x670] ss:$20 sps:$4 sm:$0xff]  }
  0xc3   : > { %6898 = vmatpush1.bf16.msra.mxu0 %v10175_v4  ;;  %7431 = vmatpush1.bf16.msra.mxu1 %v10178_v5  ;;  %v10262_v4 = vld [vmem:[%s11662_s6 + $0x694] ss:$20 sps:$4 sm:$0xff]   ;;  %v10265_v5 = vld [vmem:[%s11662_s6 + $0x69c] ss:$20 sps:$4 sm:$0xff]  }
  0xc4   : > { %6899 = vmatprep.subr.bf16.mxu0 %v10183_v6  ;;  %7432 = vmatprep.subr.bf16.mxu1 %v10186_v7  ;;  %v10260_v6 = vld [vmem:[%s11662_s6 + $0x690] ss:$20 sps:$4 sm:$0xff]   ;;  %v10263_v7 = vld [vmem:[%s11662_s6 + $0x698] ss:$20 sps:$4 sm:$0xff]  }
  0xc7   : > { %6900 = vmatpush1.bf16.msra.mxu0 %v10181_v8  ;;  %7433 = vmatpush1.bf16.msra.mxu1 %v10184_v10  ;;  %v10268_v8 = vld [vmem:[%s11662_s6 + $0x6bc] ss:$20 sps:$4 sm:$0xff]   ;;  %v10271_v10 = vld [vmem:[%s11662_s6 + $0x6c4] ss:$20 sps:$4 sm:$0xff]  }
  0xc8   : > { %6901 = vmatprep.subr.bf16.mxu0 %v10189_v11  ;;  %7434 = vmatprep.subr.bf16.mxu1 %v10192_v12  ;;  %v10266_v11 = vld [vmem:[%s11662_s6 + $0x6b8] ss:$20 sps:$4 sm:$0xff]   ;;  %v10269_v12 = vld [vmem:[%s11662_s6 + $0x6c0] ss:$20 sps:$4 sm:$0xff]  }
  0xcb   : > { %6902 = vmatpush1.bf16.msra.mxu0 %v10187_v13  ;;  %7435 = vmatpush1.bf16.msra.mxu1 %v10190_v14  ;;  %v10274_v13 = vld [vmem:[%s11662_s6 + $0x6e4] ss:$20 sps:$4 sm:$0xff]   ;;  %v10277_v14 = vld [vmem:[%s11662_s6 + $0x6ec] ss:$20 sps:$4 sm:$0xff]  }
  0xcc   : > { %6903 = vmatprep.subr.bf16.mxu0 %v10195_v15  ;;  %7436 = vmatprep.subr.bf16.mxu1 %v10198_v17  ;;  %v10272_v15 = vld [vmem:[%s11662_s6 + $0x6e0] ss:$20 sps:$4 sm:$0xff]   ;;  %v10275_v17 = vld [vmem:[%s11662_s6 + $0x6e8] ss:$20 sps:$4 sm:$0xff]  }
  0xcf   : > { %6904 = vmatpush1.bf16.msra.mxu0 %v10193_v18  ;;  %7437 = vmatpush1.bf16.msra.mxu1 %v10196_v19  ;;  %v10280_v18 = vld [vmem:[%s11662_s6 + $0x70c] ss:$20 sps:$4 sm:$0xff]   ;;  %v10283_v19 = vld [vmem:[%s11662_s6 + $0x714] ss:$20 sps:$4 sm:$0xff]  }
  0xd0   : > { %6914 = vmatprep.subr.bf16.mxu0 %v10202_v21  ;;  %7447 = vmatprep.subr.bf16.mxu1 %v10205_v22  ;;  %v10278_v21 = vld [vmem:[%s11662_s6 + $0x708] ss:$20 sps:$4 sm:$0xff]   ;;  %v10281_v22 = vld [vmem:[%s11662_s6 + $0x710] ss:$20 sps:$4 sm:$0xff]  }
  0xd2   : > { %6906 = vmatmul.mubr.bf16.vlgmr.msra.gmra.mrb[0].mxu0 %v11833_v24  ;;  %7439 = vmatmul.mubr.bf16.vlgmr.msra.gmra.mrb[0].mxu1 %v11833_v24 }
  0xd3   : > { %6915 = vmatpush1.bf16.msra.mxu0 %v10200_v23  ;;  %7448 = vmatpush1.bf16.msra.mxu1 %v10203_v25  ;;  %v10286_v23 = vld [vmem:[%s11662_s6 + $0x734] ss:$20 sps:$4 sm:$0xff]   ;;  %v10289_v25 = vld [vmem:[%s11662_s6 + $0x73c] ss:$20 sps:$4 sm:$0xff]  }
  0xd4   : > { %6916 = vmatprep.subr.bf16.mxu0 %v10208_v27  ;;  %7449 = vmatprep.subr.bf16.mxu1 %v10211_v28  ;;  %v263_v27 = vcombine.high %v11839_v26, %v11839_v26  ;;  %v10284_v28 = vld [vmem:[%s11662_s6 + $0x730] ss:$20 sps:$4 sm:$0xff]   ;;  %v10290_v26 = vld [vmem:[%s11662_s6 + $0x758] ss:$20 sps:$4 sm:$0xff]  }
  0xd5   : > { %6946 = vmatprep.mubr.bf16.mxu0 %v11855_v34  ;;  %7479 = vmatprep.mubr.bf16.mxu1 %v11855_v34 }
  0xd7   : > { %6917 = vmatpush1.bf16.msra.mxu0 %v10206_v30  ;;  %7450 = vmatpush1.bf16.msra.mxu1 %v10209_v31  ;;  %v10292_v30 = vld [vmem:[%s11662_s6 + $0x75c] ss:$20 sps:$4 sm:$0xff]   ;;  %v10295_v31 = vld [vmem:[%s11662_s6 + $0x764] ss:$20 sps:$4 sm:$0xff]  }
  0xd8   : > { %6918 = vmatprep.subr.bf16.mxu0 %v10214_v32  ;;  %7451 = vmatprep.subr.bf16.mxu1 %v10217_v33  ;;  %v11914_v32 = vrot.slane %v263_v27, %v11721_v49  ;;  %v10293_v33 = vld [vmem:[%s11662_s6 + $0x760] ss:$20 sps:$4 sm:$0xff]   ;;  %v10362_v27 = vld [vmem:[%s11662_s6 + $0x938] ss:$20 sps:$4 sm:$0xff]  }
  0xdb   : > { %6919 = vmatpush1.bf16.msra.mxu0 %v10212_v35  ;;  %7452 = vmatpush1.bf16.msra.mxu1 %v10215_v36  ;;  %v10298_v35 = vld [vmem:[%s11662_s6 + $0x784] ss:$20 sps:$4 sm:$0xff]   ;;  %v10301_v36 = vld [vmem:[%s11662_s6 + $0x78c] ss:$20 sps:$4 sm:$0xff]  }
  0xdc   : > { %6920 = vmatprep.subr.bf16.mxu0 %v10220_v37  ;;  %7453 = vmatprep.subr.bf16.mxu1 %v10223_v38  ;;  %v279_v37 = vcombine.high %v11914_v32, %v11914_v32  ;;  %v11924_v38 = vpack.c.bf16 %v11845_v29, %v11845_v29  ;;  %v10302_v29 = vld [vmem:[%s11662_s6 + $0x7a8] ss:$20 sps:$4 sm:$0xff]  }
  0xdf   : > { %6921 = vmatpush1.bf16.msra.mxu0 %v10218_v39  ;;  %7454 = vmatpush1.bf16.msra.mxu1 %v10221_v40  ;;  %v10296_v39 = vld [vmem:[%s11662_s6 + $0x780] ss:$20 sps:$4 sm:$0xff]   ;;  %v10299_v40 = vld [vmem:[%s11662_s6 + $0x788] ss:$20 sps:$4 sm:$0xff]  }
  0xe0   : > { %6922 = vmatprep.subr.bf16.mxu0 %v10226_v41  ;;  %7455 = vmatprep.subr.bf16.mxu1 %v10229_v42  ;;  %v10304_v41 = vld [vmem:[%s11662_s6 + $0x7ac] ss:$20 sps:$4 sm:$0xff]   ;;  %v10307_v42 = vld [vmem:[%s11662_s6 + $0x7b4] ss:$20 sps:$4 sm:$0xff]  }
  0xe3   : > { %6923 = vmatpush1.bf16.msra.mxu0 %v10224_v44  ;;  %7456 = vmatpush1.bf16.msra.mxu1 %v10227_v45  ;;  %v11930_v44 = vpack.c.bf16 %v279_v37, %v279_v37  ;;  %v10305_v45 = vld [vmem:[%s11662_s6 + $0x7b0] ss:$20 sps:$4 sm:$0xff]  }
  0xe4   : > { %6924 = vmatprep.subr.bf16.mxu0 %v10232_v46  ;;  %7457 = vmatprep.subr.bf16.mxu1 %v10235_v47  ;;  %v10310_v46 = vld [vmem:[%s11662_s6 + $0x7d4] ss:$20 sps:$4 sm:$0xff]   ;;  %v10313_v47 = vld [vmem:[%s11662_s6 + $0x7dc] ss:$20 sps:$4 sm:$0xff]  }
  0xe5   : > { %v10377_v37 = vld [vmem:[%s11662_s6 + $0x990] ss:$20 sps:$4 sm:$0xff]  }
  0xe7   : > { %6925 = vmatpush1.bf16.msra.mxu0 %v10230_v48  ;;  %7458 = vmatpush1.bf16.msra.mxu1 %v10233_v50  ;;  %v10308_v48 = vld [vmem:[%s11662_s6 + $0x7d0] ss:$20 sps:$4 sm:$0xff]   ;;  %v10311_v50 = vld [vmem:[%s11662_s6 + $0x7d8] ss:$20 sps:$4 sm:$0xff]  }
  0xe8   : > { %6926 = vmatprep.subr.bf16.mxu0 %v10238_v51  ;;  %7459 = vmatprep.subr.bf16.mxu1 %v10241_v52  ;;  %v10316_v51 = vld [vmem:[%s11662_s6 + $0x7fc] ss:$20 sps:$4 sm:$0xff]   ;;  %v10319_v52 = vld [vmem:[%s11662_s6 + $0x804] ss:$20 sps:$4 sm:$0xff]  }
  0xeb   : > { %6927 = vmatpush1.bf16.msra.mxu0 %v10236_v53  ;;  %7460 = vmatpush1.bf16.msra.mxu1 %v10239_v54  ;;  %v10314_v53 = vld [vmem:[%s11662_s6 + $0x7f8] ss:$20 sps:$4 sm:$0xff]   ;;  %v10317_v54 = vld [vmem:[%s11662_s6 + $0x800] ss:$20 sps:$4 sm:$0xff]  }
  0xec   : > { %6928 = vmatprep.subr.bf16.mxu0 %v10244_v55  ;;  %7461 = vmatprep.subr.bf16.mxu1 %v10247_v56  ;;  %v10322_v55 = vld [vmem:[%s11662_s6 + $0x824] ss:$20 sps:$4 sm:$0xff]   ;;  %v10325_v56 = vld [vmem:[%s11662_s6 + $0x82c] ss:$20 sps:$4 sm:$0xff]  }
  0xef   : > { %6929 = vmatpush1.bf16.msra.mxu0 %v10242_v57  ;;  %7462 = vmatpush1.bf16.msra.mxu1 %v10245_v58  ;;  %v10320_v57 = vld [vmem:[%s11662_s6 + $0x820] ss:$20 sps:$4 sm:$0xff]   ;;  %v10323_v58 = vld [vmem:[%s11662_s6 + $0x828] ss:$20 sps:$4 sm:$0xff]  }
  0xf0   : > { %6930 = vmatprep.subr.bf16.mxu0 %v10250_v59  ;;  %7463 = vmatprep.subr.bf16.mxu1 %v10253_v61  ;;  %v10328_v59 = vld [vmem:[%s11662_s6 + $0x84c] ss:$20 sps:$4 sm:$0xff]   ;;  %v10331_v61 = vld [vmem:[%s11662_s6 + $0x854] ss:$20 sps:$4 sm:$0xff]  }
  0xf3   : > { %6931 = vmatpush1.bf16.msra.mxu0 %v10248_v62  ;;  %7464 = vmatpush1.bf16.msra.mxu1 %v10251_v63  ;;  %v10326_v62 = vld [vmem:[%s11662_s6 + $0x848] ss:$20 sps:$4 sm:$0xff]   ;;  %v10329_v63 = vld [vmem:[%s11662_s6 + $0x850] ss:$20 sps:$4 sm:$0xff]  }
  0xf4   : > { %6932 = vmatprep.subr.bf16.mxu0 %v10256_v0  ;;  %7465 = vmatprep.subr.bf16.mxu1 %v10259_v1  ;;  %v10334_v0 = vld [vmem:[%s11662_s6 + $0x874] ss:$20 sps:$4 sm:$0xff]   ;;  %v10337_v1 = vld [vmem:[%s11662_s6 + $0x87c] ss:$20 sps:$4 sm:$0xff]  }
  0xf7   : > { %6933 = vmatpush1.bf16.msra.mxu0 %v10254_v2  ;;  %7466 = vmatpush1.bf16.msra.mxu1 %v10257_v3  ;;  %v10332_v2 = vld [vmem:[%s11662_s6 + $0x870] ss:$20 sps:$4 sm:$0xff]   ;;  %v10335_v3 = vld [vmem:[%s11662_s6 + $0x878] ss:$20 sps:$4 sm:$0xff]  }
  0xf8   : > { %6934 = vmatprep.subr.bf16.mxu0 %v10262_v4  ;;  %7467 = vmatprep.subr.bf16.mxu1 %v10265_v5  ;;  %v10340_v4 = vld [vmem:[%s11662_s6 + $0x89c] ss:$20 sps:$4 sm:$0xff]   ;;  %v10343_v5 = vld [vmem:[%s11662_s6 + $0x8a4] ss:$20 sps:$4 sm:$0xff]  }
  0xfb   : > { %6935 = vmatpush1.bf16.msra.mxu0 %v10260_v6  ;;  %7468 = vmatpush1.bf16.msra.mxu1 %v10263_v7  ;;  %v10338_v6 = vld [vmem:[%s11662_s6 + $0x898] ss:$20 sps:$4 sm:$0xff]   ;;  %v10341_v7 = vld [vmem:[%s11662_s6 + $0x8a0] ss:$20 sps:$4 sm:$0xff]  }
  0xfc   : > { %6936 = vmatprep.subr.bf16.mxu0 %v10268_v8  ;;  %7469 = vmatprep.subr.bf16.mxu1 %v10271_v10  ;;  %v10346_v8 = vld [vmem:[%s11662_s6 + $0x8c4] ss:$20 sps:$4 sm:$0xff]   ;;  %v10349_v10 = vld [vmem:[%s11662_s6 + $0x8cc] ss:$20 sps:$4 sm:$0xff]  }
  0xff   : > { %6937 = vmatpush1.bf16.msra.mxu0 %v10266_v11  ;;  %7470 = vmatpush1.bf16.msra.mxu1 %v10269_v12  ;;  %v10344_v11 = vld [vmem:[%s11662_s6 + $0x8c0] ss:$20 sps:$4 sm:$0xff]   ;;  %v10347_v12 = vld [vmem:[%s11662_s6 + $0x8c8] ss:$20 sps:$4 sm:$0xff]  }
 0x100   : > { %6938 = vmatprep.subr.bf16.mxu0 %v10274_v13  ;;  %7471 = vmatprep.subr.bf16.mxu1 %v10277_v14  ;;  %v10352_v13 = vld [vmem:[%s11662_s6 + $0x8ec] ss:$20 sps:$4 sm:$0xff]   ;;  %v10355_v14 = vld [vmem:[%s11662_s6 + $0x8f4] ss:$20 sps:$4 sm:$0xff]  }
 0x103   : > { %6939 = vmatpush1.bf16.msra.mxu0 %v10272_v15  ;;  %7472 = vmatpush1.bf16.msra.mxu1 %v10275_v17  ;;  %v10350_v15 = vld [vmem:[%s11662_s6 + $0x8e8] ss:$20 sps:$4 sm:$0xff]   ;;  %v10353_v17 = vld [vmem:[%s11662_s6 + $0x8f0] ss:$20 sps:$4 sm:$0xff]  }
 0x104   : > { %6940 = vmatprep.subr.bf16.mxu0 %v10280_v18  ;;  %7473 = vmatprep.subr.bf16.mxu1 %v10283_v19  ;;  %v10358_v18 = vld [vmem:[%s11662_s6 + $0x914] ss:$20 sps:$4 sm:$0xff]   ;;  %v10361_v19 = vld [vmem:[%s11662_s6 + $0x91c] ss:$20 sps:$4 sm:$0xff]  }
 0x107   : > { %6941 = vmatpush1.bf16.msra.mxu0 %v10278_v21  ;;  %7474 = vmatpush1.bf16.msra.mxu1 %v10281_v22  ;;  %v10356_v21 = vld [vmem:[%s11662_s6 + $0x910] ss:$20 sps:$4 sm:$0xff]   ;;  %v10359_v22 = vld [vmem:[%s11662_s6 + $0x918] ss:$20 sps:$4 sm:$0xff]  }
 0x108   : > { %6942 = vmatprep.subr.bf16.mxu0 %v10286_v23  ;;  %7475 = vmatprep.subr.bf16.mxu1 %v10289_v25  ;;  %v10364_v23 = vld [vmem:[%s11662_s6 + $0x93c] ss:$20 sps:$4 sm:$0xff]   ;;  %v10367_v25 = vld [vmem:[%s11662_s6 + $0x944] ss:$20 sps:$4 sm:$0xff]  }
 0x10b   : > { %6943 = vmatpush1.bf16.msra.mxu0 %v10284_v28  ;;  %7476 = vmatpush1.bf16.msra.mxu1 %v10287_v9  ;;  %v10365_v28 = vld [vmem:[%s11662_s6 + $0x940] ss:$20 sps:$4 sm:$0xff]   ;;  %v10370_v9 = vld [vmem:[%s11662_s6 + $0x964] ss:$20 sps:$4 sm:$0xff]  }
 0x10c   : > { %6944 = vmatprep.subr.bf16.mxu0 %v10292_v30  ;;  %7477 = vmatprep.subr.bf16.mxu1 %v10295_v31  ;;  %v10373_v30 = vld [vmem:[%s11662_s6 + $0x96c] ss:$20 sps:$4 sm:$0xff]  }
 0x10d   : > { %v10368_v31 = vld [vmem:[%s11662_s6 + $0x960] ss:$20 sps:$4 sm:$0xff]  }
 0x10f   : > { %6945 = vmatpush1.bf16.msra.mxu0 %v10290_v26  ;;  %7478 = vmatpush1.bf16.msra.mxu1 %v10293_v33  ;;  %v10371_v26 = vld [vmem:[%s11662_s6 + $0x968] ss:$20 sps:$4 sm:$0xff]   ;;  %v10376_v33 = vld [vmem:[%s11662_s6 + $0x98c] ss:$20 sps:$4 sm:$0xff]  }
 0x110   : > { %6955 = vmatprep.subr.bf16.mxu0 %v10298_v35  ;;  %7488 = vmatprep.subr.bf16.mxu1 %v10301_v36  ;;  %v10379_v35 = vld [vmem:[%s11662_s6 + $0x994] ss:$20 sps:$4 sm:$0xff]  }
 0x111   : > { %v10374_v36 = vld [vmem:[%s11662_s6 + $0x988] ss:$20 sps:$4 sm:$0xff]  }
 0x112   : > { %6947 = vmatmul.mubr.bf16.vlgmr.msra.gmra.mrb[0].mxu0 %v11924_v38  ;;  %7480 = vmatmul.mubr.bf16.vlgmr.msra.gmra.mrb[0].mxu1 %v11924_v38 }
 0x113   : > { %6956 = vmatpush1.bf16.msra.mxu0 %v10296_v39  ;;  %7489 = vmatpush1.bf16.msra.mxu1 %v10299_v40  ;;  %v10382_v39 = vld [vmem:[%s11662_s6 + $0x9b4] ss:$20 sps:$4 sm:$0xff]   ;;  %v10385_v40 = vld [vmem:[%s11662_s6 + $0x9bc] ss:$20 sps:$4 sm:$0xff]  }
 0x114   : > { %6957 = vmatprep.subr.bf16.mxu0 %v10304_v41  ;;  %7490 = vmatprep.subr.bf16.mxu1 %v10307_v42  ;;  %v10380_v41 = vld [vmem:[%s11662_s6 + $0x9b0] ss:$20 sps:$4 sm:$0xff]   ;;  %v11992_v42 = vld [vmem:[%s12959_s0 + $0x10] sm:$0xff] }
 0x115   : > { %6987 = vmatprep.mubr.bf16.mxu0 %v11930_v44  ;;  %7520 = vmatprep.mubr.bf16.mxu1 %v11930_v44 }
 0x117   : > { %6958 = vmatpush1.bf16.msra.mxu0 %v10302_v29  ;;  %7491 = vmatpush1.bf16.msra.mxu1 %v10305_v45  ;;  %v10383_v29 = vld [vmem:[%s11662_s6 + $0x9b8] ss:$20 sps:$4 sm:$0xff]   ;;  %v10388_v45 = vld [vmem:[%s11662_s6 + $0x9dc] ss:$20 sps:$4 sm:$0xff]  }
 0x118   : > { %6959 = vmatprep.subr.bf16.mxu0 %v10310_v46  ;;  %7492 = vmatprep.subr.bf16.mxu1 %v10313_v47  ;;  %v10391_v46 = vld [vmem:[%s11662_s6 + $0x9e4] ss:$20 sps:$4 sm:$0xff]   ;;  %v11999_v47 = vrot.slane %v11992_v42, %v11721_v49 }
 0x11b   : > { %6960 = vmatpush1.bf16.msra.mxu0 %v10308_v48  ;;  %7493 = vmatpush1.bf16.msra.mxu1 %v10311_v50  ;;  %v10386_v48 = vld [vmem:[%s11662_s6 + $0x9d8] ss:$20 sps:$4 sm:$0xff]   ;;  %v10389_v50 = vld [vmem:[%s11662_s6 + $0x9e0] ss:$20 sps:$4 sm:$0xff]  }
 0x11c   : > { %6961 = vmatprep.subr.bf16.mxu0 %v10316_v51  ;;  %7494 = vmatprep.subr.bf16.mxu1 %v10319_v52  ;;  %v10395_v51 = vld [vmem:[%s11662_s6 + $0xa04] ss:$20 sps:$4 sm:$0xff]   ;;  %v10398_v52 = vld [vmem:[%s11662_s6 + $0xa0c] ss:$20 sps:$4 sm:$0xff]  }
 0x11f   : > { %6962 = vmatpush1.bf16.msra.mxu0 %v10314_v53  ;;  %7495 = vmatpush1.bf16.msra.mxu1 %v10317_v54  ;;  %v295_v53 = vcombine.high %v11999_v47, %v11999_v47  ;;  %v10393_v54 = vld [vmem:[%s11662_s6 + $0xa00] ss:$20 sps:$4 sm:$0xff]  }
 0x120   : > { %6963 = vmatprep.subr.bf16.mxu0 %v10322_v55  ;;  %7496 = vmatprep.subr.bf16.mxu1 %v10325_v56  ;;  %v12010_v55 = vpack.c.bf16 %v11914_v32, %v11914_v32  ;;  %v10396_v56 = vld [vmem:[%s11662_s6 + $0xa08] ss:$20 sps:$4 sm:$0xff]   ;;  %v10402_v32 = vld [vmem:[%s11662_s6 + $0xa30] ss:$20 sps:$4 sm:$0xff]  }
 0x123   : > { %6964 = vmatpush1.bf16.msra.mxu0 %v10320_v57  ;;  %7497 = vmatpush1.bf16.msra.mxu1 %v10323_v58  ;;  %v10401_v57 = vld [vmem:[%s11662_s6 + $0xa2c] ss:$20 sps:$4 sm:$0xff]   ;;  %v10404_v58 = vld [vmem:[%s11662_s6 + $0xa34] ss:$20 sps:$4 sm:$0xff]  }
 0x124   : > { %6965 = vmatprep.subr.bf16.mxu0 %v10328_v59  ;;  %7498 = vmatprep.subr.bf16.mxu1 %v10331_v61  ;;  %v12015_v59 = vpack.c.bf16 %v295_v53, %v295_v53  ;;  %v10399_v61 = vld [vmem:[%s11662_s6 + $0xa28] ss:$20 sps:$4 sm:$0xff]   ;;  %v10473_v53 = vld [vmem:[%s11662_s6 + $0xc0c] ss:$20 sps:$4 sm:$0xff]  }
 0x127   : > { %6966 = vmatpush1.bf16.msra.mxu0 %v10326_v62  ;;  %7499 = vmatpush1.bf16.msra.mxu1 %v10329_v63  ;;  %v10407_v62 = vld [vmem:[%s11662_s6 + $0xa54] ss:$20 sps:$4 sm:$0xff]   ;;  %v10410_v63 = vld [vmem:[%s11662_s6 + $0xa5c] ss:$20 sps:$4 sm:$0xff]  }
 0x128   : > { %6967 = vmatprep.subr.bf16.mxu0 %v10334_v0  ;;  %7500 = vmatprep.subr.bf16.mxu1 %v10337_v1  ;;  %v10405_v0 = vld [vmem:[%s11662_s6 + $0xa50] ss:$20 sps:$4 sm:$0xff]   ;;  %v10408_v1 = vld [vmem:[%s11662_s6 + $0xa58] ss:$20 sps:$4 sm:$0xff]  }
 0x12b   : > { %6968 = vmatpush1.bf16.msra.mxu0 %v10332_v2  ;;  %7501 = vmatpush1.bf16.msra.mxu1 %v10335_v3  ;;  %v10413_v2 = vld [vmem:[%s11662_s6 + $0xa7c] ss:$20 sps:$4 sm:$0xff]   ;;  %v10416_v3 = vld [vmem:[%s11662_s6 + $0xa84] ss:$20 sps:$4 sm:$0xff]  }
 0x12c   : > { %6969 = vmatprep.subr.bf16.mxu0 %v10340_v4  ;;  %7502 = vmatprep.subr.bf16.mxu1 %v10343_v5  ;;  %v10411_v4 = vld [vmem:[%s11662_s6 + $0xa78] ss:$20 sps:$4 sm:$0xff]   ;;  %v10414_v5 = vld [vmem:[%s11662_s6 + $0xa80] ss:$20 sps:$4 sm:$0xff]  }
 0x12f   : > { %6970 = vmatpush1.bf16.msra.mxu0 %v10338_v6  ;;  %7503 = vmatpush1.bf16.msra.mxu1 %v10341_v7  ;;  %v10419_v6 = vld [vmem:[%s11662_s6 + $0xaa4] ss:$20 sps:$4 sm:$0xff]   ;;  %v10422_v7 = vld [vmem:[%s11662_s6 + $0xaac] ss:$20 sps:$4 sm:$0xff]  }
 0x130   : > { %6971 = vmatprep.subr.bf16.mxu0 %v10346_v8  ;;  %7504 = vmatprep.subr.bf16.mxu1 %v10349_v10  ;;  %v10417_v8 = vld [vmem:[%s11662_s6 + $0xaa0] ss:$20 sps:$4 sm:$0xff]   ;;  %v10420_v10 = vld [vmem:[%s11662_s6 + $0xaa8] ss:$20 sps:$4 sm:$0xff]  }
 0x133   : > { %6972 = vmatpush1.bf16.msra.mxu0 %v10344_v11  ;;  %7505 = vmatpush1.bf16.msra.mxu1 %v10347_v12  ;;  %v10425_v11 = vld [vmem:[%s11662_s6 + $0xacc] ss:$20 sps:$4 sm:$0xff]   ;;  %v10428_v12 = vld [vmem:[%s11662_s6 + $0xad4] ss:$20 sps:$4 sm:$0xff]  }
 0x134   : > { %6973 = vmatprep.subr.bf16.mxu0 %v10352_v13  ;;  %7506 = vmatprep.subr.bf16.mxu1 %v10355_v14  ;;  %v10423_v13 = vld [vmem:[%s11662_s6 + $0xac8] ss:$20 sps:$4 sm:$0xff]   ;;  %v10426_v14 = vld [vmem:[%s11662_s6 + $0xad0] ss:$20 sps:$4 sm:$0xff]  }
 0x137   : > { %6974 = vmatpush1.bf16.msra.mxu0 %v10350_v15  ;;  %7507 = vmatpush1.bf16.msra.mxu1 %v10353_v17  ;;  %v10431_v15 = vld [vmem:[%s11662_s6 + $0xaf4] ss:$20 sps:$4 sm:$0xff]   ;;  %v10434_v17 = vld [vmem:[%s11662_s6 + $0xafc] ss:$20 sps:$4 sm:$0xff]  }
 0x138   : > { %6975 = vmatprep.subr.bf16.mxu0 %v10358_v18  ;;  %7508 = vmatprep.subr.bf16.mxu1 %v10361_v19  ;;  %v10429_v18 = vld [vmem:[%s11662_s6 + $0xaf0] ss:$20 sps:$4 sm:$0xff]   ;;  %v10432_v19 = vld [vmem:[%s11662_s6 + $0xaf8] ss:$20 sps:$4 sm:$0xff]  }
 0x13b   : > { %6976 = vmatpush1.bf16.msra.mxu0 %v10356_v21  ;;  %7509 = vmatpush1.bf16.msra.mxu1 %v10359_v22  ;;  %v10437_v21 = vld [vmem:[%s11662_s6 + $0xb1c] ss:$20 sps:$4 sm:$0xff]   ;;  %v10440_v22 = vld [vmem:[%s11662_s6 + $0xb24] ss:$20 sps:$4 sm:$0xff]  }
 0x13c   : > { %6977 = vmatprep.subr.bf16.mxu0 %v10364_v23  ;;  %7510 = vmatprep.subr.bf16.mxu1 %v10367_v25  ;;  %v10435_v23 = vld [vmem:[%s11662_s6 + $0xb18] ss:$20 sps:$4 sm:$0xff]   ;;  %v10438_v25 = vld [vmem:[%s11662_s6 + $0xb20] ss:$20 sps:$4 sm:$0xff]  }
 0x13f   : > { %6978 = vmatpush1.bf16.msra.mxu0 %v10362_v27  ;;  %7511 = vmatpush1.bf16.msra.mxu1 %v10365_v28  ;;  %v10443_v27 = vld [vmem:[%s11662_s6 + $0xb44] ss:$20 sps:$4 sm:$0xff]   ;;  %v10446_v28 = vld [vmem:[%s11662_s6 + $0xb4c] ss:$20 sps:$4 sm:$0xff]  }
 0x140   : > { %6979 = vmatprep.subr.bf16.mxu0 %v10370_v9  ;;  %7512 = vmatprep.subr.bf16.mxu1 %v10373_v30  ;;  %v10441_v9 = vld [vmem:[%s11662_s6 + $0xb40] ss:$20 sps:$4 sm:$0xff]   ;;  %v10444_v30 = vld [vmem:[%s11662_s6 + $0xb48] ss:$20 sps:$4 sm:$0xff]  }
 0x143   : > { %6980 = vmatpush1.bf16.msra.mxu0 %v10368_v31  ;;  %7513 = vmatpush1.bf16.msra.mxu1 %v10371_v26  ;;  %v10449_v31 = vld [vmem:[%s11662_s6 + $0xb6c] ss:$20 sps:$4 sm:$0xff]   ;;  %v10452_v26 = vld [vmem:[%s11662_s6 + $0xb74] ss:$20 sps:$4 sm:$0xff]  }
 0x144   : > { %6981 = vmatprep.subr.bf16.mxu0 %v10376_v33  ;;  %7514 = vmatprep.subr.bf16.mxu1 %v10379_v35  ;;  %v10447_v33 = vld [vmem:[%s11662_s6 + $0xb68] ss:$20 sps:$4 sm:$0xff]   ;;  %v10450_v35 = vld [vmem:[%s11662_s6 + $0xb70] ss:$20 sps:$4 sm:$0xff]  }
 0x147   : > { %6982 = vmatpush1.bf16.msra.mxu0 %v10374_v36  ;;  %7515 = vmatpush1.bf16.msra.mxu1 %v10377_v37  ;;  %v10455_v36 = vld [vmem:[%s11662_s6 + $0xb94] ss:$20 sps:$4 sm:$0xff]   ;;  %v10458_v37 = vld [vmem:[%s11662_s6 + $0xb9c] ss:$20 sps:$4 sm:$0xff]  }
 0x148   : > { %6983 = vmatprep.subr.bf16.mxu0 %v10382_v39  ;;  %7516 = vmatprep.subr.bf16.mxu1 %v10385_v40  ;;  %v10453_v39 = vld [vmem:[%s11662_s6 + $0xb90] ss:$20 sps:$4 sm:$0xff]   ;;  %v10456_v40 = vld [vmem:[%s11662_s6 + $0xb98] ss:$20 sps:$4 sm:$0xff]  }
 0x14b   : > { %6984 = vmatpush1.bf16.msra.mxu0 %v10380_v41  ;;  %7517 = vmatpush1.bf16.msra.mxu1 %v10383_v29  ;;  %v10461_v41 = vld [vmem:[%s11662_s6 + $0xbbc] ss:$20 sps:$4 sm:$0xff]   ;;  %v10464_v29 = vld [vmem:[%s11662_s6 + $0xbc4] ss:$20 sps:$4 sm:$0xff]  }
 0x14c   : > { %6985 = vmatprep.subr.bf16.mxu0 %v10388_v45  ;;  %7518 = vmatprep.subr.bf16.mxu1 %v10391_v46  ;;  %v10459_v45 = vld [vmem:[%s11662_s6 + $0xbb8] ss:$20 sps:$4 sm:$0xff]   ;;  %v10462_v46 = vld [vmem:[%s11662_s6 + $0xbc0] ss:$20 sps:$4 sm:$0xff]  }
 0x14f   : > { %6986 = vmatpush1.bf16.msra.mxu0 %v10386_v48  ;;  %7519 = vmatpush1.bf16.msra.mxu1 %v10389_v50  ;;  %v10467_v48 = vld [vmem:[%s11662_s6 + $0xbe4] ss:$20 sps:$4 sm:$0xff]   ;;  %v10470_v50 = vld [vmem:[%s11662_s6 + $0xbec] ss:$20 sps:$4 sm:$0xff]  }
 0x150   : > { %6996 = vmatprep.subr.bf16.mxu0 %v10395_v51  ;;  %7529 = vmatprep.subr.bf16.mxu1 %v10398_v52  ;;  %v10465_v51 = vld [vmem:[%s11662_s6 + $0xbe0] ss:$20 sps:$4 sm:$0xff]   ;;  %v10468_v52 = vld [vmem:[%s11662_s6 + $0xbe8] ss:$20 sps:$4 sm:$0xff]  }
 0x152   : > { %6988 = vmatmul.mubr.bf16.vlgmr.msra.gmra.mrb[0].mxu0 %v12010_v55  ;;  %7521 = vmatmul.mubr.bf16.vlgmr.msra.gmra.mrb[0].mxu1 %v12010_v55 }
 0x153   : > { %6997 = vmatpush1.bf16.msra.mxu0 %v10393_v54  ;;  %7530 = vmatpush1.bf16.msra.mxu1 %v10396_v56  ;;  %v10476_v54 = vld [vmem:[%s11662_s6 + $0xc14] ss:$20 sps:$4 sm:$0xff]  }
 0x154   : > { %6998 = vmatprep.subr.bf16.mxu0 %v10401_v57  ;;  %7531 = vmatprep.subr.bf16.mxu1 %v10404_v58  ;;  %v10471_v56 = vld [vmem:[%s11662_s6 + $0xc08] ss:$20 sps:$4 sm:$0xff]   ;;  %v10474_v57 = vld [vmem:[%s11662_s6 + $0xc10] ss:$20 sps:$4 sm:$0xff]  }
 0x155   : > { %7028 = vmatprep.mubr.bf16.mxu0 %v12015_v59  ;;  %7561 = vmatprep.mubr.bf16.mxu1 %v12015_v59  ;;  %v10479_v58 = vld [vmem:[%s11662_s6 + $0xc34] ss:$20 sps:$4 sm:$0xff]  }
 0x157   : > { %6999 = vmatpush1.bf16.msra.mxu0 %v10399_v61  ;;  %7532 = vmatpush1.bf16.msra.mxu1 %v10402_v32  ;;  %v10482_v61 = vld [vmem:[%s11662_s6 + $0xc3c] ss:$20 sps:$4 sm:$0xff]   ;;  %v280_v32 = vcombine.high %v11992_v42, %v11992_v42  ;;  %v10483_v42 = vld [vmem:[%s11662_s6 + $0xc58] ss:$20 sps:$4 sm:$0xff]  }
 0x158   : > { %7000 = vmatprep.subr.bf16.mxu0 %v10407_v62  ;;  %7533 = vmatprep.subr.bf16.mxu1 %v10410_v63  ;;  %v10477_v62 = vld [vmem:[%s11662_s6 + $0xc30] ss:$20 sps:$4 sm:$0xff]   ;;  %v10480_v63 = vld [vmem:[%s11662_s6 + $0xc38] ss:$20 sps:$4 sm:$0xff]  }
 0x15b   : > { %7001 = vmatpush1.bf16.msra.mxu0 %v10405_v0  ;;  %7534 = vmatpush1.bf16.msra.mxu1 %v10408_v1  ;;  %v10485_v0 = vld [vmem:[%s11662_s6 + $0xc5c] ss:$20 sps:$4 sm:$0xff]   ;;  %v10488_v1 = vld [vmem:[%s11662_s6 + $0xc64] ss:$20 sps:$4 sm:$0xff]  }
 0x15c   : > { %7002 = vmatprep.subr.bf16.mxu0 %v10413_v2  ;;  %7535 = vmatprep.subr.bf16.mxu1 %v10416_v3  ;;  %v12080_v2 = vrot.slane %v280_v32, %v11721_v49  ;;  %v10486_v3 = vld [vmem:[%s11662_s6 + $0xc60] ss:$20 sps:$4 sm:$0xff]   ;;  %v10549_v32 = vld [vmem:[%s11662_s6 + $0xe10] ss:$20 sps:$4 sm:$0xff]  }
 0x15f   : > { %7003 = vmatpush1.bf16.msra.mxu0 %v10411_v4  ;;  %7536 = vmatpush1.bf16.msra.mxu1 %v10414_v5  ;;  %v10491_v4 = vld [vmem:[%s11662_s6 + $0xc84] ss:$20 sps:$4 sm:$0xff]   ;;  %v10494_v5 = vld [vmem:[%s11662_s6 + $0xc8c] ss:$20 sps:$4 sm:$0xff]  }
 0x160   : > { %7004 = vmatprep.subr.bf16.mxu0 %v10419_v6  ;;  %7537 = vmatprep.subr.bf16.mxu1 %v10422_v7  ;;  %v296_v6 = vcombine.high %v12080_v2, %v12080_v2  ;;  %v12090_v7 = vpack.c.bf16 %v11999_v47, %v11999_v47  ;;  %v10495_v47 = vld [vmem:[%s11662_s6 + $0xca8] ss:$20 sps:$4 sm:$0xff]  }
 0x163   : > { %7005 = vmatpush1.bf16.msra.mxu0 %v10417_v8  ;;  %7538 = vmatpush1.bf16.msra.mxu1 %v10420_v10  ;;  %v10489_v8 = vld [vmem:[%s11662_s6 + $0xc80] ss:$20 sps:$4 sm:$0xff]   ;;  %v10492_v10 = vld [vmem:[%s11662_s6 + $0xc88] ss:$20 sps:$4 sm:$0xff]  }
 0x164   : > { %7006 = vmatprep.subr.bf16.mxu0 %v10425_v11  ;;  %7539 = vmatprep.subr.bf16.mxu1 %v10428_v12  ;;  %v10497_v11 = vld [vmem:[%s11662_s6 + $0xcac] ss:$20 sps:$4 sm:$0xff]   ;;  %v10500_v12 = vld [vmem:[%s11662_s6 + $0xcb4] ss:$20 sps:$4 sm:$0xff]  }
 0x167   : > { %7007 = vmatpush1.bf16.msra.mxu0 %v10423_v13  ;;  %7540 = vmatpush1.bf16.msra.mxu1 %v10426_v14  ;;  %v12096_v13 = vpack.c.bf16 %v296_v6, %v296_v6  ;;  %v10498_v14 = vld [vmem:[%s11662_s6 + $0xcb0] ss:$20 sps:$4 sm:$0xff]   ;;  %v10564_v6 = vld [vmem:[%s11662_s6 + $0xe68] ss:$20 sps:$4 sm:$0xff]  }
 0x168   : > { %7008 = vmatprep.subr.bf16.mxu0 %v10431_v15  ;;  %7541 = vmatprep.subr.bf16.mxu1 %v10434_v17  ;;  %v10503_v15 = vld [vmem:[%s11662_s6 + $0xcd4] ss:$20 sps:$4 sm:$0xff]   ;;  %v10506_v17 = vld [vmem:[%s11662_s6 + $0xcdc] ss:$20 sps:$4 sm:$0xff]  }
 0x16b   : > { %7009 = vmatpush1.bf16.msra.mxu0 %v10429_v18  ;;  %7542 = vmatpush1.bf16.msra.mxu1 %v10432_v19  ;;  %v10501_v18 = vld [vmem:[%s11662_s6 + $0xcd0] ss:$20 sps:$4 sm:$0xff]   ;;  %v10504_v19 = vld [vmem:[%s11662_s6 + $0xcd8] ss:$20 sps:$4 sm:$0xff]  }
 0x16c   : > { %7010 = vmatprep.subr.bf16.mxu0 %v10437_v21  ;;  %7543 = vmatprep.subr.bf16.mxu1 %v10440_v22  ;;  %v10509_v21 = vld [vmem:[%s11662_s6 + $0xcfc] ss:$20 sps:$4 sm:$0xff]   ;;  %v10512_v22 = vld [vmem:[%s11662_s6 + $0xd04] ss:$20 sps:$4 sm:$0xff]  }
 0x16f   : > { %7011 = vmatpush1.bf16.msra.mxu0 %v10435_v23  ;;  %7544 = vmatpush1.bf16.msra.mxu1 %v10438_v25  ;;  %v10507_v23 = vld [vmem:[%s11662_s6 + $0xcf8] ss:$20 sps:$4 sm:$0xff]   ;;  %v10510_v25 = vld [vmem:[%s11662_s6 + $0xd00] ss:$20 sps:$4 sm:$0xff]  }
 0x170   : > { %7012 = vmatprep.subr.bf16.mxu0 %v10443_v27  ;;  %7545 = vmatprep.subr.bf16.mxu1 %v10446_v28  ;;  %v10515_v27 = vld [vmem:[%s11662_s6 + $0xd24] ss:$20 sps:$4 sm:$0xff]   ;;  %v10518_v28 = vld [vmem:[%s11662_s6 + $0xd2c] ss:$20 sps:$4 sm:$0xff]  }
 0x173   : > { %7013 = vmatpush1.bf16.msra.mxu0 %v10441_v9  ;;  %7546 = vmatpush1.bf16.msra.mxu1 %v10444_v30  ;;  %v10513_v9 = vld [vmem:[%s11662_s6 + $0xd20] ss:$20 sps:$4 sm:$0xff]   ;;  %v10516_v30 = vld [vmem:[%s11662_s6 + $0xd28] ss:$20 sps:$4 sm:$0xff]  }
 0x174   : > { %7014 = vmatprep.subr.bf16.mxu0 %v10449_v31  ;;  %7547 = vmatprep.subr.bf16.mxu1 %v10452_v26  ;;  %v10521_v31 = vld [vmem:[%s11662_s6 + $0xd4c] ss:$20 sps:$4 sm:$0xff]   ;;  %v10524_v26 = vld [vmem:[%s11662_s6 + $0xd54] ss:$20 sps:$4 sm:$0xff]  }
 0x177   : > { %7015 = vmatpush1.bf16.msra.mxu0 %v10447_v33  ;;  %7548 = vmatpush1.bf16.msra.mxu1 %v10450_v35  ;;  %v10519_v33 = vld [vmem:[%s11662_s6 + $0xd48] ss:$20 sps:$4 sm:$0xff]   ;;  %v10522_v35 = vld [vmem:[%s11662_s6 + $0xd50] ss:$20 sps:$4 sm:$0xff]  }
 0x178   : > { %7016 = vmatprep.subr.bf16.mxu0 %v10455_v36  ;;  %7549 = vmatprep.subr.bf16.mxu1 %v10458_v37  ;;  %v10527_v36 = vld [vmem:[%s11662_s6 + $0xd74] ss:$20 sps:$4 sm:$0xff]   ;;  %v10530_v37 = vld [vmem:[%s11662_s6 + $0xd7c] ss:$20 sps:$4 sm:$0xff]  }
 0x17b   : > { %7017 = vmatpush1.bf16.msra.mxu0 %v10453_v39  ;;  %7550 = vmatpush1.bf16.msra.mxu1 %v10456_v40  ;;  %v10525_v39 = vld [vmem:[%s11662_s6 + $0xd70] ss:$20 sps:$4 sm:$0xff]   ;;  %v10528_v40 = vld [vmem:[%s11662_s6 + $0xd78] ss:$20 sps:$4 sm:$0xff]  }
 0x17c   : > { %7018 = vmatprep.subr.bf16.mxu0 %v10461_v41  ;;  %7551 = vmatprep.subr.bf16.mxu1 %v10464_v29  ;;  %v10533_v41 = vld [vmem:[%s11662_s6 + $0xd9c] ss:$20 sps:$4 sm:$0xff]   ;;  %v10536_v29 = vld [vmem:[%s11662_s6 + $0xda4] ss:$20 sps:$4 sm:$0xff]  }
 0x17f   : > { %7019 = vmatpush1.bf16.msra.mxu0 %v10459_v45  ;;  %7552 = vmatpush1.bf16.msra.mxu1 %v10462_v46  ;;  %v10531_v45 = vld [vmem:[%s11662_s6 + $0xd98] ss:$20 sps:$4 sm:$0xff]   ;;  %v10534_v46 = vld [vmem:[%s11662_s6 + $0xda0] ss:$20 sps:$4 sm:$0xff]  }
 0x180   : > { %7020 = vmatprep.subr.bf16.mxu0 %v10467_v48  ;;  %7553 = vmatprep.subr.bf16.mxu1 %v10470_v50  ;;  %v10539_v48 = vld [vmem:[%s11662_s6 + $0xdc4] ss:$20 sps:$4 sm:$0xff]   ;;  %v10542_v50 = vld [vmem:[%s11662_s6 + $0xdcc] ss:$20 sps:$4 sm:$0xff]  }
 0x183   : > { %7021 = vmatpush1.bf16.msra.mxu0 %v10465_v51  ;;  %7554 = vmatpush1.bf16.msra.mxu1 %v10468_v52  ;;  %v10537_v51 = vld [vmem:[%s11662_s6 + $0xdc0] ss:$20 sps:$4 sm:$0xff]   ;;  %v10540_v52 = vld [vmem:[%s11662_s6 + $0xdc8] ss:$20 sps:$4 sm:$0xff]  }
 0x184   : > { %7022 = vmatprep.subr.bf16.mxu0 %v10473_v53  ;;  %7555 = vmatprep.subr.bf16.mxu1 %v10476_v54  ;;  %v10545_v53 = vld [vmem:[%s11662_s6 + $0xdec] ss:$20 sps:$4 sm:$0xff]   ;;  %v10548_v54 = vld [vmem:[%s11662_s6 + $0xdf4] ss:$20 sps:$4 sm:$0xff]  }
 0x187   : > { %7023 = vmatpush1.bf16.msra.mxu0 %v10471_v56  ;;  %7556 = vmatpush1.bf16.msra.mxu1 %v10474_v57  ;;  %v10543_v56 = vld [vmem:[%s11662_s6 + $0xde8] ss:$20 sps:$4 sm:$0xff]   ;;  %v10546_v57 = vld [vmem:[%s11662_s6 + $0xdf0] ss:$20 sps:$4 sm:$0xff]  }
 0x188   : > { %7024 = vmatprep.subr.bf16.mxu0 %v10479_v58  ;;  %7557 = vmatprep.subr.bf16.mxu1 %v10482_v61  ;;  %v10551_v58 = vld [vmem:[%s11662_s6 + $0xe14] ss:$20 sps:$4 sm:$0xff]   ;;  %v10554_v61 = vld [vmem:[%s11662_s6 + $0xe1c] ss:$20 sps:$4 sm:$0xff]  }
 0x18b   : > { %7025 = vmatpush1.bf16.msra.mxu0 %v10477_v62  ;;  %7558 = vmatpush1.bf16.msra.mxu1 %v10480_v63  ;;  %v10552_v62 = vld [vmem:[%s11662_s6 + $0xe18] ss:$20 sps:$4 sm:$0xff]   ;;  %v10557_v63 = vld [vmem:[%s11662_s6 + $0xe3c] ss:$20 sps:$4 sm:$0xff]  }
 0x18c   : > { %7026 = vmatprep.subr.bf16.mxu0 %v10485_v0  ;;  %7559 = vmatprep.subr.bf16.mxu1 %v10488_v1  ;;  %v10560_v0 = vld [vmem:[%s11662_s6 + $0xe44] ss:$20 sps:$4 sm:$0xff]  }
 0x18d   : > { %v10555_v1 = vld [vmem:[%s11662_s6 + $0xe38] ss:$20 sps:$4 sm:$0xff]  }
 0x18f   : > { %7027 = vmatpush1.bf16.msra.mxu0 %v10483_v42  ;;  %7560 = vmatpush1.bf16.msra.mxu1 %v10486_v3  ;;  %v10558_v42 = vld [vmem:[%s11662_s6 + $0xe40] ss:$20 sps:$4 sm:$0xff]   ;;  %v10563_v3 = vld [vmem:[%s11662_s6 + $0xe64] ss:$20 sps:$4 sm:$0xff]  }
 0x190   : > { %7037 = vmatprep.subr.bf16.mxu0 %v10491_v4  ;;  %7570 = vmatprep.subr.bf16.mxu1 %v10494_v5  ;;  %v10566_v4 = vld [vmem:[%s11662_s6 + $0xe6c] ss:$20 sps:$4 sm:$0xff]  }
 0x191   : > { %v10561_v5 = vld [vmem:[%s11662_s6 + $0xe60] ss:$20 sps:$4 sm:$0xff]  }
 0x192   : > { %7029 = vmatmul.mubr.bf16.vlgmr.msra.gmra.mrb[0].mxu0 %v12090_v7  ;;  %7562 = vmatmul.mubr.bf16.vlgmr.msra.gmra.mrb[0].mxu1 %v12090_v7 }
 0x193   : > { %7038 = vmatpush1.bf16.msra.mxu0 %v10489_v8  ;;  %7571 = vmatpush1.bf16.msra.mxu1 %v10492_v10  ;;  %v10569_v8 = vld [vmem:[%s11662_s6 + $0xe8c] ss:$20 sps:$4 sm:$0xff]   ;;  %v10572_v10 = vld [vmem:[%s11662_s6 + $0xe94] ss:$20 sps:$4 sm:$0xff]  }
 0x194   : > { %7039 = vmatprep.subr.bf16.mxu0 %v10497_v11  ;;  %7572 = vmatprep.subr.bf16.mxu1 %v10500_v12  ;;  %v10567_v11 = vld [vmem:[%s11662_s6 + $0xe88] ss:$20 sps:$4 sm:$0xff]   ;;  %v10570_v12 = vld [vmem:[%s11662_s6 + $0xe90] ss:$20 sps:$4 sm:$0xff]  }
 0x195   : > { %7069 = vmatprep.mubr.bf16.mxu0 %v12096_v13  ;;  %7602 = vmatprep.mubr.bf16.mxu1 %v12096_v13 }
 0x197   : > { %7040 = vmatpush1.bf16.msra.mxu0 %v10495_v47  ;;  %7573 = vmatpush1.bf16.msra.mxu1 %v10498_v14  ;;  %v10575_v47 = vld [vmem:[%s11662_s6 + $0xeb4] ss:$20 sps:$4 sm:$0xff]   ;;  %v10578_v14 = vld [vmem:[%s11662_s6 + $0xebc] ss:$20 sps:$4 sm:$0xff]  }
 0x198   : > { %7041 = vmatprep.subr.bf16.mxu0 %v10503_v15  ;;  %7574 = vmatprep.subr.bf16.mxu1 %v10506_v17  ;;  %v12157_v15 = vld [vmem:[%s12959_s0 + $0x18] sm:$0xff] }
 0x199   : > { %v10573_v17 = vld [vmem:[%s11662_s6 + $0xeb0] ss:$20 sps:$4 sm:$0xff]  }
 0x19b   : > { %7042 = vmatpush1.bf16.msra.mxu0 %v10501_v18  ;;  %7575 = vmatpush1.bf16.msra.mxu1 %v10504_v19  ;;  %v10576_v18 = vld [vmem:[%s11662_s6 + $0xeb8] ss:$20 sps:$4 sm:$0xff]   ;;  %v10581_v19 = vld [vmem:[%s11662_s6 + $0xedc] ss:$20 sps:$4 sm:$0xff]  }
 0x19c   : > { %7043 = vmatprep.subr.bf16.mxu0 %v10509_v21  ;;  %7576 = vmatprep.subr.bf16.mxu1 %v10512_v22  ;;  %v10584_v21 = vld [vmem:[%s11662_s6 + $0xee4] ss:$20 sps:$4 sm:$0xff]   ;;  %v12165_v22 = vrot.slane %v12157_v15, %v11721_v49 }
 0x19f   : > { %7044 = vmatpush1.bf16.msra.mxu0 %v10507_v23  ;;  %7577 = vmatpush1.bf16.msra.mxu1 %v10510_v25  ;;  %v10579_v23 = vld [vmem:[%s11662_s6 + $0xed8] ss:$20 sps:$4 sm:$0xff]   ;;  %v10582_v25 = vld [vmem:[%s11662_s6 + $0xee0] ss:$20 sps:$4 sm:$0xff]  }
 0x1a0   : > { %7045 = vmatprep.subr.bf16.mxu0 %v10515_v27  ;;  %7578 = vmatprep.subr.bf16.mxu1 %v10518_v28  ;;  %v10588_v27 = vld [vmem:[%s11662_s6 + $0xf04] ss:$20 sps:$4 sm:$0xff]   ;;  %v10591_v28 = vld [vmem:[%s11662_s6 + $0xf0c] ss:$20 sps:$4 sm:$0xff]  }
 0x1a3   : > { %7046 = vmatpush1.bf16.msra.mxu0 %v10513_v9  ;;  %7579 = vmatpush1.bf16.msra.mxu1 %v10516_v30  ;;  %v312_v9 = vcombine.high %v12165_v22, %v12165_v22  ;;  %v12175_v30 = vpack.c.bf16 %v12080_v2, %v12080_v2  ;;  %v10592_v2 = vld [vmem:[%s11662_s6 + $0xf28] ss:$20 sps:$4 sm:$0xff]  }
 0x1a4   : > { %7047 = vmatprep.subr.bf16.mxu0 %v10521_v31  ;;  %7580 = vmatprep.subr.bf16.mxu1 %v10524_v26  ;;  %v10586_v31 = vld [vmem:[%s11662_s6 + $0xf00] ss:$20 sps:$4 sm:$0xff]   ;;  %v10589_v26 = vld [vmem:[%s11662_s6 + $0xf08] ss:$20 sps:$4 sm:$0xff]  }
 0x1a7   : > { %7048 = vmatpush1.bf16.msra.mxu0 %v10519_v33  ;;  %7581 = vmatpush1.bf16.msra.mxu1 %v10522_v35  ;;  %v10594_v33 = vld [vmem:[%s11662_s6 + $0xf2c] ss:$20 sps:$4 sm:$0xff]   ;;  %v10597_v35 = vld [vmem:[%s11662_s6 + $0xf34] ss:$20 sps:$4 sm:$0xff]  }
 0x1a8   : > { %7049 = vmatprep.subr.bf16.mxu0 %v10527_v36  ;;  %7582 = vmatprep.subr.bf16.mxu1 %v10530_v37  ;;  %v12181_v36 = vpack.c.bf16 %v312_v9, %v312_v9  ;;  %v10595_v37 = vld [vmem:[%s11662_s6 + $0xf30] ss:$20 sps:$4 sm:$0xff]  }
 0x1a9   : > { %v10660_v9 = vld [vmem:[%s11662_s6 + $0x10e4] ss:$20 sps:$4 sm:$0xff]  }
 0x1ab   : > { %7050 = vmatpush1.bf16.msra.mxu0 %v10525_v39  ;;  %7583 = vmatpush1.bf16.msra.mxu1 %v10528_v40  ;;  %v10600_v39 = vld [vmem:[%s11662_s6 + $0xf54] ss:$20 sps:$4 sm:$0xff]   ;;  %v10603_v40 = vld [vmem:[%s11662_s6 + $0xf5c] ss:$20 sps:$4 sm:$0xff]  }
 0x1ac   : > { %7051 = vmatprep.subr.bf16.mxu0 %v10533_v41  ;;  %7584 = vmatprep.subr.bf16.mxu1 %v10536_v29  ;;  %v10598_v41 = vld [vmem:[%s11662_s6 + $0xf50] ss:$20 sps:$4 sm:$0xff]   ;;  %v10601_v29 = vld [vmem:[%s11662_s6 + $0xf58] ss:$20 sps:$4 sm:$0xff]  }
 0x1af   : > { %7052 = vmatpush1.bf16.msra.mxu0 %v10531_v45  ;;  %7585 = vmatpush1.bf16.msra.mxu1 %v10534_v46  ;;  %v10606_v45 = vld [vmem:[%s11662_s6 + $0xf7c] ss:$20 sps:$4 sm:$0xff]   ;;  %v10609_v46 = vld [vmem:[%s11662_s6 + $0xf84] ss:$20 sps:$4 sm:$0xff]  }
 0x1b0   : > { %7053 = vmatprep.subr.bf16.mxu0 %v10539_v48  ;;  %7586 = vmatprep.subr.bf16.mxu1 %v10542_v50  ;;  %v10604_v48 = vld [vmem:[%s11662_s6 + $0xf78] ss:$20 sps:$4 sm:$0xff]   ;;  %v10607_v50 = vld [vmem:[%s11662_s6 + $0xf80] ss:$20 sps:$4 sm:$0xff]  }
 0x1b3   : > { %7054 = vmatpush1.bf16.msra.mxu0 %v10537_v51  ;;  %7587 = vmatpush1.bf16.msra.mxu1 %v10540_v52  ;;  %v10612_v51 = vld [vmem:[%s11662_s6 + $0xfa4] ss:$20 sps:$4 sm:$0xff]   ;;  %v10615_v52 = vld [vmem:[%s11662_s6 + $0xfac] ss:$20 sps:$4 sm:$0xff]  }
 0x1b4   : > { %7055 = vmatprep.subr.bf16.mxu0 %v10545_v53  ;;  %7588 = vmatprep.subr.bf16.mxu1 %v10548_v54  ;;  %v10610_v53 = vld [vmem:[%s11662_s6 + $0xfa0] ss:$20 sps:$4 sm:$0xff]   ;;  %v10613_v54 = vld [vmem:[%s11662_s6 + $0xfa8] ss:$20 sps:$4 sm:$0xff]  }
 0x1b7   : > { %7056 = vmatpush1.bf16.msra.mxu0 %v10543_v56  ;;  %7589 = vmatpush1.bf16.msra.mxu1 %v10546_v57  ;;  %v10618_v56 = vld [vmem:[%s11662_s6 + $0xfcc] ss:$20 sps:$4 sm:$0xff]   ;;  %v10621_v57 = vld [vmem:[%s11662_s6 + $0xfd4] ss:$20 sps:$4 sm:$0xff]  }
 0x1b8   : > { %7057 = vmatprep.subr.bf16.mxu0 %v10551_v58  ;;  %7590 = vmatprep.subr.bf16.mxu1 %v10554_v61  ;;  %v10616_v58 = vld [vmem:[%s11662_s6 + $0xfc8] ss:$20 sps:$4 sm:$0xff]   ;;  %v10619_v61 = vld [vmem:[%s11662_s6 + $0xfd0] ss:$20 sps:$4 sm:$0xff]  }
 0x1bb   : > { %7058 = vmatpush1.bf16.msra.mxu0 %v10549_v32  ;;  %7591 = vmatpush1.bf16.msra.mxu1 %v10552_v62  ;;  %v10624_v32 = vld [vmem:[%s11662_s6 + $0xff4] ss:$20 sps:$4 sm:$0xff]   ;;  %v10627_v62 = vld [vmem:[%s11662_s6 + $0xffc] ss:$20 sps:$4 sm:$0xff]  }
 0x1bc   : > { %7059 = vmatprep.subr.bf16.mxu0 %v10557_v63  ;;  %7592 = vmatprep.subr.bf16.mxu1 %v10560_v0  ;;  %v10622_v63 = vld [vmem:[%s11662_s6 + $0xff0] ss:$20 sps:$4 sm:$0xff]   ;;  %v10625_v0 = vld [vmem:[%s11662_s6 + $0xff8] ss:$20 sps:$4 sm:$0xff]  }
 0x1bf   : > { %7060 = vmatpush1.bf16.msra.mxu0 %v10555_v1  ;;  %7593 = vmatpush1.bf16.msra.mxu1 %v10558_v42  ;;  %v10630_v1 = vld [vmem:[%s11662_s6 + $0x101c] ss:$20 sps:$4 sm:$0xff]   ;;  %v10633_v42 = vld [vmem:[%s11662_s6 + $0x1024] ss:$20 sps:$4 sm:$0xff]  }
 0x1c0   : > { %7061 = vmatprep.subr.bf16.mxu0 %v10563_v3  ;;  %7594 = vmatprep.subr.bf16.mxu1 %v10566_v4  ;;  %v10628_v3 = vld [vmem:[%s11662_s6 + $0x1018] ss:$20 sps:$4 sm:$0xff]   ;;  %v10631_v4 = vld [vmem:[%s11662_s6 + $0x1020] ss:$20 sps:$4 sm:$0xff]  }
 0x1c3   : > { %7062 = vmatpush1.bf16.msra.mxu0 %v10561_v5  ;;  %7595 = vmatpush1.bf16.msra.mxu1 %v10564_v6  ;;  %v10636_v5 = vld [vmem:[%s11662_s6 + $0x1044] ss:$20 sps:$4 sm:$0xff]   ;;  %v10639_v6 = vld [vmem:[%s11662_s6 + $0x104c] ss:$20 sps:$4 sm:$0xff]  }
 0x1c4   : > { %7063 = vmatprep.subr.bf16.mxu0 %v10569_v8  ;;  %7596 = vmatprep.subr.bf16.mxu1 %v10572_v10  ;;  %v10634_v8 = vld [vmem:[%s11662_s6 + $0x1040] ss:$20 sps:$4 sm:$0xff]   ;;  %v10637_v10 = vld [vmem:[%s11662_s6 + $0x1048] ss:$20 sps:$4 sm:$0xff]  }
 0x1c7   : > { %7064 = vmatpush1.bf16.msra.mxu0 %v10567_v11  ;;  %7597 = vmatpush1.bf16.msra.mxu1 %v10570_v12  ;;  %v10642_v11 = vld [vmem:[%s11662_s6 + $0x106c] ss:$20 sps:$4 sm:$0xff]   ;;  %v10645_v12 = vld [vmem:[%s11662_s6 + $0x1074] ss:$20 sps:$4 sm:$0xff]  }
 0x1c8   : > { %7065 = vmatprep.subr.bf16.mxu0 %v10575_v47  ;;  %7598 = vmatprep.subr.bf16.mxu1 %v10578_v14  ;;  %v10640_v47 = vld [vmem:[%s11662_s6 + $0x1068] ss:$20 sps:$4 sm:$0xff]   ;;  %v10643_v14 = vld [vmem:[%s11662_s6 + $0x1070] ss:$20 sps:$4 sm:$0xff]  }
 0x1cb   : > { %7066 = vmatpush1.bf16.msra.mxu0 %v10573_v17  ;;  %7599 = vmatpush1.bf16.msra.mxu1 %v10576_v18  ;;  %v10648_v17 = vld [vmem:[%s11662_s6 + $0x1094] ss:$20 sps:$4 sm:$0xff]   ;;  %v10651_v18 = vld [vmem:[%s11662_s6 + $0x109c] ss:$20 sps:$4 sm:$0xff]  }
 0x1cc   : > { %7067 = vmatprep.subr.bf16.mxu0 %v10581_v19  ;;  %7600 = vmatprep.subr.bf16.mxu1 %v10584_v21  ;;  %v10646_v19 = vld [vmem:[%s11662_s6 + $0x1090] ss:$20 sps:$4 sm:$0xff]   ;;  %v10649_v21 = vld [vmem:[%s11662_s6 + $0x1098] ss:$20 sps:$4 sm:$0xff]  }
 0x1cf   : > { %7068 = vmatpush1.bf16.msra.mxu0 %v10579_v23  ;;  %7601 = vmatpush1.bf16.msra.mxu1 %v10582_v25  ;;  %v10654_v23 = vld [vmem:[%s11662_s6 + $0x10bc] ss:$20 sps:$4 sm:$0xff]   ;;  %v10657_v25 = vld [vmem:[%s11662_s6 + $0x10c4] ss:$20 sps:$4 sm:$0xff]  }
 0x1d0   : > { %7078 = vmatprep.subr.bf16.mxu0 %v10588_v27  ;;  %7611 = vmatprep.subr.bf16.mxu1 %v10591_v28  ;;  %v10652_v27 = vld [vmem:[%s11662_s6 + $0x10b8] ss:$20 sps:$4 sm:$0xff]   ;;  %v10655_v28 = vld [vmem:[%s11662_s6 + $0x10c0] ss:$20 sps:$4 sm:$0xff]  }
 0x1d2   : > { %7070 = vmatmul.mubr.bf16.vlgmr.msra.gmra.mrb[0].mxu0 %v12175_v30  ;;  %7603 = vmatmul.mubr.bf16.vlgmr.msra.gmra.mrb[0].mxu1 %v12175_v30 }
 0x1d3   : > { %7079 = vmatpush1.bf16.msra.mxu0 %v10586_v31  ;;  %7612 = vmatpush1.bf16.msra.mxu1 %v10589_v26  ;;  %v10663_v31 = vld [vmem:[%s11662_s6 + $0x10ec] ss:$20 sps:$4 sm:$0xff]  }
 0x1d4   : > { %7080 = vmatprep.subr.bf16.mxu0 %v10594_v33  ;;  %7613 = vmatprep.subr.bf16.mxu1 %v10597_v35  ;;  %v10658_v26 = vld [vmem:[%s11662_s6 + $0x10e0] ss:$20 sps:$4 sm:$0xff]   ;;  %v10661_v33 = vld [vmem:[%s11662_s6 + $0x10e8] ss:$20 sps:$4 sm:$0xff]  }
 0x1d5   : > { %7110 = vmatprep.mubr.bf16.mxu0 %v12181_v36  ;;  %7643 = vmatprep.mubr.bf16.mxu1 %v12181_v36  ;;  %v10666_v35 = vld [vmem:[%s11662_s6 + $0x110c] ss:$20 sps:$4 sm:$0xff]  }
 0x1d7   : > { %7081 = vmatpush1.bf16.msra.mxu0 %v10592_v2  ;;  %7614 = vmatpush1.bf16.msra.mxu1 %v10595_v37  ;;  %v10669_v2 = vld [vmem:[%s11662_s6 + $0x1114] ss:$20 sps:$4 sm:$0xff]  }
 0x1d8   : > { %7082 = vmatprep.subr.bf16.mxu0 %v10600_v39  ;;  %7615 = vmatprep.subr.bf16.mxu1 %v10603_v40  ;;  %v10664_v37 = vld [vmem:[%s11662_s6 + $0x1108] ss:$20 sps:$4 sm:$0xff]   ;;  %v10667_v39 = vld [vmem:[%s11662_s6 + $0x1110] ss:$20 sps:$4 sm:$0xff]  }
 0x1d9   : > { %v10672_v40 = vld [vmem:[%s11662_s6 + $0x1134] ss:$20 sps:$4 sm:$0xff]  }
 0x1db   : > { %7083 = vmatpush1.bf16.msra.mxu0 %v10598_v41  ;;  %7616 = vmatpush1.bf16.msra.mxu1 %v10601_v29  ;;  %v10675_v41 = vld [vmem:[%s11662_s6 + $0x113c] ss:$20 sps:$4 sm:$0xff]   ;;  %v297_v29 = vcombine.high %v12157_v15, %v12157_v15  ;;  %v10676_v15 = vld [vmem:[%s11662_s6 + $0x1158] ss:$20 sps:$4 sm:$0xff]  }
 0x1dc   : > { %7084 = vmatprep.subr.bf16.mxu0 %v10606_v45  ;;  %7617 = vmatprep.subr.bf16.mxu1 %v10609_v46  ;;  %v10670_v45 = vld [vmem:[%s11662_s6 + $0x1130] ss:$20 sps:$4 sm:$0xff]   ;;  %v10673_v46 = vld [vmem:[%s11662_s6 + $0x1138] ss:$20 sps:$4 sm:$0xff]  }
 0x1df   : > { %7085 = vmatpush1.bf16.msra.mxu0 %v10604_v48  ;;  %7618 = vmatpush1.bf16.msra.mxu1 %v10607_v50  ;;  %v10678_v48 = vld [vmem:[%s11662_s6 + $0x115c] ss:$20 sps:$4 sm:$0xff]   ;;  %v10681_v50 = vld [vmem:[%s11662_s6 + $0x1164] ss:$20 sps:$4 sm:$0xff]  }
 0x1e0   : > { %7086 = vmatprep.subr.bf16.mxu0 %v10612_v51  ;;  %7619 = vmatprep.subr.bf16.mxu1 %v10615_v52  ;;  %v12246_v51 = vrot.slane %v297_v29, %v11721_v49  ;;  %v10679_v52 = vld [vmem:[%s11662_s6 + $0x1160] ss:$20 sps:$4 sm:$0xff]   ;;  %v10736_v29 = vld [vmem:[%s11662_s6 + $0x12e8] ss:$20 sps:$4 sm:$0xff]  }
 0x1e3   : > { %7087 = vmatpush1.bf16.msra.mxu0 %v10610_v53  ;;  %7620 = vmatpush1.bf16.msra.mxu1 %v10613_v54  ;;  %v10684_v53 = vld [vmem:[%s11662_s6 + $0x1184] ss:$20 sps:$4 sm:$0xff]   ;;  %v10687_v54 = vld [vmem:[%s11662_s6 + $0x118c] ss:$20 sps:$4 sm:$0xff]  }
 0x1e4   : > { %7088 = vmatprep.subr.bf16.mxu0 %v10618_v56  ;;  %7621 = vmatprep.subr.bf16.mxu1 %v10621_v57  ;;  %v313_v56 = vcombine.high %v12246_v51, %v12246_v51  ;;  %v12256_v57 = vpack.c.bf16 %v12165_v22, %v12165_v22  ;;  %v10688_v22 = vld [vmem:[%s11662_s6 + $0x11a8] ss:$20 sps:$4 sm:$0xff]  }
 0x1e7   : > { %7089 = vmatpush1.bf16.msra.mxu0 %v10616_v58  ;;  %7622 = vmatpush1.bf16.msra.mxu1 %v10619_v61  ;;  %v10682_v58 = vld [vmem:[%s11662_s6 + $0x1180] ss:$20 sps:$4 sm:$0xff]   ;;  %v10685_v61 = vld [vmem:[%s11662_s6 + $0x1188] ss:$20 sps:$4 sm:$0xff]  }
 0x1e8   : > { %7090 = vmatprep.subr.bf16.mxu0 %v10624_v32  ;;  %7623 = vmatprep.subr.bf16.mxu1 %v10627_v62  ;;  %v10690_v32 = vld [vmem:[%s11662_s6 + $0x11ac] ss:$20 sps:$4 sm:$0xff]   ;;  %v10693_v62 = vld [vmem:[%s11662_s6 + $0x11b4] ss:$20 sps:$4 sm:$0xff]  }
 0x1eb   : > { %7091 = vmatpush1.bf16.msra.mxu0 %v10622_v63  ;;  %7624 = vmatpush1.bf16.msra.mxu1 %v10625_v0  ;;  %v12262_v63 = vpack.c.bf16 %v313_v56, %v313_v56  ;;  %v10691_v0 = vld [vmem:[%s11662_s6 + $0x11b0] ss:$20 sps:$4 sm:$0xff]   ;;  %v10751_v56 = vld [vmem:[%s11662_s6 + $0x1340] ss:$20 sps:$4 sm:$0xff]  }
 0x1ec   : > { %7092 = vmatprep.subr.bf16.mxu0 %v10630_v1  ;;  %7625 = vmatprep.subr.bf16.mxu1 %v10633_v42  ;;  %v10696_v1 = vld [vmem:[%s11662_s6 + $0x11d4] ss:$20 sps:$4 sm:$0xff]   ;;  %v10699_v42 = vld [vmem:[%s11662_s6 + $0x11dc] ss:$20 sps:$4 sm:$0xff]  }
 0x1ef   : > { %7093 = vmatpush1.bf16.msra.mxu0 %v10628_v3  ;;  %7626 = vmatpush1.bf16.msra.mxu1 %v10631_v4  ;;  %v10694_v3 = vld [vmem:[%s11662_s6 + $0x11d0] ss:$20 sps:$4 sm:$0xff]   ;;  %v10697_v4 = vld [vmem:[%s11662_s6 + $0x11d8] ss:$20 sps:$4 sm:$0xff]  }
 0x1f0   : > { %7094 = vmatprep.subr.bf16.mxu0 %v10636_v5  ;;  %7627 = vmatprep.subr.bf16.mxu1 %v10639_v6  ;;  %v10702_v5 = vld [vmem:[%s11662_s6 + $0x11fc] ss:$20 sps:$4 sm:$0xff]   ;;  %v10705_v6 = vld [vmem:[%s11662_s6 + $0x1204] ss:$20 sps:$4 sm:$0xff]  }
 0x1f3   : > { %7095 = vmatpush1.bf16.msra.mxu0 %v10634_v8  ;;  %7628 = vmatpush1.bf16.msra.mxu1 %v10637_v10  ;;  %v10700_v8 = vld [vmem:[%s11662_s6 + $0x11f8] ss:$20 sps:$4 sm:$0xff]   ;;  %v10703_v10 = vld [vmem:[%s11662_s6 + $0x1200] ss:$20 sps:$4 sm:$0xff]  }
 0x1f4   : > { %7096 = vmatprep.subr.bf16.mxu0 %v10642_v11  ;;  %7629 = vmatprep.subr.bf16.mxu1 %v10645_v12  ;;  %v10708_v11 = vld [vmem:[%s11662_s6 + $0x1224] ss:$20 sps:$4 sm:$0xff]   ;;  %v10711_v12 = vld [vmem:[%s11662_s6 + $0x122c] ss:$20 sps:$4 sm:$0xff]  }
 0x1f7   : > { %7097 = vmatpush1.bf16.msra.mxu0 %v10640_v47  ;;  %7630 = vmatpush1.bf16.msra.mxu1 %v10643_v14  ;;  %v10706_v47 = vld [vmem:[%s11662_s6 + $0x1220] ss:$20 sps:$4 sm:$0xff]   ;;  %v10709_v14 = vld [vmem:[%s11662_s6 + $0x1228] ss:$20 sps:$4 sm:$0xff]  }
 0x1f8   : > { %7098 = vmatprep.subr.bf16.mxu0 %v10648_v17  ;;  %7631 = vmatprep.subr.bf16.mxu1 %v10651_v18  ;;  %v10714_v17 = vld [vmem:[%s11662_s6 + $0x124c] ss:$20 sps:$4 sm:$0xff]   ;;  %v10717_v18 = vld [vmem:[%s11662_s6 + $0x1254] ss:$20 sps:$4 sm:$0xff]  }
 0x1fb   : > { %7099 = vmatpush1.bf16.msra.mxu0 %v10646_v19  ;;  %7632 = vmatpush1.bf16.msra.mxu1 %v10649_v21  ;;  %v10712_v19 = vld [vmem:[%s11662_s6 + $0x1248] ss:$20 sps:$4 sm:$0xff]   ;;  %v10715_v21 = vld [vmem:[%s11662_s6 + $0x1250] ss:$20 sps:$4 sm:$0xff]  }
 0x1fc   : > { %7100 = vmatprep.subr.bf16.mxu0 %v10654_v23  ;;  %7633 = vmatprep.subr.bf16.mxu1 %v10657_v25  ;;  %v10720_v23 = vld [vmem:[%s11662_s6 + $0x1274] ss:$20 sps:$4 sm:$0xff]   ;;  %v10723_v25 = vld [vmem:[%s11662_s6 + $0x127c] ss:$20 sps:$4 sm:$0xff]  }
 0x1ff   : > { %7101 = vmatpush1.bf16.msra.mxu0 %v10652_v27  ;;  %7634 = vmatpush1.bf16.msra.mxu1 %v10655_v28  ;;  %v10718_v27 = vld [vmem:[%s11662_s6 + $0x1270] ss:$20 sps:$4 sm:$0xff]   ;;  %v10721_v28 = vld [vmem:[%s11662_s6 + $0x1278] ss:$20 sps:$4 sm:$0xff]  }
 0x200   : > { %7102 = vmatprep.subr.bf16.mxu0 %v10660_v9  ;;  %7635 = vmatprep.subr.bf16.mxu1 %v10663_v31  ;;  %v10726_v9 = vld [vmem:[%s11662_s6 + $0x129c] ss:$20 sps:$4 sm:$0xff]   ;;  %v10729_v31 = vld [vmem:[%s11662_s6 + $0x12a4] ss:$20 sps:$4 sm:$0xff]  }
 0x203   : > { %7103 = vmatpush1.bf16.msra.mxu0 %v10658_v26  ;;  %7636 = vmatpush1.bf16.msra.mxu1 %v10661_v33  ;;  %v10724_v26 = vld [vmem:[%s11662_s6 + $0x1298] ss:$20 sps:$4 sm:$0xff]   ;;  %v10727_v33 = vld [vmem:[%s11662_s6 + $0x12a0] ss:$20 sps:$4 sm:$0xff]  }
 0x204   : > { %7104 = vmatprep.subr.bf16.mxu0 %v10666_v35  ;;  %7637 = vmatprep.subr.bf16.mxu1 %v10669_v2  ;;  %v10732_v35 = vld [vmem:[%s11662_s6 + $0x12c4] ss:$20 sps:$4 sm:$0xff]   ;;  %v10735_v2 = vld [vmem:[%s11662_s6 + $0x12cc] ss:$20 sps:$4 sm:$0xff]  }
 0x207   : > { %7105 = vmatpush1.bf16.msra.mxu0 %v10664_v37  ;;  %7638 = vmatpush1.bf16.msra.mxu1 %v10667_v39  ;;  %v10730_v37 = vld [vmem:[%s11662_s6 + $0x12c0] ss:$20 sps:$4 sm:$0xff]   ;;  %v10733_v39 = vld [vmem:[%s11662_s6 + $0x12c8] ss:$20 sps:$4 sm:$0xff]  }
 0x208   : > { %7106 = vmatprep.subr.bf16.mxu0 %v10672_v40  ;;  %7639 = vmatprep.subr.bf16.mxu1 %v10675_v41  ;;  %v10738_v40 = vld [vmem:[%s11662_s6 + $0x12ec] ss:$20 sps:$4 sm:$0xff]   ;;  %v10741_v41 = vld [vmem:[%s11662_s6 + $0x12f4] ss:$20 sps:$4 sm:$0xff]  }
 0x20b   : > { %7107 = vmatpush1.bf16.msra.mxu0 %v10670_v45  ;;  %7640 = vmatpush1.bf16.msra.mxu1 %v10673_v46  ;;  %v10739_v45 = vld [vmem:[%s11662_s6 + $0x12f0] ss:$20 sps:$4 sm:$0xff]   ;;  %v10744_v46 = vld [vmem:[%s11662_s6 + $0x1314] ss:$20 sps:$4 sm:$0xff]  }
 0x20c   : > { %7108 = vmatprep.subr.bf16.mxu0 %v10678_v48  ;;  %7641 = vmatprep.subr.bf16.mxu1 %v10681_v50  ;;  %v10747_v48 = vld [vmem:[%s11662_s6 + $0x131c] ss:$20 sps:$4 sm:$0xff]  }
 0x20d   : > { %v10742_v50 = vld [vmem:[%s11662_s6 + $0x1310] ss:$20 sps:$4 sm:$0xff]  }
 0x20f   : > { %7109 = vmatpush1.bf16.msra.mxu0 %v10676_v15  ;;  %7642 = vmatpush1.bf16.msra.mxu1 %v10679_v52  ;;  %v10745_v15 = vld [vmem:[%s11662_s6 + $0x1318] ss:$20 sps:$4 sm:$0xff]   ;;  %v10750_v52 = vld [vmem:[%s11662_s6 + $0x133c] ss:$20 sps:$4 sm:$0xff]  }
 0x210   : > { %7119 = vmatprep.subr.bf16.mxu0 %v10684_v53  ;;  %7652 = vmatprep.subr.bf16.mxu1 %v10687_v54  ;;  %v10753_v53 = vld [vmem:[%s11662_s6 + $0x1344] ss:$20 sps:$4 sm:$0xff]  }
 0x211   : > { %v10748_v54 = vld [vmem:[%s11662_s6 + $0x1338] ss:$20 sps:$4 sm:$0xff]  }
 0x212   : > { %7111 = vmatmul.mubr.bf16.vlgmr.msra.gmra.mrb[0].mxu0 %v12256_v57  ;;  %7644 = vmatmul.mubr.bf16.vlgmr.msra.gmra.mrb[0].mxu1 %v12256_v57 }
 0x213   : > { %7120 = vmatpush1.bf16.msra.mxu0 %v10682_v58  ;;  %7653 = vmatpush1.bf16.msra.mxu1 %v10685_v61  ;;  %v10756_v58 = vld [vmem:[%s11662_s6 + $0x1364] ss:$20 sps:$4 sm:$0xff]   ;;  %v10759_v61 = vld [vmem:[%s11662_s6 + $0x136c] ss:$20 sps:$4 sm:$0xff]  }
 0x214   : > { %7121 = vmatprep.subr.bf16.mxu0 %v10690_v32  ;;  %7654 = vmatprep.subr.bf16.mxu1 %v10693_v62  ;;  %v10754_v32 = vld [vmem:[%s11662_s6 + $0x1360] ss:$20 sps:$4 sm:$0xff]   ;;  %v10757_v62 = vld [vmem:[%s11662_s6 + $0x1368] ss:$20 sps:$4 sm:$0xff]  }
 0x215   : > { %7151 = vmatprep.mubr.bf16.mxu0 %v12262_v63  ;;  %7684 = vmatprep.mubr.bf16.mxu1 %v12262_v63 }
 0x217   : > { %7122 = vmatpush1.bf16.msra.mxu0 %v10688_v22  ;;  %7655 = vmatpush1.bf16.msra.mxu1 %v10691_v0  ;;  %v10762_v22 = vld [vmem:[%s11662_s6 + $0x138c] ss:$20 sps:$4 sm:$0xff]   ;;  %v10765_v0 = vld [vmem:[%s11662_s6 + $0x1394] ss:$20 sps:$4 sm:$0xff]  }
 0x218   : > { %7123 = vmatprep.subr.bf16.mxu0 %v10696_v1  ;;  %7656 = vmatprep.subr.bf16.mxu1 %v10699_v42  ;;  %v10760_v1 = vld [vmem:[%s11662_s6 + $0x1388] ss:$20 sps:$4 sm:$0xff]   ;;  %v10763_v42 = vld [vmem:[%s11662_s6 + $0x1390] ss:$20 sps:$4 sm:$0xff]  }
 0x21b   : > { %7124 = vmatpush1.bf16.msra.mxu0 %v10694_v3  ;;  %7657 = vmatpush1.bf16.msra.mxu1 %v10697_v4  ;;  %v10768_v3 = vld [vmem:[%s11662_s6 + $0x13b4] ss:$20 sps:$4 sm:$0xff]   ;;  %v10771_v4 = vld [vmem:[%s11662_s6 + $0x13bc] ss:$20 sps:$4 sm:$0xff]  }
 0x21c   : > { %7125 = vmatprep.subr.bf16.mxu0 %v10702_v5  ;;  %7658 = vmatprep.subr.bf16.mxu1 %v10705_v6  ;;  %v12323_v5 = vld [vmem:[%s12959_s0 + $0x20] sm:$0xff]  ;;  %v10766_v6 = vld [vmem:[%s11662_s6 + $0x13b0] ss:$20 sps:$4 sm:$0xff]  }
 0x21f   : > { %7126 = vmatpush1.bf16.msra.mxu0 %v10700_v8  ;;  %7659 = vmatpush1.bf16.msra.mxu1 %v10703_v10  ;;  %v10769_v8 = vld [vmem:[%s11662_s6 + $0x13b8] ss:$20 sps:$4 sm:$0xff]   ;;  %v10774_v10 = vld [vmem:[%s11662_s6 + $0x13dc] ss:$20 sps:$4 sm:$0xff]  }
 0x220   : > { %7127 = vmatprep.subr.bf16.mxu0 %v10708_v11  ;;  %7660 = vmatprep.subr.bf16.mxu1 %v10711_v12  ;;  %v10777_v11 = vld [vmem:[%s11662_s6 + $0x13e4] ss:$20 sps:$4 sm:$0xff]   ;;  %v12331_v12 = vrot.slane %v12323_v5, %v11721_v49 }
 0x223   : > { %7128 = vmatpush1.bf16.msra.mxu0 %v10706_v47  ;;  %7661 = vmatpush1.bf16.msra.mxu1 %v10709_v14  ;;  %v10772_v47 = vld [vmem:[%s11662_s6 + $0x13d8] ss:$20 sps:$4 sm:$0xff]   ;;  %v10775_v14 = vld [vmem:[%s11662_s6 + $0x13e0] ss:$20 sps:$4 sm:$0xff]  }
 0x224   : > { %7129 = vmatprep.subr.bf16.mxu0 %v10714_v17  ;;  %7662 = vmatprep.subr.bf16.mxu1 %v10717_v18  ;;  %v10781_v17 = vld [vmem:[%s11662_s6 + $0x1404] ss:$20 sps:$4 sm:$0xff]   ;;  %v10784_v18 = vld [vmem:[%s11662_s6 + $0x140c] ss:$20 sps:$4 sm:$0xff]  }
 0x227   : > { %7130 = vmatpush1.bf16.msra.mxu0 %v10712_v19  ;;  %7663 = vmatpush1.bf16.msra.mxu1 %v10715_v21  ;;  %v329_v19 = vcombine.high %v12331_v12, %v12331_v12  ;;  %v12341_v21 = vpack.c.bf16 %v12246_v51, %v12246_v51  ;;  %v10785_v51 = vld [vmem:[%s11662_s6 + $0x1428] ss:$20 sps:$4 sm:$0xff]  }
 0x228   : > { %7131 = vmatprep.subr.bf16.mxu0 %v10720_v23  ;;  %7664 = vmatprep.subr.bf16.mxu1 %v10723_v25  ;;  %v10779_v23 = vld [vmem:[%s11662_s6 + $0x1400] ss:$20 sps:$4 sm:$0xff]   ;;  %v10782_v25 = vld [vmem:[%s11662_s6 + $0x1408] ss:$20 sps:$4 sm:$0xff]  }
 0x22b   : > { %7132 = vmatpush1.bf16.msra.mxu0 %v10718_v27  ;;  %7665 = vmatpush1.bf16.msra.mxu1 %v10721_v28  ;;  %v10787_v27 = vld [vmem:[%s11662_s6 + $0x142c] ss:$20 sps:$4 sm:$0xff]   ;;  %v10790_v28 = vld [vmem:[%s11662_s6 + $0x1434] ss:$20 sps:$4 sm:$0xff]  }
 0x22c   : > { %7133 = vmatprep.subr.bf16.mxu0 %v10726_v9  ;;  %7666 = vmatprep.subr.bf16.mxu1 %v10729_v31  ;;  %v12347_v9 = vpack.c.bf16 %v329_v19, %v329_v19  ;;  %v10788_v31 = vld [vmem:[%s11662_s6 + $0x1430] ss:$20 sps:$4 sm:$0xff]  }
 0x22d   : > { %v10847_v19 = vld [vmem:[%s11662_s6 + $0x15bc] ss:$20 sps:$4 sm:$0xff]  }
 0x22f   : > { %7134 = vmatpush1.bf16.msra.mxu0 %v10724_v26  ;;  %7667 = vmatpush1.bf16.msra.mxu1 %v10727_v33  ;;  %v10793_v26 = vld [vmem:[%s11662_s6 + $0x1454] ss:$20 sps:$4 sm:$0xff]   ;;  %v10796_v33 = vld [vmem:[%s11662_s6 + $0x145c] ss:$20 sps:$4 sm:$0xff]  }
 0x230   : > { %7135 = vmatprep.subr.bf16.mxu0 %v10732_v35  ;;  %7668 = vmatprep.subr.bf16.mxu1 %v10735_v2  ;;  %v10791_v35 = vld [vmem:[%s11662_s6 + $0x1450] ss:$20 sps:$4 sm:$0xff]   ;;  %v10794_v2 = vld [vmem:[%s11662_s6 + $0x1458] ss:$20 sps:$4 sm:$0xff]  }
 0x233   : > { %7136 = vmatpush1.bf16.msra.mxu0 %v10730_v37  ;;  %7669 = vmatpush1.bf16.msra.mxu1 %v10733_v39  ;;  %v10799_v37 = vld [vmem:[%s11662_s6 + $0x147c] ss:$20 sps:$4 sm:$0xff]   ;;  %v10802_v39 = vld [vmem:[%s11662_s6 + $0x1484] ss:$20 sps:$4 sm:$0xff]  }
 0x234   : > { %7137 = vmatprep.subr.bf16.mxu0 %v10738_v40  ;;  %7670 = vmatprep.subr.bf16.mxu1 %v10741_v41  ;;  %v10797_v40 = vld [vmem:[%s11662_s6 + $0x1478] ss:$20 sps:$4 sm:$0xff]   ;;  %v10800_v41 = vld [vmem:[%s11662_s6 + $0x1480] ss:$20 sps:$4 sm:$0xff]  }
 0x237   : > { %7138 = vmatpush1.bf16.msra.mxu0 %v10736_v29  ;;  %7671 = vmatpush1.bf16.msra.mxu1 %v10739_v45  ;;  %v10805_v29 = vld [vmem:[%s11662_s6 + $0x14a4] ss:$20 sps:$4 sm:$0xff]   ;;  %v10808_v45 = vld [vmem:[%s11662_s6 + $0x14ac] ss:$20 sps:$4 sm:$0xff]  }
 0x238   : > { %7139 = vmatprep.subr.bf16.mxu0 %v10744_v46  ;;  %7672 = vmatprep.subr.bf16.mxu1 %v10747_v48  ;;  %v10803_v46 = vld [vmem:[%s11662_s6 + $0x14a0] ss:$20 sps:$4 sm:$0xff]   ;;  %v10806_v48 = vld [vmem:[%s11662_s6 + $0x14a8] ss:$20 sps:$4 sm:$0xff]  }
 0x23b   : > { %7140 = vmatpush1.bf16.msra.mxu0 %v10742_v50  ;;  %7673 = vmatpush1.bf16.msra.mxu1 %v10745_v15  ;;  %v10811_v50 = vld [vmem:[%s11662_s6 + $0x14cc] ss:$20 sps:$4 sm:$0xff]   ;;  %v10814_v15 = vld [vmem:[%s11662_s6 + $0x14d4] ss:$20 sps:$4 sm:$0xff]  }
 0x23c   : > { %7141 = vmatprep.subr.bf16.mxu0 %v10750_v52  ;;  %7674 = vmatprep.subr.bf16.mxu1 %v10753_v53  ;;  %v10809_v52 = vld [vmem:[%s11662_s6 + $0x14c8] ss:$20 sps:$4 sm:$0xff]   ;;  %v10812_v53 = vld [vmem:[%s11662_s6 + $0x14d0] ss:$20 sps:$4 sm:$0xff]  }
 0x23f   : > { %7142 = vmatpush1.bf16.msra.mxu0 %v10748_v54  ;;  %7675 = vmatpush1.bf16.msra.mxu1 %v10751_v56  ;;  %v10817_v54 = vld [vmem:[%s11662_s6 + $0x14f4] ss:$20 sps:$4 sm:$0xff]   ;;  %v10820_v56 = vld [vmem:[%s11662_s6 + $0x14fc] ss:$20 sps:$4 sm:$0xff]  }
 0x240   : > { %7143 = vmatprep.subr.bf16.mxu0 %v10756_v58  ;;  %7676 = vmatprep.subr.bf16.mxu1 %v10759_v61  ;;  %v10815_v58 = vld [vmem:[%s11662_s6 + $0x14f0] ss:$20 sps:$4 sm:$0xff]   ;;  %v10818_v61 = vld [vmem:[%s11662_s6 + $0x14f8] ss:$20 sps:$4 sm:$0xff]  }
 0x243   : > { %7144 = vmatpush1.bf16.msra.mxu0 %v10754_v32  ;;  %7677 = vmatpush1.bf16.msra.mxu1 %v10757_v62  ;;  %v10823_v32 = vld [vmem:[%s11662_s6 + $0x151c] ss:$20 sps:$4 sm:$0xff]   ;;  %v10826_v62 = vld [vmem:[%s11662_s6 + $0x1524] ss:$20 sps:$4 sm:$0xff]  }
 0x244   : > { %7145 = vmatprep.subr.bf16.mxu0 %v10762_v22  ;;  %7678 = vmatprep.subr.bf16.mxu1 %v10765_v0  ;;  %v10821_v22 = vld [vmem:[%s11662_s6 + $0x1518] ss:$20 sps:$4 sm:$0xff]   ;;  %v10824_v0 = vld [vmem:[%s11662_s6 + $0x1520] ss:$20 sps:$4 sm:$0xff]  }
 0x247   : > { %7146 = vmatpush1.bf16.msra.mxu0 %v10760_v1  ;;  %7679 = vmatpush1.bf16.msra.mxu1 %v10763_v42  ;;  %v10829_v1 = vld [vmem:[%s11662_s6 + $0x1544] ss:$20 sps:$4 sm:$0xff]   ;;  %v10832_v42 = vld [vmem:[%s11662_s6 + $0x154c] ss:$20 sps:$4 sm:$0xff]  }
 0x248   : > { %7147 = vmatprep.subr.bf16.mxu0 %v10768_v3  ;;  %7680 = vmatprep.subr.bf16.mxu1 %v10771_v4  ;;  %v10827_v3 = vld [vmem:[%s11662_s6 + $0x1540] ss:$20 sps:$4 sm:$0xff]   ;;  %v10830_v4 = vld [vmem:[%s11662_s6 + $0x1548] ss:$20 sps:$4 sm:$0xff]  }
 0x24b   : > { %7148 = vmatpush1.bf16.msra.mxu0 %v10766_v6  ;;  %7681 = vmatpush1.bf16.msra.mxu1 %v10769_v8  ;;  %v10835_v6 = vld [vmem:[%s11662_s6 + $0x156c] ss:$20 sps:$4 sm:$0xff]   ;;  %v10838_v8 = vld [vmem:[%s11662_s6 + $0x1574] ss:$20 sps:$4 sm:$0xff]  }
 0x24c   : > { %7149 = vmatprep.subr.bf16.mxu0 %v10774_v10  ;;  %7682 = vmatprep.subr.bf16.mxu1 %v10777_v11  ;;  %v10833_v10 = vld [vmem:[%s11662_s6 + $0x1568] ss:$20 sps:$4 sm:$0xff]   ;;  %v10836_v11 = vld [vmem:[%s11662_s6 + $0x1570] ss:$20 sps:$4 sm:$0xff]  }
 0x24f   : > { %7150 = vmatpush1.bf16.msra.mxu0 %v10772_v47  ;;  %7683 = vmatpush1.bf16.msra.mxu1 %v10775_v14  ;;  %v10841_v47 = vld [vmem:[%s11662_s6 + $0x1594] ss:$20 sps:$4 sm:$0xff]   ;;  %v10844_v14 = vld [vmem:[%s11662_s6 + $0x159c] ss:$20 sps:$4 sm:$0xff]  }
 0x250   : > { %7160 = vmatprep.subr.bf16.mxu0 %v10781_v17  ;;  %7693 = vmatprep.subr.bf16.mxu1 %v10784_v18  ;;  %v10839_v17 = vld [vmem:[%s11662_s6 + $0x1590] ss:$20 sps:$4 sm:$0xff]   ;;  %v10842_v18 = vld [vmem:[%s11662_s6 + $0x1598] ss:$20 sps:$4 sm:$0xff]  }
 0x252   : > { %7152 = vmatmul.mubr.bf16.vlgmr.msra.gmra.mrb[0].mxu0 %v12341_v21  ;;  %7685 = vmatmul.mubr.bf16.vlgmr.msra.gmra.mrb[0].mxu1 %v12341_v21 }
 0x253   : > { %7161 = vmatpush1.bf16.msra.mxu0 %v10779_v23  ;;  %7694 = vmatpush1.bf16.msra.mxu1 %v10782_v25  ;;  %v10850_v23 = vld [vmem:[%s11662_s6 + $0x15c4] ss:$20 sps:$4 sm:$0xff]  }
 0x254   : > { %7162 = vmatprep.subr.bf16.mxu0 %v10787_v27  ;;  %7695 = vmatprep.subr.bf16.mxu1 %v10790_v28  ;;  %v10845_v25 = vld [vmem:[%s11662_s6 + $0x15b8] ss:$20 sps:$4 sm:$0xff]   ;;  %v10848_v27 = vld [vmem:[%s11662_s6 + $0x15c0] ss:$20 sps:$4 sm:$0xff]  }
 0x255   : > { %7192 = vmatprep.mubr.bf16.mxu0 %v12347_v9  ;;  %7725 = vmatprep.mubr.bf16.mxu1 %v12347_v9  ;;  %v10853_v28 = vld [vmem:[%s11662_s6 + $0x15e4] ss:$20 sps:$4 sm:$0xff]  }
 0x257   : > { %7163 = vmatpush1.bf16.msra.mxu0 %v10785_v51  ;;  %7696 = vmatpush1.bf16.msra.mxu1 %v10788_v31  ;;  %v10856_v51 = vld [vmem:[%s11662_s6 + $0x15ec] ss:$20 sps:$4 sm:$0xff]  }
 0x258   : > { %7164 = vmatprep.subr.bf16.mxu0 %v10793_v26  ;;  %7697 = vmatprep.subr.bf16.mxu1 %v10796_v33  ;;  %v10851_v31 = vld [vmem:[%s11662_s6 + $0x15e0] ss:$20 sps:$4 sm:$0xff]   ;;  %v10854_v26 = vld [vmem:[%s11662_s6 + $0x15e8] ss:$20 sps:$4 sm:$0xff]  }
 0x259   : > { %v10859_v33 = vld [vmem:[%s11662_s6 + $0x160c] ss:$20 sps:$4 sm:$0xff]  }
 0x25b   : > { %7165 = vmatpush1.bf16.msra.mxu0 %v10791_v35  ;;  %7698 = vmatpush1.bf16.msra.mxu1 %v10794_v2  ;;  %v10862_v35 = vld [vmem:[%s11662_s6 + $0x1614] ss:$20 sps:$4 sm:$0xff]  }
 0x25c   : > { %7166 = vmatprep.subr.bf16.mxu0 %v10799_v37  ;;  %7699 = vmatprep.subr.bf16.mxu1 %v10802_v39  ;;  %v10857_v2 = vld [vmem:[%s11662_s6 + $0x1608] ss:$20 sps:$4 sm:$0xff]   ;;  %v10860_v37 = vld [vmem:[%s11662_s6 + $0x1610] ss:$20 sps:$4 sm:$0xff]  }
 0x25d   : > { %v10865_v39 = vld [vmem:[%s11662_s6 + $0x1634] ss:$20 sps:$4 sm:$0xff]  }
 0x25f   : > { %7167 = vmatpush1.bf16.msra.mxu0 %v10797_v40  ;;  %7700 = vmatpush1.bf16.msra.mxu1 %v10800_v41  ;;  %v10868_v40 = vld [vmem:[%s11662_s6 + $0x163c] ss:$20 sps:$4 sm:$0xff]   ;;  %v314_v41 = vcombine.high %v12323_v5, %v12323_v5  ;;  %v10869_v5 = vld [vmem:[%s11662_s6 + $0x1658] ss:$20 sps:$4 sm:$0xff]  }
 0x260   : > { %7168 = vmatprep.subr.bf16.mxu0 %v10805_v29  ;;  %7701 = vmatprep.subr.bf16.mxu1 %v10808_v45  ;;  %v10863_v29 = vld [vmem:[%s11662_s6 + $0x1630] ss:$20 sps:$4 sm:$0xff]   ;;  %v10866_v45 = vld [vmem:[%s11662_s6 + $0x1638] ss:$20 sps:$4 sm:$0xff]  }
 0x263   : > { %7169 = vmatpush1.bf16.msra.mxu0 %v10803_v46  ;;  %7702 = vmatpush1.bf16.msra.mxu1 %v10806_v48  ;;  %v10871_v46 = vld [vmem:[%s11662_s6 + $0x165c] ss:$20 sps:$4 sm:$0xff]   ;;  %v10874_v48 = vld [vmem:[%s11662_s6 + $0x1664] ss:$20 sps:$4 sm:$0xff]  }
 0x264   : > { %7170 = vmatprep.subr.bf16.mxu0 %v10811_v50  ;;  %7703 = vmatprep.subr.bf16.mxu1 %v10814_v15  ;;  %v12412_v50 = vrot.slane %v314_v41, %v11721_v49  ;;  %v10872_v15 = vld [vmem:[%s11662_s6 + $0x1660] ss:$20 sps:$4 sm:$0xff]  }
 0x265   : > { %v10923_v41 = vld [vmem:[%s11662_s6 + $0x17c0] ss:$20 sps:$4 sm:$0xff]  }
 0x267   : > { %7171 = vmatpush1.bf16.msra.mxu0 %v10809_v52  ;;  %7704 = vmatpush1.bf16.msra.mxu1 %v10812_v53  ;;  %v10877_v52 = vld [vmem:[%s11662_s6 + $0x1684] ss:$20 sps:$4 sm:$0xff]   ;;  %v10880_v53 = vld [vmem:[%s11662_s6 + $0x168c] ss:$20 sps:$4 sm:$0xff]  }
 0x268   : > { %7172 = vmatprep.subr.bf16.mxu0 %v10817_v54  ;;  %7705 = vmatprep.subr.bf16.mxu1 %v10820_v56  ;;  %v330_v54 = vcombine.high %v12412_v50, %v12412_v50  ;;  %v12422_v56 = vpack.c.bf16 %v12331_v12, %v12331_v12  ;;  %v10881_v12 = vld [vmem:[%s11662_s6 + $0x16a8] ss:$20 sps:$4 sm:$0xff]  }
 0x26b   : > { %7173 = vmatpush1.bf16.msra.mxu0 %v10815_v58  ;;  %7706 = vmatpush1.bf16.msra.mxu1 %v10818_v61  ;;  %v10875_v58 = vld [vmem:[%s11662_s6 + $0x1680] ss:$20 sps:$4 sm:$0xff]   ;;  %v10878_v61 = vld [vmem:[%s11662_s6 + $0x1688] ss:$20 sps:$4 sm:$0xff]  }
 0x26c   : > { %7174 = vmatprep.subr.bf16.mxu0 %v10823_v32  ;;  %7707 = vmatprep.subr.bf16.mxu1 %v10826_v62  ;;  %v10883_v32 = vld [vmem:[%s11662_s6 + $0x16ac] ss:$20 sps:$4 sm:$0xff]   ;;  %v10886_v62 = vld [vmem:[%s11662_s6 + $0x16b4] ss:$20 sps:$4 sm:$0xff]  }
 0x26f   : > { %7175 = vmatpush1.bf16.msra.mxu0 %v10821_v22  ;;  %7708 = vmatpush1.bf16.msra.mxu1 %v10824_v0  ;;  %v12428_v22 = vpack.c.bf16 %v330_v54, %v330_v54  ;;  %v10884_v0 = vld [vmem:[%s11662_s6 + $0x16b0] ss:$20 sps:$4 sm:$0xff]   ;;  %v10938_v54 = vld [vmem:[%s11662_s6 + $0x1818] ss:$20 sps:$4 sm:$0xff]  }
 0x270   : > { %7176 = vmatprep.subr.bf16.mxu0 %v10829_v1  ;;  %7709 = vmatprep.subr.bf16.mxu1 %v10832_v42  ;;  %v10889_v1 = vld [vmem:[%s11662_s6 + $0x16d4] ss:$20 sps:$4 sm:$0xff]   ;;  %v10892_v42 = vld [vmem:[%s11662_s6 + $0x16dc] ss:$20 sps:$4 sm:$0xff]  }
 0x273   : > { %7177 = vmatpush1.bf16.msra.mxu0 %v10827_v3  ;;  %7710 = vmatpush1.bf16.msra.mxu1 %v10830_v4  ;;  %v10887_v3 = vld [vmem:[%s11662_s6 + $0x16d0] ss:$20 sps:$4 sm:$0xff]   ;;  %v10890_v4 = vld [vmem:[%s11662_s6 + $0x16d8] ss:$20 sps:$4 sm:$0xff]  }
 0x274   : > { %7178 = vmatprep.subr.bf16.mxu0 %v10835_v6  ;;  %7711 = vmatprep.subr.bf16.mxu1 %v10838_v8  ;;  %v10895_v6 = vld [vmem:[%s11662_s6 + $0x16fc] ss:$20 sps:$4 sm:$0xff]   ;;  %v10898_v8 = vld [vmem:[%s11662_s6 + $0x1704] ss:$20 sps:$4 sm:$0xff]  }
 0x277   : > { %7179 = vmatpush1.bf16.msra.mxu0 %v10833_v10  ;;  %7712 = vmatpush1.bf16.msra.mxu1 %v10836_v11  ;;  %v10893_v10 = vld [vmem:[%s11662_s6 + $0x16f8] ss:$20 sps:$4 sm:$0xff]   ;;  %v10896_v11 = vld [vmem:[%s11662_s6 + $0x1700] ss:$20 sps:$4 sm:$0xff]  }
 0x278   : > { %7180 = vmatprep.subr.bf16.mxu0 %v10841_v47  ;;  %7713 = vmatprep.subr.bf16.mxu1 %v10844_v14  ;;  %v10901_v47 = vld [vmem:[%s11662_s6 + $0x1724] ss:$20 sps:$4 sm:$0xff]   ;;  %v10904_v14 = vld [vmem:[%s11662_s6 + $0x172c] ss:$20 sps:$4 sm:$0xff]  }
 0x27b   : > { %7181 = vmatpush1.bf16.msra.mxu0 %v10839_v17  ;;  %7714 = vmatpush1.bf16.msra.mxu1 %v10842_v18  ;;  %v10899_v17 = vld [vmem:[%s11662_s6 + $0x1720] ss:$20 sps:$4 sm:$0xff]   ;;  %v10902_v18 = vld [vmem:[%s11662_s6 + $0x1728] ss:$20 sps:$4 sm:$0xff]  }
 0x27c   : > { %7182 = vmatprep.subr.bf16.mxu0 %v10847_v19  ;;  %7715 = vmatprep.subr.bf16.mxu1 %v10850_v23  ;;  %v10907_v19 = vld [vmem:[%s11662_s6 + $0x174c] ss:$20 sps:$4 sm:$0xff]   ;;  %v10910_v23 = vld [vmem:[%s11662_s6 + $0x1754] ss:$20 sps:$4 sm:$0xff]  }
 0x27f   : > { %7183 = vmatpush1.bf16.msra.mxu0 %v10845_v25  ;;  %7716 = vmatpush1.bf16.msra.mxu1 %v10848_v27  ;;  %v10905_v25 = vld [vmem:[%s11662_s6 + $0x1748] ss:$20 sps:$4 sm:$0xff]   ;;  %v10908_v27 = vld [vmem:[%s11662_s6 + $0x1750] ss:$20 sps:$4 sm:$0xff]  }
 0x280   : > { %7184 = vmatprep.subr.bf16.mxu0 %v10853_v28  ;;  %7717 = vmatprep.subr.bf16.mxu1 %v10856_v51  ;;  %v10913_v28 = vld [vmem:[%s11662_s6 + $0x1774] ss:$20 sps:$4 sm:$0xff]   ;;  %v10916_v51 = vld [vmem:[%s11662_s6 + $0x177c] ss:$20 sps:$4 sm:$0xff]  }
 0x283   : > { %7185 = vmatpush1.bf16.msra.mxu0 %v10851_v31  ;;  %7718 = vmatpush1.bf16.msra.mxu1 %v10854_v26  ;;  %v10911_v31 = vld [vmem:[%s11662_s6 + $0x1770] ss:$20 sps:$4 sm:$0xff]   ;;  %v10914_v26 = vld [vmem:[%s11662_s6 + $0x1778] ss:$20 sps:$4 sm:$0xff]  }
 0x284   : > { %7186 = vmatprep.subr.bf16.mxu0 %v10859_v33  ;;  %7719 = vmatprep.subr.bf16.mxu1 %v10862_v35  ;;  %v10919_v33 = vld [vmem:[%s11662_s6 + $0x179c] ss:$20 sps:$4 sm:$0xff]   ;;  %v10922_v35 = vld [vmem:[%s11662_s6 + $0x17a4] ss:$20 sps:$4 sm:$0xff]  }
 0x287   : > { %7187 = vmatpush1.bf16.msra.mxu0 %v10857_v2  ;;  %7720 = vmatpush1.bf16.msra.mxu1 %v10860_v37  ;;  %v10917_v2 = vld [vmem:[%s11662_s6 + $0x1798] ss:$20 sps:$4 sm:$0xff]   ;;  %v10920_v37 = vld [vmem:[%s11662_s6 + $0x17a0] ss:$20 sps:$4 sm:$0xff]  }
 0x288   : > { %7188 = vmatprep.subr.bf16.mxu0 %v10865_v39  ;;  %7721 = vmatprep.subr.bf16.mxu1 %v10868_v40  ;;  %v10925_v39 = vld [vmem:[%s11662_s6 + $0x17c4] ss:$20 sps:$4 sm:$0xff]   ;;  %v10928_v40 = vld [vmem:[%s11662_s6 + $0x17cc] ss:$20 sps:$4 sm:$0xff]  }
 0x28b   : > { %7189 = vmatpush1.bf16.msra.mxu0 %v10863_v29  ;;  %7722 = vmatpush1.bf16.msra.mxu1 %v10866_v45  ;;  %v10926_v29 = vld [vmem:[%s11662_s6 + $0x17c8] ss:$20 sps:$4 sm:$0xff]   ;;  %v10931_v45 = vld [vmem:[%s11662_s6 + $0x17ec] ss:$20 sps:$4 sm:$0xff]  }
 0x28c   : > { %7190 = vmatprep.subr.bf16.mxu0 %v10871_v46  ;;  %7723 = vmatprep.subr.bf16.mxu1 %v10874_v48  ;;  %v10934_v46 = vld [vmem:[%s11662_s6 + $0x17f4] ss:$20 sps:$4 sm:$0xff]  }
 0x28d   : > { %v10929_v48 = vld [vmem:[%s11662_s6 + $0x17e8] ss:$20 sps:$4 sm:$0xff]  }
 0x28f   : > { %7191 = vmatpush1.bf16.msra.mxu0 %v10869_v5  ;;  %7724 = vmatpush1.bf16.msra.mxu1 %v10872_v15  ;;  %v10932_v5 = vld [vmem:[%s11662_s6 + $0x17f0] ss:$20 sps:$4 sm:$0xff]   ;;  %v10937_v15 = vld [vmem:[%s11662_s6 + $0x1814] ss:$20 sps:$4 sm:$0xff]  }
 0x290   : > { %7201 = vmatprep.subr.bf16.mxu0 %v10877_v52  ;;  %7734 = vmatprep.subr.bf16.mxu1 %v10880_v53  ;;  %v10940_v52 = vld [vmem:[%s11662_s6 + $0x181c] ss:$20 sps:$4 sm:$0xff]  }
 0x291   : > { %v10935_v53 = vld [vmem:[%s11662_s6 + $0x1810] ss:$20 sps:$4 sm:$0xff]  }
 0x292   : > { %7193 = vmatmul.mubr.bf16.vlgmr.msra.gmra.mrb[0].mxu0 %v12422_v56  ;;  %7726 = vmatmul.mubr.bf16.vlgmr.msra.gmra.mrb[0].mxu1 %v12422_v56 }
 0x293   : > { %7202 = vmatpush1.bf16.msra.mxu0 %v10875_v58  ;;  %7735 = vmatpush1.bf16.msra.mxu1 %v10878_v61  ;;  %v10943_v58 = vld [vmem:[%s11662_s6 + $0x183c] ss:$20 sps:$4 sm:$0xff]   ;;  %v10946_v61 = vld [vmem:[%s11662_s6 + $0x1844] ss:$20 sps:$4 sm:$0xff]  }
 0x294   : > { %7203 = vmatprep.subr.bf16.mxu0 %v10883_v32  ;;  %7736 = vmatprep.subr.bf16.mxu1 %v10886_v62  ;;  %v10941_v32 = vld [vmem:[%s11662_s6 + $0x1838] ss:$20 sps:$4 sm:$0xff]   ;;  %v10944_v62 = vld [vmem:[%s11662_s6 + $0x1840] ss:$20 sps:$4 sm:$0xff]  }
 0x295   : > { %7233 = vmatprep.mubr.bf16.mxu0 %v12428_v22  ;;  %7766 = vmatprep.mubr.bf16.mxu1 %v12428_v22 }
 0x297   : > { %7204 = vmatpush1.bf16.msra.mxu0 %v10881_v12  ;;  %7737 = vmatpush1.bf16.msra.mxu1 %v10884_v0  ;;  %v10949_v12 = vld [vmem:[%s11662_s6 + $0x1864] ss:$20 sps:$4 sm:$0xff]   ;;  %v10952_v0 = vld [vmem:[%s11662_s6 + $0x186c] ss:$20 sps:$4 sm:$0xff]  }
 0x298   : > { %7205 = vmatprep.subr.bf16.mxu0 %v10889_v1  ;;  %7738 = vmatprep.subr.bf16.mxu1 %v10892_v42  ;;  %v10947_v1 = vld [vmem:[%s11662_s6 + $0x1860] ss:$20 sps:$4 sm:$0xff]   ;;  %v10950_v42 = vld [vmem:[%s11662_s6 + $0x1868] ss:$20 sps:$4 sm:$0xff]  }
 0x29b   : > { %7206 = vmatpush1.bf16.msra.mxu0 %v10887_v3  ;;  %7739 = vmatpush1.bf16.msra.mxu1 %v10890_v4  ;;  %v10955_v3 = vld [vmem:[%s11662_s6 + $0x188c] ss:$20 sps:$4 sm:$0xff]   ;;  %v10958_v4 = vld [vmem:[%s11662_s6 + $0x1894] ss:$20 sps:$4 sm:$0xff]  }
 0x29c   : > { %7207 = vmatprep.subr.bf16.mxu0 %v10895_v6  ;;  %7740 = vmatprep.subr.bf16.mxu1 %v10898_v8  ;;  %v10953_v6 = vld [vmem:[%s11662_s6 + $0x1888] ss:$20 sps:$4 sm:$0xff]   ;;  %v10956_v8 = vld [vmem:[%s11662_s6 + $0x1890] ss:$20 sps:$4 sm:$0xff]  }
 0x29f   : > { %7208 = vmatpush1.bf16.msra.mxu0 %v10893_v10  ;;  %7741 = vmatpush1.bf16.msra.mxu1 %v10896_v11  ;;  %v10961_v10 = vld [vmem:[%s11662_s6 + $0x18b4] ss:$20 sps:$4 sm:$0xff]   ;;  %v10964_v11 = vld [vmem:[%s11662_s6 + $0x18bc] ss:$20 sps:$4 sm:$0xff]  }
 0x2a0   : > { %7209 = vmatprep.subr.bf16.mxu0 %v10901_v47  ;;  %7742 = vmatprep.subr.bf16.mxu1 %v10904_v14  ;;  %v12489_v47 = vld [vmem:[%s12959_s0 + $0x28] sm:$0xff] }
 0x2a1   : > { %v10959_v14 = vld [vmem:[%s11662_s6 + $0x18b0] ss:$20 sps:$4 sm:$0xff]  }
 0x2a3   : > { %7210 = vmatpush1.bf16.msra.mxu0 %v10899_v17  ;;  %7743 = vmatpush1.bf16.msra.mxu1 %v10902_v18  ;;  %v10962_v17 = vld [vmem:[%s11662_s6 + $0x18b8] ss:$20 sps:$4 sm:$0xff]   ;;  %v10967_v18 = vld [vmem:[%s11662_s6 + $0x18dc] ss:$20 sps:$4 sm:$0xff]  }
 0x2a4   : > { %7211 = vmatprep.subr.bf16.mxu0 %v10907_v19  ;;  %7744 = vmatprep.subr.bf16.mxu1 %v10910_v23  ;;  %v10970_v19 = vld [vmem:[%s11662_s6 + $0x18e4] ss:$20 sps:$4 sm:$0xff]   ;;  %v12497_v23 = vrot.slane %v12489_v47, %v11721_v49 }
 0x2a7   : > { %7212 = vmatpush1.bf16.msra.mxu0 %v10905_v25  ;;  %7745 = vmatpush1.bf16.msra.mxu1 %v10908_v27  ;;  %v10965_v25 = vld [vmem:[%s11662_s6 + $0x18d8] ss:$20 sps:$4 sm:$0xff]   ;;  %v10968_v27 = vld [vmem:[%s11662_s6 + $0x18e0] ss:$20 sps:$4 sm:$0xff]  }
 0x2a8   : > { %7213 = vmatprep.subr.bf16.mxu0 %v10913_v28  ;;  %7746 = vmatprep.subr.bf16.mxu1 %v10916_v51  ;;  %v10974_v28 = vld [vmem:[%s11662_s6 + $0x1904] ss:$20 sps:$4 sm:$0xff]   ;;  %v10977_v51 = vld [vmem:[%s11662_s6 + $0x190c] ss:$20 sps:$4 sm:$0xff]  }
 0x2ab   : > { %7214 = vmatpush1.bf16.msra.mxu0 %v10911_v31  ;;  %7747 = vmatpush1.bf16.msra.mxu1 %v10914_v26  ;;  %v346_v31 = vcombine.high %v12497_v23, %v12497_v23  ;;  %v12507_v26 = vpack.c.bf16 %v12412_v50, %v12412_v50  ;;  %v10978_v50 = vld [vmem:[%s11662_s6 + $0x1928] ss:$20 sps:$4 sm:$0xff]  }
 0x2ac   : > { %7215 = vmatprep.subr.bf16.mxu0 %v10919_v33  ;;  %7748 = vmatprep.subr.bf16.mxu1 %v10922_v35  ;;  %v10972_v33 = vld [vmem:[%s11662_s6 + $0x1900] ss:$20 sps:$4 sm:$0xff]   ;;  %v10975_v35 = vld [vmem:[%s11662_s6 + $0x1908] ss:$20 sps:$4 sm:$0xff]  }
 0x2af   : > { %7216 = vmatpush1.bf16.msra.mxu0 %v10917_v2  ;;  %7749 = vmatpush1.bf16.msra.mxu1 %v10920_v37  ;;  %v10980_v2 = vld [vmem:[%s11662_s6 + $0x192c] ss:$20 sps:$4 sm:$0xff]   ;;  %v10983_v37 = vld [vmem:[%s11662_s6 + $0x1934] ss:$20 sps:$4 sm:$0xff]  }
 0x2b0   : > { %7217 = vmatprep.subr.bf16.mxu0 %v10925_v39  ;;  %7750 = vmatprep.subr.bf16.mxu1 %v10928_v40  ;;  %v12513_v39 = vpack.c.bf16 %v346_v31, %v346_v31  ;;  %v10981_v40 = vld [vmem:[%s11662_s6 + $0x1930] ss:$20 sps:$4 sm:$0xff]   ;;  %v11034_v31 = vld [vmem:[%s11662_s6 + $0x1a94] ss:$20 sps:$4 sm:$0xff]  }
 0x2b3   : > { %7218 = vmatpush1.bf16.msra.mxu0 %v10923_v41  ;;  %7751 = vmatpush1.bf16.msra.mxu1 %v10926_v29  ;;  %v10986_v41 = vld [vmem:[%s11662_s6 + $0x1954] ss:$20 sps:$4 sm:$0xff]   ;;  %v10989_v29 = vld [vmem:[%s11662_s6 + $0x195c] ss:$20 sps:$4 sm:$0xff]  }
 0x2b4   : > { %7219 = vmatprep.subr.bf16.mxu0 %v10931_v45  ;;  %7752 = vmatprep.subr.bf16.mxu1 %v10934_v46  ;;  %v10984_v45 = vld [vmem:[%s11662_s6 + $0x1950] ss:$20 sps:$4 sm:$0xff]   ;;  %v10987_v46 = vld [vmem:[%s11662_s6 + $0x1958] ss:$20 sps:$4 sm:$0xff]  }
 0x2b7   : > { %7220 = vmatpush1.bf16.msra.mxu0 %v10929_v48  ;;  %7753 = vmatpush1.bf16.msra.mxu1 %v10932_v5  ;;  %v10992_v48 = vld [vmem:[%s11662_s6 + $0x197c] ss:$20 sps:$4 sm:$0xff]   ;;  %v10995_v5 = vld [vmem:[%s11662_s6 + $0x1984] ss:$20 sps:$4 sm:$0xff]  }
 0x2b8   : > { %7221 = vmatprep.subr.bf16.mxu0 %v10937_v15  ;;  %7754 = vmatprep.subr.bf16.mxu1 %v10940_v52  ;;  %v10990_v15 = vld [vmem:[%s11662_s6 + $0x1978] ss:$20 sps:$4 sm:$0xff]   ;;  %v10993_v52 = vld [vmem:[%s11662_s6 + $0x1980] ss:$20 sps:$4 sm:$0xff]  }
 0x2bb   : > { %7222 = vmatpush1.bf16.msra.mxu0 %v10935_v53  ;;  %7755 = vmatpush1.bf16.msra.mxu1 %v10938_v54  ;;  %v10998_v53 = vld [vmem:[%s11662_s6 + $0x19a4] ss:$20 sps:$4 sm:$0xff]   ;;  %v11001_v54 = vld [vmem:[%s11662_s6 + $0x19ac] ss:$20 sps:$4 sm:$0xff]  }
 0x2bc   : > { %7223 = vmatprep.subr.bf16.mxu0 %v10943_v58  ;;  %7756 = vmatprep.subr.bf16.mxu1 %v10946_v61  ;;  %v10996_v58 = vld [vmem:[%s11662_s6 + $0x19a0] ss:$20 sps:$4 sm:$0xff]   ;;  %v10999_v61 = vld [vmem:[%s11662_s6 + $0x19a8] ss:$20 sps:$4 sm:$0xff]  }
 0x2bf   : > { %7224 = vmatpush1.bf16.msra.mxu0 %v10941_v32  ;;  %7757 = vmatpush1.bf16.msra.mxu1 %v10944_v62  ;;  %v11004_v32 = vld [vmem:[%s11662_s6 + $0x19cc] ss:$20 sps:$4 sm:$0xff]   ;;  %v11007_v62 = vld [vmem:[%s11662_s6 + $0x19d4] ss:$20 sps:$4 sm:$0xff]  }
 0x2c0   : > { %7225 = vmatprep.subr.bf16.mxu0 %v10949_v12  ;;  %7758 = vmatprep.subr.bf16.mxu1 %v10952_v0  ;;  %v11002_v12 = vld [vmem:[%s11662_s6 + $0x19c8] ss:$20 sps:$4 sm:$0xff]   ;;  %v11005_v0 = vld [vmem:[%s11662_s6 + $0x19d0] ss:$20 sps:$4 sm:$0xff]  }
 0x2c3   : > { %7226 = vmatpush1.bf16.msra.mxu0 %v10947_v1  ;;  %7759 = vmatpush1.bf16.msra.mxu1 %v10950_v42  ;;  %v11010_v1 = vld [vmem:[%s11662_s6 + $0x19f4] ss:$20 sps:$4 sm:$0xff]   ;;  %v11013_v42 = vld [vmem:[%s11662_s6 + $0x19fc] ss:$20 sps:$4 sm:$0xff]  }
 0x2c4   : > { %7227 = vmatprep.subr.bf16.mxu0 %v10955_v3  ;;  %7760 = vmatprep.subr.bf16.mxu1 %v10958_v4  ;;  %v11008_v3 = vld [vmem:[%s11662_s6 + $0x19f0] ss:$20 sps:$4 sm:$0xff]   ;;  %v11011_v4 = vld [vmem:[%s11662_s6 + $0x19f8] ss:$20 sps:$4 sm:$0xff]  }
 0x2c7   : > { %7228 = vmatpush1.bf16.msra.mxu0 %v10953_v6  ;;  %7761 = vmatpush1.bf16.msra.mxu1 %v10956_v8  ;;  %v11016_v6 = vld [vmem:[%s11662_s6 + $0x1a1c] ss:$20 sps:$4 sm:$0xff]   ;;  %v11019_v8 = vld [vmem:[%s11662_s6 + $0x1a24] ss:$20 sps:$4 sm:$0xff]  }
 0x2c8   : > { %7229 = vmatprep.subr.bf16.mxu0 %v10961_v10  ;;  %7762 = vmatprep.subr.bf16.mxu1 %v10964_v11  ;;  %v11014_v10 = vld [vmem:[%s11662_s6 + $0x1a18] ss:$20 sps:$4 sm:$0xff]   ;;  %v11017_v11 = vld [vmem:[%s11662_s6 + $0x1a20] ss:$20 sps:$4 sm:$0xff]  }
 0x2cb   : > { %7230 = vmatpush1.bf16.msra.mxu0 %v10959_v14  ;;  %7763 = vmatpush1.bf16.msra.mxu1 %v10962_v17  ;;  %v11022_v14 = vld [vmem:[%s11662_s6 + $0x1a44] ss:$20 sps:$4 sm:$0xff]   ;;  %v11025_v17 = vld [vmem:[%s11662_s6 + $0x1a4c] ss:$20 sps:$4 sm:$0xff]  }
 0x2cc   : > { %7231 = vmatprep.subr.bf16.mxu0 %v10967_v18  ;;  %7764 = vmatprep.subr.bf16.mxu1 %v10970_v19  ;;  %v11020_v18 = vld [vmem:[%s11662_s6 + $0x1a40] ss:$20 sps:$4 sm:$0xff]   ;;  %v11023_v19 = vld [vmem:[%s11662_s6 + $0x1a48] ss:$20 sps:$4 sm:$0xff]  }
 0x2cf   : > { %7232 = vmatpush1.bf16.msra.mxu0 %v10965_v25  ;;  %7765 = vmatpush1.bf16.msra.mxu1 %v10968_v27  ;;  %v11028_v25 = vld [vmem:[%s11662_s6 + $0x1a6c] ss:$20 sps:$4 sm:$0xff]   ;;  %v11031_v27 = vld [vmem:[%s11662_s6 + $0x1a74] ss:$20 sps:$4 sm:$0xff]  }
 0x2d0   : > { %7242 = vmatprep.subr.bf16.mxu0 %v10974_v28  ;;  %7775 = vmatprep.subr.bf16.mxu1 %v10977_v51  ;;  %v11026_v28 = vld [vmem:[%s11662_s6 + $0x1a68] ss:$20 sps:$4 sm:$0xff]   ;;  %v11029_v51 = vld [vmem:[%s11662_s6 + $0x1a70] ss:$20 sps:$4 sm:$0xff]  }
 0x2d2   : > { %7234 = vmatmul.mubr.bf16.vlgmr.msra.gmra.mrb[0].mxu0 %v12507_v26  ;;  %7767 = vmatmul.mubr.bf16.vlgmr.msra.gmra.mrb[0].mxu1 %v12507_v26 }
 0x2d3   : > { %7243 = vmatpush1.bf16.msra.mxu0 %v10972_v33  ;;  %7776 = vmatpush1.bf16.msra.mxu1 %v10975_v35  ;;  %v11037_v33 = vld [vmem:[%s11662_s6 + $0x1a9c] ss:$20 sps:$4 sm:$0xff]  }
 0x2d4   : > { %7244 = vmatprep.subr.bf16.mxu0 %v10980_v2  ;;  %7777 = vmatprep.subr.bf16.mxu1 %v10983_v37  ;;  %v11032_v35 = vld [vmem:[%s11662_s6 + $0x1a90] ss:$20 sps:$4 sm:$0xff]   ;;  %v11035_v2 = vld [vmem:[%s11662_s6 + $0x1a98] ss:$20 sps:$4 sm:$0xff]  }
 0x2d5   : > { %7274 = vmatprep.mubr.bf16.mxu0 %v12513_v39  ;;  %7807 = vmatprep.mubr.bf16.mxu1 %v12513_v39  ;;  %v11040_v37 = vld [vmem:[%s11662_s6 + $0x1abc] ss:$20 sps:$4 sm:$0xff]  }
 0x2d7   : > { %7245 = vmatpush1.bf16.msra.mxu0 %v10978_v50  ;;  %7778 = vmatpush1.bf16.msra.mxu1 %v10981_v40  ;;  %v11043_v50 = vld [vmem:[%s11662_s6 + $0x1ac4] ss:$20 sps:$4 sm:$0xff]  }
 0x2d8   : > { %7246 = vmatprep.subr.bf16.mxu0 %v10986_v41  ;;  %7779 = vmatprep.subr.bf16.mxu1 %v10989_v29  ;;  %v11038_v40 = vld [vmem:[%s11662_s6 + $0x1ab8] ss:$20 sps:$4 sm:$0xff]   ;;  %v11041_v41 = vld [vmem:[%s11662_s6 + $0x1ac0] ss:$20 sps:$4 sm:$0xff]  }
 0x2d9   : > { %v11046_v29 = vld [vmem:[%s11662_s6 + $0x1ae4] ss:$20 sps:$4 sm:$0xff]  }
 0x2db   : > { %7247 = vmatpush1.bf16.msra.mxu0 %v10984_v45  ;;  %7780 = vmatpush1.bf16.msra.mxu1 %v10987_v46  ;;  %v11049_v45 = vld [vmem:[%s11662_s6 + $0x1aec] ss:$20 sps:$4 sm:$0xff]  }
 0x2dc   : > { %7248 = vmatprep.subr.bf16.mxu0 %v10992_v48  ;;  %7781 = vmatprep.subr.bf16.mxu1 %v10995_v5  ;;  %v11044_v46 = vld [vmem:[%s11662_s6 + $0x1ae0] ss:$20 sps:$4 sm:$0xff]   ;;  %v11047_v48 = vld [vmem:[%s11662_s6 + $0x1ae8] ss:$20 sps:$4 sm:$0xff]  }
 0x2dd   : > { %v11052_v5 = vld [vmem:[%s11662_s6 + $0x1b0c] ss:$20 sps:$4 sm:$0xff]  }
 0x2df   : > { %7249 = vmatpush1.bf16.msra.mxu0 %v10990_v15  ;;  %7782 = vmatpush1.bf16.msra.mxu1 %v10993_v52  ;;  %v11055_v15 = vld [vmem:[%s11662_s6 + $0x1b14] ss:$20 sps:$4 sm:$0xff]  }
 0x2e0   : > { %7250 = vmatprep.subr.bf16.mxu0 %v10998_v53  ;;  %7783 = vmatprep.subr.bf16.mxu1 %v11001_v54  ;;  %v11050_v52 = vld [vmem:[%s11662_s6 + $0x1b08] ss:$20 sps:$4 sm:$0xff]   ;;  %v11053_v53 = vld [vmem:[%s11662_s6 + $0x1b10] ss:$20 sps:$4 sm:$0xff]  }
 0x2e1   : > { %v11058_v54 = vld [vmem:[%s11662_s6 + $0x1b34] ss:$20 sps:$4 sm:$0xff]  }
 0x2e3   : > { %7251 = vmatpush1.bf16.msra.mxu0 %v10996_v58  ;;  %7784 = vmatpush1.bf16.msra.mxu1 %v10999_v61  ;;  %v11061_v58 = vld [vmem:[%s11662_s6 + $0x1b3c] ss:$20 sps:$4 sm:$0xff]   ;;  %v331_v61 = vcombine.high %v12489_v47, %v12489_v47  ;;  %v11062_v47 = vld [vmem:[%s11662_s6 + $0x1b58] ss:$20 sps:$4 sm:$0xff]  }
 0x2e4   : > { %7252 = vmatprep.subr.bf16.mxu0 %v11004_v32  ;;  %7785 = vmatprep.subr.bf16.mxu1 %v11007_v62  ;;  %v11056_v32 = vld [vmem:[%s11662_s6 + $0x1b30] ss:$20 sps:$4 sm:$0xff]   ;;  %v11059_v62 = vld [vmem:[%s11662_s6 + $0x1b38] ss:$20 sps:$4 sm:$0xff]  }
 0x2e7   : > { %7253 = vmatpush1.bf16.msra.mxu0 %v11002_v12  ;;  %7786 = vmatpush1.bf16.msra.mxu1 %v11005_v0  ;;  %v11064_v12 = vld [vmem:[%s11662_s6 + $0x1b5c] ss:$20 sps:$4 sm:$0xff]   ;;  %v11067_v0 = vld [vmem:[%s11662_s6 + $0x1b64] ss:$20 sps:$4 sm:$0xff]  }
 0x2e8   : > { %7254 = vmatprep.subr.bf16.mxu0 %v11010_v1  ;;  %7787 = vmatprep.subr.bf16.mxu1 %v11013_v42  ;;  %v12578_v1 = vrot.slane %v331_v61, %v11721_v49  ;;  %v11065_v42 = vld [vmem:[%s11662_s6 + $0x1b60] ss:$20 sps:$4 sm:$0xff]   ;;  %v11110_v61 = vld [vmem:[%s11662_s6 + $0x1c98] ss:$20 sps:$4 sm:$0xff]  }
 0x2eb   : > { %7255 = vmatpush1.bf16.msra.mxu0 %v11008_v3  ;;  %7788 = vmatpush1.bf16.msra.mxu1 %v11011_v4  ;;  %v11070_v3 = vld [vmem:[%s11662_s6 + $0x1b84] ss:$20 sps:$4 sm:$0xff]   ;;  %v11073_v4 = vld [vmem:[%s11662_s6 + $0x1b8c] ss:$20 sps:$4 sm:$0xff]  }
 0x2ec   : > { %7256 = vmatprep.subr.bf16.mxu0 %v11016_v6  ;;  %7789 = vmatprep.subr.bf16.mxu1 %v11019_v8  ;;  %v347_v6 = vcombine.high %v12578_v1, %v12578_v1  ;;  %v12588_v8 = vpack.c.bf16 %v12497_v23, %v12497_v23  ;;  %v11074_v23 = vld [vmem:[%s11662_s6 + $0x1ba8] ss:$20 sps:$4 sm:$0xff]  }
 0x2ef   : > { %7257 = vmatpush1.bf16.msra.mxu0 %v11014_v10  ;;  %7790 = vmatpush1.bf16.msra.mxu1 %v11017_v11  ;;  %v11068_v10 = vld [vmem:[%s11662_s6 + $0x1b80] ss:$20 sps:$4 sm:$0xff]   ;;  %v11071_v11 = vld [vmem:[%s11662_s6 + $0x1b88] ss:$20 sps:$4 sm:$0xff]  }
 0x2f0   : > { %7258 = vmatprep.subr.bf16.mxu0 %v11022_v14  ;;  %7791 = vmatprep.subr.bf16.mxu1 %v11025_v17  ;;  %v11076_v14 = vld [vmem:[%s11662_s6 + $0x1bac] ss:$20 sps:$4 sm:$0xff]   ;;  %v11079_v17 = vld [vmem:[%s11662_s6 + $0x1bb4] ss:$20 sps:$4 sm:$0xff]  }
 0x2f3   : > { %7259 = vmatpush1.bf16.msra.mxu0 %v11020_v18  ;;  %7792 = vmatpush1.bf16.msra.mxu1 %v11023_v19  ;;  %v12594_v18 = vpack.c.bf16 %v347_v6, %v347_v6  ;;  %v11077_v19 = vld [vmem:[%s11662_s6 + $0x1bb0] ss:$20 sps:$4 sm:$0xff]  }
 0x2f4   : > { %7260 = vmatprep.subr.bf16.mxu0 %v11028_v25  ;;  %7793 = vmatprep.subr.bf16.mxu1 %v11031_v27  ;;  %v11082_v25 = vld [vmem:[%s11662_s6 + $0x1bd4] ss:$20 sps:$4 sm:$0xff]   ;;  %v11085_v27 = vld [vmem:[%s11662_s6 + $0x1bdc] ss:$20 sps:$4 sm:$0xff]  }
 0x2f5   : > { %v11125_v6 = vld [vmem:[%s11662_s6 + $0x1cf0] ss:$20 sps:$4 sm:$0xff]  }
 0x2f7   : > { %7261 = vmatpush1.bf16.msra.mxu0 %v11026_v28  ;;  %7794 = vmatpush1.bf16.msra.mxu1 %v11029_v51  ;;  %v11080_v28 = vld [vmem:[%s11662_s6 + $0x1bd0] ss:$20 sps:$4 sm:$0xff]   ;;  %v11083_v51 = vld [vmem:[%s11662_s6 + $0x1bd8] ss:$20 sps:$4 sm:$0xff]  }
 0x2f8   : > { %7262 = vmatprep.subr.bf16.mxu0 %v11034_v31  ;;  %7795 = vmatprep.subr.bf16.mxu1 %v11037_v33  ;;  %v11088_v31 = vld [vmem:[%s11662_s6 + $0x1bfc] ss:$20 sps:$4 sm:$0xff]   ;;  %v11091_v33 = vld [vmem:[%s11662_s6 + $0x1c04] ss:$20 sps:$4 sm:$0xff]  }
 0x2fb   : > { %7263 = vmatpush1.bf16.msra.mxu0 %v11032_v35  ;;  %7796 = vmatpush1.bf16.msra.mxu1 %v11035_v2  ;;  %v11086_v35 = vld [vmem:[%s11662_s6 + $0x1bf8] ss:$20 sps:$4 sm:$0xff]   ;;  %v11089_v2 = vld [vmem:[%s11662_s6 + $0x1c00] ss:$20 sps:$4 sm:$0xff]  }
 0x2fc   : > { %7264 = vmatprep.subr.bf16.mxu0 %v11040_v37  ;;  %7797 = vmatprep.subr.bf16.mxu1 %v11043_v50  ;;  %v11094_v37 = vld [vmem:[%s11662_s6 + $0x1c24] ss:$20 sps:$4 sm:$0xff]   ;;  %v11097_v50 = vld [vmem:[%s11662_s6 + $0x1c2c] ss:$20 sps:$4 sm:$0xff]  }
 0x2ff   : > { %7265 = vmatpush1.bf16.msra.mxu0 %v11038_v40  ;;  %7798 = vmatpush1.bf16.msra.mxu1 %v11041_v41  ;;  %v11092_v40 = vld [vmem:[%s11662_s6 + $0x1c20] ss:$20 sps:$4 sm:$0xff]   ;;  %v11095_v41 = vld [vmem:[%s11662_s6 + $0x1c28] ss:$20 sps:$4 sm:$0xff]  }
 0x300   : > { %7266 = vmatprep.subr.bf16.mxu0 %v11046_v29  ;;  %7799 = vmatprep.subr.bf16.mxu1 %v11049_v45  ;;  %v11100_v29 = vld [vmem:[%s11662_s6 + $0x1c4c] ss:$20 sps:$4 sm:$0xff]   ;;  %v11103_v45 = vld [vmem:[%s11662_s6 + $0x1c54] ss:$20 sps:$4 sm:$0xff]  }
 0x303   : > { %7267 = vmatpush1.bf16.msra.mxu0 %v11044_v46  ;;  %7800 = vmatpush1.bf16.msra.mxu1 %v11047_v48  ;;  %v11098_v46 = vld [vmem:[%s11662_s6 + $0x1c48] ss:$20 sps:$4 sm:$0xff]   ;;  %v11101_v48 = vld [vmem:[%s11662_s6 + $0x1c50] ss:$20 sps:$4 sm:$0xff]  }
 0x304   : > { %7268 = vmatprep.subr.bf16.mxu0 %v11052_v5  ;;  %7801 = vmatprep.subr.bf16.mxu1 %v11055_v15  ;;  %v11106_v5 = vld [vmem:[%s11662_s6 + $0x1c74] ss:$20 sps:$4 sm:$0xff]   ;;  %v11109_v15 = vld [vmem:[%s11662_s6 + $0x1c7c] ss:$20 sps:$4 sm:$0xff]  }
 0x307   : > { %7269 = vmatpush1.bf16.msra.mxu0 %v11050_v52  ;;  %7802 = vmatpush1.bf16.msra.mxu1 %v11053_v53  ;;  %v11104_v52 = vld [vmem:[%s11662_s6 + $0x1c70] ss:$20 sps:$4 sm:$0xff]   ;;  %v11107_v53 = vld [vmem:[%s11662_s6 + $0x1c78] ss:$20 sps:$4 sm:$0xff]  }
 0x308   : > { %7270 = vmatprep.subr.bf16.mxu0 %v11058_v54  ;;  %7803 = vmatprep.subr.bf16.mxu1 %v11061_v58  ;;  %v11112_v54 = vld [vmem:[%s11662_s6 + $0x1c9c] ss:$20 sps:$4 sm:$0xff]   ;;  %v11115_v58 = vld [vmem:[%s11662_s6 + $0x1ca4] ss:$20 sps:$4 sm:$0xff]  }
 0x30b   : > { %7271 = vmatpush1.bf16.msra.mxu0 %v11056_v32  ;;  %7804 = vmatpush1.bf16.msra.mxu1 %v11059_v62  ;;  %v11113_v32 = vld [vmem:[%s11662_s6 + $0x1ca0] ss:$20 sps:$4 sm:$0xff]   ;;  %v11118_v62 = vld [vmem:[%s11662_s6 + $0x1cc4] ss:$20 sps:$4 sm:$0xff]  }
 0x30c   : > { %7272 = vmatprep.subr.bf16.mxu0 %v11064_v12  ;;  %7805 = vmatprep.subr.bf16.mxu1 %v11067_v0  ;;  %v11121_v12 = vld [vmem:[%s11662_s6 + $0x1ccc] ss:$20 sps:$4 sm:$0xff]  }
 0x30d   : > { %v11116_v0 = vld [vmem:[%s11662_s6 + $0x1cc0] ss:$20 sps:$4 sm:$0xff]  }
 0x30f   : > { %7273 = vmatpush1.bf16.msra.mxu0 %v11062_v47  ;;  %7806 = vmatpush1.bf16.msra.mxu1 %v11065_v42  ;;  %v11119_v47 = vld [vmem:[%s11662_s6 + $0x1cc8] ss:$20 sps:$4 sm:$0xff]   ;;  %v11124_v42 = vld [vmem:[%s11662_s6 + $0x1cec] ss:$20 sps:$4 sm:$0xff]  }
 0x310   : > { %7283 = vmatprep.subr.bf16.mxu0 %v11070_v3  ;;  %7816 = vmatprep.subr.bf16.mxu1 %v11073_v4  ;;  %v11127_v3 = vld [vmem:[%s11662_s6 + $0x1cf4] ss:$20 sps:$4 sm:$0xff]  }
 0x311   : > { %v11122_v4 = vld [vmem:[%s11662_s6 + $0x1ce8] ss:$20 sps:$4 sm:$0xff]  }
 0x312   : > { %7275 = vmatmul.mubr.bf16.vlgmr.msra.gmra.mrb[0].mxu0 %v12588_v8  ;;  %7808 = vmatmul.mubr.bf16.vlgmr.msra.gmra.mrb[0].mxu1 %v12588_v8 }
 0x313   : > { %7284 = vmatpush1.bf16.msra.mxu0 %v11068_v10  ;;  %7817 = vmatpush1.bf16.msra.mxu1 %v11071_v11  ;;  %v11130_v10 = vld [vmem:[%s11662_s6 + $0x1d14] ss:$20 sps:$4 sm:$0xff]   ;;  %v11133_v11 = vld [vmem:[%s11662_s6 + $0x1d1c] ss:$20 sps:$4 sm:$0xff]  }
 0x314   : > { %7285 = vmatprep.subr.bf16.mxu0 %v11076_v14  ;;  %7818 = vmatprep.subr.bf16.mxu1 %v11079_v17  ;;  %v11128_v14 = vld [vmem:[%s11662_s6 + $0x1d10] ss:$20 sps:$4 sm:$0xff]   ;;  %v11131_v17 = vld [vmem:[%s11662_s6 + $0x1d18] ss:$20 sps:$4 sm:$0xff]  }
 0x315   : > { %7315 = vmatprep.mubr.bf16.mxu0 %v12594_v18  ;;  %7848 = vmatprep.mubr.bf16.mxu1 %v12594_v18 }
 0x317   : > { %7286 = vmatpush1.bf16.msra.mxu0 %v11074_v23  ;;  %7819 = vmatpush1.bf16.msra.mxu1 %v11077_v19  ;;  %v11136_v23 = vld [vmem:[%s11662_s6 + $0x1d3c] ss:$20 sps:$4 sm:$0xff]   ;;  %v11139_v19 = vld [vmem:[%s11662_s6 + $0x1d44] ss:$20 sps:$4 sm:$0xff]  }
 0x318   : > { %7287 = vmatprep.subr.bf16.mxu0 %v11082_v25  ;;  %7820 = vmatprep.subr.bf16.mxu1 %v11085_v27  ;;  %v11134_v25 = vld [vmem:[%s11662_s6 + $0x1d38] ss:$20 sps:$4 sm:$0xff]   ;;  %v11137_v27 = vld [vmem:[%s11662_s6 + $0x1d40] ss:$20 sps:$4 sm:$0xff]  }
 0x31b   : > { %7288 = vmatpush1.bf16.msra.mxu0 %v11080_v28  ;;  %7821 = vmatpush1.bf16.msra.mxu1 %v11083_v51  ;;  %v11142_v28 = vld [vmem:[%s11662_s6 + $0x1d64] ss:$20 sps:$4 sm:$0xff]   ;;  %v11145_v51 = vld [vmem:[%s11662_s6 + $0x1d6c] ss:$20 sps:$4 sm:$0xff]  }
 0x31c   : > { %7289 = vmatprep.subr.bf16.mxu0 %v11088_v31  ;;  %7822 = vmatprep.subr.bf16.mxu1 %v11091_v33  ;;  %v11140_v31 = vld [vmem:[%s11662_s6 + $0x1d60] ss:$20 sps:$4 sm:$0xff]   ;;  %v11143_v33 = vld [vmem:[%s11662_s6 + $0x1d68] ss:$20 sps:$4 sm:$0xff]  }
 0x31f   : > { %7290 = vmatpush1.bf16.msra.mxu0 %v11086_v35  ;;  %7823 = vmatpush1.bf16.msra.mxu1 %v11089_v2  ;;  %v11148_v35 = vld [vmem:[%s11662_s6 + $0x1d8c] ss:$20 sps:$4 sm:$0xff]   ;;  %v11151_v2 = vld [vmem:[%s11662_s6 + $0x1d94] ss:$20 sps:$4 sm:$0xff]  }
 0x320   : > { %7291 = vmatprep.subr.bf16.mxu0 %v11094_v37  ;;  %7824 = vmatprep.subr.bf16.mxu1 %v11097_v50  ;;  %v11146_v37 = vld [vmem:[%s11662_s6 + $0x1d88] ss:$20 sps:$4 sm:$0xff]   ;;  %v11149_v50 = vld [vmem:[%s11662_s6 + $0x1d90] ss:$20 sps:$4 sm:$0xff]  }
 0x323   : > { %7292 = vmatpush1.bf16.msra.mxu0 %v11092_v40  ;;  %7825 = vmatpush1.bf16.msra.mxu1 %v11095_v41  ;;  %v11154_v40 = vld [vmem:[%s11662_s6 + $0x1db4] ss:$20 sps:$4 sm:$0xff]   ;;  %v11157_v41 = vld [vmem:[%s11662_s6 + $0x1dbc] ss:$20 sps:$4 sm:$0xff]  }
 0x324   : > { %7293 = vmatprep.subr.bf16.mxu0 %v11100_v29  ;;  %7826 = vmatprep.subr.bf16.mxu1 %v11103_v45  ;;  %v11152_v29 = vld [vmem:[%s11662_s6 + $0x1db0] ss:$20 sps:$4 sm:$0xff]   ;;  %v11155_v45 = vld [vmem:[%s11662_s6 + $0x1db8] ss:$20 sps:$4 sm:$0xff]  }
 0x327   : > { %7294 = vmatpush1.bf16.msra.mxu0 %v11098_v46  ;;  %7827 = vmatpush1.bf16.msra.mxu1 %v11101_v48  ;;  %v11160_v46 = vld [vmem:[%s11662_s6 + $0x1ddc] ss:$20 sps:$4 sm:$0xff]   ;;  %v11163_v48 = vld [vmem:[%s11662_s6 + $0x1de4] ss:$20 sps:$4 sm:$0xff]  }
 0x328   : > { %7295 = vmatprep.subr.bf16.mxu0 %v11106_v5  ;;  %7828 = vmatprep.subr.bf16.mxu1 %v11109_v15  ;;  %v11158_v5 = vld [vmem:[%s11662_s6 + $0x1dd8] ss:$20 sps:$4 sm:$0xff]   ;;  %v11161_v15 = vld [vmem:[%s11662_s6 + $0x1de0] ss:$20 sps:$4 sm:$0xff]  }
 0x32b   : > { %7296 = vmatpush1.bf16.msra.mxu0 %v11104_v52  ;;  %7829 = vmatpush1.bf16.msra.mxu1 %v11107_v53  ;;  %v11167_v52 = vld [vmem:[%s11662_s6 + $0x1e04] ss:$20 sps:$4 sm:$0xff]   ;;  %v11170_v53 = vld [vmem:[%s11662_s6 + $0x1e0c] ss:$20 sps:$4 sm:$0xff]  }
 0x32c   : > { %7297 = vmatprep.subr.bf16.mxu0 %v11112_v54  ;;  %7830 = vmatprep.subr.bf16.mxu1 %v11115_v58  ;;  %v12662_v54 = vpack.c.bf16 %v12578_v1, %v12578_v1  ;;  %v11165_v58 = vld [vmem:[%s11662_s6 + $0x1e00] ss:$20 sps:$4 sm:$0xff]   ;;  %v11171_v1 = vld [vmem:[%s11662_s6 + $0x1e28] ss:$20 sps:$4 sm:$0xff]  }
 0x32f   : > { %7298 = vmatpush1.bf16.msra.mxu0 %v11110_v61  ;;  %7831 = vmatpush1.bf16.msra.mxu1 %v11113_v32  ;;  %v11168_v61 = vld [vmem:[%s11662_s6 + $0x1e08] ss:$20 sps:$4 sm:$0xff]   ;;  %v11173_v32 = vld [vmem:[%s11662_s6 + $0x1e2c] ss:$20 sps:$4 sm:$0xff]  }
 0x330   : > { %7299 = vmatprep.subr.bf16.mxu0 %v11118_v62  ;;  %7832 = vmatprep.subr.bf16.mxu1 %v11121_v12  ;;  %v11176_v62 = vld [vmem:[%s11662_s6 + $0x1e34] ss:$20 sps:$4 sm:$0xff]   ;;  %v11174_v12 = vld [vmem:[%s11662_s6 + $0x1e30] ss:$20 sps:$4 sm:$0xff]  }
 0x333   : > { %7300 = vmatpush1.bf16.msra.mxu0 %v11116_v0  ;;  %7833 = vmatpush1.bf16.msra.mxu1 %v11119_v47  ;;  %v11179_v0 = vld [vmem:[%s11662_s6 + $0x1e54] ss:$20 sps:$4 sm:$0xff]   ;;  %v11182_v47 = vld [vmem:[%s11662_s6 + $0x1e5c] ss:$20 sps:$4 sm:$0xff]  }
 0x334   : > { %7301 = vmatprep.subr.bf16.mxu0 %v11124_v42  ;;  %7834 = vmatprep.subr.bf16.mxu1 %v11127_v3  ;;  %v11518_v42 = vmov 0   ;;  %v11177_v3 = vld [vmem:[%s11662_s6 + $0x1e50] ss:$20 sps:$4 sm:$0xff]  }
 0x337   : > { %7302 = vmatpush1.bf16.msra.mxu0 %v11122_v4  ;;  %7835 = vmatpush1.bf16.msra.mxu1 %v11125_v6  ;;  %v11180_v4 = vld [vmem:[%s11662_s6 + $0x1e58] ss:$20 sps:$4 sm:$0xff]   ;;  %v11185_v6 = vld [vmem:[%s11662_s6 + $0x1e7c] ss:$20 sps:$4 sm:$0xff]  }
 0x338   : > { %7303 = vmatprep.subr.bf16.mxu0 %v11130_v10  ;;  %7836 = vmatprep.subr.bf16.mxu1 %v11133_v11  ;;  %v11188_v10 = vld [vmem:[%s11662_s6 + $0x1e84] ss:$20 sps:$4 sm:$0xff]  }
 0x339   : > { %v11183_v11 = vld [vmem:[%s11662_s6 + $0x1e78] ss:$20 sps:$4 sm:$0xff]  }
 0x33b   : > { %7304 = vmatpush1.bf16.msra.mxu0 %v11128_v14  ;;  %7837 = vmatpush1.bf16.msra.mxu1 %v11131_v17  ;;  %v11186_v14 = vld [vmem:[%s11662_s6 + $0x1e80] ss:$20 sps:$4 sm:$0xff]   ;;  %v11191_v17 = vld [vmem:[%s11662_s6 + $0x1ea4] ss:$20 sps:$4 sm:$0xff]  }
 0x33c   : > { %7305 = vmatprep.subr.bf16.mxu0 %v11136_v23  ;;  %7838 = vmatprep.subr.bf16.mxu1 %v11139_v19  ;;  %v11194_v23 = vld [vmem:[%s11662_s6 + $0x1eac] ss:$20 sps:$4 sm:$0xff]  }
 0x33d   : > { %v11189_v19 = vld [vmem:[%s11662_s6 + $0x1ea0] ss:$20 sps:$4 sm:$0xff]  }
 0x33f   : > { %7306 = vmatpush1.bf16.msra.mxu0 %v11134_v25  ;;  %7839 = vmatpush1.bf16.msra.mxu1 %v11137_v27  ;;  %v11192_v25 = vld [vmem:[%s11662_s6 + $0x1ea8] ss:$20 sps:$4 sm:$0xff]   ;;  %v11197_v27 = vld [vmem:[%s11662_s6 + $0x1ecc] ss:$20 sps:$4 sm:$0xff]  }
 0x340   : > { %7307 = vmatprep.subr.bf16.mxu0 %v11142_v28  ;;  %7840 = vmatprep.subr.bf16.mxu1 %v11145_v51  ;;  %v11200_v28 = vld [vmem:[%s11662_s6 + $0x1ed4] ss:$20 sps:$4 sm:$0xff]  }
 0x341   : > { %v11195_v51 = vld [vmem:[%s11662_s6 + $0x1ec8] ss:$20 sps:$4 sm:$0xff]  }
 0x343   : > { %7308 = vmatpush1.bf16.msra.mxu0 %v11140_v31  ;;  %7841 = vmatpush1.bf16.msra.mxu1 %v11143_v33  ;;  %v11198_v31 = vld [vmem:[%s11662_s6 + $0x1ed0] ss:$20 sps:$4 sm:$0xff]   ;;  %v11203_v33 = vld [vmem:[%s11662_s6 + $0x1ef4] ss:$20 sps:$4 sm:$0xff]  }
 0x344   : > { %7309 = vmatprep.subr.bf16.mxu0 %v11148_v35  ;;  %7842 = vmatprep.subr.bf16.mxu1 %v11151_v2  ;;  %v11206_v35 = vld [vmem:[%s11662_s6 + $0x1efc] ss:$20 sps:$4 sm:$0xff]  }
 0x345   : > { %v11201_v2 = vld [vmem:[%s11662_s6 + $0x1ef0] ss:$20 sps:$4 sm:$0xff]  }
 0x347   : > { %7310 = vmatpush1.bf16.msra.mxu0 %v11146_v37  ;;  %7843 = vmatpush1.bf16.msra.mxu1 %v11149_v50  ;;  %v11204_v37 = vld [vmem:[%s11662_s6 + $0x1ef8] ss:$20 sps:$4 sm:$0xff]   ;;  %v11209_v50 = vld [vmem:[%s11662_s6 + $0x1f1c] ss:$20 sps:$4 sm:$0xff]  }
 0x348   : > { %7311 = vmatprep.subr.bf16.mxu0 %v11154_v40  ;;  %7844 = vmatprep.subr.bf16.mxu1 %v11157_v41  ;;  %v11212_v40 = vld [vmem:[%s11662_s6 + $0x1f24] ss:$20 sps:$4 sm:$0xff]  }
 0x349   : > { %v11207_v41 = vld [vmem:[%s11662_s6 + $0x1f18] ss:$20 sps:$4 sm:$0xff]  }
 0x34b   : > { %7312 = vmatpush1.bf16.msra.mxu0 %v11152_v29  ;;  %7845 = vmatpush1.bf16.msra.mxu1 %v11155_v45  ;;  %v11210_v29 = vld [vmem:[%s11662_s6 + $0x1f20] ss:$20 sps:$4 sm:$0xff]   ;;  %v8554_v45 = vld.sshfl [vmem:[%s12959_s0 + $0x30] sm:$0x3 pattern:$0x76325410] }
 0x34c   : > { %7313 = vmatprep.subr.bf16.mxu0 %v11160_v46  ;;  %7846 = vmatprep.subr.bf16.mxu1 %v11163_v48  ;;  %v11213_v46 = vld [vmem:[%s11662_s6 + $0x150] ss:$20 sps:$4 sm:$0xff]  }
 0x34d   : > { %v11215_v48 = vld [vmem:[%s11662_s6 + $0x3d0] ss:$20 sps:$4 sm:$0xff]  }
 0x34f   : > { %7314 = vmatpush1.bf16.msra.mxu0 %v11158_v5  ;;  %7847 = vmatpush1.bf16.msra.mxu1 %v11161_v15  ;;  %v12701_v5 = vpack.c.bf16 %v8554_v45, %v8554_v45  ;;  %v11214_v15 = vld [vmem:[%s11662_s6 + $0x10] ss:$20 sps:$4 sm:$0xff]   ;;  %v11250_v45 = vld [vmem:[%s11662_s6 + $0x538] ss:$20 sps:$4 sm:$0xff]  }
 0x350   : > { %7324 = vmatprep.subr.bf16.mxu0 %v11167_v52  ;;  %7857 = vmatprep.subr.bf16.mxu1 %v11170_v53  ;;  %v11216_v52 = vld [vmem:[%s11662_s6 + $0x290] ss:$20 sps:$4 sm:$0xff]   ;;  %v11217_v53 = vld [vmem:[%s11662_s6 + $0x178] ss:$20 sps:$4 sm:$0xff]  }
 0x352   : > { %7316 = vmatmul.mubr.bf16.vlgmr.msra.gmra.mrb[0].mxu0 %v12662_v54  ;;  %7849 = vmatmul.mubr.bf16.vlgmr.msra.gmra.mrb[0].mxu1 %v12662_v54 }
 0x353   : > { %7325 = vmatpush1.bf16.msra.mxu0 %v11165_v58  ;;  %7858 = vmatpush1.bf16.msra.mxu1 %v11168_v61  ;;  %v11219_v58 = vld [vmem:[%s11662_s6 + $0x3f8] ss:$20 sps:$4 sm:$0xff]  }
 0x354   : > { %7326 = vmatprep.subr.bf16.mxu0 %v11173_v32  ;;  %7859 = vmatprep.subr.bf16.mxu1 %v11176_v62  ;;  %v11218_v61 = vld [vmem:[%s11662_s6 + $0x38] ss:$20 sps:$4 sm:$0xff]   ;;  %v11221_v62 = vld [vmem:[%s11662_s6 + $0x1a0] ss:$20 sps:$4 sm:$0xff]  }
 0x355   : > { %7356 = vmatprep.mubr.bf16.mxu0 %v11518_v42  ;;  %7889 = vmatprep.mubr.bf16.mxu1 %v11518_v42  ;;  %v11220_v32 = vld [vmem:[%s11662_s6 + $0x2b8] ss:$20 sps:$4 sm:$0xff]   ;;  %v11227_v42 = vld [vmem:[%s11662_s6 + $0x448] ss:$20 sps:$4 sm:$0xff]  }
 0x357   : > { %7327 = vmatpush1.bf16.msra.mxu0 %v11171_v1  ;;  %7860 = vmatpush1.bf16.msra.mxu1 %v11174_v12  ;;  %v11223_v1 = vld [vmem:[%s11662_s6 + $0x420] ss:$20 sps:$4 sm:$0xff]  }
 0x358   : > { %7328 = vmatprep.subr.bf16.mxu0 %v11179_v0  ;;  %7861 = vmatprep.subr.bf16.mxu1 %v11182_v47  ;;  %v11222_v12 = vld [vmem:[%s11662_s6 + $0x60] ss:$20 sps:$4 sm:$0xff]   ;;  %v11225_v47 = vld [vmem:[%s11662_s6 + $0x1c8] ss:$20 sps:$4 sm:$0xff]  }
 0x359   : > { %v11224_v0 = vld [vmem:[%s11662_s6 + $0x2e0] ss:$20 sps:$4 sm:$0xff]  }
 0x35b   : > { %7329 = vmatpush1.bf16.msra.mxu0 %v11177_v3  ;;  %7862 = vmatpush1.bf16.msra.mxu1 %v11180_v4  ;;  %v11226_v3 = vld [vmem:[%s11662_s6 + $0x88] ss:$20 sps:$4 sm:$0xff]   ;;  %v11231_v4 = vld [vmem:[%s11662_s6 + $0x470] ss:$20 sps:$4 sm:$0xff]  }
 0x35c   : > { %7330 = vmatprep.subr.bf16.mxu0 %v11185_v6  ;;  %7863 = vmatprep.subr.bf16.mxu1 %v11188_v10  ;;  %v11230_v6 = vld [vmem:[%s11662_s6 + $0xb0] ss:$20 sps:$4 sm:$0xff]  }
 0x35d   : > { %v11232_v10 = vld [vmem:[%s11662_s6 + $0x330] ss:$20 sps:$4 sm:$0xff]  }
 0x35f   : > { %7331 = vmatpush1.bf16.msra.mxu0 %v11183_v11  ;;  %7864 = vmatpush1.bf16.msra.mxu1 %v11186_v14  ;;  %v11233_v11 = vld [vmem:[%s11662_s6 + $0x218] ss:$20 sps:$4 sm:$0xff]  }
 0x360   : > { %7332 = vmatprep.subr.bf16.mxu0 %v11191_v17  ;;  %7865 = vmatprep.subr.bf16.mxu1 %v11194_v23  ;;  %v11235_v14 = vld [vmem:[%s11662_s6 + $0x498] ss:$20 sps:$4 sm:$0xff]  }
 0x361   : > { %v11234_v17 = vld [vmem:[%s11662_s6 + $0xd8] ss:$20 sps:$4 sm:$0xff]  }
 0x362   : > { %v11236_v23 = vld [vmem:[%s11662_s6 + $0x358] ss:$20 sps:$4 sm:$0xff]  }
 0x363   : > { %7333 = vmatpush1.bf16.msra.mxu0 %v11189_v19  ;;  %7866 = vmatpush1.bf16.msra.mxu1 %v11192_v25  ;;  %v11237_v19 = vld [vmem:[%s11662_s6 + $0x240] ss:$20 sps:$4 sm:$0xff]  }
 0x364   : > { %7334 = vmatprep.subr.bf16.mxu0 %v11197_v27  ;;  %7867 = vmatprep.subr.bf16.mxu1 %v11200_v28  ;;  %v11239_v25 = vld [vmem:[%s11662_s6 + $0x4c0] ss:$20 sps:$4 sm:$0xff]  }
 0x365   : > { %v11238_v27 = vld [vmem:[%s11662_s6 + $0x100] ss:$20 sps:$4 sm:$0xff]  }
 0x366   : > { %v11240_v28 = vld [vmem:[%s11662_s6 + $0x380] ss:$20 sps:$4 sm:$0xff]  }
 0x367   : > { %7335 = vmatpush1.bf16.msra.mxu0 %v11195_v51  ;;  %7868 = vmatpush1.bf16.msra.mxu1 %v11198_v31  ;;  %v11241_v51 = vld [vmem:[%s11662_s6 + $0x268] ss:$20 sps:$4 sm:$0xff]  }
 0x368   : > { %7336 = vmatprep.subr.bf16.mxu0 %v11203_v33  ;;  %7869 = vmatprep.subr.bf16.mxu1 %v11206_v35  ;;  %v11243_v31 = vld [vmem:[%s11662_s6 + $0x4e8] ss:$20 sps:$4 sm:$0xff]  }
 0x369   : > { %v11242_v33 = vld [vmem:[%s11662_s6 + $0x128] ss:$20 sps:$4 sm:$0xff]  }
 0x36a   : > { %v11244_v35 = vld [vmem:[%s11662_s6 + $0x3a8] ss:$20 sps:$4 sm:$0xff]  }
 0x36b   : > { %7337 = vmatpush1.bf16.msra.mxu0 %v11201_v2  ;;  %7870 = vmatpush1.bf16.msra.mxu1 %v11204_v37  ;;  %v11245_v2 = vld [vmem:[%s11662_s6 + $0x650] ss:$20 sps:$4 sm:$0xff]  }
 0x36c   : > { %7338 = vmatprep.subr.bf16.mxu0 %v11209_v50  ;;  %7871 = vmatprep.subr.bf16.mxu1 %v11212_v40  ;;  %v11247_v37 = vld [vmem:[%s11662_s6 + $0x8d0] ss:$20 sps:$4 sm:$0xff]  }
 0x36d   : > { %v11246_v50 = vld [vmem:[%s11662_s6 + $0x510] ss:$20 sps:$4 sm:$0xff]  }
 0x36e   : > { %v11248_v40 = vld [vmem:[%s11662_s6 + $0x790] ss:$20 sps:$4 sm:$0xff]  }
 0x36f   : > { %7339 = vmatpush1.bf16.msra.mxu0 %v11207_v41  ;;  %7872 = vmatpush1.bf16.msra.mxu1 %v11210_v29  ;;  %v11249_v41 = vld [vmem:[%s11662_s6 + $0x678] ss:$20 sps:$4 sm:$0xff]  }
 0x370   : > { %9559 = vmatprep.subr.bf16.mxu0 %v11213_v46  ;;  %9581 = vmatprep.subr.bf16.mxu1 %v11215_v48  ;;  %v11251_v29 = vld [vmem:[%s11662_s6 + $0x8f8] ss:$20 sps:$4 sm:$0xff]   ;;  %v11253_v48 = vld [vmem:[%s11662_s6 + $0x6a0] ss:$20 sps:$4 sm:$0xff]  }
 0x371   : > { %v11252_v46 = vld [vmem:[%s11662_s6 + $0x7b8] ss:$20 sps:$4 sm:$0xff]  }
 0x372   : > { %7357 = vmatmul.mubr.bf16.vlgmr.msra.gmra.mrb[0].mxu0 %v12701_v5  ;;  %7890 = vmatmul.mubr.bf16.vlgmr.msra.gmra.mrb[0].mxu1 %v12701_v5 }
 0x373   : > { %9560 = vmatpush3.bf16.msra.mxu0 %v11214_v15  ;;  %9582 = vmatpush3.bf16.msra.mxu1 %v11216_v52  ;;  %v11255_v15 = vld [vmem:[%s11662_s6 + $0x920] ss:$20 sps:$4 sm:$0xff]   ;;  %v11257_v52 = vld [vmem:[%s11662_s6 + $0x6c8] ss:$20 sps:$4 sm:$0xff]  }
 0x374   : > { %9561 = vmatprep.subr.bf16.mxu0 %v11217_v53  ;;  %9583 = vmatprep.subr.bf16.mxu1 %v11219_v58  ;;  %v11259_v53 = vld [vmem:[%s11662_s6 + $0x948] ss:$20 sps:$4 sm:$0xff]  }
 0x375   : > { %7930 = vmatprep.mubr.bf16.mxu0 %v11734_v60  ;;  %7970 = vmatprep.mubr.bf16.mxu1 %v11764_v20  ;;  %v11228_v60 = vld [vmem:[%s11662_s6 + $0x308] ss:$20 sps:$4 sm:$0xff]   ;;  %v11229_v20 = vld [vmem:[%s11662_s6 + $0x1f0] ss:$20 sps:$4 sm:$0xff]  }
 0x376   : > { %v11258_v58 = vld [vmem:[%s11662_s6 + $0x588] ss:$20 sps:$4 sm:$0xff]  }
 0x377   : > { %9562 = vmatpush3.bf16.msra.mxu0 %v11218_v61  ;;  %9584 = vmatpush3.bf16.msra.mxu1 %v11220_v32  ;;  %v11263_v61 = vld [vmem:[%s11662_s6 + $0x970] ss:$20 sps:$4 sm:$0xff]  }
 0x378   : > { %9563 = vmatprep.subr.bf16.mxu0 %v11221_v62  ;;  %9585 = vmatprep.subr.bf16.mxu1 %v11223_v1  ;;  %v11262_v32 = vld [vmem:[%s11662_s6 + $0x5b0] ss:$20 sps:$4 sm:$0xff]   ;;  %v11265_v1 = vld [vmem:[%s11662_s6 + $0x718] ss:$20 sps:$4 sm:$0xff]  }
 0x379   : > { %v11264_v62 = vld [vmem:[%s11662_s6 + $0x830] ss:$20 sps:$4 sm:$0xff]  }
 0x37b   : > { %9564 = vmatpush3.bf16.msra.mxu0 %v11222_v12  ;;  %9586 = vmatpush3.bf16.msra.mxu1 %v11224_v0  ;;  %v11267_v12 = vld [vmem:[%s11662_s6 + $0x998] ss:$20 sps:$4 sm:$0xff]  }
 0x37c   : > { %9565 = vmatprep.subr.bf16.mxu0 %v11225_v47  ;;  %9587 = vmatprep.subr.bf16.mxu1 %v11227_v42  ;;  %v11266_v0 = vld [vmem:[%s11662_s6 + $0x5d8] ss:$20 sps:$4 sm:$0xff]   ;;  %v11269_v42 = vld [vmem:[%s11662_s6 + $0x740] ss:$20 sps:$4 sm:$0xff]  }
 0x37d   : > { %v11268_v47 = vld [vmem:[%s11662_s6 + $0x858] ss:$20 sps:$4 sm:$0xff]  }
 0x37f   : > { %9566 = vmatpush3.bf16.msra.mxu0 %v11226_v3  ;;  %9588 = vmatpush3.bf16.msra.mxu1 %v11228_v60  ;;  %v11271_v3 = vld [vmem:[%s11662_s6 + $0x9c0] ss:$20 sps:$4 sm:$0xff]  }
 0x380   : > { %9567 = vmatprep.subr.bf16.mxu0 %v11229_v20  ;;  %9589 = vmatprep.subr.bf16.mxu1 %v11231_v4  ;;  %v11270_v60 = vld [vmem:[%s11662_s6 + $0x600] ss:$20 sps:$4 sm:$0xff]   ;;  %v11273_v4 = vld [vmem:[%s11662_s6 + $0x768] ss:$20 sps:$4 sm:$0xff]  }
 0x381   : > { %v11272_v20 = vld [vmem:[%s11662_s6 + $0x880] ss:$20 sps:$4 sm:$0xff]  }
 0x383   : > { %9568 = vmatpush3.bf16.msra.mxu0 %v11230_v6  ;;  %9590 = vmatpush3.bf16.msra.mxu1 %v11232_v10  ;;  %v11275_v6 = vld [vmem:[%s11662_s6 + $0x9e8] ss:$20 sps:$4 sm:$0xff]  }
 0x384   : > { %9569 = vmatprep.subr.bf16.mxu0 %v11233_v11  ;;  %9591 = vmatprep.subr.bf16.mxu1 %v11235_v14  ;;  %v11274_v10 = vld [vmem:[%s11662_s6 + $0x628] ss:$20 sps:$4 sm:$0xff]   ;;  %v11277_v14 = vld [vmem:[%s11662_s6 + $0xb50] ss:$20 sps:$4 sm:$0xff]  }
 0x385   : > { %v11276_v11 = vld [vmem:[%s11662_s6 + $0x8a8] ss:$20 sps:$4 sm:$0xff]  }
 0x387   : > { %9570 = vmatpush3.bf16.msra.mxu0 %v11234_v17  ;;  %9592 = vmatpush3.bf16.msra.mxu1 %v11236_v23  ;;  %v11279_v17 = vld [vmem:[%s11662_s6 + $0xdd0] ss:$20 sps:$4 sm:$0xff]  }
 0x388   : > { %9571 = vmatprep.subr.bf16.mxu0 %v11237_v19  ;;  %9593 = vmatprep.subr.bf16.mxu1 %v11239_v25  ;;  %v11278_v23 = vld [vmem:[%s11662_s6 + $0xa10] ss:$20 sps:$4 sm:$0xff]   ;;  %v11281_v25 = vld [vmem:[%s11662_s6 + $0xb78] ss:$20 sps:$4 sm:$0xff]  }
 0x389   : > { %v11280_v19 = vld [vmem:[%s11662_s6 + $0xc90] ss:$20 sps:$4 sm:$0xff]  }
 0x38b   : > { %9572 = vmatpush3.bf16.msra.mxu0 %v11238_v27  ;;  %9594 = vmatpush3.bf16.msra.mxu1 %v11240_v28  ;;  %v11283_v27 = vld [vmem:[%s11662_s6 + $0xdf8] ss:$20 sps:$4 sm:$0xff]  }
 0x38c   : > { %9573 = vmatprep.subr.bf16.mxu0 %v11241_v51  ;;  %9595 = vmatprep.subr.bf16.mxu1 %v11243_v31  ;;  %v11282_v28 = vld [vmem:[%s11662_s6 + $0xa38] ss:$20 sps:$4 sm:$0xff]   ;;  %v11285_v31 = vld [vmem:[%s11662_s6 + $0xba0] ss:$20 sps:$4 sm:$0xff]  }
 0x38d   : > { %v11284_v51 = vld [vmem:[%s11662_s6 + $0xcb8] ss:$20 sps:$4 sm:$0xff]  }
 0x38f   : > { %9574 = vmatpush3.bf16.msra.mxu0 %v11242_v33  ;;  %9596 = vmatpush3.bf16.msra.mxu1 %v11244_v35  ;;  %v11287_v33 = vld [vmem:[%s11662_s6 + $0xe20] ss:$20 sps:$4 sm:$0xff]   ;;  %v11289_v35 = vld [vmem:[%s11662_s6 + $0xbc8] ss:$20 sps:$4 sm:$0xff]  }
 0x390   : > { %9603 = vmatprep.subr.bf16.mxu0 %v11245_v2  ;;  %9625 = vmatprep.subr.bf16.mxu1 %v11247_v37  ;;  %v11291_v2 = vld [vmem:[%s11662_s6 + $0xe48] ss:$20 sps:$4 sm:$0xff]  }
 0x391   : > { %v11290_v37 = vld [vmem:[%s11662_s6 + $0xa88] ss:$20 sps:$4 sm:$0xff]  }
 0x392   : > { %7931 = vmatmul.mubr.bf16.vlgmr.msra.gmra.mrb[4].mxu0 %v11759_v16  ;;  %7971 = vmatmul.mubr.bf16.vlgmr.msra.gmra.mrb[4].mxu1 %v11833_v24  ;;  %v11254_v16 = vld [vmem:[%s11662_s6 + $0x560] ss:$20 sps:$4 sm:$0xff]  }
 0x393   : > { %9604 = vmatpush3.bf16.msra.mxu0 %v11246_v50  ;;  %9626 = vmatpush3.bf16.msra.mxu1 %v11248_v40  ;;  %v11256_v24 = vld [vmem:[%s11662_s6 + $0x7e0] ss:$20 sps:$4 sm:$0xff]   ;;  %v11295_v50 = vld [vmem:[%s11662_s6 + $0xe70] ss:$20 sps:$4 sm:$0xff]  }
 0x394   : > { %9605 = vmatprep.subr.bf16.mxu0 %v11249_v41  ;;  %9627 = vmatprep.subr.bf16.mxu1 %v11251_v29  ;;  %v11294_v40 = vld [vmem:[%s11662_s6 + $0xab0] ss:$20 sps:$4 sm:$0xff]   ;;  %v11297_v29 = vld [vmem:[%s11662_s6 + $0xc18] ss:$20 sps:$4 sm:$0xff]  }
 0x395   : > { %8010 = vmatprep.mubr.bf16.mxu0 %v11855_v34  ;;  %8050 = vmatprep.mubr.bf16.mxu1 %v11930_v44  ;;  %v11260_v34 = vld [vmem:[%s11662_s6 + $0x808] ss:$20 sps:$4 sm:$0xff]   ;;  %v11261_v44 = vld [vmem:[%s11662_s6 + $0x6f0] ss:$20 sps:$4 sm:$0xff]  }
 0x396   : > { %v11296_v41 = vld [vmem:[%s11662_s6 + $0xd30] ss:$20 sps:$4 sm:$0xff]  }
 0x397   : > { %9606 = vmatpush3.bf16.msra.mxu0 %v11250_v45  ;;  %9628 = vmatpush3.bf16.msra.mxu1 %v11252_v46  ;;  %v11299_v45 = vld [vmem:[%s11662_s6 + $0xe98] ss:$20 sps:$4 sm:$0xff]  }
 0x398   : > { %9607 = vmatprep.subr.bf16.mxu0 %v11253_v48  ;;  %9629 = vmatprep.subr.bf16.mxu1 %v11255_v15  ;;  %v11298_v46 = vld [vmem:[%s11662_s6 + $0xad8] ss:$20 sps:$4 sm:$0xff]   ;;  %v11301_v15 = vld [vmem:[%s11662_s6 + $0xc40] ss:$20 sps:$4 sm:$0xff]  }
 0x399   : > { %v11300_v48 = vld [vmem:[%s11662_s6 + $0xd58] ss:$20 sps:$4 sm:$0xff]  }
 0x39b   : > { %9608 = vmatpush3.bf16.msra.mxu0 %v11254_v16  ;;  %9630 = vmatpush3.bf16.msra.mxu1 %v11256_v24  ;;  %v11303_v16 = vld [vmem:[%s11662_s6 + $0xec0] ss:$20 sps:$4 sm:$0xff]  }
 0x39c   : > { %9609 = vmatprep.subr.bf16.mxu0 %v11257_v52  ;;  %9631 = vmatprep.subr.bf16.mxu1 %v11259_v53  ;;  %v11302_v24 = vld [vmem:[%s11662_s6 + $0xb00] ss:$20 sps:$4 sm:$0xff]   ;;  %v11305_v53 = vld [vmem:[%s11662_s6 + $0xc68] ss:$20 sps:$4 sm:$0xff]  }
 0x39d   : > { %v11304_v52 = vld [vmem:[%s11662_s6 + $0xd80] ss:$20 sps:$4 sm:$0xff]  }
 0x39f   : > { %9610 = vmatpush3.bf16.msra.mxu0 %v11258_v58  ;;  %9632 = vmatpush3.bf16.msra.mxu1 %v11260_v34  ;;  %v11307_v58 = vld [vmem:[%s11662_s6 + $0xee8] ss:$20 sps:$4 sm:$0xff]  }
 0x3a0   : > { %9611 = vmatprep.subr.bf16.mxu0 %v11261_v44  ;;  %9633 = vmatprep.subr.bf16.mxu1 %v11263_v61  ;;  %v11306_v34 = vld [vmem:[%s11662_s6 + $0xb28] ss:$20 sps:$4 sm:$0xff]   ;;  %v11309_v61 = vld [vmem:[%s11662_s6 + $0x1050] ss:$20 sps:$4 sm:$0xff]  }
 0x3a1   : > { %v11308_v44 = vld [vmem:[%s11662_s6 + $0xda8] ss:$20 sps:$4 sm:$0xff]  }
 0x3a3   : > { %9612 = vmatpush3.bf16.msra.mxu0 %v11262_v32  ;;  %9634 = vmatpush3.bf16.msra.mxu1 %v11264_v62  ;;  %v11311_v32 = vld [vmem:[%s11662_s6 + $0x12d0] ss:$20 sps:$4 sm:$0xff]  }
 0x3a4   : > { %9613 = vmatprep.subr.bf16.mxu0 %v11265_v1  ;;  %9635 = vmatprep.subr.bf16.mxu1 %v11267_v12  ;;  %v11310_v62 = vld [vmem:[%s11662_s6 + $0xf10] ss:$20 sps:$4 sm:$0xff]   ;;  %v11313_v12 = vld [vmem:[%s11662_s6 + $0x1078] ss:$20 sps:$4 sm:$0xff]  }
 0x3a5   : > { %v11312_v1 = vld [vmem:[%s11662_s6 + $0x1190] ss:$20 sps:$4 sm:$0xff]  }
 0x3a7   : > { %9614 = vmatpush3.bf16.msra.mxu0 %v11266_v0  ;;  %9636 = vmatpush3.bf16.msra.mxu1 %v11268_v47  ;;  %v11315_v0 = vld [vmem:[%s11662_s6 + $0x12f8] ss:$20 sps:$4 sm:$0xff]  }
 0x3a8   : > { %9615 = vmatprep.subr.bf16.mxu0 %v11269_v42  ;;  %9637 = vmatprep.subr.bf16.mxu1 %v11271_v3  ;;  %v11314_v47 = vld [vmem:[%s11662_s6 + $0xf38] ss:$20 sps:$4 sm:$0xff]   ;;  %v11317_v3 = vld [vmem:[%s11662_s6 + $0x10a0] ss:$20 sps:$4 sm:$0xff]  }
 0x3a9   : > { %v11316_v42 = vld [vmem:[%s11662_s6 + $0x11b8] ss:$20 sps:$4 sm:$0xff]  }
 0x3ab   : > { %9616 = vmatpush3.bf16.msra.mxu0 %v11270_v60  ;;  %9638 = vmatpush3.bf16.msra.mxu1 %v11272_v20  ;;  %v11319_v60 = vld [vmem:[%s11662_s6 + $0x1320] ss:$20 sps:$4 sm:$0xff]   ;;  %v11321_v20 = vld [vmem:[%s11662_s6 + $0x10c8] ss:$20 sps:$4 sm:$0xff]  }
 0x3ac   : > { %9617 = vmatprep.subr.bf16.mxu0 %v11273_v4  ;;  %9639 = vmatprep.subr.bf16.mxu1 %v11275_v6  ;;  %v11323_v4 = vld [vmem:[%s11662_s6 + $0x1348] ss:$20 sps:$4 sm:$0xff]  }
 0x3ad   : > { %v11322_v6 = vld [vmem:[%s11662_s6 + $0xf88] ss:$20 sps:$4 sm:$0xff]  }
 0x3af   : > { %9618 = vmatpush3.bf16.msra.mxu0 %v11274_v10  ;;  %9640 = vmatpush3.bf16.msra.mxu1 %v11276_v11  ;;  %v11327_v10 = vld [vmem:[%s11662_s6 + $0x1370] ss:$20 sps:$4 sm:$0xff]  }
 0x3b0   : > { %9647 = vmatprep.subr.bf16.mxu0 %v11277_v14  ;;  %9669 = vmatprep.subr.bf16.mxu1 %v11279_v17  ;;  %v11326_v11 = vld [vmem:[%s11662_s6 + $0xfb0] ss:$20 sps:$4 sm:$0xff]   ;;  %v11329_v17 = vld [vmem:[%s11662_s6 + $0x1118] ss:$20 sps:$4 sm:$0xff]  }
 0x3b1   : > { %v11328_v14 = vld [vmem:[%s11662_s6 + $0x1230] ss:$20 sps:$4 sm:$0xff]  }
 0x3b2   : > { %8011 = vmatmul.mubr.bf16.vlgmr.msra.gmra.mrb[8].mxu0 %v11924_v38  ;;  %8051 = vmatmul.mubr.bf16.vlgmr.msra.gmra.mrb[8].mxu1 %v12010_v55  ;;  %v11286_v38 = vld [vmem:[%s11662_s6 + $0xa60] ss:$20 sps:$4 sm:$0xff]  }
 0x3b3   : > { %9648 = vmatpush3.bf16.msra.mxu0 %v11278_v23  ;;  %9670 = vmatpush3.bf16.msra.mxu1 %v11280_v19  ;;  %v11288_v55 = vld [vmem:[%s11662_s6 + $0xce0] ss:$20 sps:$4 sm:$0xff]   ;;  %v11331_v23 = vld [vmem:[%s11662_s6 + $0x1398] ss:$20 sps:$4 sm:$0xff]  }
 0x3b4   : > { %9649 = vmatprep.subr.bf16.mxu0 %v11281_v25  ;;  %9671 = vmatprep.subr.bf16.mxu1 %v11283_v27  ;;  %v11330_v19 = vld [vmem:[%s11662_s6 + $0xfd8] ss:$20 sps:$4 sm:$0xff]   ;;  %v11333_v27 = vld [vmem:[%s11662_s6 + $0x1140] ss:$20 sps:$4 sm:$0xff]  }
 0x3b5   : > { %8090 = vmatprep.mubr.bf16.mxu0 %v12015_v59  ;;  %8130 = vmatprep.mubr.bf16.mxu1 %v12096_v13  ;;  %v11292_v59 = vld [vmem:[%s11662_s6 + $0xd08] ss:$20 sps:$4 sm:$0xff]   ;;  %v11293_v13 = vld [vmem:[%s11662_s6 + $0xbf0] ss:$20 sps:$4 sm:$0xff]   ;;  %v11332_v25 = vld [vmem:[%s11662_s6 + $0x1258] ss:$20 sps:$4 sm:$0xff]  }
 0x3b7   : > { %9650 = vmatpush3.bf16.msra.mxu0 %v11282_v28  ;;  %9672 = vmatpush3.bf16.msra.mxu1 %v11284_v51  ;;  %v11335_v28 = vld [vmem:[%s11662_s6 + $0x13c0] ss:$20 sps:$4 sm:$0xff]  }
 0x3b8   : > { %9651 = vmatprep.subr.bf16.mxu0 %v11285_v31  ;;  %9673 = vmatprep.subr.bf16.mxu1 %v11287_v33  ;;  %v11334_v51 = vld [vmem:[%s11662_s6 + $0x1000] ss:$20 sps:$4 sm:$0xff]   ;;  %v11337_v33 = vld [vmem:[%s11662_s6 + $0x1168] ss:$20 sps:$4 sm:$0xff]  }
 0x3b9   : > { %v11336_v31 = vld [vmem:[%s11662_s6 + $0x1280] ss:$20 sps:$4 sm:$0xff]  }
 0x3bb   : > { %9652 = vmatpush3.bf16.msra.mxu0 %v11286_v38  ;;  %9674 = vmatpush3.bf16.msra.mxu1 %v11288_v55  ;;  %v11339_v38 = vld [vmem:[%s11662_s6 + $0x13e8] ss:$20 sps:$4 sm:$0xff]  }
 0x3bc   : > { %9653 = vmatprep.subr.bf16.mxu0 %v11289_v35  ;;  %9675 = vmatprep.subr.bf16.mxu1 %v11291_v2  ;;  %v11338_v55 = vld [vmem:[%s11662_s6 + $0x1028] ss:$20 sps:$4 sm:$0xff]   ;;  %v11341_v2 = vld [vmem:[%s11662_s6 + $0x1550] ss:$20 sps:$4 sm:$0xff]  }
 0x3bd   : > { %v11340_v35 = vld [vmem:[%s11662_s6 + $0x12a8] ss:$20 sps:$4 sm:$0xff]  }
 0x3bf   : > { %9654 = vmatpush3.bf16.msra.mxu0 %v11290_v37  ;;  %9676 = vmatpush3.bf16.msra.mxu1 %v11292_v59  ;;  %v11343_v37 = vld [vmem:[%s11662_s6 + $0x17d0] ss:$20 sps:$4 sm:$0xff]  }
 0x3c0   : > { %9655 = vmatprep.subr.bf16.mxu0 %v11293_v13  ;;  %9677 = vmatprep.subr.bf16.mxu1 %v11295_v50  ;;  %v11342_v59 = vld [vmem:[%s11662_s6 + $0x1410] ss:$20 sps:$4 sm:$0xff]   ;;  %v11345_v50 = vld [vmem:[%s11662_s6 + $0x1578] ss:$20 sps:$4 sm:$0xff]  }
 0x3c1   : > { %v11344_v13 = vld [vmem:[%s11662_s6 + $0x1690] ss:$20 sps:$4 sm:$0xff]  }
 0x3c3   : > { %9656 = vmatpush3.bf16.msra.mxu0 %v11294_v40  ;;  %9678 = vmatpush3.bf16.msra.mxu1 %v11296_v41  ;;  %v11347_v40 = vld [vmem:[%s11662_s6 + $0x17f8] ss:$20 sps:$4 sm:$0xff]  }
 0x3c4   : > { %9657 = vmatprep.subr.bf16.mxu0 %v11297_v29  ;;  %9679 = vmatprep.subr.bf16.mxu1 %v11299_v45  ;;  %v11346_v41 = vld [vmem:[%s11662_s6 + $0x1438] ss:$20 sps:$4 sm:$0xff]   ;;  %v11349_v45 = vld [vmem:[%s11662_s6 + $0x15a0] ss:$20 sps:$4 sm:$0xff]  }
 0x3c5   : > { %v11348_v29 = vld [vmem:[%s11662_s6 + $0x16b8] ss:$20 sps:$4 sm:$0xff]  }
 0x3c7   : > { %9658 = vmatpush3.bf16.msra.mxu0 %v11298_v46  ;;  %9680 = vmatpush3.bf16.msra.mxu1 %v11300_v48  ;;  %v11351_v46 = vld [vmem:[%s11662_s6 + $0x1820] ss:$20 sps:$4 sm:$0xff]   ;;  %v11353_v48 = vld [vmem:[%s11662_s6 + $0x15c8] ss:$20 sps:$4 sm:$0xff]  }
 0x3c8   : > { %9659 = vmatprep.subr.bf16.mxu0 %v11301_v15  ;;  %9681 = vmatprep.subr.bf16.mxu1 %v11303_v16  ;;  %v11355_v15 = vld [vmem:[%s11662_s6 + $0x1848] ss:$20 sps:$4 sm:$0xff]  }
 0x3c9   : > { %v11354_v16 = vld [vmem:[%s11662_s6 + $0x1488] ss:$20 sps:$4 sm:$0xff]  }
 0x3cb   : > { %9660 = vmatpush3.bf16.msra.mxu0 %v11302_v24  ;;  %9682 = vmatpush3.bf16.msra.mxu1 %v11304_v52  ;;  %v11359_v24 = vld [vmem:[%s11662_s6 + $0x1870] ss:$20 sps:$4 sm:$0xff]  }
 0x3cc   : > { %9661 = vmatprep.subr.bf16.mxu0 %v11305_v53  ;;  %9683 = vmatprep.subr.bf16.mxu1 %v11307_v58  ;;  %v11358_v52 = vld [vmem:[%s11662_s6 + $0x14b0] ss:$20 sps:$4 sm:$0xff]   ;;  %v11361_v58 = vld [vmem:[%s11662_s6 + $0x1618] ss:$20 sps:$4 sm:$0xff]  }
 0x3cd   : > { %v11360_v53 = vld [vmem:[%s11662_s6 + $0x1730] ss:$20 sps:$4 sm:$0xff]  }
 0x3cf   : > { %9662 = vmatpush3.bf16.msra.mxu0 %v11306_v34  ;;  %9684 = vmatpush3.bf16.msra.mxu1 %v11308_v44  ;;  %v11363_v34 = vld [vmem:[%s11662_s6 + $0x1898] ss:$20 sps:$4 sm:$0xff]  }
 0x3d0   : > { %9691 = vmatprep.subr.bf16.mxu0 %v11309_v61  ;;  %9713 = vmatprep.subr.bf16.mxu1 %v11311_v32  ;;  %v11362_v44 = vld [vmem:[%s11662_s6 + $0x14d8] ss:$20 sps:$4 sm:$0xff]   ;;  %v11365_v32 = vld [vmem:[%s11662_s6 + $0x1640] ss:$20 sps:$4 sm:$0xff]  }
 0x3d1   : > { %v11364_v61 = vld [vmem:[%s11662_s6 + $0x1758] ss:$20 sps:$4 sm:$0xff]  }
 0x3d2   : > { %8091 = vmatmul.mubr.bf16.vlgmr.msra.gmra.mrb[12].mxu0 %v12090_v7  ;;  %8131 = vmatmul.mubr.bf16.vlgmr.msra.gmra.mrb[12].mxu1 %v12175_v30  ;;  %v11318_v7 = vld [vmem:[%s11662_s6 + $0xf60] ss:$20 sps:$4 sm:$0xff]  }
 0x3d3   : > { %9692 = vmatpush3.bf16.msra.mxu0 %v11310_v62  ;;  %9714 = vmatpush3.bf16.msra.mxu1 %v11312_v1  ;;  %v11320_v30 = vld [vmem:[%s11662_s6 + $0x11e0] ss:$20 sps:$4 sm:$0xff]  }
 0x3d4   : > { %9693 = vmatprep.subr.bf16.mxu0 %v11313_v12  ;;  %9715 = vmatprep.subr.bf16.mxu1 %v11315_v0  ;;  %v11367_v62 = vld [vmem:[%s11662_s6 + $0x18c0] ss:$20 sps:$4 sm:$0xff]   ;;  %v11369_v0 = vld [vmem:[%s11662_s6 + $0x1668] ss:$20 sps:$4 sm:$0xff]  }
 0x3d5   : > { %8170 = vmatprep.mubr.bf16.mxu0 %v12181_v36  ;;  %8210 = vmatprep.mubr.bf16.mxu1 %v12262_v63  ;;  %v11324_v36 = vld [vmem:[%s11662_s6 + $0x1208] ss:$20 sps:$4 sm:$0xff]   ;;  %v11325_v63 = vld [vmem:[%s11662_s6 + $0x10f0] ss:$20 sps:$4 sm:$0xff]   ;;  %v11366_v1 = vld [vmem:[%s11662_s6 + $0x1500] ss:$20 sps:$4 sm:$0xff]  }
 0x3d6   : > { %v11368_v12 = vld [vmem:[%s11662_s6 + $0x1780] ss:$20 sps:$4 sm:$0xff]  }
 0x3d7   : > { %9694 = vmatpush3.bf16.msra.mxu0 %v11314_v47  ;;  %9716 = vmatpush3.bf16.msra.mxu1 %v11316_v42  ;;  %v11371_v47 = vld [vmem:[%s11662_s6 + $0x18e8] ss:$20 sps:$4 sm:$0xff]  }
 0x3d8   : > { %9695 = vmatprep.subr.bf16.mxu0 %v11317_v3  ;;  %9717 = vmatprep.subr.bf16.mxu1 %v11319_v60  ;;  %v11370_v42 = vld [vmem:[%s11662_s6 + $0x1528] ss:$20 sps:$4 sm:$0xff]   ;;  %v11373_v60 = vld [vmem:[%s11662_s6 + $0x1a50] ss:$20 sps:$4 sm:$0xff]  }
 0x3d9   : > { %v11372_v3 = vld [vmem:[%s11662_s6 + $0x17a8] ss:$20 sps:$4 sm:$0xff]  }
 0x3db   : > { %9696 = vmatpush3.bf16.msra.mxu0 %v11318_v7  ;;  %9718 = vmatpush3.bf16.msra.mxu1 %v11320_v30  ;;  %v11375_v7 = vld [vmem:[%s11662_s6 + $0x1cd0] ss:$20 sps:$4 sm:$0xff]  }
 0x3dc   : > { %9697 = vmatprep.subr.bf16.mxu0 %v11321_v20  ;;  %9719 = vmatprep.subr.bf16.mxu1 %v11323_v4  ;;  %v11374_v30 = vld [vmem:[%s11662_s6 + $0x1910] ss:$20 sps:$4 sm:$0xff]   ;;  %v11377_v4 = vld [vmem:[%s11662_s6 + $0x1a78] ss:$20 sps:$4 sm:$0xff]  }
 0x3dd   : > { %v11376_v20 = vld [vmem:[%s11662_s6 + $0x1b90] ss:$20 sps:$4 sm:$0xff]  }
 0x3df   : > { %9698 = vmatpush3.bf16.msra.mxu0 %v11322_v6  ;;  %9720 = vmatpush3.bf16.msra.mxu1 %v11324_v36  ;;  %v11379_v6 = vld [vmem:[%s11662_s6 + $0x1cf8] ss:$20 sps:$4 sm:$0xff]  }
 0x3e0   : > { %9699 = vmatprep.subr.bf16.mxu0 %v11325_v63  ;;  %9721 = vmatprep.subr.bf16.mxu1 %v11327_v10  ;;  %v11378_v36 = vld [vmem:[%s11662_s6 + $0x1938] ss:$20 sps:$4 sm:$0xff]   ;;  %v11381_v10 = vld [vmem:[%s11662_s6 + $0x1aa0] ss:$20 sps:$4 sm:$0xff]  }
 0x3e1   : > { %v11380_v63 = vld [vmem:[%s11662_s6 + $0x1bb8] ss:$20 sps:$4 sm:$0xff]  }
 0x3e3   : > { %9700 = vmatpush3.bf16.msra.mxu0 %v11326_v11  ;;  %9722 = vmatpush3.bf16.msra.mxu1 %v11328_v14  ;;  %v11383_v11 = vld [vmem:[%s11662_s6 + $0x1d20] ss:$20 sps:$4 sm:$0xff]   ;;  %v11385_v14 = vld [vmem:[%s11662_s6 + $0x1ac8] ss:$20 sps:$4 sm:$0xff]  }
 0x3e4   : > { %9701 = vmatprep.subr.bf16.mxu0 %v11329_v17  ;;  %9723 = vmatprep.subr.bf16.mxu1 %v11331_v23  ;;  %v11387_v17 = vld [vmem:[%s11662_s6 + $0x1d48] ss:$20 sps:$4 sm:$0xff]  }
 0x3e5   : > { %v11386_v23 = vld [vmem:[%s11662_s6 + $0x1988] ss:$20 sps:$4 sm:$0xff]  }
 0x3e7   : > { %9702 = vmatpush3.bf16.msra.mxu0 %v11330_v19  ;;  %9724 = vmatpush3.bf16.msra.mxu1 %v11332_v25  ;;  %v11391_v19 = vld [vmem:[%s11662_s6 + $0x1d70] ss:$20 sps:$4 sm:$0xff]  }
 0x3e8   : > { %9703 = vmatprep.subr.bf16.mxu0 %v11333_v27  ;;  %9725 = vmatprep.subr.bf16.mxu1 %v11335_v28  ;;  %v11390_v25 = vld [vmem:[%s11662_s6 + $0x19b0] ss:$20 sps:$4 sm:$0xff]   ;;  %v11393_v28 = vld [vmem:[%s11662_s6 + $0x1b18] ss:$20 sps:$4 sm:$0xff]  }
 0x3e9   : > { %v11392_v27 = vld [vmem:[%s11662_s6 + $0x1c30] ss:$20 sps:$4 sm:$0xff]  }
 0x3eb   : > { %9704 = vmatpush3.bf16.msra.mxu0 %v11334_v51  ;;  %9726 = vmatpush3.bf16.msra.mxu1 %v11336_v31  ;;  %v11395_v51 = vld [vmem:[%s11662_s6 + $0x1d98] ss:$20 sps:$4 sm:$0xff]  }
 0x3ec   : > { %9705 = vmatprep.subr.bf16.mxu0 %v11337_v33  ;;  %9727 = vmatprep.subr.bf16.mxu1 %v11339_v38  ;;  %v11394_v31 = vld [vmem:[%s11662_s6 + $0x19d8] ss:$20 sps:$4 sm:$0xff]   ;;  %v11397_v38 = vld [vmem:[%s11662_s6 + $0x1b40] ss:$20 sps:$4 sm:$0xff]  }
 0x3ed   : > { %v11396_v33 = vld [vmem:[%s11662_s6 + $0x1c58] ss:$20 sps:$4 sm:$0xff]  }
 0x3ef   : > { %9706 = vmatpush3.bf16.msra.mxu0 %v11338_v55  ;;  %9728 = vmatpush3.bf16.msra.mxu1 %v11340_v35  ;;  %v11399_v55 = vld [vmem:[%s11662_s6 + $0x1dc0] ss:$20 sps:$4 sm:$0xff]  }
 0x3f0   : > { %9735 = vmatprep.subr.bf16.mxu0 %v11341_v2  ;;  %9757 = vmatprep.subr.bf16.mxu1 %v11343_v37  ;;  %v11398_v35 = vld [vmem:[%s11662_s6 + $0x1a00] ss:$20 sps:$4 sm:$0xff]   ;;  %v11401_v37 = vld [vmem:[%s11662_s6 + $0x1b68] ss:$20 sps:$4 sm:$0xff]  }
 0x3f1   : > { %v11400_v2 = vld [vmem:[%s11662_s6 + $0x1c80] ss:$20 sps:$4 sm:$0xff]  }
 0x3f2   : > { %8171 = vmatmul.mubr.bf16.vlgmr.msra.gmra.mrb[16].mxu0 %v12256_v57  ;;  %8211 = vmatmul.mubr.bf16.vlgmr.msra.gmra.mrb[16].mxu1 %v12341_v21  ;;  %v11350_v57 = vld [vmem:[%s11662_s6 + $0x1460] ss:$20 sps:$4 sm:$0xff]  }
 0x3f3   : > { %9736 = vmatpush3.bf16.msra.mxu0 %v11342_v59  ;;  %9758 = vmatpush3.bf16.msra.mxu1 %v11344_v13  ;;  %v11352_v21 = vld [vmem:[%s11662_s6 + $0x16e0] ss:$20 sps:$4 sm:$0xff]   ;;  %v11403_v59 = vld [vmem:[%s11662_s6 + $0x1de8] ss:$20 sps:$4 sm:$0xff]  }
 0x3f4   : > { %9737 = vmatprep.subr.bf16.mxu0 %v11345_v50  ;;  %9759 = vmatprep.subr.bf16.mxu1 %v11347_v40  ;;  %v11402_v13 = vld [vmem:[%s11662_s6 + $0x1a28] ss:$20 sps:$4 sm:$0xff]   ;;  %v11405_v40 = vld [vmem:[%s11662_s6 + $0x1e10] ss:$20 sps:$4 sm:$0xff]  }
 0x3f5   : > { %8250 = vmatprep.mubr.bf16.mxu0 %v12347_v9  ;;  %8290 = vmatprep.mubr.bf16.mxu1 %v12428_v22  ;;  %v11356_v9 = vld [vmem:[%s11662_s6 + $0x1708] ss:$20 sps:$4 sm:$0xff]   ;;  %v11357_v22 = vld [vmem:[%s11662_s6 + $0x15f0] ss:$20 sps:$4 sm:$0xff]  }
 0x3f6   : > { %v11404_v50 = vld [vmem:[%s11662_s6 + $0x1ca8] ss:$20 sps:$4 sm:$0xff]  }
 0x3f7   : > { %9738 = vmatpush3.bf16.msra.mxu0 %v11346_v41  ;;  %9760 = vmatpush3.bf16.msra.mxu1 %v11348_v29  ;;  %v11519_v41 = vmov 0.0   ;;  %v11406_v29 = vld [vmem:[%s11662_s6 + $0x1e38] ss:$20 sps:$4 sm:$0xff]  }
 0x3f8   : > { %9739 = vmatprep.subr.bf16.mxu0 %v11349_v45  ;;  %9761 = vmatprep.subr.bf16.mxu1 %v11351_v46  ;;  %v11407_v45 = vld [vmem:[%s11662_s6 + $0x1e60] ss:$20 sps:$4 sm:$0xff]   ;;  %v11408_v46 = vld [vmem:[%s11662_s6 + $0x1e88] ss:$20 sps:$4 sm:$0xff]  }
 0x3fb   : > { %9740 = vmatpush3.bf16.msra.mxu0 %v11350_v57  ;;  %9762 = vmatpush3.bf16.msra.mxu1 %v11352_v21  ;;  %v11409_v57 = vld [vmem:[%s11662_s6 + $0x1eb0] ss:$20 sps:$4 sm:$0xff]   ;;  %v1609_v21 = vsub.s32 0, %v11713_v43 }
 0x3fc   : > { %9741 = vmatprep.subr.bf16.mxu0 %v11353_v48  ;;  %9763 = vmatprep.subr.bf16.mxu1 %v11355_v15  ;;  %v1613_v48 = vsub.s32 1, %v11713_v43  ;;  %v1621_v15 = vsub.s32 3, %v11713_v43 }
 0x3ff   : > { %9742 = vmatpush3.bf16.msra.mxu0 %v11354_v16  ;;  %9764 = vmatpush3.bf16.msra.mxu1 %v11356_v9 }
 0x400   : > { %9743 = vmatprep.subr.bf16.mxu0 %v11357_v22  ;;  %9765 = vmatprep.subr.bf16.mxu1 %v11359_v24 }
 0x403   : > { %9744 = vmatpush3.bf16.msra.mxu0 %v11358_v52  ;;  %9766 = vmatpush3.bf16.msra.mxu1 %v11360_v53  ;;  %v11410_v52 = vld [vmem:[%s11662_s6 + $0x1ed8] ss:$20 sps:$4 sm:$0xff]  }
 0x404   : > { %9745 = vmatprep.subr.bf16.mxu0 %v11361_v58  ;;  %9767 = vmatprep.subr.bf16.mxu1 %v11363_v34 }
 0x407   : > { %9746 = vmatpush3.bf16.msra.mxu0 %v11362_v44  ;;  %9768 = vmatpush3.bf16.msra.mxu1 %v11364_v61 }
 0x408   : > { %9747 = vmatprep.subr.bf16.mxu0 %v11365_v32  ;;  %9769 = vmatprep.subr.bf16.mxu1 %v11367_v62 }
 0x40b   : > { %9748 = vmatpush3.bf16.msra.mxu0 %v11366_v1  ;;  %9770 = vmatpush3.bf16.msra.mxu1 %v11368_v12 }
 0x40c   : > { %9749 = vmatprep.subr.bf16.mxu0 %v11369_v0  ;;  %9771 = vmatprep.subr.bf16.mxu1 %v11371_v47  ;;  %v11411_v47 = vld [vmem:[%s11662_s6 + $0x1f00] ss:$20 sps:$4 sm:$0xff]  }
 0x40f   : > { %9750 = vmatpush3.bf16.msra.mxu0 %v11370_v42  ;;  %9772 = vmatpush3.bf16.msra.mxu1 %v11372_v3 }
 0x410   : > { %9779 = vmatprep.subr.bf16.mxu0 %v11373_v60  ;;  %9801 = vmatprep.subr.bf16.mxu1 %v11375_v7 }
 0x412   : > { %8251 = vmatmul.mubr.bf16.vlgmr.msra.gmra.mrb[20].mxu0 %v12422_v56  ;;  %8291 = vmatmul.mubr.bf16.vlgmr.msra.gmra.mrb[20].mxu1 %v12507_v26  ;;  %v11382_v56 = vld [vmem:[%s11662_s6 + $0x1960] ss:$20 sps:$4 sm:$0xff]  }
 0x413   : > { %9780 = vmatpush3.bf16.msra.mxu0 %v11374_v30  ;;  %9802 = vmatpush3.bf16.msra.mxu1 %v11376_v20  ;;  %v11384_v26 = vld [vmem:[%s11662_s6 + $0x1be0] ss:$20 sps:$4 sm:$0xff]  }
 0x414   : > { %9781 = vmatprep.subr.bf16.mxu0 %v11377_v4  ;;  %9803 = vmatprep.subr.bf16.mxu1 %v11379_v6 }
 0x415   : > { %8330 = vmatprep.mubr.bf16.mxu0 %v12513_v39  ;;  %8370 = vmatprep.mubr.bf16.mxu1 %v12594_v18  ;;  %v11388_v39 = vld [vmem:[%s11662_s6 + $0x1c08] ss:$20 sps:$4 sm:$0xff]   ;;  %v11389_v18 = vld [vmem:[%s11662_s6 + $0x1af0] ss:$20 sps:$4 sm:$0xff]  }
 0x417   : > { %9782 = vmatpush3.bf16.msra.mxu0 %v11378_v36  ;;  %9804 = vmatpush3.bf16.msra.mxu1 %v11380_v63  ;;  %v11412_v36 = vld [vmem:[%s11662_s6 + $0x1f28] ss:$20 sps:$4 sm:$0xff]  }
 0x418   : > { %9783 = vmatprep.subr.bf16.mxu0 %v11381_v10  ;;  %9805 = vmatprep.subr.bf16.mxu1 %v11383_v11 }
 0x41b   : > { %9784 = vmatpush3.bf16.msra.mxu0 %v11382_v56  ;;  %9806 = vmatpush3.bf16.msra.mxu1 %v11384_v26  ;;  %v1625_v56 = vsub.s32 4, %v11713_v43 }
 0x41c   : > { %9785 = vmatprep.subr.bf16.mxu0 %v11385_v14  ;;  %9807 = vmatprep.subr.bf16.mxu1 %v11387_v17 }
 0x41f   : > { %9786 = vmatpush3.bf16.msra.mxu0 %v11386_v23  ;;  %9808 = vmatpush3.bf16.msra.mxu1 %v11388_v39 }
 0x420   : > { %9787 = vmatprep.subr.bf16.mxu0 %v11389_v18  ;;  %9809 = vmatprep.subr.bf16.mxu1 %v11391_v19 }
 0x423   : > { %9788 = vmatpush3.bf16.msra.mxu0 %v11390_v25  ;;  %9810 = vmatpush3.bf16.msra.mxu1 %v11392_v27 }
 0x424   : > { %9789 = vmatprep.subr.bf16.mxu0 %v11393_v28  ;;  %9811 = vmatprep.subr.bf16.mxu1 %v11395_v51 }
 0x427   : > { %9790 = vmatpush3.bf16.msra.mxu0 %v11394_v31  ;;  %9812 = vmatpush3.bf16.msra.mxu1 %v11396_v33 }
 0x428   : > { %9791 = vmatprep.subr.bf16.mxu0 %v11397_v38  ;;  %9813 = vmatprep.subr.bf16.mxu1 %v11399_v55 }
 0x42b   : > { %9792 = vmatpush3.bf16.msra.mxu0 %v11398_v35  ;;  %9814 = vmatpush3.bf16.msra.mxu1 %v11400_v2 }
 0x42c   : > { %9793 = vmatprep.subr.bf16.mxu0 %v11401_v37  ;;  %9815 = vmatprep.subr.bf16.mxu1 %v11403_v59 }
 0x42f   : > { %9794 = vmatpush3.bf16.msra.mxu0 %v11402_v13  ;;  %9816 = vmatpush3.bf16.msra.mxu1 %v11404_v50 }
 0x430   : > { %9832 = vmatprep.subr.bf16.mxu0 %v11519_v41 }
 0x432   : > { %8331 = vmatmul.mubr.bf16.vlgmr.msra.gmra.mrb[24].mxu0 %v12588_v8  ;;  %8371 = vmatmul.mubr.bf16.vlgmr.msra.gmra.mrb[24].mxu1 %v12662_v54  ;;  %v1617_v8 = vsub.s32 2, %v11713_v43  ;;  %v1605_v54 = vld [vmem:[%s11668_s30] sm:$0x1f] }
 0x433   : > { %9833 = vmatpush3.bf16.msra.mxu0 %v11405_v40  ;;  %9848 = vmatprep.mubr.msk.bf16.mxu0 %vm11520_vm0, %v11519_v41  ;;  %v1610_v16 = vrot.slane %v1605_v54, %v1609_v21  ;;  %v1614_v22 = vrot.slane %v1605_v54, %v1613_v48  ;;  %v1622_v24 = vrot.slane %v1605_v54, %v1621_v15 }
 0x434   : > { %9834 = vmatprep.subr.bf16.mxu0 %v11519_v41  ;;  %v1618_v9 = vrot.slane %v1605_v54, %v1617_v8  ;;  %v1626_v14 = vrot.slane %v1605_v54, %v1625_v56 }
 0x437   : > { %9835 = vmatpush3.bf16.msra.mxu0 %v11406_v29 }
 0x438   : > { %9836 = vmatprep.subr.bf16.mxu0 %v11519_v41 }
 0x43b   : > { %9837 = vmatpush3.bf16.msra.mxu0 %v11407_v45 }
 0x43c   : > { %9838 = vmatprep.subr.bf16.mxu0 %v11519_v41 }
 0x43f   : > { %9839 = vmatpush3.bf16.msra.mxu0 %v11408_v46 }
 0x440   : > { %9840 = vmatprep.subr.bf16.mxu0 %v11519_v41 }
 0x443   : > { %9841 = vmatpush3.bf16.msra.mxu0 %v11409_v57 }
 0x444   : > { %9842 = vmatprep.subr.bf16.mxu0 %v11519_v41 }
 0x445   : > { %v7358_v53 = vpop.f32.mrb[0].mxu0  ;;  %v7891_v58 = vpop.f32.mrb[0].mxu1 }
 0x446   : > { %v9852_v34 = vadd.f32 %v7358_v53, %v1610_v16  ;;  %v9854_v44 = vadd.f32 %v7891_v58, %v1618_v9  ;;  %v7360_v61 = vpop.f32.mrb[1].mxu0  ;;  %v7893_v32 = vpop.f32.mrb[1].mxu1 }
 0x447   : > { %v9853_v62 = vadd.f32 %v7360_v61, %v1614_v22  ;;  %v9855_v1 = vadd.f32 %v7893_v32, %v1622_v24  ;;  %v7362_v12 = vpop.f32.mrb[2].mxu0  ;;  %v7895_v0 = vpop.f32.mrb[2].mxu1  ;;  %9843 = vmatpush3.bf16.msra.mxu0 %v11410_v52 }
 0x448   : > { %v8418_v42 = vmax.f32 %v9852_v34, 0.0  ;;  %v8420_v3 = vmax.f32 %v9854_v44, 0.0  ;;  %v7363_v60 = vpop.f32.mrb[3].mxu0  ;;  %v7896_v7 = vpop.f32.mrb[3].mxu1  ;;  %9844 = vmatprep.subr.bf16.mxu0 %v11519_v41 }
 0x449   : > { %v8419_v30 = vmax.f32 %v9853_v62, 0.0  ;;  %v8421_v20 = vmax.f32 %v9855_v1, 0.0 }
 0x44b   : > { %v8428_v4 = vcombine.low %v8418_v42, %v8419_v30  ;;  %v8429_v6 = vcombine.low %v8420_v3, %v8421_v20  ;;  %9845 = vmatpush3.bf16.msra.mxu0 %v11411_v47 }
 0x44c   : > { %9846 = vmatprep.subr.bf16.mxu0 %v11519_v41 }
 0x44d   : > { %v8436_v63 = vrot.slane %v8428_v4, %v11721_v49  ;;  %v8443_v10 = vrot.slane %v8429_v6, %v11721_v49 }
 0x44f   : > { %v8444_v11 = vcombine.low %v8436_v63, %v8443_v10  ;;  %9847 = vmatpush3.bf16.msra.mxu0 %v11412_v36 }
 0x451   : > { %8454 = vst [vmem:[%s12940_s5] sm:$0xff] %v8444_v11 }
 0x452   : > { %9849 = vmatmul.mubr.bf16.vlgmr.msra.gmra.mrb[28].mxu0 %v12701_v5 }
 0x465   : > { %v9575_v26 = vpop.f32.mrb[4].mxu0  ;;  %v9597_v17 = vpop.f32.mrb[4].mxu1 }
 0x466   : > { %v9576_v23 = vpop.f32.mrb[5].mxu0  ;;  %v9598_v39 = vpop.f32.mrb[5].mxu1 }
 0x467   : > { %v9577_v18 = vadd.f32 %v9576_v23, %v9575_v26  ;;  %v9578_v49 = vpop.f32.mrb[6].mxu0  ;;  %v9599_v19 = vadd.f32 %v9598_v39, %v9597_v17  ;;  %v9600_v25 = vpop.f32.mrb[6].mxu1 }
 0x468   : > { %v9579_v27 = vpop.f32.mrb[7].mxu0  ;;  %v9601_v28 = vpop.f32.mrb[7].mxu1 }
 0x469   : > { %v7933_v51 = vadd.f32 %v9577_v18, %v1626_v14 }
 0x46b   : > { %v7973_v31 = vadd.f32 %v9599_v19, %v7933_v51 }
 0x485   : > { %v9619_v33 = vpop.f32.mrb[8].mxu0  ;;  %v9641_v38 = vpop.f32.mrb[8].mxu1 }
 0x486   : > { %v9620_v55 = vpop.f32.mrb[9].mxu0  ;;  %v9642_v35 = vpop.f32.mrb[9].mxu1 }
 0x487   : > { %v9621_v5 = vadd.f32 %v9620_v55, %v9619_v33  ;;  %v9622_v2 = vpop.f32.mrb[10].mxu0  ;;  %v9643_v43 = vadd.f32 %v9642_v35, %v9641_v38  ;;  %v9644_v37 = vpop.f32.mrb[10].mxu1 }
 0x488   : > { %v9623_v59 = vpop.f32.mrb[11].mxu0  ;;  %v9645_v13 = vpop.f32.mrb[11].mxu1 }
 0x489   : > { %v8013_v50 = vadd.f32 %v9621_v5, %v7973_v31 }
 0x48b   : > { %v8053_v40 = vadd.f32 %v9643_v43, %v8013_v50 }
 0x4a5   : > { %v9663_v41 = vpop.f32.mrb[12].mxu0  ;;  %v9685_v29 = vpop.f32.mrb[12].mxu1 }
 0x4a6   : > { %v9664_v45 = vpop.f32.mrb[13].mxu0  ;;  %v9686_v46 = vpop.f32.mrb[13].mxu1 }
 0x4a7   : > { %v9665_v57 = vadd.f32 %v9664_v45, %v9663_v41  ;;  %v9666_v21 = vpop.f32.mrb[14].mxu0  ;;  %v9687_v8 = vadd.f32 %v9686_v46, %v9685_v29  ;;  %v9688_v54 = vpop.f32.mrb[14].mxu1 }
 0x4a8   : > { %v9667_v48 = vpop.f32.mrb[15].mxu0  ;;  %v9689_v15 = vpop.f32.mrb[15].mxu1 }
 0x4a9   : > { %v8093_v16 = vadd.f32 %v9665_v57, %v8053_v40 }
 0x4ab   : > { %v8133_v9 = vadd.f32 %v9687_v8, %v8093_v16 }
 0x4c5   : > { %v9707_v22 = vpop.f32.mrb[16].mxu0  ;;  %v9729_v24 = vpop.f32.mrb[16].mxu1 }
 0x4c6   : > { %v9708_v52 = vpop.f32.mrb[17].mxu0  ;;  %v9730_v53 = vpop.f32.mrb[17].mxu1 }
 0x4c7   : > { %v9709_v58 = vadd.f32 %v9708_v52, %v9707_v22  ;;  %v9710_v34 = vpop.f32.mrb[18].mxu0  ;;  %v9731_v44 = vadd.f32 %v9730_v53, %v9729_v24  ;;  %v9732_v61 = vpop.f32.mrb[18].mxu1 }
 0x4c8   : > { %v9711_v32 = vpop.f32.mrb[19].mxu0  ;;  %v9733_v62 = vpop.f32.mrb[19].mxu1 }
 0x4c9   : > { %v8173_v1 = vadd.f32 %v9709_v58, %v8133_v9 }
 0x4cb   : > { %v8213_v12 = vadd.f32 %v9731_v44, %v8173_v1 }
 0x4e5   : > { %v9751_v0 = vpop.f32.mrb[20].mxu0  ;;  %v9773_v47 = vpop.f32.mrb[20].mxu1 }
 0x4e6   : > { %v9752_v42 = vpop.f32.mrb[21].mxu0  ;;  %v9774_v3 = vpop.f32.mrb[21].mxu1 }
 0x4e7   : > { %v9753_v60 = vadd.f32 %v9752_v42, %v9751_v0  ;;  %v9754_v7 = vpop.f32.mrb[22].mxu0  ;;  %v9775_v30 = vadd.f32 %v9774_v3, %v9773_v47  ;;  %v9776_v20 = vpop.f32.mrb[22].mxu1 }
 0x4e8   : > { %v9755_v4 = vpop.f32.mrb[23].mxu0  ;;  %v9777_v6 = vpop.f32.mrb[23].mxu1 }
 0x4e9   : > { %v8253_v36 = vadd.f32 %v9753_v60, %v8213_v12 }
 0x4eb   : > { %v8293_v63 = vadd.f32 %v9775_v30, %v8253_v36 }
 0x505   : > { %v9795_v10 = vpop.f32.mrb[24].mxu0  ;;  %v9817_v11 = vpop.f32.mrb[24].mxu1 }
 0x506   : > { %v9796_v56 = vpop.f32.mrb[25].mxu0  ;;  %v9818_v26 = vpop.f32.mrb[25].mxu1 }
 0x507   : > { %v9797_v14 = vadd.f32 %v9796_v56, %v9795_v10  ;;  %v9798_v17 = vpop.f32.mrb[26].mxu0  ;;  %v9819_v23 = vadd.f32 %v9818_v26, %v9817_v11  ;;  %v9820_v39 = vpop.f32.mrb[26].mxu1 }
 0x508   : > { %v9799_v18 = vpop.f32.mrb[27].mxu0  ;;  %v9821_v49 = vpop.f32.mrb[27].mxu1 }
 0x509   : > { %v8333_v19 = vadd.f32 %v9797_v14, %v8293_v63 }
 0x50b   : > { %v8373_v25 = vadd.f32 %v9819_v23, %v8333_v19 }
 0x525   : > { %v8412_v27 = vpop.f32.mrb[28].mxu0 }
 0x526   : > { %v8413_v28 = vadd.f32 %v8412_v27, %v8373_v25  ;;  %v9850_v51 = vpop.f32.mrb[29].mxu0 }
 0x527   : > { %v8415_v31 = vpop.f32.mrb[30].mxu0 }
 0x528   : > { %v8422_v33 = vmax.f32 %v8413_v28, 0.0  ;;  %v9851_v38 = vpop.f32.mrb[31].mxu0 }
 0x52a   : > { %9555 = vst.sshfl [vmem:[%s12940_s5 + $0x8] sm:$0x3 pattern:$0x76325410] %v8422_v33 }
 0x52b PF: > { %p16_p8 = scmp.ge.s32.totalorder %s11561_s17, 7   ;;  %s12970_s12 = smov %s11503_s13 }
 0x52c   : > { %s12971_s13 = smov %s11507_s14  ;;  %s12972_s14 = smov %s11571_s20 }
 0x52d   : > { %s12973_s15 = smov %s11561_s17  ;;  %18 = sbr.rel (!%p16_p8) target bundleno = 5 (0x5), region = 85 }
 0x534   :  { %8478 = vsyncpa [#allocation3], 1 }
 0x535   :  { %8480 = vsyncpa [#allocation3 + $0x1], 1 }
 0x536   :  { %8481 = vsyncpa [#allocation5], 1 }
 0x537   :  { %8483 = vsyncpa [#allocation5 + $0x1], 1 }

// kernel: votenet_forward.3
= control target key start
LH: loop header
LB: loop body
LE: loop exit
PB: predicated region body
PF: predicated region fallthrough
CT: control target
= control target key end

     0   :  { %9 = vsyncpa [#allocation3], 0  ;;  %s14478_s0 = inlined_call_operand.vmem [shape: f32[2,3200], index: 0, kind: input, shape index: {}]   ;;  %s14479_s1 = inlined_call_operand.vmem [shape: bf16[5,3200,640], index: 1, kind: input, shape index: {}]   ;;  %s14480_s2 = inlined_call_operand.vmem [shape: f32[1,3200], index: 2, kind: input, shape index: {}]   ;;  %s14481_s3 = inlined_call_operand.hbm [shape: bf16[3200,384], index: 3, kind: input, shape index: {}]   ;;  %s14482_s4 = inlined_call_operand.vmem [shape: f32[5,2,384], index: 4, kind: output, shape index: {}]  }
   0x1   :  { %11 = vsyncpa [#allocation3 + $0x1], 0  ;;  %s12927_s15 = smov 0   ;;  %s12929_s16 = smov 0  }
   0x2   :  { %s12931_s17 = smov 0   ;;  %s12933_s18 = smov 0  }
   0x3 LB: > { %s12946_s19 = sadd.s32 4294967295, %s12893_s18   ;;  %s12949_s20 = sadd.s32 1, %s12893_s18   ;;  %s12893_s18 = sphi %s12933_s18, %s14488_s18   ;;  %s12889_s17 = sphi %s12931_s17, %s14487_s17   ;;  %s12885_s16 = sphi %s12929_s16, %s14486_s16   ;;  %s12881_s15 = sphi %s12927_s15, %s14485_s15  }
   0x4   : > { %s94_s21 = ssub.s32 %s12893_s18, %s12949_s20  ;;  %s97_s22 = sadd.s32 1, %s12889_s17 }
   0x5   : > { %p95_p0 = scmp.eq.s32.totalorder %s94_s21, 0  ;;  %p104_p1 = scmp.ne.s32.totalorder %s12889_s17, %s12885_s16 }
   0x6   : > { %p105_p2 = scmp.eq.s32.totalorder %s12893_s18, 0  ;;  %p110_p3 = scmp.ne.s32.totalorder %s12885_s16, %s12881_s15 }
   0x7   : > { %s12959_s23 = scalar_select %p95_p0, %s12889_s17, %s97_s22  }
   0x8   : > { %p106_p4 = por %p105_p2, %p104_p1  ;;  %p111_p5 = scmp.eq.s32.totalorder %s12946_s19, 0 }
   0x9   : > { %p11223_p6 = scmp.lt.s32.totalorder %s12893_s18, 5  ;;  %s179_s25 = sand.u32 1, %s12889_s17  }
   0xa   : > { %p12963_p7 = por %p111_p5, %p110_p3  ;;  %s11212_s26 = smul.u32 960, %s179_s25 }
   0xb   : > { %p12968_p8 = pnand %p11223_p6, %p106_p4  ;;  %s11224_s28 = smul.u32 15360, %s12893_s18 }
   0xc   : > { %s183_s29 = scalar_lea.vmem [#allocation2], %s11212_s26  ;;  %s12980_s8 = scalar_lea.sflag [#allocation3], %s179_s25 }
   0xd   : > { %s191_s30 = sshll.u32 %s183_s29, 4  ;;  %s12976_s7 = scalar_lea.hbm %s14481_s3, %s11224_s28  ;;  %s12978_s30 = int_to_ptr.vmem [resolvable:$true] %s191_s30 }
   0xe   : > { %s12829_s9 = scalar_lea.hbm %s12976_s7, 15360  ;;  %p12831_p10 = pneg %p12968_p8 }
   0xf   : > { %p12830_p9 = scmp.ne.s32.totalorder %s12976_s7, %s12829_s9  ;;  %s12834_s12 = scalar_lea.hbm %s14481_s3, 76800 }
  0x10   : > { %p12835_p13 = scmp.lt.u32.totalorder %s12976_s7, %s14481_s3  ;;  %p12836_p0 = scmp.lt.u32.totalorder %s12834_s12, %s12829_s9 }
  0x11   : > { %p12832_p11 = pnand %p12831_p10, %p12830_p9  ;;  %p12838_p2 = scmp.lt.u32.totalorder %s12829_s9, %s12976_s7 }
  0x12   : > { %p12837_p1 = por %p12836_p0, %p12835_p13 }
  0x13   : > { %p12833_p12 = pneg %p12832_p11 }
  0x14   : > { %p12839_p3 = por %p12838_p2, %p12837_p1 }
  0x16   : > { %p12840_p4 = pnand %p12839_p3, %p12833_p12 }
  0x18   : > { %12843 = shalt.err (!%p12840_p4)
}
  0x19   : > { %s12844_s15 = scalar_lea.vmem %s12978_s30, 15360  ;;  %s12895_s21 = smov [#allocation2]  }
  0x1a   : > { %p12845_p5 = scmp.ne.s32.totalorder %s12978_s30, %s12844_s15  ;;  %s12849_s22 = sshll.u32 %s12895_s21, 4  ;;  %s12850_s22 = int_to_ptr.vmem [resolvable:$false] %s12849_s22 }
  0x1b   : > { %s12851_s25 = scalar_lea.vmem %s12850_s22, 30720  ;;  %p12852_p11 = scmp.lt.s32.totalorder %s12978_s30, %s12850_s22 }
  0x1c   : > { %p12847_p6 = pnand %p12845_p5, %p12831_p10  ;;  %p12853_p13 = scmp.lt.s32.totalorder %s12851_s25, %s12844_s15 }
  0x1e   : > { %p12848_p9 = pneg %p12847_p6  ;;  %p12854_p0 = por %p12853_p13, %p12852_p11 }
  0x20   : > { %p12855_p1 = pnand %p12854_p0, %p12848_p9 }
  0x22   : > { %12858 = shalt.err (!%p12855_p1)
}
  0x23   : > { %s12896_s26 = smov 192   ;;  %s12897_s28 = smov 12  }
  0x24   : > { %11222 = dma.hbm_to_vmem [thread:$0]  (!%p12968_p8), %s12976_s7, 15360, %s12978_s30, %s12980_s8, %s12896_s26, %s12896_s26, %s12897_s28  }
  0x25   : > { %p9612_p10 = scmp.ge.s32.totalorder %s12893_s18, 1  ;;  %p199_p12 = scmp.lt.s32.totalorder %s12893_s18, 6 }
  0x27   : > { %p200_p2 = pnand %p9612_p10, %p199_p12 }
  0x28   : > { %s205_s29 = sand.u32 (!%p200_p2), 1, %s12885_s16  }
  0x29   : > { %203 = sbr.rel (%p200_p2) target bundleno = 1519 (0x5ef), region = 36  ;;  %s206_s6 = scalar_lea.sflag (!%p200_p2), [#allocation3], %s205_s29 }
  0x2a   : > { %s11214_s5 = smul.u32 (!%p200_p2), 960, %s205_s29 }
  0x2c   : > { %s13011_s9 = scalar_lea.vmem (!%p200_p2), [#allocation2], %s11214_s5 }
  0x30   : > { %12876 = dma.done.wait (%p12963_p7), %s206_s6, 15360  }
  0x31   : > { %12878 = vsyncadd (%p12963_p7), %s206_s6, 4294951936  ;;  %p243_p3 = scmp.lt.s32.totalorder %s12946_s19, 4  ;;  %v12898_v36 = vmov 1983009808   ;;  %v278_v38 = vlaneseq  ;;  %v260_v52 = vld [vmem:[%s14478_s0] sm:$0xff]  ;;  %s248_s6 = smul.u32 5, %s12946_s19 }
  0x32   : > { %v276_v37 = vunpack.c.l.s4 %v12898_v36  ;;  %vm12901_vm0 = vmmov 0  }
  0x33   : > { %s13019_s27 = scalar_select %p243_p3, %s12946_s19, 4  ;;  %v13066_v43 = vshrl.u32 %v278_v38, 7 }
  0x34   : > { %v277_v42 = vunpack.c.0.s8 %v276_v37  ;;  %p249_p7 = scmp.lt.s32.totalorder %s248_s6, 24 }
  0x35   : > { %s11215_s18 = smul.u32 8000, %s13019_s27 }
  0x36   : > { %v13074_v49 = vsub.s32 %v277_v42, %v13066_v43  ;;  %s14490_s6 = smov (!%p249_p7, %s248_s6), 24 }
  0x37   : > { %s13025_s8 = scalar_lea.vmem %s14479_s1, %s11215_s18  ;;  %s251_s30 = scalar_lea.vmem %s14480_s2, %s14490_s6 }
  0x38   : > { %v11263_v0 = vld [vmem:[%s13025_s8 + $0x4] ss:$20 sps:$4 sm:$0xff]   ;;  %v11265_v1 = vld [vmem:[%s13025_s8 + $0xc] ss:$20 sps:$4 sm:$0xff]   ;;  %v11268_v3 = vld [vmem:[%s13025_s8 + $0x8] ss:$20 sps:$4 sm:$0xff]   ;;  %v281_v54 = vrot.slane %v260_v52, %v13074_v49 }
  0x39   : > { %6860 = vmatprep.subr.bf16.mxu0 %v11263_v0  ;;  %v11267_v2 = vld [vmem:[%s13025_s8] ss:$20 sps:$4 sm:$0xff]   ;;  %7393 = vmatprep.subr.bf16.mxu1 %v11265_v1  ;;  %v11273_v6 = vld [vmem:[%s13025_s8 + $0x28] ss:$20 sps:$4 sm:$0xff]   ;;  %v11274_v7 = vld [vmem:[%s13025_s8 + $0x30] ss:$20 sps:$4 sm:$0xff]  }
  0x3a   : > { %v11269_v4 = vld [vmem:[%s13025_s8 + $0x2c] ss:$20 sps:$4 sm:$0xff]   ;;  %6861 = vmatpush1.bf16.msra.mxu0 %v11267_v2  ;;  %7394 = vmatpush1.bf16.msra.mxu1 %v11268_v3  ;;  %v11271_v5 = vld [vmem:[%s13025_s8 + $0x34] ss:$20 sps:$4 sm:$0xff]   ;;  %v11277_v9 = vld [vmem:[%s13025_s8 + $0x5c] ss:$20 sps:$4 sm:$0xff]   ;;  %v289_v58 = vcombine.high %v281_v54, %v281_v54 }
  0x3b   : > { %6862 = vmatprep.subr.bf16.mxu0 %v11269_v4  ;;  %7395 = vmatprep.subr.bf16.mxu1 %v11271_v5  ;;  %v11275_v8 = vld [vmem:[%s13025_s8 + $0x54] ss:$20 sps:$4 sm:$0xff]   ;;  %v11279_v10 = vld [vmem:[%s13025_s8 + $0x50] ss:$20 sps:$4 sm:$0xff]   ;;  %v11280_v11 = vld [vmem:[%s13025_s8 + $0x58] ss:$20 sps:$4 sm:$0xff]   ;;  %v274_v4 = vcombine.high %v260_v52, %v260_v52 }
  0x3c   : > { %v11281_v12 = vld [vmem:[%s13025_s8 + $0x7c] ss:$20 sps:$4 sm:$0xff]   ;;  %v11283_v13 = vld [vmem:[%s13025_s8 + $0x84] ss:$20 sps:$4 sm:$0xff]   ;;  %v11286_v15 = vld [vmem:[%s13025_s8 + $0x80] ss:$20 sps:$4 sm:$0xff]   ;;  %v13087_v60 = vpack.c.bf16 %v289_v58, %v289_v58 }
  0x3d   : > { %v11285_v14 = vld [vmem:[%s13025_s8 + $0x78] ss:$20 sps:$4 sm:$0xff]   ;;  %v11291_v18 = vld [vmem:[%s13025_s8 + $0xa0] ss:$20 sps:$4 sm:$0xff]   ;;  %v11292_v19 = vld [vmem:[%s13025_s8 + $0xa8] ss:$20 sps:$4 sm:$0xff]  }
  0x3e   : > { %6863 = vmatpush1.bf16.msra.mxu0 %v11273_v6  ;;  %7396 = vmatpush1.bf16.msra.mxu1 %v11274_v7  ;;  %v11287_v16 = vld [vmem:[%s13025_s8 + $0xa4] ss:$20 sps:$4 sm:$0xff]   ;;  %v11289_v17 = vld [vmem:[%s13025_s8 + $0xac] ss:$20 sps:$4 sm:$0xff]   ;;  %v11295_v21 = vld [vmem:[%s13025_s8 + $0xd4] ss:$20 sps:$4 sm:$0xff]  }
  0x3f   : > { %6864 = vmatprep.subr.bf16.mxu0 %v11275_v8  ;;  %7397 = vmatprep.subr.bf16.mxu1 %v11277_v9  ;;  %v11293_v20 = vld [vmem:[%s13025_s8 + $0xcc] ss:$20 sps:$4 sm:$0xff]   ;;  %v11297_v22 = vld [vmem:[%s13025_s8 + $0xc8] ss:$20 sps:$4 sm:$0xff]   ;;  %v11298_v23 = vld [vmem:[%s13025_s8 + $0xd0] ss:$20 sps:$4 sm:$0xff]   ;;  %v13103_v9 = vrot.slane %v274_v4, %v13074_v49 }
  0x40   : > { %v11299_v24 = vld [vmem:[%s13025_s8 + $0xf4] ss:$20 sps:$4 sm:$0xff]   ;;  %v11301_v25 = vld [vmem:[%s13025_s8 + $0xfc] ss:$20 sps:$4 sm:$0xff]   ;;  %v11304_v27 = vld [vmem:[%s13025_s8 + $0xf8] ss:$20 sps:$4 sm:$0xff]   ;;  %6892 = vmatprep.mubr.bf16.mxu0 %v13087_v60  ;;  %7425 = vmatprep.mubr.bf16.mxu1 %v13087_v60 }
  0x41   : > { %v11303_v26 = vld [vmem:[%s13025_s8 + $0xf0] ss:$20 sps:$4 sm:$0xff]   ;;  %v11309_v30 = vld [vmem:[%s13025_s8 + $0x118] ss:$20 sps:$4 sm:$0xff]   ;;  %v11310_v31 = vld [vmem:[%s13025_s8 + $0x120] ss:$20 sps:$4 sm:$0xff]  }
  0x42   : > { %6865 = vmatpush1.bf16.msra.mxu0 %v11279_v10  ;;  %7398 = vmatpush1.bf16.msra.mxu1 %v11280_v11  ;;  %v11305_v28 = vld [vmem:[%s13025_s8 + $0x11c] ss:$20 sps:$4 sm:$0xff]   ;;  %v11307_v29 = vld [vmem:[%s13025_s8 + $0x124] ss:$20 sps:$4 sm:$0xff]   ;;  %v11313_v33 = vld [vmem:[%s13025_s8 + $0x14c] ss:$20 sps:$4 sm:$0xff]  }
  0x43   : > { %6866 = vmatprep.subr.bf16.mxu0 %v11281_v12  ;;  %7399 = vmatprep.subr.bf16.mxu1 %v11283_v13  ;;  %v11311_v32 = vld [vmem:[%s13025_s8 + $0x144] ss:$20 sps:$4 sm:$0xff]   ;;  %v11315_v34 = vld [vmem:[%s13025_s8 + $0x140] ss:$20 sps:$4 sm:$0xff]   ;;  %v11316_v35 = vld [vmem:[%s13025_s8 + $0x148] ss:$20 sps:$4 sm:$0xff]  }
  0x44   : > { %v11317_v39 = vld [vmem:[%s13025_s8 + $0x16c] ss:$20 sps:$4 sm:$0xff]   ;;  %v11319_v40 = vld [vmem:[%s13025_s8 + $0x174] ss:$20 sps:$4 sm:$0xff]   ;;  %v11322_v44 = vld [vmem:[%s13025_s8 + $0x170] ss:$20 sps:$4 sm:$0xff]  }
  0x45   : > { %v11321_v41 = vld [vmem:[%s13025_s8 + $0x168] ss:$20 sps:$4 sm:$0xff]   ;;  %v11327_v47 = vld [vmem:[%s13025_s8 + $0x190] ss:$20 sps:$4 sm:$0xff]   ;;  %v11328_v48 = vld [vmem:[%s13025_s8 + $0x198] ss:$20 sps:$4 sm:$0xff]  }
  0x46   : > { %6867 = vmatpush1.bf16.msra.mxu0 %v11285_v14  ;;  %7400 = vmatpush1.bf16.msra.mxu1 %v11286_v15  ;;  %v11323_v45 = vld [vmem:[%s13025_s8 + $0x194] ss:$20 sps:$4 sm:$0xff]   ;;  %v11325_v46 = vld [vmem:[%s13025_s8 + $0x19c] ss:$20 sps:$4 sm:$0xff]   ;;  %v11331_v51 = vld [vmem:[%s13025_s8 + $0x1c4] ss:$20 sps:$4 sm:$0xff]   ;;  %v290_v14 = vcombine.high %v13103_v9, %v13103_v9 }
  0x47   : > { %6868 = vmatprep.subr.bf16.mxu0 %v11287_v16  ;;  %7401 = vmatprep.subr.bf16.mxu1 %v11289_v17  ;;  %v11329_v50 = vld [vmem:[%s13025_s8 + $0x1bc] ss:$20 sps:$4 sm:$0xff]   ;;  %v11333_v53 = vld [vmem:[%s13025_s8 + $0x1b8] ss:$20 sps:$4 sm:$0xff]   ;;  %v11334_v55 = vld [vmem:[%s13025_s8 + $0x1c0] ss:$20 sps:$4 sm:$0xff]   ;;  %v13112_v16 = vpack.c.bf16 %v281_v54, %v281_v54 }
  0x48   : > { %v11335_v56 = vld [vmem:[%s13025_s8 + $0x1e4] ss:$20 sps:$4 sm:$0xff]   ;;  %v11337_v57 = vld [vmem:[%s13025_s8 + $0x1ec] ss:$20 sps:$4 sm:$0xff]   ;;  %v11340_v61 = vld [vmem:[%s13025_s8 + $0x1e8] ss:$20 sps:$4 sm:$0xff]  }
  0x49   : > { %v11339_v59 = vld [vmem:[%s13025_s8 + $0x1e0] ss:$20 sps:$4 sm:$0xff]   ;;  %v11345_v0 = vld [vmem:[%s13025_s8 + $0x208] ss:$20 sps:$4 sm:$0xff]   ;;  %v11346_v1 = vld [vmem:[%s13025_s8 + $0x210] ss:$20 sps:$4 sm:$0xff]  }
  0x4a   : > { %6869 = vmatpush1.bf16.msra.mxu0 %v11291_v18  ;;  %7402 = vmatpush1.bf16.msra.mxu1 %v11292_v19  ;;  %v11341_v62 = vld [vmem:[%s13025_s8 + $0x20c] ss:$20 sps:$4 sm:$0xff]   ;;  %v11343_v63 = vld [vmem:[%s13025_s8 + $0x214] ss:$20 sps:$4 sm:$0xff]   ;;  %v11349_v3 = vld [vmem:[%s13025_s8 + $0x23c] ss:$20 sps:$4 sm:$0xff]  }
  0x4b   : > { %6870 = vmatprep.subr.bf16.mxu0 %v11293_v20  ;;  %7403 = vmatprep.subr.bf16.mxu1 %v11295_v21  ;;  %v11347_v2 = vld [vmem:[%s13025_s8 + $0x234] ss:$20 sps:$4 sm:$0xff]   ;;  %v11351_v5 = vld [vmem:[%s13025_s8 + $0x230] ss:$20 sps:$4 sm:$0xff]   ;;  %v11352_v6 = vld [vmem:[%s13025_s8 + $0x238] ss:$20 sps:$4 sm:$0xff]   ;;  %v13117_v20 = vpack.c.bf16 %v290_v14, %v290_v14 }
  0x4c   : > { %v11353_v7 = vld [vmem:[%s13025_s8 + $0x25c] ss:$20 sps:$4 sm:$0xff]   ;;  %v11355_v8 = vld [vmem:[%s13025_s8 + $0x264] ss:$20 sps:$4 sm:$0xff]   ;;  %v11358_v11 = vld [vmem:[%s13025_s8 + $0x260] ss:$20 sps:$4 sm:$0xff]  }
  0x4d   : > { %v11357_v10 = vld [vmem:[%s13025_s8 + $0x258] ss:$20 sps:$4 sm:$0xff]   ;;  %v11359_v15 = vld [vmem:[%s13025_s8 + $0x280] ss:$20 sps:$4 sm:$0xff]   ;;  %v11362_v17 = vld [vmem:[%s13025_s8 + $0x288] ss:$20 sps:$4 sm:$0xff]  }
  0x4e   : > { %6871 = vmatpush1.bf16.msra.mxu0 %v11297_v22  ;;  %7404 = vmatpush1.bf16.msra.mxu1 %v11298_v23  ;;  %v11361_v12 = vld [vmem:[%s13025_s8 + $0x284] ss:$20 sps:$4 sm:$0xff]   ;;  %v11364_v13 = vld [vmem:[%s13025_s8 + $0x28c] ss:$20 sps:$4 sm:$0xff]   ;;  %v11370_v19 = vld [vmem:[%s13025_s8 + $0x2b4] ss:$20 sps:$4 sm:$0xff]  }
  0x4f   : > { %6872 = vmatprep.subr.bf16.mxu0 %v11299_v24  ;;  %7405 = vmatprep.subr.bf16.mxu1 %v11301_v25  ;;  %v11367_v18 = vld [vmem:[%s13025_s8 + $0x2ac] ss:$20 sps:$4 sm:$0xff]   ;;  %v11365_v21 = vld [vmem:[%s13025_s8 + $0x2a8] ss:$20 sps:$4 sm:$0xff]   ;;  %v11368_v22 = vld [vmem:[%s13025_s8 + $0x2b0] ss:$20 sps:$4 sm:$0xff]  }
  0x50   : > { %v11373_v23 = vld [vmem:[%s13025_s8 + $0x2d4] ss:$20 sps:$4 sm:$0xff]   ;;  %v11376_v24 = vld [vmem:[%s13025_s8 + $0x2dc] ss:$20 sps:$4 sm:$0xff]   ;;  %v11398_v42 = vld [vmem:[%s13025_s8 + $0x378] ss:$20 sps:$4 sm:$0xff]  }
  0x51   : > { %v11371_v25 = vld [vmem:[%s13025_s8 + $0x2d0] ss:$20 sps:$4 sm:$0xff]   ;;  %v11394_v36 = vld [vmem:[%s13025_s8 + $0x354] ss:$20 sps:$4 sm:$0xff]   ;;  %v11446_v14 = vld [vmem:[%s13025_s8 + $0x4b8] ss:$20 sps:$4 sm:$0xff]  }
  0x52   : > { %6873 = vmatpush1.bf16.msra.mxu0 %v11303_v26  ;;  %7406 = vmatpush1.bf16.msra.mxu1 %v11304_v27  ;;  %v11374_v26 = vld [vmem:[%s13025_s8 + $0x2d8] ss:$20 sps:$4 sm:$0xff]   ;;  %v11379_v27 = vld [vmem:[%s13025_s8 + $0x2fc] ss:$20 sps:$4 sm:$0xff]   ;;  %v11418_v54 = vld [vmem:[%s13025_s8 + $0x3f4] ss:$20 sps:$4 sm:$0xff]  }
  0x53   : > { %6874 = vmatprep.subr.bf16.mxu0 %v11305_v28  ;;  %7407 = vmatprep.subr.bf16.mxu1 %v11307_v29  ;;  %v11382_v28 = vld [vmem:[%s13025_s8 + $0x304] ss:$20 sps:$4 sm:$0xff]   ;;  %v11389_v37 = vld [vmem:[%s13025_s8 + $0x348] ss:$20 sps:$4 sm:$0xff]   ;;  %v11431_v4 = vld [vmem:[%s13025_s8 + $0x460] ss:$20 sps:$4 sm:$0xff]  }
  0x54   : > { %v11377_v29 = vld [vmem:[%s13025_s8 + $0x2f8] ss:$20 sps:$4 sm:$0xff]   ;;  %v11392_v38 = vld [vmem:[%s13025_s8 + $0x350] ss:$20 sps:$4 sm:$0xff]   ;;  %v11410_v52 = vld [vmem:[%s13025_s8 + $0x3c8] ss:$20 sps:$4 sm:$0xff]  }
  0x55   : > { %v11424_v58 = vld [vmem:[%s13025_s8 + $0x41c] ss:$20 sps:$4 sm:$0xff]  }
  0x56   : > { %6875 = vmatpush1.bf16.msra.mxu0 %v11309_v30  ;;  %7408 = vmatpush1.bf16.msra.mxu1 %v11310_v31  ;;  %v11380_v30 = vld [vmem:[%s13025_s8 + $0x300] ss:$20 sps:$4 sm:$0xff]   ;;  %v11385_v31 = vld [vmem:[%s13025_s8 + $0x324] ss:$20 sps:$4 sm:$0xff]  }
  0x57   : > { %6876 = vmatprep.subr.bf16.mxu0 %v11311_v32  ;;  %7409 = vmatprep.subr.bf16.mxu1 %v11313_v33  ;;  %v11388_v32 = vld [vmem:[%s13025_s8 + $0x32c] ss:$20 sps:$4 sm:$0xff]  }
  0x58   : > { %v11383_v33 = vld [vmem:[%s13025_s8 + $0x320] ss:$20 sps:$4 sm:$0xff]  }
  0x5a   : > { %6877 = vmatpush1.bf16.msra.mxu0 %v11315_v34  ;;  %7410 = vmatpush1.bf16.msra.mxu1 %v11316_v35  ;;  %v11386_v34 = vld [vmem:[%s13025_s8 + $0x328] ss:$20 sps:$4 sm:$0xff]   ;;  %v11391_v35 = vld [vmem:[%s13025_s8 + $0x34c] ss:$20 sps:$4 sm:$0xff]  }
  0x5b   : > { %6878 = vmatprep.subr.bf16.mxu0 %v11317_v39  ;;  %7411 = vmatprep.subr.bf16.mxu1 %v11319_v40  ;;  %v11397_v39 = vld [vmem:[%s13025_s8 + $0x374] ss:$20 sps:$4 sm:$0xff]   ;;  %v11400_v40 = vld [vmem:[%s13025_s8 + $0x37c] ss:$20 sps:$4 sm:$0xff]  }
  0x5e   : > { %6879 = vmatpush1.bf16.msra.mxu0 %v11321_v41  ;;  %7412 = vmatpush1.bf16.msra.mxu1 %v11322_v44  ;;  %v11395_v41 = vld [vmem:[%s13025_s8 + $0x370] ss:$20 sps:$4 sm:$0xff]  }
  0x5f   : > { %6880 = vmatprep.subr.bf16.mxu0 %v11323_v45  ;;  %7413 = vmatprep.subr.bf16.mxu1 %v11325_v46  ;;  %v11403_v44 = vld [vmem:[%s13025_s8 + $0x39c] ss:$20 sps:$4 sm:$0xff]   ;;  %v11406_v45 = vld [vmem:[%s13025_s8 + $0x3a4] ss:$20 sps:$4 sm:$0xff]  }
  0x60   : > { %v11401_v46 = vld [vmem:[%s13025_s8 + $0x398] ss:$20 sps:$4 sm:$0xff]  }
  0x62   : > { %6881 = vmatpush1.bf16.msra.mxu0 %v11327_v47  ;;  %7414 = vmatpush1.bf16.msra.mxu1 %v11328_v48  ;;  %v11404_v47 = vld [vmem:[%s13025_s8 + $0x3a0] ss:$20 sps:$4 sm:$0xff]   ;;  %v11409_v48 = vld [vmem:[%s13025_s8 + $0x3c4] ss:$20 sps:$4 sm:$0xff]  }
  0x63   : > { %6882 = vmatprep.subr.bf16.mxu0 %v11329_v50  ;;  %7415 = vmatprep.subr.bf16.mxu1 %v11331_v51  ;;  %v11412_v50 = vld [vmem:[%s13025_s8 + $0x3cc] ss:$20 sps:$4 sm:$0xff]  }
  0x64   : > { %v11407_v51 = vld [vmem:[%s13025_s8 + $0x3c0] ss:$20 sps:$4 sm:$0xff]  }
  0x66   : > { %6883 = vmatpush1.bf16.msra.mxu0 %v11333_v53  ;;  %7416 = vmatpush1.bf16.msra.mxu1 %v11334_v55  ;;  %v11415_v53 = vld [vmem:[%s13025_s8 + $0x3ec] ss:$20 sps:$4 sm:$0xff]   ;;  %v11413_v55 = vld [vmem:[%s13025_s8 + $0x3e8] ss:$20 sps:$4 sm:$0xff]  }
  0x67   : > { %6884 = vmatprep.subr.bf16.mxu0 %v11335_v56  ;;  %7417 = vmatprep.subr.bf16.mxu1 %v11337_v57  ;;  %v11416_v56 = vld [vmem:[%s13025_s8 + $0x3f0] ss:$20 sps:$4 sm:$0xff]   ;;  %v11421_v57 = vld [vmem:[%s13025_s8 + $0x414] ss:$20 sps:$4 sm:$0xff]  }
  0x6a   : > { %6885 = vmatpush1.bf16.msra.mxu0 %v11339_v59  ;;  %7418 = vmatpush1.bf16.msra.mxu1 %v11340_v61  ;;  %v11419_v59 = vld [vmem:[%s13025_s8 + $0x410] ss:$20 sps:$4 sm:$0xff]   ;;  %v11422_v61 = vld [vmem:[%s13025_s8 + $0x418] ss:$20 sps:$4 sm:$0xff]  }
  0x6b   : > { %6886 = vmatprep.subr.bf16.mxu0 %v11341_v62  ;;  %7419 = vmatprep.subr.bf16.mxu1 %v11343_v63  ;;  %v11427_v62 = vld [vmem:[%s13025_s8 + $0x43c] ss:$20 sps:$4 sm:$0xff]   ;;  %v11430_v63 = vld [vmem:[%s13025_s8 + $0x444] ss:$20 sps:$4 sm:$0xff]  }
  0x6e   : > { %6887 = vmatpush1.bf16.msra.mxu0 %v11345_v0  ;;  %7420 = vmatpush1.bf16.msra.mxu1 %v11346_v1  ;;  %v11425_v0 = vld [vmem:[%s13025_s8 + $0x438] ss:$20 sps:$4 sm:$0xff]   ;;  %v11428_v1 = vld [vmem:[%s13025_s8 + $0x440] ss:$20 sps:$4 sm:$0xff]  }
  0x6f   : > { %6888 = vmatprep.subr.bf16.mxu0 %v11347_v2  ;;  %7421 = vmatprep.subr.bf16.mxu1 %v11349_v3  ;;  %v11433_v2 = vld [vmem:[%s13025_s8 + $0x464] ss:$20 sps:$4 sm:$0xff]   ;;  %v11436_v3 = vld [vmem:[%s13025_s8 + $0x46c] ss:$20 sps:$4 sm:$0xff]  }
  0x72   : > { %6889 = vmatpush1.bf16.msra.mxu0 %v11351_v5  ;;  %7422 = vmatpush1.bf16.msra.mxu1 %v11352_v6  ;;  %v11434_v5 = vld [vmem:[%s13025_s8 + $0x468] ss:$20 sps:$4 sm:$0xff]   ;;  %v11439_v6 = vld [vmem:[%s13025_s8 + $0x48c] ss:$20 sps:$4 sm:$0xff]  }
  0x73   : > { %6890 = vmatprep.subr.bf16.mxu0 %v11353_v7  ;;  %7423 = vmatprep.subr.bf16.mxu1 %v11355_v8  ;;  %v11442_v7 = vld [vmem:[%s13025_s8 + $0x494] ss:$20 sps:$4 sm:$0xff]  }
  0x74   : > { %v11437_v8 = vld [vmem:[%s13025_s8 + $0x488] ss:$20 sps:$4 sm:$0xff]  }
  0x76   : > { %6891 = vmatpush1.bf16.msra.mxu0 %v11357_v10  ;;  %7424 = vmatpush1.bf16.msra.mxu1 %v11358_v11  ;;  %v11440_v10 = vld [vmem:[%s13025_s8 + $0x490] ss:$20 sps:$4 sm:$0xff]   ;;  %v11445_v11 = vld [vmem:[%s13025_s8 + $0x4b4] ss:$20 sps:$4 sm:$0xff]  }
  0x77   : > { %6901 = vmatprep.subr.bf16.mxu0 %v11361_v12  ;;  %7434 = vmatprep.subr.bf16.mxu1 %v11364_v13  ;;  %v11448_v12 = vld [vmem:[%s13025_s8 + $0x4bc] ss:$20 sps:$4 sm:$0xff]  }
  0x78   : > { %v11443_v13 = vld [vmem:[%s13025_s8 + $0x4b0] ss:$20 sps:$4 sm:$0xff]  }
  0x79   : > { %6893 = vmatmul.mubr.bf16.vlgmr.msra.gmra.mrb[0].mxu0 %v13112_v16  ;;  %7426 = vmatmul.mubr.bf16.vlgmr.msra.gmra.mrb[0].mxu1 %v13112_v16 }
  0x7a   : > { %6902 = vmatpush1.bf16.msra.mxu0 %v11359_v15  ;;  %7435 = vmatpush1.bf16.msra.mxu1 %v11362_v17  ;;  %v11451_v15 = vld [vmem:[%s13025_s8 + $0x4dc] ss:$20 sps:$4 sm:$0xff]   ;;  %v11454_v17 = vld [vmem:[%s13025_s8 + $0x4e4] ss:$20 sps:$4 sm:$0xff]  }
  0x7b   : > { %6903 = vmatprep.subr.bf16.mxu0 %v11367_v18  ;;  %7436 = vmatprep.subr.bf16.mxu1 %v11370_v19  ;;  %v11449_v18 = vld [vmem:[%s13025_s8 + $0x4d8] ss:$20 sps:$4 sm:$0xff]   ;;  %v11452_v19 = vld [vmem:[%s13025_s8 + $0x4e0] ss:$20 sps:$4 sm:$0xff]  }
  0x7c   : > { %6933 = vmatprep.mubr.bf16.mxu0 %v13117_v20  ;;  %7466 = vmatprep.mubr.bf16.mxu1 %v13117_v20 }
  0x7e   : > { %6904 = vmatpush1.bf16.msra.mxu0 %v11365_v21  ;;  %7437 = vmatpush1.bf16.msra.mxu1 %v11368_v22  ;;  %v11458_v21 = vld [vmem:[%s13025_s8 + $0x504] ss:$20 sps:$4 sm:$0xff]   ;;  %v11461_v22 = vld [vmem:[%s13025_s8 + $0x50c] ss:$20 sps:$4 sm:$0xff]  }
  0x7f   : > { %6905 = vmatprep.subr.bf16.mxu0 %v11373_v23  ;;  %7438 = vmatprep.subr.bf16.mxu1 %v11376_v24  ;;  %v11456_v23 = vld [vmem:[%s13025_s8 + $0x500] ss:$20 sps:$4 sm:$0xff]   ;;  %v13186_v24 = vpack.c.bf16 %v13103_v9, %v13103_v9 }
  0x82   : > { %6906 = vmatpush1.bf16.msra.mxu0 %v11371_v25  ;;  %7439 = vmatpush1.bf16.msra.mxu1 %v11374_v26  ;;  %v11459_v25 = vld [vmem:[%s13025_s8 + $0x508] ss:$20 sps:$4 sm:$0xff]  }
  0x83   : > { %6907 = vmatprep.subr.bf16.mxu0 %v11379_v27  ;;  %7440 = vmatprep.subr.bf16.mxu1 %v11382_v28  ;;  %v13192_v26 = vld [vmem:[%s14478_s0 + $0x8] sm:$0xff] }
  0x84   : > { %v11464_v27 = vld [vmem:[%s13025_s8 + $0x52c] ss:$20 sps:$4 sm:$0xff]   ;;  %v11467_v28 = vld [vmem:[%s13025_s8 + $0x534] ss:$20 sps:$4 sm:$0xff]  }
  0x86   : > { %6908 = vmatpush1.bf16.msra.mxu0 %v11377_v29  ;;  %7441 = vmatpush1.bf16.msra.mxu1 %v11380_v30  ;;  %v13198_v29 = vrot.slane %v13192_v26, %v13074_v49  ;;  %v11462_v30 = vld [vmem:[%s13025_s8 + $0x528] ss:$20 sps:$4 sm:$0xff]  }
  0x87   : > { %6909 = vmatprep.subr.bf16.mxu0 %v11385_v31  ;;  %7442 = vmatprep.subr.bf16.mxu1 %v11388_v32  ;;  %v11465_v31 = vld [vmem:[%s13025_s8 + $0x530] ss:$20 sps:$4 sm:$0xff]   ;;  %v11470_v32 = vld [vmem:[%s13025_s8 + $0x554] ss:$20 sps:$4 sm:$0xff]  }
  0x88   : > { %v306_v9 = vcombine.high %v13198_v29, %v13198_v29 }
  0x8a   : > { %6910 = vmatpush1.bf16.msra.mxu0 %v11383_v33  ;;  %7443 = vmatpush1.bf16.msra.mxu1 %v11386_v34  ;;  %v11473_v33 = vld [vmem:[%s13025_s8 + $0x55c] ss:$20 sps:$4 sm:$0xff]   ;;  %v13208_v34 = vpack.c.bf16 %v306_v9, %v306_v9  ;;  %v11543_v9 = vld [vmem:[%s13025_s8 + $0x738] ss:$20 sps:$4 sm:$0xff]  }
  0x8b   : > { %6911 = vmatprep.subr.bf16.mxu0 %v11391_v35  ;;  %7444 = vmatprep.subr.bf16.mxu1 %v11394_v36  ;;  %v11468_v35 = vld [vmem:[%s13025_s8 + $0x550] ss:$20 sps:$4 sm:$0xff]   ;;  %v11471_v36 = vld [vmem:[%s13025_s8 + $0x558] ss:$20 sps:$4 sm:$0xff]  }
  0x8e   : > { %6912 = vmatpush1.bf16.msra.mxu0 %v11389_v37  ;;  %7445 = vmatpush1.bf16.msra.mxu1 %v11392_v38  ;;  %v11476_v37 = vld [vmem:[%s13025_s8 + $0x57c] ss:$20 sps:$4 sm:$0xff]   ;;  %v11479_v38 = vld [vmem:[%s13025_s8 + $0x584] ss:$20 sps:$4 sm:$0xff]  }
  0x8f   : > { %6913 = vmatprep.subr.bf16.mxu0 %v11397_v39  ;;  %7446 = vmatprep.subr.bf16.mxu1 %v11400_v40  ;;  %v11474_v39 = vld [vmem:[%s13025_s8 + $0x578] ss:$20 sps:$4 sm:$0xff]   ;;  %v11477_v40 = vld [vmem:[%s13025_s8 + $0x580] ss:$20 sps:$4 sm:$0xff]  }
  0x92   : > { %6914 = vmatpush1.bf16.msra.mxu0 %v11395_v41  ;;  %7447 = vmatpush1.bf16.msra.mxu1 %v11398_v42  ;;  %v11482_v41 = vld [vmem:[%s13025_s8 + $0x5a4] ss:$20 sps:$4 sm:$0xff]   ;;  %v11485_v42 = vld [vmem:[%s13025_s8 + $0x5ac] ss:$20 sps:$4 sm:$0xff]  }
  0x93   : > { %6915 = vmatprep.subr.bf16.mxu0 %v11403_v44  ;;  %7448 = vmatprep.subr.bf16.mxu1 %v11406_v45  ;;  %v11480_v44 = vld [vmem:[%s13025_s8 + $0x5a0] ss:$20 sps:$4 sm:$0xff]   ;;  %v11483_v45 = vld [vmem:[%s13025_s8 + $0x5a8] ss:$20 sps:$4 sm:$0xff]  }
  0x96   : > { %6916 = vmatpush1.bf16.msra.mxu0 %v11401_v46  ;;  %7449 = vmatpush1.bf16.msra.mxu1 %v11404_v47  ;;  %v11488_v46 = vld [vmem:[%s13025_s8 + $0x5cc] ss:$20 sps:$4 sm:$0xff]   ;;  %v11491_v47 = vld [vmem:[%s13025_s8 + $0x5d4] ss:$20 sps:$4 sm:$0xff]  }
  0x97   : > { %6917 = vmatprep.subr.bf16.mxu0 %v11409_v48  ;;  %7450 = vmatprep.subr.bf16.mxu1 %v11412_v50  ;;  %v11486_v48 = vld [vmem:[%s13025_s8 + $0x5c8] ss:$20 sps:$4 sm:$0xff]   ;;  %v11489_v50 = vld [vmem:[%s13025_s8 + $0x5d0] ss:$20 sps:$4 sm:$0xff]  }
  0x9a   : > { %6918 = vmatpush1.bf16.msra.mxu0 %v11407_v51  ;;  %7451 = vmatpush1.bf16.msra.mxu1 %v11410_v52  ;;  %v11494_v51 = vld [vmem:[%s13025_s8 + $0x5f4] ss:$20 sps:$4 sm:$0xff]   ;;  %v11497_v52 = vld [vmem:[%s13025_s8 + $0x5fc] ss:$20 sps:$4 sm:$0xff]  }
  0x9b   : > { %6919 = vmatprep.subr.bf16.mxu0 %v11415_v53  ;;  %7452 = vmatprep.subr.bf16.mxu1 %v11418_v54  ;;  %v11492_v53 = vld [vmem:[%s13025_s8 + $0x5f0] ss:$20 sps:$4 sm:$0xff]   ;;  %v11495_v54 = vld [vmem:[%s13025_s8 + $0x5f8] ss:$20 sps:$4 sm:$0xff]  }
  0x9e   : > { %6920 = vmatpush1.bf16.msra.mxu0 %v11413_v55  ;;  %7453 = vmatpush1.bf16.msra.mxu1 %v11416_v56  ;;  %v11500_v55 = vld [vmem:[%s13025_s8 + $0x61c] ss:$20 sps:$4 sm:$0xff]   ;;  %v11503_v56 = vld [vmem:[%s13025_s8 + $0x624] ss:$20 sps:$4 sm:$0xff]  }
  0x9f   : > { %6921 = vmatprep.subr.bf16.mxu0 %v11421_v57  ;;  %7454 = vmatprep.subr.bf16.mxu1 %v11424_v58  ;;  %v11498_v57 = vld [vmem:[%s13025_s8 + $0x618] ss:$20 sps:$4 sm:$0xff]   ;;  %v11501_v58 = vld [vmem:[%s13025_s8 + $0x620] ss:$20 sps:$4 sm:$0xff]  }
  0xa2   : > { %6922 = vmatpush1.bf16.msra.mxu0 %v11419_v59  ;;  %7455 = vmatpush1.bf16.msra.mxu1 %v11422_v61  ;;  %v11506_v59 = vld [vmem:[%s13025_s8 + $0x644] ss:$20 sps:$4 sm:$0xff]   ;;  %v11509_v61 = vld [vmem:[%s13025_s8 + $0x64c] ss:$20 sps:$4 sm:$0xff]  }
  0xa3   : > { %6923 = vmatprep.subr.bf16.mxu0 %v11427_v62  ;;  %7456 = vmatprep.subr.bf16.mxu1 %v11430_v63  ;;  %v11504_v62 = vld [vmem:[%s13025_s8 + $0x640] ss:$20 sps:$4 sm:$0xff]   ;;  %v11507_v63 = vld [vmem:[%s13025_s8 + $0x648] ss:$20 sps:$4 sm:$0xff]  }
  0xa6   : > { %6924 = vmatpush1.bf16.msra.mxu0 %v11425_v0  ;;  %7457 = vmatpush1.bf16.msra.mxu1 %v11428_v1  ;;  %v11512_v0 = vld [vmem:[%s13025_s8 + $0x66c] ss:$20 sps:$4 sm:$0xff]   ;;  %v11515_v1 = vld [vmem:[%s13025_s8 + $0x674] ss:$20 sps:$4 sm:$0xff]  }
  0xa7   : > { %6925 = vmatprep.subr.bf16.mxu0 %v11433_v2  ;;  %7458 = vmatprep.subr.bf16.mxu1 %v11436_v3  ;;  %v11510_v2 = vld [vmem:[%s13025_s8 + $0x668] ss:$20 sps:$4 sm:$0xff]   ;;  %v11513_v3 = vld [vmem:[%s13025_s8 + $0x670] ss:$20 sps:$4 sm:$0xff]  }
  0xaa   : > { %6926 = vmatpush1.bf16.msra.mxu0 %v11431_v4  ;;  %7459 = vmatpush1.bf16.msra.mxu1 %v11434_v5  ;;  %v11518_v4 = vld [vmem:[%s13025_s8 + $0x694] ss:$20 sps:$4 sm:$0xff]   ;;  %v11521_v5 = vld [vmem:[%s13025_s8 + $0x69c] ss:$20 sps:$4 sm:$0xff]  }
  0xab   : > { %6927 = vmatprep.subr.bf16.mxu0 %v11439_v6  ;;  %7460 = vmatprep.subr.bf16.mxu1 %v11442_v7  ;;  %v11516_v6 = vld [vmem:[%s13025_s8 + $0x690] ss:$20 sps:$4 sm:$0xff]   ;;  %v11519_v7 = vld [vmem:[%s13025_s8 + $0x698] ss:$20 sps:$4 sm:$0xff]  }
  0xae   : > { %6928 = vmatpush1.bf16.msra.mxu0 %v11437_v8  ;;  %7461 = vmatpush1.bf16.msra.mxu1 %v11440_v10  ;;  %v11524_v8 = vld [vmem:[%s13025_s8 + $0x6bc] ss:$20 sps:$4 sm:$0xff]   ;;  %v11527_v10 = vld [vmem:[%s13025_s8 + $0x6c4] ss:$20 sps:$4 sm:$0xff]  }
  0xaf   : > { %6929 = vmatprep.subr.bf16.mxu0 %v11445_v11  ;;  %7462 = vmatprep.subr.bf16.mxu1 %v11448_v12  ;;  %v11522_v11 = vld [vmem:[%s13025_s8 + $0x6b8] ss:$20 sps:$4 sm:$0xff]   ;;  %v11525_v12 = vld [vmem:[%s13025_s8 + $0x6c0] ss:$20 sps:$4 sm:$0xff]  }
  0xb2   : > { %6930 = vmatpush1.bf16.msra.mxu0 %v11443_v13  ;;  %7463 = vmatpush1.bf16.msra.mxu1 %v11446_v14  ;;  %v11530_v13 = vld [vmem:[%s13025_s8 + $0x6e4] ss:$20 sps:$4 sm:$0xff]   ;;  %v11533_v14 = vld [vmem:[%s13025_s8 + $0x6ec] ss:$20 sps:$4 sm:$0xff]  }
  0xb3   : > { %6931 = vmatprep.subr.bf16.mxu0 %v11451_v15  ;;  %7464 = vmatprep.subr.bf16.mxu1 %v11454_v17  ;;  %v11528_v15 = vld [vmem:[%s13025_s8 + $0x6e0] ss:$20 sps:$4 sm:$0xff]   ;;  %v11531_v17 = vld [vmem:[%s13025_s8 + $0x6e8] ss:$20 sps:$4 sm:$0xff]  }
  0xb6   : > { %6932 = vmatpush1.bf16.msra.mxu0 %v11449_v18  ;;  %7465 = vmatpush1.bf16.msra.mxu1 %v11452_v19  ;;  %v11536_v18 = vld [vmem:[%s13025_s8 + $0x70c] ss:$20 sps:$4 sm:$0xff]   ;;  %v11539_v19 = vld [vmem:[%s13025_s8 + $0x714] ss:$20 sps:$4 sm:$0xff]  }
  0xb7   : > { %6942 = vmatprep.subr.bf16.mxu0 %v11458_v21  ;;  %7475 = vmatprep.subr.bf16.mxu1 %v11461_v22  ;;  %v11534_v21 = vld [vmem:[%s13025_s8 + $0x708] ss:$20 sps:$4 sm:$0xff]   ;;  %v11537_v22 = vld [vmem:[%s13025_s8 + $0x710] ss:$20 sps:$4 sm:$0xff]  }
  0xb9   : > { %6934 = vmatmul.mubr.bf16.vlgmr.msra.gmra.mrb[0].mxu0 %v13186_v24  ;;  %7467 = vmatmul.mubr.bf16.vlgmr.msra.gmra.mrb[0].mxu1 %v13186_v24 }
  0xba   : > { %6943 = vmatpush1.bf16.msra.mxu0 %v11456_v23  ;;  %7476 = vmatpush1.bf16.msra.mxu1 %v11459_v25  ;;  %v11542_v23 = vld [vmem:[%s13025_s8 + $0x734] ss:$20 sps:$4 sm:$0xff]   ;;  %v11545_v25 = vld [vmem:[%s13025_s8 + $0x73c] ss:$20 sps:$4 sm:$0xff]  }
  0xbb   : > { %6944 = vmatprep.subr.bf16.mxu0 %v11464_v27  ;;  %7477 = vmatprep.subr.bf16.mxu1 %v11467_v28  ;;  %v291_v27 = vcombine.high %v13192_v26, %v13192_v26  ;;  %v11540_v28 = vld [vmem:[%s13025_s8 + $0x730] ss:$20 sps:$4 sm:$0xff]   ;;  %v11546_v26 = vld [vmem:[%s13025_s8 + $0x758] ss:$20 sps:$4 sm:$0xff]  }
  0xbc   : > { %6974 = vmatprep.mubr.bf16.mxu0 %v13208_v34  ;;  %7507 = vmatprep.mubr.bf16.mxu1 %v13208_v34 }
  0xbe   : > { %6945 = vmatpush1.bf16.msra.mxu0 %v11462_v30  ;;  %7478 = vmatpush1.bf16.msra.mxu1 %v11465_v31  ;;  %v11548_v30 = vld [vmem:[%s13025_s8 + $0x75c] ss:$20 sps:$4 sm:$0xff]   ;;  %v11551_v31 = vld [vmem:[%s13025_s8 + $0x764] ss:$20 sps:$4 sm:$0xff]  }
  0xbf   : > { %6946 = vmatprep.subr.bf16.mxu0 %v11470_v32  ;;  %7479 = vmatprep.subr.bf16.mxu1 %v11473_v33  ;;  %v13267_v32 = vrot.slane %v291_v27, %v13074_v49  ;;  %v11549_v33 = vld [vmem:[%s13025_s8 + $0x760] ss:$20 sps:$4 sm:$0xff]   ;;  %v11618_v27 = vld [vmem:[%s13025_s8 + $0x938] ss:$20 sps:$4 sm:$0xff]  }
  0xc2   : > { %6947 = vmatpush1.bf16.msra.mxu0 %v11468_v35  ;;  %7480 = vmatpush1.bf16.msra.mxu1 %v11471_v36  ;;  %v11554_v35 = vld [vmem:[%s13025_s8 + $0x784] ss:$20 sps:$4 sm:$0xff]   ;;  %v11557_v36 = vld [vmem:[%s13025_s8 + $0x78c] ss:$20 sps:$4 sm:$0xff]  }
  0xc3   : > { %6948 = vmatprep.subr.bf16.mxu0 %v11476_v37  ;;  %7481 = vmatprep.subr.bf16.mxu1 %v11479_v38  ;;  %v307_v37 = vcombine.high %v13267_v32, %v13267_v32  ;;  %v13277_v38 = vpack.c.bf16 %v13198_v29, %v13198_v29  ;;  %v11558_v29 = vld [vmem:[%s13025_s8 + $0x7a8] ss:$20 sps:$4 sm:$0xff]  }
  0xc6   : > { %6949 = vmatpush1.bf16.msra.mxu0 %v11474_v39  ;;  %7482 = vmatpush1.bf16.msra.mxu1 %v11477_v40  ;;  %v11552_v39 = vld [vmem:[%s13025_s8 + $0x780] ss:$20 sps:$4 sm:$0xff]   ;;  %v11555_v40 = vld [vmem:[%s13025_s8 + $0x788] ss:$20 sps:$4 sm:$0xff]  }
  0xc7   : > { %6950 = vmatprep.subr.bf16.mxu0 %v11482_v41  ;;  %7483 = vmatprep.subr.bf16.mxu1 %v11485_v42  ;;  %v11560_v41 = vld [vmem:[%s13025_s8 + $0x7ac] ss:$20 sps:$4 sm:$0xff]   ;;  %v11563_v42 = vld [vmem:[%s13025_s8 + $0x7b4] ss:$20 sps:$4 sm:$0xff]  }
  0xca   : > { %6951 = vmatpush1.bf16.msra.mxu0 %v11480_v44  ;;  %7484 = vmatpush1.bf16.msra.mxu1 %v11483_v45  ;;  %v13283_v44 = vpack.c.bf16 %v307_v37, %v307_v37  ;;  %v11561_v45 = vld [vmem:[%s13025_s8 + $0x7b0] ss:$20 sps:$4 sm:$0xff]  }
  0xcb   : > { %6952 = vmatprep.subr.bf16.mxu0 %v11488_v46  ;;  %7485 = vmatprep.subr.bf16.mxu1 %v11491_v47  ;;  %v11566_v46 = vld [vmem:[%s13025_s8 + $0x7d4] ss:$20 sps:$4 sm:$0xff]   ;;  %v11569_v47 = vld [vmem:[%s13025_s8 + $0x7dc] ss:$20 sps:$4 sm:$0xff]  }
  0xcc   : > { %v11633_v37 = vld [vmem:[%s13025_s8 + $0x990] ss:$20 sps:$4 sm:$0xff]  }
  0xce   : > { %6953 = vmatpush1.bf16.msra.mxu0 %v11486_v48  ;;  %7486 = vmatpush1.bf16.msra.mxu1 %v11489_v50  ;;  %v11564_v48 = vld [vmem:[%s13025_s8 + $0x7d0] ss:$20 sps:$4 sm:$0xff]   ;;  %v11567_v50 = vld [vmem:[%s13025_s8 + $0x7d8] ss:$20 sps:$4 sm:$0xff]  }
  0xcf   : > { %6954 = vmatprep.subr.bf16.mxu0 %v11494_v51  ;;  %7487 = vmatprep.subr.bf16.mxu1 %v11497_v52  ;;  %v11572_v51 = vld [vmem:[%s13025_s8 + $0x7fc] ss:$20 sps:$4 sm:$0xff]   ;;  %v11575_v52 = vld [vmem:[%s13025_s8 + $0x804] ss:$20 sps:$4 sm:$0xff]  }
  0xd2   : > { %6955 = vmatpush1.bf16.msra.mxu0 %v11492_v53  ;;  %7488 = vmatpush1.bf16.msra.mxu1 %v11495_v54  ;;  %v11570_v53 = vld [vmem:[%s13025_s8 + $0x7f8] ss:$20 sps:$4 sm:$0xff]   ;;  %v11573_v54 = vld [vmem:[%s13025_s8 + $0x800] ss:$20 sps:$4 sm:$0xff]  }
  0xd3   : > { %6956 = vmatprep.subr.bf16.mxu0 %v11500_v55  ;;  %7489 = vmatprep.subr.bf16.mxu1 %v11503_v56  ;;  %v11578_v55 = vld [vmem:[%s13025_s8 + $0x824] ss:$20 sps:$4 sm:$0xff]   ;;  %v11581_v56 = vld [vmem:[%s13025_s8 + $0x82c] ss:$20 sps:$4 sm:$0xff]  }
  0xd6   : > { %6957 = vmatpush1.bf16.msra.mxu0 %v11498_v57  ;;  %7490 = vmatpush1.bf16.msra.mxu1 %v11501_v58  ;;  %v11576_v57 = vld [vmem:[%s13025_s8 + $0x820] ss:$20 sps:$4 sm:$0xff]   ;;  %v11579_v58 = vld [vmem:[%s13025_s8 + $0x828] ss:$20 sps:$4 sm:$0xff]  }
  0xd7   : > { %6958 = vmatprep.subr.bf16.mxu0 %v11506_v59  ;;  %7491 = vmatprep.subr.bf16.mxu1 %v11509_v61  ;;  %v11584_v59 = vld [vmem:[%s13025_s8 + $0x84c] ss:$20 sps:$4 sm:$0xff]   ;;  %v11587_v61 = vld [vmem:[%s13025_s8 + $0x854] ss:$20 sps:$4 sm:$0xff]  }
  0xda   : > { %6959 = vmatpush1.bf16.msra.mxu0 %v11504_v62  ;;  %7492 = vmatpush1.bf16.msra.mxu1 %v11507_v63  ;;  %v11582_v62 = vld [vmem:[%s13025_s8 + $0x848] ss:$20 sps:$4 sm:$0xff]   ;;  %v11585_v63 = vld [vmem:[%s13025_s8 + $0x850] ss:$20 sps:$4 sm:$0xff]  }
  0xdb   : > { %6960 = vmatprep.subr.bf16.mxu0 %v11512_v0  ;;  %7493 = vmatprep.subr.bf16.mxu1 %v11515_v1  ;;  %v11590_v0 = vld [vmem:[%s13025_s8 + $0x874] ss:$20 sps:$4 sm:$0xff]   ;;  %v11593_v1 = vld [vmem:[%s13025_s8 + $0x87c] ss:$20 sps:$4 sm:$0xff]  }
  0xde   : > { %6961 = vmatpush1.bf16.msra.mxu0 %v11510_v2  ;;  %7494 = vmatpush1.bf16.msra.mxu1 %v11513_v3  ;;  %v11588_v2 = vld [vmem:[%s13025_s8 + $0x870] ss:$20 sps:$4 sm:$0xff]   ;;  %v11591_v3 = vld [vmem:[%s13025_s8 + $0x878] ss:$20 sps:$4 sm:$0xff]  }
  0xdf   : > { %6962 = vmatprep.subr.bf16.mxu0 %v11518_v4  ;;  %7495 = vmatprep.subr.bf16.mxu1 %v11521_v5  ;;  %v11596_v4 = vld [vmem:[%s13025_s8 + $0x89c] ss:$20 sps:$4 sm:$0xff]   ;;  %v11599_v5 = vld [vmem:[%s13025_s8 + $0x8a4] ss:$20 sps:$4 sm:$0xff]  }
  0xe2   : > { %6963 = vmatpush1.bf16.msra.mxu0 %v11516_v6  ;;  %7496 = vmatpush1.bf16.msra.mxu1 %v11519_v7  ;;  %v11594_v6 = vld [vmem:[%s13025_s8 + $0x898] ss:$20 sps:$4 sm:$0xff]   ;;  %v11597_v7 = vld [vmem:[%s13025_s8 + $0x8a0] ss:$20 sps:$4 sm:$0xff]  }
  0xe3   : > { %6964 = vmatprep.subr.bf16.mxu0 %v11524_v8  ;;  %7497 = vmatprep.subr.bf16.mxu1 %v11527_v10  ;;  %v11602_v8 = vld [vmem:[%s13025_s8 + $0x8c4] ss:$20 sps:$4 sm:$0xff]   ;;  %v11605_v10 = vld [vmem:[%s13025_s8 + $0x8cc] ss:$20 sps:$4 sm:$0xff]  }
  0xe6   : > { %6965 = vmatpush1.bf16.msra.mxu0 %v11522_v11  ;;  %7498 = vmatpush1.bf16.msra.mxu1 %v11525_v12  ;;  %v11600_v11 = vld [vmem:[%s13025_s8 + $0x8c0] ss:$20 sps:$4 sm:$0xff]   ;;  %v11603_v12 = vld [vmem:[%s13025_s8 + $0x8c8] ss:$20 sps:$4 sm:$0xff]  }
  0xe7   : > { %6966 = vmatprep.subr.bf16.mxu0 %v11530_v13  ;;  %7499 = vmatprep.subr.bf16.mxu1 %v11533_v14  ;;  %v11608_v13 = vld [vmem:[%s13025_s8 + $0x8ec] ss:$20 sps:$4 sm:$0xff]   ;;  %v11611_v14 = vld [vmem:[%s13025_s8 + $0x8f4] ss:$20 sps:$4 sm:$0xff]  }
  0xea   : > { %6967 = vmatpush1.bf16.msra.mxu0 %v11528_v15  ;;  %7500 = vmatpush1.bf16.msra.mxu1 %v11531_v17  ;;  %v11606_v15 = vld [vmem:[%s13025_s8 + $0x8e8] ss:$20 sps:$4 sm:$0xff]   ;;  %v11609_v17 = vld [vmem:[%s13025_s8 + $0x8f0] ss:$20 sps:$4 sm:$0xff]  }
  0xeb   : > { %6968 = vmatprep.subr.bf16.mxu0 %v11536_v18  ;;  %7501 = vmatprep.subr.bf16.mxu1 %v11539_v19  ;;  %v11614_v18 = vld [vmem:[%s13025_s8 + $0x914] ss:$20 sps:$4 sm:$0xff]   ;;  %v11617_v19 = vld [vmem:[%s13025_s8 + $0x91c] ss:$20 sps:$4 sm:$0xff]  }
  0xee   : > { %6969 = vmatpush1.bf16.msra.mxu0 %v11534_v21  ;;  %7502 = vmatpush1.bf16.msra.mxu1 %v11537_v22  ;;  %v11612_v21 = vld [vmem:[%s13025_s8 + $0x910] ss:$20 sps:$4 sm:$0xff]   ;;  %v11615_v22 = vld [vmem:[%s13025_s8 + $0x918] ss:$20 sps:$4 sm:$0xff]  }
  0xef   : > { %6970 = vmatprep.subr.bf16.mxu0 %v11542_v23  ;;  %7503 = vmatprep.subr.bf16.mxu1 %v11545_v25  ;;  %v11620_v23 = vld [vmem:[%s13025_s8 + $0x93c] ss:$20 sps:$4 sm:$0xff]   ;;  %v11623_v25 = vld [vmem:[%s13025_s8 + $0x944] ss:$20 sps:$4 sm:$0xff]  }
  0xf2   : > { %6971 = vmatpush1.bf16.msra.mxu0 %v11540_v28  ;;  %7504 = vmatpush1.bf16.msra.mxu1 %v11543_v9  ;;  %v11621_v28 = vld [vmem:[%s13025_s8 + $0x940] ss:$20 sps:$4 sm:$0xff]   ;;  %v11626_v9 = vld [vmem:[%s13025_s8 + $0x964] ss:$20 sps:$4 sm:$0xff]  }
  0xf3   : > { %6972 = vmatprep.subr.bf16.mxu0 %v11548_v30  ;;  %7505 = vmatprep.subr.bf16.mxu1 %v11551_v31  ;;  %v11629_v30 = vld [vmem:[%s13025_s8 + $0x96c] ss:$20 sps:$4 sm:$0xff]  }
  0xf4   : > { %v11624_v31 = vld [vmem:[%s13025_s8 + $0x960] ss:$20 sps:$4 sm:$0xff]  }
  0xf6   : > { %6973 = vmatpush1.bf16.msra.mxu0 %v11546_v26  ;;  %7506 = vmatpush1.bf16.msra.mxu1 %v11549_v33  ;;  %v11627_v26 = vld [vmem:[%s13025_s8 + $0x968] ss:$20 sps:$4 sm:$0xff]   ;;  %v11632_v33 = vld [vmem:[%s13025_s8 + $0x98c] ss:$20 sps:$4 sm:$0xff]  }
  0xf7   : > { %6983 = vmatprep.subr.bf16.mxu0 %v11554_v35  ;;  %7516 = vmatprep.subr.bf16.mxu1 %v11557_v36  ;;  %v11635_v35 = vld [vmem:[%s13025_s8 + $0x994] ss:$20 sps:$4 sm:$0xff]  }
  0xf8   : > { %v11630_v36 = vld [vmem:[%s13025_s8 + $0x988] ss:$20 sps:$4 sm:$0xff]  }
  0xf9   : > { %6975 = vmatmul.mubr.bf16.vlgmr.msra.gmra.mrb[0].mxu0 %v13277_v38  ;;  %7508 = vmatmul.mubr.bf16.vlgmr.msra.gmra.mrb[0].mxu1 %v13277_v38 }
  0xfa   : > { %6984 = vmatpush1.bf16.msra.mxu0 %v11552_v39  ;;  %7517 = vmatpush1.bf16.msra.mxu1 %v11555_v40  ;;  %v11638_v39 = vld [vmem:[%s13025_s8 + $0x9b4] ss:$20 sps:$4 sm:$0xff]   ;;  %v11641_v40 = vld [vmem:[%s13025_s8 + $0x9bc] ss:$20 sps:$4 sm:$0xff]  }
  0xfb   : > { %6985 = vmatprep.subr.bf16.mxu0 %v11560_v41  ;;  %7518 = vmatprep.subr.bf16.mxu1 %v11563_v42  ;;  %v11636_v41 = vld [vmem:[%s13025_s8 + $0x9b0] ss:$20 sps:$4 sm:$0xff]  }
  0xfc   : > { %7015 = vmatprep.mubr.bf16.mxu0 %v13283_v44  ;;  %7548 = vmatprep.mubr.bf16.mxu1 %v13283_v44  ;;  %v13345_v42 = vld [vmem:[%s14478_s0 + $0x10] sm:$0xff] }
  0xfe   : > { %6986 = vmatpush1.bf16.msra.mxu0 %v11558_v29  ;;  %7519 = vmatpush1.bf16.msra.mxu1 %v11561_v45  ;;  %v11639_v29 = vld [vmem:[%s13025_s8 + $0x9b8] ss:$20 sps:$4 sm:$0xff]   ;;  %v11644_v45 = vld [vmem:[%s13025_s8 + $0x9dc] ss:$20 sps:$4 sm:$0xff]  }
  0xff   : > { %6987 = vmatprep.subr.bf16.mxu0 %v11566_v46  ;;  %7520 = vmatprep.subr.bf16.mxu1 %v11569_v47  ;;  %v11647_v46 = vld [vmem:[%s13025_s8 + $0x9e4] ss:$20 sps:$4 sm:$0xff]   ;;  %v13352_v47 = vrot.slane %v13345_v42, %v13074_v49 }
 0x102   : > { %6988 = vmatpush1.bf16.msra.mxu0 %v11564_v48  ;;  %7521 = vmatpush1.bf16.msra.mxu1 %v11567_v50  ;;  %v11642_v48 = vld [vmem:[%s13025_s8 + $0x9d8] ss:$20 sps:$4 sm:$0xff]   ;;  %v11645_v50 = vld [vmem:[%s13025_s8 + $0x9e0] ss:$20 sps:$4 sm:$0xff]  }
 0x103   : > { %6989 = vmatprep.subr.bf16.mxu0 %v11572_v51  ;;  %7522 = vmatprep.subr.bf16.mxu1 %v11575_v52  ;;  %v11651_v51 = vld [vmem:[%s13025_s8 + $0xa04] ss:$20 sps:$4 sm:$0xff]   ;;  %v11654_v52 = vld [vmem:[%s13025_s8 + $0xa0c] ss:$20 sps:$4 sm:$0xff]  }
 0x106   : > { %6990 = vmatpush1.bf16.msra.mxu0 %v11570_v53  ;;  %7523 = vmatpush1.bf16.msra.mxu1 %v11573_v54  ;;  %v323_v53 = vcombine.high %v13352_v47, %v13352_v47  ;;  %v11649_v54 = vld [vmem:[%s13025_s8 + $0xa00] ss:$20 sps:$4 sm:$0xff]  }
 0x107   : > { %6991 = vmatprep.subr.bf16.mxu0 %v11578_v55  ;;  %7524 = vmatprep.subr.bf16.mxu1 %v11581_v56  ;;  %v13363_v55 = vpack.c.bf16 %v13267_v32, %v13267_v32  ;;  %v11652_v56 = vld [vmem:[%s13025_s8 + $0xa08] ss:$20 sps:$4 sm:$0xff]   ;;  %v11658_v32 = vld [vmem:[%s13025_s8 + $0xa30] ss:$20 sps:$4 sm:$0xff]  }
 0x10a   : > { %6992 = vmatpush1.bf16.msra.mxu0 %v11576_v57  ;;  %7525 = vmatpush1.bf16.msra.mxu1 %v11579_v58  ;;  %v11657_v57 = vld [vmem:[%s13025_s8 + $0xa2c] ss:$20 sps:$4 sm:$0xff]   ;;  %v11660_v58 = vld [vmem:[%s13025_s8 + $0xa34] ss:$20 sps:$4 sm:$0xff]  }
 0x10b   : > { %6993 = vmatprep.subr.bf16.mxu0 %v11584_v59  ;;  %7526 = vmatprep.subr.bf16.mxu1 %v11587_v61  ;;  %v13368_v59 = vpack.c.bf16 %v323_v53, %v323_v53  ;;  %v11655_v61 = vld [vmem:[%s13025_s8 + $0xa28] ss:$20 sps:$4 sm:$0xff]   ;;  %v11729_v53 = vld [vmem:[%s13025_s8 + $0xc0c] ss:$20 sps:$4 sm:$0xff]  }
 0x10e   : > { %6994 = vmatpush1.bf16.msra.mxu0 %v11582_v62  ;;  %7527 = vmatpush1.bf16.msra.mxu1 %v11585_v63  ;;  %v11663_v62 = vld [vmem:[%s13025_s8 + $0xa54] ss:$20 sps:$4 sm:$0xff]   ;;  %v11666_v63 = vld [vmem:[%s13025_s8 + $0xa5c] ss:$20 sps:$4 sm:$0xff]  }
 0x10f   : > { %6995 = vmatprep.subr.bf16.mxu0 %v11590_v0  ;;  %7528 = vmatprep.subr.bf16.mxu1 %v11593_v1  ;;  %v11661_v0 = vld [vmem:[%s13025_s8 + $0xa50] ss:$20 sps:$4 sm:$0xff]   ;;  %v11664_v1 = vld [vmem:[%s13025_s8 + $0xa58] ss:$20 sps:$4 sm:$0xff]  }
 0x112   : > { %6996 = vmatpush1.bf16.msra.mxu0 %v11588_v2  ;;  %7529 = vmatpush1.bf16.msra.mxu1 %v11591_v3  ;;  %v11669_v2 = vld [vmem:[%s13025_s8 + $0xa7c] ss:$20 sps:$4 sm:$0xff]   ;;  %v11672_v3 = vld [vmem:[%s13025_s8 + $0xa84] ss:$20 sps:$4 sm:$0xff]  }
 0x113   : > { %6997 = vmatprep.subr.bf16.mxu0 %v11596_v4  ;;  %7530 = vmatprep.subr.bf16.mxu1 %v11599_v5  ;;  %v11667_v4 = vld [vmem:[%s13025_s8 + $0xa78] ss:$20 sps:$4 sm:$0xff]   ;;  %v11670_v5 = vld [vmem:[%s13025_s8 + $0xa80] ss:$20 sps:$4 sm:$0xff]  }
 0x116   : > { %6998 = vmatpush1.bf16.msra.mxu0 %v11594_v6  ;;  %7531 = vmatpush1.bf16.msra.mxu1 %v11597_v7  ;;  %v11675_v6 = vld [vmem:[%s13025_s8 + $0xaa4] ss:$20 sps:$4 sm:$0xff]   ;;  %v11678_v7 = vld [vmem:[%s13025_s8 + $0xaac] ss:$20 sps:$4 sm:$0xff]  }
 0x117   : > { %6999 = vmatprep.subr.bf16.mxu0 %v11602_v8  ;;  %7532 = vmatprep.subr.bf16.mxu1 %v11605_v10  ;;  %v11673_v8 = vld [vmem:[%s13025_s8 + $0xaa0] ss:$20 sps:$4 sm:$0xff]   ;;  %v11676_v10 = vld [vmem:[%s13025_s8 + $0xaa8] ss:$20 sps:$4 sm:$0xff]  }
 0x11a   : > { %7000 = vmatpush1.bf16.msra.mxu0 %v11600_v11  ;;  %7533 = vmatpush1.bf16.msra.mxu1 %v11603_v12  ;;  %v11681_v11 = vld [vmem:[%s13025_s8 + $0xacc] ss:$20 sps:$4 sm:$0xff]   ;;  %v11684_v12 = vld [vmem:[%s13025_s8 + $0xad4] ss:$20 sps:$4 sm:$0xff]  }
 0x11b   : > { %7001 = vmatprep.subr.bf16.mxu0 %v11608_v13  ;;  %7534 = vmatprep.subr.bf16.mxu1 %v11611_v14  ;;  %v11679_v13 = vld [vmem:[%s13025_s8 + $0xac8] ss:$20 sps:$4 sm:$0xff]   ;;  %v11682_v14 = vld [vmem:[%s13025_s8 + $0xad0] ss:$20 sps:$4 sm:$0xff]  }
 0x11e   : > { %7002 = vmatpush1.bf16.msra.mxu0 %v11606_v15  ;;  %7535 = vmatpush1.bf16.msra.mxu1 %v11609_v17  ;;  %v11687_v15 = vld [vmem:[%s13025_s8 + $0xaf4] ss:$20 sps:$4 sm:$0xff]   ;;  %v11690_v17 = vld [vmem:[%s13025_s8 + $0xafc] ss:$20 sps:$4 sm:$0xff]  }
 0x11f   : > { %7003 = vmatprep.subr.bf16.mxu0 %v11614_v18  ;;  %7536 = vmatprep.subr.bf16.mxu1 %v11617_v19  ;;  %v11685_v18 = vld [vmem:[%s13025_s8 + $0xaf0] ss:$20 sps:$4 sm:$0xff]   ;;  %v11688_v19 = vld [vmem:[%s13025_s8 + $0xaf8] ss:$20 sps:$4 sm:$0xff]  }
 0x122   : > { %7004 = vmatpush1.bf16.msra.mxu0 %v11612_v21  ;;  %7537 = vmatpush1.bf16.msra.mxu1 %v11615_v22  ;;  %v11693_v21 = vld [vmem:[%s13025_s8 + $0xb1c] ss:$20 sps:$4 sm:$0xff]   ;;  %v11696_v22 = vld [vmem:[%s13025_s8 + $0xb24] ss:$20 sps:$4 sm:$0xff]  }
 0x123   : > { %7005 = vmatprep.subr.bf16.mxu0 %v11620_v23  ;;  %7538 = vmatprep.subr.bf16.mxu1 %v11623_v25  ;;  %v11691_v23 = vld [vmem:[%s13025_s8 + $0xb18] ss:$20 sps:$4 sm:$0xff]   ;;  %v11694_v25 = vld [vmem:[%s13025_s8 + $0xb20] ss:$20 sps:$4 sm:$0xff]  }
 0x126   : > { %7006 = vmatpush1.bf16.msra.mxu0 %v11618_v27  ;;  %7539 = vmatpush1.bf16.msra.mxu1 %v11621_v28  ;;  %v11699_v27 = vld [vmem:[%s13025_s8 + $0xb44] ss:$20 sps:$4 sm:$0xff]   ;;  %v11702_v28 = vld [vmem:[%s13025_s8 + $0xb4c] ss:$20 sps:$4 sm:$0xff]  }
 0x127   : > { %7007 = vmatprep.subr.bf16.mxu0 %v11626_v9  ;;  %7540 = vmatprep.subr.bf16.mxu1 %v11629_v30  ;;  %v11697_v9 = vld [vmem:[%s13025_s8 + $0xb40] ss:$20 sps:$4 sm:$0xff]   ;;  %v11700_v30 = vld [vmem:[%s13025_s8 + $0xb48] ss:$20 sps:$4 sm:$0xff]  }
 0x12a   : > { %7008 = vmatpush1.bf16.msra.mxu0 %v11624_v31  ;;  %7541 = vmatpush1.bf16.msra.mxu1 %v11627_v26  ;;  %v11705_v31 = vld [vmem:[%s13025_s8 + $0xb6c] ss:$20 sps:$4 sm:$0xff]   ;;  %v11708_v26 = vld [vmem:[%s13025_s8 + $0xb74] ss:$20 sps:$4 sm:$0xff]  }
 0x12b   : > { %7009 = vmatprep.subr.bf16.mxu0 %v11632_v33  ;;  %7542 = vmatprep.subr.bf16.mxu1 %v11635_v35  ;;  %v11703_v33 = vld [vmem:[%s13025_s8 + $0xb68] ss:$20 sps:$4 sm:$0xff]   ;;  %v11706_v35 = vld [vmem:[%s13025_s8 + $0xb70] ss:$20 sps:$4 sm:$0xff]  }
 0x12e   : > { %7010 = vmatpush1.bf16.msra.mxu0 %v11630_v36  ;;  %7543 = vmatpush1.bf16.msra.mxu1 %v11633_v37  ;;  %v11711_v36 = vld [vmem:[%s13025_s8 + $0xb94] ss:$20 sps:$4 sm:$0xff]   ;;  %v11714_v37 = vld [vmem:[%s13025_s8 + $0xb9c] ss:$20 sps:$4 sm:$0xff]  }
 0x12f   : > { %7011 = vmatprep.subr.bf16.mxu0 %v11638_v39  ;;  %7544 = vmatprep.subr.bf16.mxu1 %v11641_v40  ;;  %v11709_v39 = vld [vmem:[%s13025_s8 + $0xb90] ss:$20 sps:$4 sm:$0xff]   ;;  %v11712_v40 = vld [vmem:[%s13025_s8 + $0xb98] ss:$20 sps:$4 sm:$0xff]  }
 0x132   : > { %7012 = vmatpush1.bf16.msra.mxu0 %v11636_v41  ;;  %7545 = vmatpush1.bf16.msra.mxu1 %v11639_v29  ;;  %v11717_v41 = vld [vmem:[%s13025_s8 + $0xbbc] ss:$20 sps:$4 sm:$0xff]   ;;  %v11720_v29 = vld [vmem:[%s13025_s8 + $0xbc4] ss:$20 sps:$4 sm:$0xff]  }
 0x133   : > { %7013 = vmatprep.subr.bf16.mxu0 %v11644_v45  ;;  %7546 = vmatprep.subr.bf16.mxu1 %v11647_v46  ;;  %v11715_v45 = vld [vmem:[%s13025_s8 + $0xbb8] ss:$20 sps:$4 sm:$0xff]   ;;  %v11718_v46 = vld [vmem:[%s13025_s8 + $0xbc0] ss:$20 sps:$4 sm:$0xff]  }
 0x136   : > { %7014 = vmatpush1.bf16.msra.mxu0 %v11642_v48  ;;  %7547 = vmatpush1.bf16.msra.mxu1 %v11645_v50  ;;  %v11723_v48 = vld [vmem:[%s13025_s8 + $0xbe4] ss:$20 sps:$4 sm:$0xff]   ;;  %v11726_v50 = vld [vmem:[%s13025_s8 + $0xbec] ss:$20 sps:$4 sm:$0xff]  }
 0x137   : > { %7024 = vmatprep.subr.bf16.mxu0 %v11651_v51  ;;  %7557 = vmatprep.subr.bf16.mxu1 %v11654_v52  ;;  %v11721_v51 = vld [vmem:[%s13025_s8 + $0xbe0] ss:$20 sps:$4 sm:$0xff]   ;;  %v11724_v52 = vld [vmem:[%s13025_s8 + $0xbe8] ss:$20 sps:$4 sm:$0xff]  }
 0x139   : > { %7016 = vmatmul.mubr.bf16.vlgmr.msra.gmra.mrb[0].mxu0 %v13363_v55  ;;  %7549 = vmatmul.mubr.bf16.vlgmr.msra.gmra.mrb[0].mxu1 %v13363_v55 }
 0x13a   : > { %7025 = vmatpush1.bf16.msra.mxu0 %v11649_v54  ;;  %7558 = vmatpush1.bf16.msra.mxu1 %v11652_v56  ;;  %v11732_v54 = vld [vmem:[%s13025_s8 + $0xc14] ss:$20 sps:$4 sm:$0xff]  }
 0x13b   : > { %7026 = vmatprep.subr.bf16.mxu0 %v11657_v57  ;;  %7559 = vmatprep.subr.bf16.mxu1 %v11660_v58  ;;  %v11727_v56 = vld [vmem:[%s13025_s8 + $0xc08] ss:$20 sps:$4 sm:$0xff]   ;;  %v11730_v57 = vld [vmem:[%s13025_s8 + $0xc10] ss:$20 sps:$4 sm:$0xff]  }
 0x13c   : > { %7056 = vmatprep.mubr.bf16.mxu0 %v13368_v59  ;;  %7589 = vmatprep.mubr.bf16.mxu1 %v13368_v59  ;;  %v11735_v58 = vld [vmem:[%s13025_s8 + $0xc34] ss:$20 sps:$4 sm:$0xff]  }
 0x13e   : > { %7027 = vmatpush1.bf16.msra.mxu0 %v11655_v61  ;;  %7560 = vmatpush1.bf16.msra.mxu1 %v11658_v32  ;;  %v11738_v61 = vld [vmem:[%s13025_s8 + $0xc3c] ss:$20 sps:$4 sm:$0xff]   ;;  %v308_v32 = vcombine.high %v13345_v42, %v13345_v42  ;;  %v11739_v42 = vld [vmem:[%s13025_s8 + $0xc58] ss:$20 sps:$4 sm:$0xff]  }
 0x13f   : > { %7028 = vmatprep.subr.bf16.mxu0 %v11663_v62  ;;  %7561 = vmatprep.subr.bf16.mxu1 %v11666_v63  ;;  %v11733_v62 = vld [vmem:[%s13025_s8 + $0xc30] ss:$20 sps:$4 sm:$0xff]   ;;  %v11736_v63 = vld [vmem:[%s13025_s8 + $0xc38] ss:$20 sps:$4 sm:$0xff]  }
 0x142   : > { %7029 = vmatpush1.bf16.msra.mxu0 %v11661_v0  ;;  %7562 = vmatpush1.bf16.msra.mxu1 %v11664_v1  ;;  %v11741_v0 = vld [vmem:[%s13025_s8 + $0xc5c] ss:$20 sps:$4 sm:$0xff]   ;;  %v11744_v1 = vld [vmem:[%s13025_s8 + $0xc64] ss:$20 sps:$4 sm:$0xff]  }
 0x143   : > { %7030 = vmatprep.subr.bf16.mxu0 %v11669_v2  ;;  %7563 = vmatprep.subr.bf16.mxu1 %v11672_v3  ;;  %v13433_v2 = vrot.slane %v308_v32, %v13074_v49  ;;  %v11742_v3 = vld [vmem:[%s13025_s8 + $0xc60] ss:$20 sps:$4 sm:$0xff]   ;;  %v11805_v32 = vld [vmem:[%s13025_s8 + $0xe10] ss:$20 sps:$4 sm:$0xff]  }
 0x146   : > { %7031 = vmatpush1.bf16.msra.mxu0 %v11667_v4  ;;  %7564 = vmatpush1.bf16.msra.mxu1 %v11670_v5  ;;  %v11747_v4 = vld [vmem:[%s13025_s8 + $0xc84] ss:$20 sps:$4 sm:$0xff]   ;;  %v11750_v5 = vld [vmem:[%s13025_s8 + $0xc8c] ss:$20 sps:$4 sm:$0xff]  }
 0x147   : > { %7032 = vmatprep.subr.bf16.mxu0 %v11675_v6  ;;  %7565 = vmatprep.subr.bf16.mxu1 %v11678_v7  ;;  %v324_v6 = vcombine.high %v13433_v2, %v13433_v2  ;;  %v13443_v7 = vpack.c.bf16 %v13352_v47, %v13352_v47  ;;  %v11751_v47 = vld [vmem:[%s13025_s8 + $0xca8] ss:$20 sps:$4 sm:$0xff]  }
 0x14a   : > { %7033 = vmatpush1.bf16.msra.mxu0 %v11673_v8  ;;  %7566 = vmatpush1.bf16.msra.mxu1 %v11676_v10  ;;  %v11745_v8 = vld [vmem:[%s13025_s8 + $0xc80] ss:$20 sps:$4 sm:$0xff]   ;;  %v11748_v10 = vld [vmem:[%s13025_s8 + $0xc88] ss:$20 sps:$4 sm:$0xff]  }
 0x14b   : > { %7034 = vmatprep.subr.bf16.mxu0 %v11681_v11  ;;  %7567 = vmatprep.subr.bf16.mxu1 %v11684_v12  ;;  %v11753_v11 = vld [vmem:[%s13025_s8 + $0xcac] ss:$20 sps:$4 sm:$0xff]   ;;  %v11756_v12 = vld [vmem:[%s13025_s8 + $0xcb4] ss:$20 sps:$4 sm:$0xff]  }
 0x14e   : > { %7035 = vmatpush1.bf16.msra.mxu0 %v11679_v13  ;;  %7568 = vmatpush1.bf16.msra.mxu1 %v11682_v14  ;;  %v13449_v13 = vpack.c.bf16 %v324_v6, %v324_v6  ;;  %v11754_v14 = vld [vmem:[%s13025_s8 + $0xcb0] ss:$20 sps:$4 sm:$0xff]   ;;  %v11820_v6 = vld [vmem:[%s13025_s8 + $0xe68] ss:$20 sps:$4 sm:$0xff]  }
 0x14f   : > { %7036 = vmatprep.subr.bf16.mxu0 %v11687_v15  ;;  %7569 = vmatprep.subr.bf16.mxu1 %v11690_v17  ;;  %v11759_v15 = vld [vmem:[%s13025_s8 + $0xcd4] ss:$20 sps:$4 sm:$0xff]   ;;  %v11762_v17 = vld [vmem:[%s13025_s8 + $0xcdc] ss:$20 sps:$4 sm:$0xff]  }
 0x152   : > { %7037 = vmatpush1.bf16.msra.mxu0 %v11685_v18  ;;  %7570 = vmatpush1.bf16.msra.mxu1 %v11688_v19  ;;  %v11757_v18 = vld [vmem:[%s13025_s8 + $0xcd0] ss:$20 sps:$4 sm:$0xff]   ;;  %v11760_v19 = vld [vmem:[%s13025_s8 + $0xcd8] ss:$20 sps:$4 sm:$0xff]  }
 0x153   : > { %7038 = vmatprep.subr.bf16.mxu0 %v11693_v21  ;;  %7571 = vmatprep.subr.bf16.mxu1 %v11696_v22  ;;  %v11765_v21 = vld [vmem:[%s13025_s8 + $0xcfc] ss:$20 sps:$4 sm:$0xff]   ;;  %v11768_v22 = vld [vmem:[%s13025_s8 + $0xd04] ss:$20 sps:$4 sm:$0xff]  }
 0x156   : > { %7039 = vmatpush1.bf16.msra.mxu0 %v11691_v23  ;;  %7572 = vmatpush1.bf16.msra.mxu1 %v11694_v25  ;;  %v11763_v23 = vld [vmem:[%s13025_s8 + $0xcf8] ss:$20 sps:$4 sm:$0xff]   ;;  %v11766_v25 = vld [vmem:[%s13025_s8 + $0xd00] ss:$20 sps:$4 sm:$0xff]  }
 0x157   : > { %7040 = vmatprep.subr.bf16.mxu0 %v11699_v27  ;;  %7573 = vmatprep.subr.bf16.mxu1 %v11702_v28  ;;  %v11771_v27 = vld [vmem:[%s13025_s8 + $0xd24] ss:$20 sps:$4 sm:$0xff]   ;;  %v11774_v28 = vld [vmem:[%s13025_s8 + $0xd2c] ss:$20 sps:$4 sm:$0xff]  }
 0x15a   : > { %7041 = vmatpush1.bf16.msra.mxu0 %v11697_v9  ;;  %7574 = vmatpush1.bf16.msra.mxu1 %v11700_v30  ;;  %v11769_v9 = vld [vmem:[%s13025_s8 + $0xd20] ss:$20 sps:$4 sm:$0xff]   ;;  %v11772_v30 = vld [vmem:[%s13025_s8 + $0xd28] ss:$20 sps:$4 sm:$0xff]  }
 0x15b   : > { %7042 = vmatprep.subr.bf16.mxu0 %v11705_v31  ;;  %7575 = vmatprep.subr.bf16.mxu1 %v11708_v26  ;;  %v11777_v31 = vld [vmem:[%s13025_s8 + $0xd4c] ss:$20 sps:$4 sm:$0xff]   ;;  %v11780_v26 = vld [vmem:[%s13025_s8 + $0xd54] ss:$20 sps:$4 sm:$0xff]  }
 0x15e   : > { %7043 = vmatpush1.bf16.msra.mxu0 %v11703_v33  ;;  %7576 = vmatpush1.bf16.msra.mxu1 %v11706_v35  ;;  %v11775_v33 = vld [vmem:[%s13025_s8 + $0xd48] ss:$20 sps:$4 sm:$0xff]   ;;  %v11778_v35 = vld [vmem:[%s13025_s8 + $0xd50] ss:$20 sps:$4 sm:$0xff]  }
 0x15f   : > { %7044 = vmatprep.subr.bf16.mxu0 %v11711_v36  ;;  %7577 = vmatprep.subr.bf16.mxu1 %v11714_v37  ;;  %v11783_v36 = vld [vmem:[%s13025_s8 + $0xd74] ss:$20 sps:$4 sm:$0xff]   ;;  %v11786_v37 = vld [vmem:[%s13025_s8 + $0xd7c] ss:$20 sps:$4 sm:$0xff]  }
 0x162   : > { %7045 = vmatpush1.bf16.msra.mxu0 %v11709_v39  ;;  %7578 = vmatpush1.bf16.msra.mxu1 %v11712_v40  ;;  %v11781_v39 = vld [vmem:[%s13025_s8 + $0xd70] ss:$20 sps:$4 sm:$0xff]   ;;  %v11784_v40 = vld [vmem:[%s13025_s8 + $0xd78] ss:$20 sps:$4 sm:$0xff]  }
 0x163   : > { %7046 = vmatprep.subr.bf16.mxu0 %v11717_v41  ;;  %7579 = vmatprep.subr.bf16.mxu1 %v11720_v29  ;;  %v11789_v41 = vld [vmem:[%s13025_s8 + $0xd9c] ss:$20 sps:$4 sm:$0xff]   ;;  %v11792_v29 = vld [vmem:[%s13025_s8 + $0xda4] ss:$20 sps:$4 sm:$0xff]  }
 0x166   : > { %7047 = vmatpush1.bf16.msra.mxu0 %v11715_v45  ;;  %7580 = vmatpush1.bf16.msra.mxu1 %v11718_v46  ;;  %v11787_v45 = vld [vmem:[%s13025_s8 + $0xd98] ss:$20 sps:$4 sm:$0xff]   ;;  %v11790_v46 = vld [vmem:[%s13025_s8 + $0xda0] ss:$20 sps:$4 sm:$0xff]  }
 0x167   : > { %7048 = vmatprep.subr.bf16.mxu0 %v11723_v48  ;;  %7581 = vmatprep.subr.bf16.mxu1 %v11726_v50  ;;  %v11795_v48 = vld [vmem:[%s13025_s8 + $0xdc4] ss:$20 sps:$4 sm:$0xff]   ;;  %v11798_v50 = vld [vmem:[%s13025_s8 + $0xdcc] ss:$20 sps:$4 sm:$0xff]  }
 0x16a   : > { %7049 = vmatpush1.bf16.msra.mxu0 %v11721_v51  ;;  %7582 = vmatpush1.bf16.msra.mxu1 %v11724_v52  ;;  %v11793_v51 = vld [vmem:[%s13025_s8 + $0xdc0] ss:$20 sps:$4 sm:$0xff]   ;;  %v11796_v52 = vld [vmem:[%s13025_s8 + $0xdc8] ss:$20 sps:$4 sm:$0xff]  }
 0x16b   : > { %7050 = vmatprep.subr.bf16.mxu0 %v11729_v53  ;;  %7583 = vmatprep.subr.bf16.mxu1 %v11732_v54  ;;  %v11801_v53 = vld [vmem:[%s13025_s8 + $0xdec] ss:$20 sps:$4 sm:$0xff]   ;;  %v11804_v54 = vld [vmem:[%s13025_s8 + $0xdf4] ss:$20 sps:$4 sm:$0xff]  }
 0x16e   : > { %7051 = vmatpush1.bf16.msra.mxu0 %v11727_v56  ;;  %7584 = vmatpush1.bf16.msra.mxu1 %v11730_v57  ;;  %v11799_v56 = vld [vmem:[%s13025_s8 + $0xde8] ss:$20 sps:$4 sm:$0xff]   ;;  %v11802_v57 = vld [vmem:[%s13025_s8 + $0xdf0] ss:$20 sps:$4 sm:$0xff]  }
 0x16f   : > { %7052 = vmatprep.subr.bf16.mxu0 %v11735_v58  ;;  %7585 = vmatprep.subr.bf16.mxu1 %v11738_v61  ;;  %v11807_v58 = vld [vmem:[%s13025_s8 + $0xe14] ss:$20 sps:$4 sm:$0xff]   ;;  %v11810_v61 = vld [vmem:[%s13025_s8 + $0xe1c] ss:$20 sps:$4 sm:$0xff]  }
 0x172   : > { %7053 = vmatpush1.bf16.msra.mxu0 %v11733_v62  ;;  %7586 = vmatpush1.bf16.msra.mxu1 %v11736_v63  ;;  %v11808_v62 = vld [vmem:[%s13025_s8 + $0xe18] ss:$20 sps:$4 sm:$0xff]   ;;  %v11813_v63 = vld [vmem:[%s13025_s8 + $0xe3c] ss:$20 sps:$4 sm:$0xff]  }
 0x173   : > { %7054 = vmatprep.subr.bf16.mxu0 %v11741_v0  ;;  %7587 = vmatprep.subr.bf16.mxu1 %v11744_v1  ;;  %v11816_v0 = vld [vmem:[%s13025_s8 + $0xe44] ss:$20 sps:$4 sm:$0xff]  }
 0x174   : > { %v11811_v1 = vld [vmem:[%s13025_s8 + $0xe38] ss:$20 sps:$4 sm:$0xff]  }
 0x176   : > { %7055 = vmatpush1.bf16.msra.mxu0 %v11739_v42  ;;  %7588 = vmatpush1.bf16.msra.mxu1 %v11742_v3  ;;  %v11814_v42 = vld [vmem:[%s13025_s8 + $0xe40] ss:$20 sps:$4 sm:$0xff]   ;;  %v11819_v3 = vld [vmem:[%s13025_s8 + $0xe64] ss:$20 sps:$4 sm:$0xff]  }
 0x177   : > { %7065 = vmatprep.subr.bf16.mxu0 %v11747_v4  ;;  %7598 = vmatprep.subr.bf16.mxu1 %v11750_v5  ;;  %v11822_v4 = vld [vmem:[%s13025_s8 + $0xe6c] ss:$20 sps:$4 sm:$0xff]  }
 0x178   : > { %v11817_v5 = vld [vmem:[%s13025_s8 + $0xe60] ss:$20 sps:$4 sm:$0xff]  }
 0x179   : > { %7057 = vmatmul.mubr.bf16.vlgmr.msra.gmra.mrb[0].mxu0 %v13443_v7  ;;  %7590 = vmatmul.mubr.bf16.vlgmr.msra.gmra.mrb[0].mxu1 %v13443_v7 }
 0x17a   : > { %7066 = vmatpush1.bf16.msra.mxu0 %v11745_v8  ;;  %7599 = vmatpush1.bf16.msra.mxu1 %v11748_v10  ;;  %v11825_v8 = vld [vmem:[%s13025_s8 + $0xe8c] ss:$20 sps:$4 sm:$0xff]   ;;  %v11828_v10 = vld [vmem:[%s13025_s8 + $0xe94] ss:$20 sps:$4 sm:$0xff]  }
 0x17b   : > { %7067 = vmatprep.subr.bf16.mxu0 %v11753_v11  ;;  %7600 = vmatprep.subr.bf16.mxu1 %v11756_v12  ;;  %v11823_v11 = vld [vmem:[%s13025_s8 + $0xe88] ss:$20 sps:$4 sm:$0xff]   ;;  %v11826_v12 = vld [vmem:[%s13025_s8 + $0xe90] ss:$20 sps:$4 sm:$0xff]  }
 0x17c   : > { %7097 = vmatprep.mubr.bf16.mxu0 %v13449_v13  ;;  %7630 = vmatprep.mubr.bf16.mxu1 %v13449_v13 }
 0x17e   : > { %7068 = vmatpush1.bf16.msra.mxu0 %v11751_v47  ;;  %7601 = vmatpush1.bf16.msra.mxu1 %v11754_v14  ;;  %v11831_v47 = vld [vmem:[%s13025_s8 + $0xeb4] ss:$20 sps:$4 sm:$0xff]   ;;  %v11834_v14 = vld [vmem:[%s13025_s8 + $0xebc] ss:$20 sps:$4 sm:$0xff]  }
 0x17f   : > { %7069 = vmatprep.subr.bf16.mxu0 %v11759_v15  ;;  %7602 = vmatprep.subr.bf16.mxu1 %v11762_v17  ;;  %v13510_v15 = vld [vmem:[%s14478_s0 + $0x18] sm:$0xff]  ;;  %v11829_v17 = vld [vmem:[%s13025_s8 + $0xeb0] ss:$20 sps:$4 sm:$0xff]  }
 0x182   : > { %7070 = vmatpush1.bf16.msra.mxu0 %v11757_v18  ;;  %7603 = vmatpush1.bf16.msra.mxu1 %v11760_v19  ;;  %v11832_v18 = vld [vmem:[%s13025_s8 + $0xeb8] ss:$20 sps:$4 sm:$0xff]   ;;  %v11837_v19 = vld [vmem:[%s13025_s8 + $0xedc] ss:$20 sps:$4 sm:$0xff]  }
 0x183   : > { %7071 = vmatprep.subr.bf16.mxu0 %v11765_v21  ;;  %7604 = vmatprep.subr.bf16.mxu1 %v11768_v22  ;;  %v11840_v21 = vld [vmem:[%s13025_s8 + $0xee4] ss:$20 sps:$4 sm:$0xff]   ;;  %v13518_v22 = vrot.slane %v13510_v15, %v13074_v49 }
 0x186   : > { %7072 = vmatpush1.bf16.msra.mxu0 %v11763_v23  ;;  %7605 = vmatpush1.bf16.msra.mxu1 %v11766_v25  ;;  %v11835_v23 = vld [vmem:[%s13025_s8 + $0xed8] ss:$20 sps:$4 sm:$0xff]   ;;  %v11838_v25 = vld [vmem:[%s13025_s8 + $0xee0] ss:$20 sps:$4 sm:$0xff]  }
 0x187   : > { %7073 = vmatprep.subr.bf16.mxu0 %v11771_v27  ;;  %7606 = vmatprep.subr.bf16.mxu1 %v11774_v28  ;;  %v11844_v27 = vld [vmem:[%s13025_s8 + $0xf04] ss:$20 sps:$4 sm:$0xff]   ;;  %v11847_v28 = vld [vmem:[%s13025_s8 + $0xf0c] ss:$20 sps:$4 sm:$0xff]  }
 0x18a   : > { %7074 = vmatpush1.bf16.msra.mxu0 %v11769_v9  ;;  %7607 = vmatpush1.bf16.msra.mxu1 %v11772_v30  ;;  %v340_v9 = vcombine.high %v13518_v22, %v13518_v22  ;;  %v13528_v30 = vpack.c.bf16 %v13433_v2, %v13433_v2  ;;  %v11848_v2 = vld [vmem:[%s13025_s8 + $0xf28] ss:$20 sps:$4 sm:$0xff]  }
 0x18b   : > { %7075 = vmatprep.subr.bf16.mxu0 %v11777_v31  ;;  %7608 = vmatprep.subr.bf16.mxu1 %v11780_v26  ;;  %v11842_v31 = vld [vmem:[%s13025_s8 + $0xf00] ss:$20 sps:$4 sm:$0xff]   ;;  %v11845_v26 = vld [vmem:[%s13025_s8 + $0xf08] ss:$20 sps:$4 sm:$0xff]  }
 0x18e   : > { %7076 = vmatpush1.bf16.msra.mxu0 %v11775_v33  ;;  %7609 = vmatpush1.bf16.msra.mxu1 %v11778_v35  ;;  %v11850_v33 = vld [vmem:[%s13025_s8 + $0xf2c] ss:$20 sps:$4 sm:$0xff]   ;;  %v11853_v35 = vld [vmem:[%s13025_s8 + $0xf34] ss:$20 sps:$4 sm:$0xff]  }
 0x18f   : > { %7077 = vmatprep.subr.bf16.mxu0 %v11783_v36  ;;  %7610 = vmatprep.subr.bf16.mxu1 %v11786_v37  ;;  %v13534_v36 = vpack.c.bf16 %v340_v9, %v340_v9  ;;  %v11851_v37 = vld [vmem:[%s13025_s8 + $0xf30] ss:$20 sps:$4 sm:$0xff]  }
 0x190   : > { %v11916_v9 = vld [vmem:[%s13025_s8 + $0x10e4] ss:$20 sps:$4 sm:$0xff]  }
 0x192   : > { %7078 = vmatpush1.bf16.msra.mxu0 %v11781_v39  ;;  %7611 = vmatpush1.bf16.msra.mxu1 %v11784_v40  ;;  %v11856_v39 = vld [vmem:[%s13025_s8 + $0xf54] ss:$20 sps:$4 sm:$0xff]   ;;  %v11859_v40 = vld [vmem:[%s13025_s8 + $0xf5c] ss:$20 sps:$4 sm:$0xff]  }
 0x193   : > { %7079 = vmatprep.subr.bf16.mxu0 %v11789_v41  ;;  %7612 = vmatprep.subr.bf16.mxu1 %v11792_v29  ;;  %v11854_v41 = vld [vmem:[%s13025_s8 + $0xf50] ss:$20 sps:$4 sm:$0xff]   ;;  %v11857_v29 = vld [vmem:[%s13025_s8 + $0xf58] ss:$20 sps:$4 sm:$0xff]  }
 0x196   : > { %7080 = vmatpush1.bf16.msra.mxu0 %v11787_v45  ;;  %7613 = vmatpush1.bf16.msra.mxu1 %v11790_v46  ;;  %v11862_v45 = vld [vmem:[%s13025_s8 + $0xf7c] ss:$20 sps:$4 sm:$0xff]   ;;  %v11865_v46 = vld [vmem:[%s13025_s8 + $0xf84] ss:$20 sps:$4 sm:$0xff]  }
 0x197   : > { %7081 = vmatprep.subr.bf16.mxu0 %v11795_v48  ;;  %7614 = vmatprep.subr.bf16.mxu1 %v11798_v50  ;;  %v11860_v48 = vld [vmem:[%s13025_s8 + $0xf78] ss:$20 sps:$4 sm:$0xff]   ;;  %v11863_v50 = vld [vmem:[%s13025_s8 + $0xf80] ss:$20 sps:$4 sm:$0xff]  }
 0x19a   : > { %7082 = vmatpush1.bf16.msra.mxu0 %v11793_v51  ;;  %7615 = vmatpush1.bf16.msra.mxu1 %v11796_v52  ;;  %v11868_v51 = vld [vmem:[%s13025_s8 + $0xfa4] ss:$20 sps:$4 sm:$0xff]   ;;  %v11871_v52 = vld [vmem:[%s13025_s8 + $0xfac] ss:$20 sps:$4 sm:$0xff]  }
 0x19b   : > { %7083 = vmatprep.subr.bf16.mxu0 %v11801_v53  ;;  %7616 = vmatprep.subr.bf16.mxu1 %v11804_v54  ;;  %v11866_v53 = vld [vmem:[%s13025_s8 + $0xfa0] ss:$20 sps:$4 sm:$0xff]   ;;  %v11869_v54 = vld [vmem:[%s13025_s8 + $0xfa8] ss:$20 sps:$4 sm:$0xff]  }
 0x19e   : > { %7084 = vmatpush1.bf16.msra.mxu0 %v11799_v56  ;;  %7617 = vmatpush1.bf16.msra.mxu1 %v11802_v57  ;;  %v11874_v56 = vld [vmem:[%s13025_s8 + $0xfcc] ss:$20 sps:$4 sm:$0xff]   ;;  %v11877_v57 = vld [vmem:[%s13025_s8 + $0xfd4] ss:$20 sps:$4 sm:$0xff]  }
 0x19f   : > { %7085 = vmatprep.subr.bf16.mxu0 %v11807_v58  ;;  %7618 = vmatprep.subr.bf16.mxu1 %v11810_v61  ;;  %v11872_v58 = vld [vmem:[%s13025_s8 + $0xfc8] ss:$20 sps:$4 sm:$0xff]   ;;  %v11875_v61 = vld [vmem:[%s13025_s8 + $0xfd0] ss:$20 sps:$4 sm:$0xff]  }
 0x1a2   : > { %7086 = vmatpush1.bf16.msra.mxu0 %v11805_v32  ;;  %7619 = vmatpush1.bf16.msra.mxu1 %v11808_v62  ;;  %v11880_v32 = vld [vmem:[%s13025_s8 + $0xff4] ss:$20 sps:$4 sm:$0xff]   ;;  %v11883_v62 = vld [vmem:[%s13025_s8 + $0xffc] ss:$20 sps:$4 sm:$0xff]  }
 0x1a3   : > { %7087 = vmatprep.subr.bf16.mxu0 %v11813_v63  ;;  %7620 = vmatprep.subr.bf16.mxu1 %v11816_v0  ;;  %v11878_v63 = vld [vmem:[%s13025_s8 + $0xff0] ss:$20 sps:$4 sm:$0xff]   ;;  %v11881_v0 = vld [vmem:[%s13025_s8 + $0xff8] ss:$20 sps:$4 sm:$0xff]  }
 0x1a6   : > { %7088 = vmatpush1.bf16.msra.mxu0 %v11811_v1  ;;  %7621 = vmatpush1.bf16.msra.mxu1 %v11814_v42  ;;  %v11886_v1 = vld [vmem:[%s13025_s8 + $0x101c] ss:$20 sps:$4 sm:$0xff]   ;;  %v11889_v42 = vld [vmem:[%s13025_s8 + $0x1024] ss:$20 sps:$4 sm:$0xff]  }
 0x1a7   : > { %7089 = vmatprep.subr.bf16.mxu0 %v11819_v3  ;;  %7622 = vmatprep.subr.bf16.mxu1 %v11822_v4  ;;  %v11884_v3 = vld [vmem:[%s13025_s8 + $0x1018] ss:$20 sps:$4 sm:$0xff]   ;;  %v11887_v4 = vld [vmem:[%s13025_s8 + $0x1020] ss:$20 sps:$4 sm:$0xff]  }
 0x1aa   : > { %7090 = vmatpush1.bf16.msra.mxu0 %v11817_v5  ;;  %7623 = vmatpush1.bf16.msra.mxu1 %v11820_v6  ;;  %v11892_v5 = vld [vmem:[%s13025_s8 + $0x1044] ss:$20 sps:$4 sm:$0xff]   ;;  %v11895_v6 = vld [vmem:[%s13025_s8 + $0x104c] ss:$20 sps:$4 sm:$0xff]  }
 0x1ab   : > { %7091 = vmatprep.subr.bf16.mxu0 %v11825_v8  ;;  %7624 = vmatprep.subr.bf16.mxu1 %v11828_v10  ;;  %v11890_v8 = vld [vmem:[%s13025_s8 + $0x1040] ss:$20 sps:$4 sm:$0xff]   ;;  %v11893_v10 = vld [vmem:[%s13025_s8 + $0x1048] ss:$20 sps:$4 sm:$0xff]  }
 0x1ae   : > { %7092 = vmatpush1.bf16.msra.mxu0 %v11823_v11  ;;  %7625 = vmatpush1.bf16.msra.mxu1 %v11826_v12  ;;  %v11898_v11 = vld [vmem:[%s13025_s8 + $0x106c] ss:$20 sps:$4 sm:$0xff]   ;;  %v11901_v12 = vld [vmem:[%s13025_s8 + $0x1074] ss:$20 sps:$4 sm:$0xff]  }
 0x1af   : > { %7093 = vmatprep.subr.bf16.mxu0 %v11831_v47  ;;  %7626 = vmatprep.subr.bf16.mxu1 %v11834_v14  ;;  %v11896_v47 = vld [vmem:[%s13025_s8 + $0x1068] ss:$20 sps:$4 sm:$0xff]   ;;  %v11899_v14 = vld [vmem:[%s13025_s8 + $0x1070] ss:$20 sps:$4 sm:$0xff]  }
 0x1b2   : > { %7094 = vmatpush1.bf16.msra.mxu0 %v11829_v17  ;;  %7627 = vmatpush1.bf16.msra.mxu1 %v11832_v18  ;;  %v11904_v17 = vld [vmem:[%s13025_s8 + $0x1094] ss:$20 sps:$4 sm:$0xff]   ;;  %v11907_v18 = vld [vmem:[%s13025_s8 + $0x109c] ss:$20 sps:$4 sm:$0xff]  }
 0x1b3   : > { %7095 = vmatprep.subr.bf16.mxu0 %v11837_v19  ;;  %7628 = vmatprep.subr.bf16.mxu1 %v11840_v21  ;;  %v11902_v19 = vld [vmem:[%s13025_s8 + $0x1090] ss:$20 sps:$4 sm:$0xff]   ;;  %v11905_v21 = vld [vmem:[%s13025_s8 + $0x1098] ss:$20 sps:$4 sm:$0xff]  }
 0x1b6   : > { %7096 = vmatpush1.bf16.msra.mxu0 %v11835_v23  ;;  %7629 = vmatpush1.bf16.msra.mxu1 %v11838_v25  ;;  %v11910_v23 = vld [vmem:[%s13025_s8 + $0x10bc] ss:$20 sps:$4 sm:$0xff]   ;;  %v11913_v25 = vld [vmem:[%s13025_s8 + $0x10c4] ss:$20 sps:$4 sm:$0xff]  }
 0x1b7   : > { %7106 = vmatprep.subr.bf16.mxu0 %v11844_v27  ;;  %7639 = vmatprep.subr.bf16.mxu1 %v11847_v28  ;;  %v11908_v27 = vld [vmem:[%s13025_s8 + $0x10b8] ss:$20 sps:$4 sm:$0xff]   ;;  %v11911_v28 = vld [vmem:[%s13025_s8 + $0x10c0] ss:$20 sps:$4 sm:$0xff]  }
 0x1b9   : > { %7098 = vmatmul.mubr.bf16.vlgmr.msra.gmra.mrb[0].mxu0 %v13528_v30  ;;  %7631 = vmatmul.mubr.bf16.vlgmr.msra.gmra.mrb[0].mxu1 %v13528_v30 }
 0x1ba   : > { %7107 = vmatpush1.bf16.msra.mxu0 %v11842_v31  ;;  %7640 = vmatpush1.bf16.msra.mxu1 %v11845_v26  ;;  %v11919_v31 = vld [vmem:[%s13025_s8 + $0x10ec] ss:$20 sps:$4 sm:$0xff]  }
 0x1bb   : > { %7108 = vmatprep.subr.bf16.mxu0 %v11850_v33  ;;  %7641 = vmatprep.subr.bf16.mxu1 %v11853_v35  ;;  %v11914_v26 = vld [vmem:[%s13025_s8 + $0x10e0] ss:$20 sps:$4 sm:$0xff]   ;;  %v11917_v33 = vld [vmem:[%s13025_s8 + $0x10e8] ss:$20 sps:$4 sm:$0xff]  }
 0x1bc   : > { %7138 = vmatprep.mubr.bf16.mxu0 %v13534_v36  ;;  %7671 = vmatprep.mubr.bf16.mxu1 %v13534_v36  ;;  %v11922_v35 = vld [vmem:[%s13025_s8 + $0x110c] ss:$20 sps:$4 sm:$0xff]  }
 0x1be   : > { %7109 = vmatpush1.bf16.msra.mxu0 %v11848_v2  ;;  %7642 = vmatpush1.bf16.msra.mxu1 %v11851_v37  ;;  %v11925_v2 = vld [vmem:[%s13025_s8 + $0x1114] ss:$20 sps:$4 sm:$0xff]  }
 0x1bf   : > { %7110 = vmatprep.subr.bf16.mxu0 %v11856_v39  ;;  %7643 = vmatprep.subr.bf16.mxu1 %v11859_v40  ;;  %v11920_v37 = vld [vmem:[%s13025_s8 + $0x1108] ss:$20 sps:$4 sm:$0xff]   ;;  %v11923_v39 = vld [vmem:[%s13025_s8 + $0x1110] ss:$20 sps:$4 sm:$0xff]  }
 0x1c0   : > { %v11928_v40 = vld [vmem:[%s13025_s8 + $0x1134] ss:$20 sps:$4 sm:$0xff]  }
 0x1c2   : > { %7111 = vmatpush1.bf16.msra.mxu0 %v11854_v41  ;;  %7644 = vmatpush1.bf16.msra.mxu1 %v11857_v29  ;;  %v11931_v41 = vld [vmem:[%s13025_s8 + $0x113c] ss:$20 sps:$4 sm:$0xff]   ;;  %v325_v29 = vcombine.high %v13510_v15, %v13510_v15  ;;  %v11932_v15 = vld [vmem:[%s13025_s8 + $0x1158] ss:$20 sps:$4 sm:$0xff]  }
 0x1c3   : > { %7112 = vmatprep.subr.bf16.mxu0 %v11862_v45  ;;  %7645 = vmatprep.subr.bf16.mxu1 %v11865_v46  ;;  %v11926_v45 = vld [vmem:[%s13025_s8 + $0x1130] ss:$20 sps:$4 sm:$0xff]   ;;  %v11929_v46 = vld [vmem:[%s13025_s8 + $0x1138] ss:$20 sps:$4 sm:$0xff]  }
 0x1c6   : > { %7113 = vmatpush1.bf16.msra.mxu0 %v11860_v48  ;;  %7646 = vmatpush1.bf16.msra.mxu1 %v11863_v50  ;;  %v11934_v48 = vld [vmem:[%s13025_s8 + $0x115c] ss:$20 sps:$4 sm:$0xff]   ;;  %v11937_v50 = vld [vmem:[%s13025_s8 + $0x1164] ss:$20 sps:$4 sm:$0xff]  }
 0x1c7   : > { %7114 = vmatprep.subr.bf16.mxu0 %v11868_v51  ;;  %7647 = vmatprep.subr.bf16.mxu1 %v11871_v52  ;;  %v13599_v51 = vrot.slane %v325_v29, %v13074_v49  ;;  %v11935_v52 = vld [vmem:[%s13025_s8 + $0x1160] ss:$20 sps:$4 sm:$0xff]   ;;  %v11992_v29 = vld [vmem:[%s13025_s8 + $0x12e8] ss:$20 sps:$4 sm:$0xff]  }
 0x1ca   : > { %7115 = vmatpush1.bf16.msra.mxu0 %v11866_v53  ;;  %7648 = vmatpush1.bf16.msra.mxu1 %v11869_v54  ;;  %v11940_v53 = vld [vmem:[%s13025_s8 + $0x1184] ss:$20 sps:$4 sm:$0xff]   ;;  %v11943_v54 = vld [vmem:[%s13025_s8 + $0x118c] ss:$20 sps:$4 sm:$0xff]  }
 0x1cb   : > { %7116 = vmatprep.subr.bf16.mxu0 %v11874_v56  ;;  %7649 = vmatprep.subr.bf16.mxu1 %v11877_v57  ;;  %v341_v56 = vcombine.high %v13599_v51, %v13599_v51  ;;  %v13609_v57 = vpack.c.bf16 %v13518_v22, %v13518_v22  ;;  %v11944_v22 = vld [vmem:[%s13025_s8 + $0x11a8] ss:$20 sps:$4 sm:$0xff]  }
 0x1ce   : > { %7117 = vmatpush1.bf16.msra.mxu0 %v11872_v58  ;;  %7650 = vmatpush1.bf16.msra.mxu1 %v11875_v61  ;;  %v11938_v58 = vld [vmem:[%s13025_s8 + $0x1180] ss:$20 sps:$4 sm:$0xff]   ;;  %v11941_v61 = vld [vmem:[%s13025_s8 + $0x1188] ss:$20 sps:$4 sm:$0xff]  }
 0x1cf   : > { %7118 = vmatprep.subr.bf16.mxu0 %v11880_v32  ;;  %7651 = vmatprep.subr.bf16.mxu1 %v11883_v62  ;;  %v11946_v32 = vld [vmem:[%s13025_s8 + $0x11ac] ss:$20 sps:$4 sm:$0xff]   ;;  %v11949_v62 = vld [vmem:[%s13025_s8 + $0x11b4] ss:$20 sps:$4 sm:$0xff]  }
 0x1d2   : > { %7119 = vmatpush1.bf16.msra.mxu0 %v11878_v63  ;;  %7652 = vmatpush1.bf16.msra.mxu1 %v11881_v0  ;;  %v13615_v63 = vpack.c.bf16 %v341_v56, %v341_v56  ;;  %v11947_v0 = vld [vmem:[%s13025_s8 + $0x11b0] ss:$20 sps:$4 sm:$0xff]   ;;  %v12007_v56 = vld [vmem:[%s13025_s8 + $0x1340] ss:$20 sps:$4 sm:$0xff]  }
 0x1d3   : > { %7120 = vmatprep.subr.bf16.mxu0 %v11886_v1  ;;  %7653 = vmatprep.subr.bf16.mxu1 %v11889_v42  ;;  %v11952_v1 = vld [vmem:[%s13025_s8 + $0x11d4] ss:$20 sps:$4 sm:$0xff]   ;;  %v11955_v42 = vld [vmem:[%s13025_s8 + $0x11dc] ss:$20 sps:$4 sm:$0xff]  }
 0x1d6   : > { %7121 = vmatpush1.bf16.msra.mxu0 %v11884_v3  ;;  %7654 = vmatpush1.bf16.msra.mxu1 %v11887_v4  ;;  %v11950_v3 = vld [vmem:[%s13025_s8 + $0x11d0] ss:$20 sps:$4 sm:$0xff]   ;;  %v11953_v4 = vld [vmem:[%s13025_s8 + $0x11d8] ss:$20 sps:$4 sm:$0xff]  }
 0x1d7   : > { %7122 = vmatprep.subr.bf16.mxu0 %v11892_v5  ;;  %7655 = vmatprep.subr.bf16.mxu1 %v11895_v6  ;;  %v11958_v5 = vld [vmem:[%s13025_s8 + $0x11fc] ss:$20 sps:$4 sm:$0xff]   ;;  %v11961_v6 = vld [vmem:[%s13025_s8 + $0x1204] ss:$20 sps:$4 sm:$0xff]  }
 0x1da   : > { %7123 = vmatpush1.bf16.msra.mxu0 %v11890_v8  ;;  %7656 = vmatpush1.bf16.msra.mxu1 %v11893_v10  ;;  %v11956_v8 = vld [vmem:[%s13025_s8 + $0x11f8] ss:$20 sps:$4 sm:$0xff]   ;;  %v11959_v10 = vld [vmem:[%s13025_s8 + $0x1200] ss:$20 sps:$4 sm:$0xff]  }
 0x1db   : > { %7124 = vmatprep.subr.bf16.mxu0 %v11898_v11  ;;  %7657 = vmatprep.subr.bf16.mxu1 %v11901_v12  ;;  %v11964_v11 = vld [vmem:[%s13025_s8 + $0x1224] ss:$20 sps:$4 sm:$0xff]   ;;  %v11967_v12 = vld [vmem:[%s13025_s8 + $0x122c] ss:$20 sps:$4 sm:$0xff]  }
 0x1de   : > { %7125 = vmatpush1.bf16.msra.mxu0 %v11896_v47  ;;  %7658 = vmatpush1.bf16.msra.mxu1 %v11899_v14  ;;  %v11962_v47 = vld [vmem:[%s13025_s8 + $0x1220] ss:$20 sps:$4 sm:$0xff]   ;;  %v11965_v14 = vld [vmem:[%s13025_s8 + $0x1228] ss:$20 sps:$4 sm:$0xff]  }
 0x1df   : > { %7126 = vmatprep.subr.bf16.mxu0 %v11904_v17  ;;  %7659 = vmatprep.subr.bf16.mxu1 %v11907_v18  ;;  %v11970_v17 = vld [vmem:[%s13025_s8 + $0x124c] ss:$20 sps:$4 sm:$0xff]   ;;  %v11973_v18 = vld [vmem:[%s13025_s8 + $0x1254] ss:$20 sps:$4 sm:$0xff]  }
 0x1e2   : > { %7127 = vmatpush1.bf16.msra.mxu0 %v11902_v19  ;;  %7660 = vmatpush1.bf16.msra.mxu1 %v11905_v21  ;;  %v11968_v19 = vld [vmem:[%s13025_s8 + $0x1248] ss:$20 sps:$4 sm:$0xff]   ;;  %v11971_v21 = vld [vmem:[%s13025_s8 + $0x1250] ss:$20 sps:$4 sm:$0xff]  }
 0x1e3   : > { %7128 = vmatprep.subr.bf16.mxu0 %v11910_v23  ;;  %7661 = vmatprep.subr.bf16.mxu1 %v11913_v25  ;;  %v11976_v23 = vld [vmem:[%s13025_s8 + $0x1274] ss:$20 sps:$4 sm:$0xff]   ;;  %v11979_v25 = vld [vmem:[%s13025_s8 + $0x127c] ss:$20 sps:$4 sm:$0xff]  }
 0x1e6   : > { %7129 = vmatpush1.bf16.msra.mxu0 %v11908_v27  ;;  %7662 = vmatpush1.bf16.msra.mxu1 %v11911_v28  ;;  %v11974_v27 = vld [vmem:[%s13025_s8 + $0x1270] ss:$20 sps:$4 sm:$0xff]   ;;  %v11977_v28 = vld [vmem:[%s13025_s8 + $0x1278] ss:$20 sps:$4 sm:$0xff]  }
 0x1e7   : > { %7130 = vmatprep.subr.bf16.mxu0 %v11916_v9  ;;  %7663 = vmatprep.subr.bf16.mxu1 %v11919_v31  ;;  %v11982_v9 = vld [vmem:[%s13025_s8 + $0x129c] ss:$20 sps:$4 sm:$0xff]   ;;  %v11985_v31 = vld [vmem:[%s13025_s8 + $0x12a4] ss:$20 sps:$4 sm:$0xff]  }
 0x1ea   : > { %7131 = vmatpush1.bf16.msra.mxu0 %v11914_v26  ;;  %7664 = vmatpush1.bf16.msra.mxu1 %v11917_v33  ;;  %v11980_v26 = vld [vmem:[%s13025_s8 + $0x1298] ss:$20 sps:$4 sm:$0xff]   ;;  %v11983_v33 = vld [vmem:[%s13025_s8 + $0x12a0] ss:$20 sps:$4 sm:$0xff]  }
 0x1eb   : > { %7132 = vmatprep.subr.bf16.mxu0 %v11922_v35  ;;  %7665 = vmatprep.subr.bf16.mxu1 %v11925_v2  ;;  %v11988_v35 = vld [vmem:[%s13025_s8 + $0x12c4] ss:$20 sps:$4 sm:$0xff]   ;;  %v11991_v2 = vld [vmem:[%s13025_s8 + $0x12cc] ss:$20 sps:$4 sm:$0xff]  }
 0x1ee   : > { %7133 = vmatpush1.bf16.msra.mxu0 %v11920_v37  ;;  %7666 = vmatpush1.bf16.msra.mxu1 %v11923_v39  ;;  %v11986_v37 = vld [vmem:[%s13025_s8 + $0x12c0] ss:$20 sps:$4 sm:$0xff]   ;;  %v11989_v39 = vld [vmem:[%s13025_s8 + $0x12c8] ss:$20 sps:$4 sm:$0xff]  }
 0x1ef   : > { %7134 = vmatprep.subr.bf16.mxu0 %v11928_v40  ;;  %7667 = vmatprep.subr.bf16.mxu1 %v11931_v41  ;;  %v11994_v40 = vld [vmem:[%s13025_s8 + $0x12ec] ss:$20 sps:$4 sm:$0xff]   ;;  %v11997_v41 = vld [vmem:[%s13025_s8 + $0x12f4] ss:$20 sps:$4 sm:$0xff]  }
 0x1f2   : > { %7135 = vmatpush1.bf16.msra.mxu0 %v11926_v45  ;;  %7668 = vmatpush1.bf16.msra.mxu1 %v11929_v46  ;;  %v11995_v45 = vld [vmem:[%s13025_s8 + $0x12f0] ss:$20 sps:$4 sm:$0xff]   ;;  %v12000_v46 = vld [vmem:[%s13025_s8 + $0x1314] ss:$20 sps:$4 sm:$0xff]  }
 0x1f3   : > { %7136 = vmatprep.subr.bf16.mxu0 %v11934_v48  ;;  %7669 = vmatprep.subr.bf16.mxu1 %v11937_v50  ;;  %v12003_v48 = vld [vmem:[%s13025_s8 + $0x131c] ss:$20 sps:$4 sm:$0xff]  }
 0x1f4   : > { %v11998_v50 = vld [vmem:[%s13025_s8 + $0x1310] ss:$20 sps:$4 sm:$0xff]  }
 0x1f6   : > { %7137 = vmatpush1.bf16.msra.mxu0 %v11932_v15  ;;  %7670 = vmatpush1.bf16.msra.mxu1 %v11935_v52  ;;  %v12001_v15 = vld [vmem:[%s13025_s8 + $0x1318] ss:$20 sps:$4 sm:$0xff]   ;;  %v12006_v52 = vld [vmem:[%s13025_s8 + $0x133c] ss:$20 sps:$4 sm:$0xff]  }
 0x1f7   : > { %7147 = vmatprep.subr.bf16.mxu0 %v11940_v53  ;;  %7680 = vmatprep.subr.bf16.mxu1 %v11943_v54  ;;  %v12009_v53 = vld [vmem:[%s13025_s8 + $0x1344] ss:$20 sps:$4 sm:$0xff]  }
 0x1f8   : > { %v12004_v54 = vld [vmem:[%s13025_s8 + $0x1338] ss:$20 sps:$4 sm:$0xff]  }
 0x1f9   : > { %7139 = vmatmul.mubr.bf16.vlgmr.msra.gmra.mrb[0].mxu0 %v13609_v57  ;;  %7672 = vmatmul.mubr.bf16.vlgmr.msra.gmra.mrb[0].mxu1 %v13609_v57 }
 0x1fa   : > { %7148 = vmatpush1.bf16.msra.mxu0 %v11938_v58  ;;  %7681 = vmatpush1.bf16.msra.mxu1 %v11941_v61  ;;  %v12012_v58 = vld [vmem:[%s13025_s8 + $0x1364] ss:$20 sps:$4 sm:$0xff]   ;;  %v12015_v61 = vld [vmem:[%s13025_s8 + $0x136c] ss:$20 sps:$4 sm:$0xff]  }
 0x1fb   : > { %7149 = vmatprep.subr.bf16.mxu0 %v11946_v32  ;;  %7682 = vmatprep.subr.bf16.mxu1 %v11949_v62  ;;  %v12010_v32 = vld [vmem:[%s13025_s8 + $0x1360] ss:$20 sps:$4 sm:$0xff]   ;;  %v12013_v62 = vld [vmem:[%s13025_s8 + $0x1368] ss:$20 sps:$4 sm:$0xff]  }
 0x1fc   : > { %7179 = vmatprep.mubr.bf16.mxu0 %v13615_v63  ;;  %7712 = vmatprep.mubr.bf16.mxu1 %v13615_v63 }
 0x1fe   : > { %7150 = vmatpush1.bf16.msra.mxu0 %v11944_v22  ;;  %7683 = vmatpush1.bf16.msra.mxu1 %v11947_v0  ;;  %v12018_v22 = vld [vmem:[%s13025_s8 + $0x138c] ss:$20 sps:$4 sm:$0xff]   ;;  %v12021_v0 = vld [vmem:[%s13025_s8 + $0x1394] ss:$20 sps:$4 sm:$0xff]  }
 0x1ff   : > { %7151 = vmatprep.subr.bf16.mxu0 %v11952_v1  ;;  %7684 = vmatprep.subr.bf16.mxu1 %v11955_v42  ;;  %v12016_v1 = vld [vmem:[%s13025_s8 + $0x1388] ss:$20 sps:$4 sm:$0xff]   ;;  %v12019_v42 = vld [vmem:[%s13025_s8 + $0x1390] ss:$20 sps:$4 sm:$0xff]  }
 0x202   : > { %7152 = vmatpush1.bf16.msra.mxu0 %v11950_v3  ;;  %7685 = vmatpush1.bf16.msra.mxu1 %v11953_v4  ;;  %v12024_v3 = vld [vmem:[%s13025_s8 + $0x13b4] ss:$20 sps:$4 sm:$0xff]   ;;  %v12027_v4 = vld [vmem:[%s13025_s8 + $0x13bc] ss:$20 sps:$4 sm:$0xff]  }
 0x203   : > { %7153 = vmatprep.subr.bf16.mxu0 %v11958_v5  ;;  %7686 = vmatprep.subr.bf16.mxu1 %v11961_v6  ;;  %v13676_v5 = vld [vmem:[%s14478_s0 + $0x20] sm:$0xff] }
 0x204   : > { %v12022_v6 = vld [vmem:[%s13025_s8 + $0x13b0] ss:$20 sps:$4 sm:$0xff]  }
 0x206   : > { %7154 = vmatpush1.bf16.msra.mxu0 %v11956_v8  ;;  %7687 = vmatpush1.bf16.msra.mxu1 %v11959_v10  ;;  %v12025_v8 = vld [vmem:[%s13025_s8 + $0x13b8] ss:$20 sps:$4 sm:$0xff]   ;;  %v12030_v10 = vld [vmem:[%s13025_s8 + $0x13dc] ss:$20 sps:$4 sm:$0xff]  }
 0x207   : > { %7155 = vmatprep.subr.bf16.mxu0 %v11964_v11  ;;  %7688 = vmatprep.subr.bf16.mxu1 %v11967_v12  ;;  %v12033_v11 = vld [vmem:[%s13025_s8 + $0x13e4] ss:$20 sps:$4 sm:$0xff]   ;;  %v13684_v12 = vrot.slane %v13676_v5, %v13074_v49 }
 0x20a   : > { %7156 = vmatpush1.bf16.msra.mxu0 %v11962_v47  ;;  %7689 = vmatpush1.bf16.msra.mxu1 %v11965_v14  ;;  %v12028_v47 = vld [vmem:[%s13025_s8 + $0x13d8] ss:$20 sps:$4 sm:$0xff]   ;;  %v12031_v14 = vld [vmem:[%s13025_s8 + $0x13e0] ss:$20 sps:$4 sm:$0xff]  }
 0x20b   : > { %7157 = vmatprep.subr.bf16.mxu0 %v11970_v17  ;;  %7690 = vmatprep.subr.bf16.mxu1 %v11973_v18  ;;  %v12037_v17 = vld [vmem:[%s13025_s8 + $0x1404] ss:$20 sps:$4 sm:$0xff]   ;;  %v12040_v18 = vld [vmem:[%s13025_s8 + $0x140c] ss:$20 sps:$4 sm:$0xff]  }
 0x20e   : > { %7158 = vmatpush1.bf16.msra.mxu0 %v11968_v19  ;;  %7691 = vmatpush1.bf16.msra.mxu1 %v11971_v21  ;;  %v357_v19 = vcombine.high %v13684_v12, %v13684_v12  ;;  %v13694_v21 = vpack.c.bf16 %v13599_v51, %v13599_v51  ;;  %v12041_v51 = vld [vmem:[%s13025_s8 + $0x1428] ss:$20 sps:$4 sm:$0xff]  }
 0x20f   : > { %7159 = vmatprep.subr.bf16.mxu0 %v11976_v23  ;;  %7692 = vmatprep.subr.bf16.mxu1 %v11979_v25  ;;  %v12035_v23 = vld [vmem:[%s13025_s8 + $0x1400] ss:$20 sps:$4 sm:$0xff]   ;;  %v12038_v25 = vld [vmem:[%s13025_s8 + $0x1408] ss:$20 sps:$4 sm:$0xff]  }
 0x212   : > { %7160 = vmatpush1.bf16.msra.mxu0 %v11974_v27  ;;  %7693 = vmatpush1.bf16.msra.mxu1 %v11977_v28  ;;  %v12043_v27 = vld [vmem:[%s13025_s8 + $0x142c] ss:$20 sps:$4 sm:$0xff]   ;;  %v12046_v28 = vld [vmem:[%s13025_s8 + $0x1434] ss:$20 sps:$4 sm:$0xff]  }
 0x213   : > { %7161 = vmatprep.subr.bf16.mxu0 %v11982_v9  ;;  %7694 = vmatprep.subr.bf16.mxu1 %v11985_v31  ;;  %v13700_v9 = vpack.c.bf16 %v357_v19, %v357_v19  ;;  %v12044_v31 = vld [vmem:[%s13025_s8 + $0x1430] ss:$20 sps:$4 sm:$0xff]  }
 0x214   : > { %v12103_v19 = vld [vmem:[%s13025_s8 + $0x15bc] ss:$20 sps:$4 sm:$0xff]  }
 0x216   : > { %7162 = vmatpush1.bf16.msra.mxu0 %v11980_v26  ;;  %7695 = vmatpush1.bf16.msra.mxu1 %v11983_v33  ;;  %v12049_v26 = vld [vmem:[%s13025_s8 + $0x1454] ss:$20 sps:$4 sm:$0xff]   ;;  %v12052_v33 = vld [vmem:[%s13025_s8 + $0x145c] ss:$20 sps:$4 sm:$0xff]  }
 0x217   : > { %7163 = vmatprep.subr.bf16.mxu0 %v11988_v35  ;;  %7696 = vmatprep.subr.bf16.mxu1 %v11991_v2  ;;  %v12047_v35 = vld [vmem:[%s13025_s8 + $0x1450] ss:$20 sps:$4 sm:$0xff]   ;;  %v12050_v2 = vld [vmem:[%s13025_s8 + $0x1458] ss:$20 sps:$4 sm:$0xff]  }
 0x21a   : > { %7164 = vmatpush1.bf16.msra.mxu0 %v11986_v37  ;;  %7697 = vmatpush1.bf16.msra.mxu1 %v11989_v39  ;;  %v12055_v37 = vld [vmem:[%s13025_s8 + $0x147c] ss:$20 sps:$4 sm:$0xff]   ;;  %v12058_v39 = vld [vmem:[%s13025_s8 + $0x1484] ss:$20 sps:$4 sm:$0xff]  }
 0x21b   : > { %7165 = vmatprep.subr.bf16.mxu0 %v11994_v40  ;;  %7698 = vmatprep.subr.bf16.mxu1 %v11997_v41  ;;  %v12053_v40 = vld [vmem:[%s13025_s8 + $0x1478] ss:$20 sps:$4 sm:$0xff]   ;;  %v12056_v41 = vld [vmem:[%s13025_s8 + $0x1480] ss:$20 sps:$4 sm:$0xff]  }
 0x21e   : > { %7166 = vmatpush1.bf16.msra.mxu0 %v11992_v29  ;;  %7699 = vmatpush1.bf16.msra.mxu1 %v11995_v45  ;;  %v12061_v29 = vld [vmem:[%s13025_s8 + $0x14a4] ss:$20 sps:$4 sm:$0xff]   ;;  %v12064_v45 = vld [vmem:[%s13025_s8 + $0x14ac] ss:$20 sps:$4 sm:$0xff]  }
 0x21f   : > { %7167 = vmatprep.subr.bf16.mxu0 %v12000_v46  ;;  %7700 = vmatprep.subr.bf16.mxu1 %v12003_v48  ;;  %v12059_v46 = vld [vmem:[%s13025_s8 + $0x14a0] ss:$20 sps:$4 sm:$0xff]   ;;  %v12062_v48 = vld [vmem:[%s13025_s8 + $0x14a8] ss:$20 sps:$4 sm:$0xff]  }
 0x222   : > { %7168 = vmatpush1.bf16.msra.mxu0 %v11998_v50  ;;  %7701 = vmatpush1.bf16.msra.mxu1 %v12001_v15  ;;  %v12067_v50 = vld [vmem:[%s13025_s8 + $0x14cc] ss:$20 sps:$4 sm:$0xff]   ;;  %v12070_v15 = vld [vmem:[%s13025_s8 + $0x14d4] ss:$20 sps:$4 sm:$0xff]  }
 0x223   : > { %7169 = vmatprep.subr.bf16.mxu0 %v12006_v52  ;;  %7702 = vmatprep.subr.bf16.mxu1 %v12009_v53  ;;  %v12065_v52 = vld [vmem:[%s13025_s8 + $0x14c8] ss:$20 sps:$4 sm:$0xff]   ;;  %v12068_v53 = vld [vmem:[%s13025_s8 + $0x14d0] ss:$20 sps:$4 sm:$0xff]  }
 0x226   : > { %7170 = vmatpush1.bf16.msra.mxu0 %v12004_v54  ;;  %7703 = vmatpush1.bf16.msra.mxu1 %v12007_v56  ;;  %v12073_v54 = vld [vmem:[%s13025_s8 + $0x14f4] ss:$20 sps:$4 sm:$0xff]   ;;  %v12076_v56 = vld [vmem:[%s13025_s8 + $0x14fc] ss:$20 sps:$4 sm:$0xff]  }
 0x227   : > { %7171 = vmatprep.subr.bf16.mxu0 %v12012_v58  ;;  %7704 = vmatprep.subr.bf16.mxu1 %v12015_v61  ;;  %v12071_v58 = vld [vmem:[%s13025_s8 + $0x14f0] ss:$20 sps:$4 sm:$0xff]   ;;  %v12074_v61 = vld [vmem:[%s13025_s8 + $0x14f8] ss:$20 sps:$4 sm:$0xff]  }
 0x22a   : > { %7172 = vmatpush1.bf16.msra.mxu0 %v12010_v32  ;;  %7705 = vmatpush1.bf16.msra.mxu1 %v12013_v62  ;;  %v12079_v32 = vld [vmem:[%s13025_s8 + $0x151c] ss:$20 sps:$4 sm:$0xff]   ;;  %v12082_v62 = vld [vmem:[%s13025_s8 + $0x1524] ss:$20 sps:$4 sm:$0xff]  }
 0x22b   : > { %7173 = vmatprep.subr.bf16.mxu0 %v12018_v22  ;;  %7706 = vmatprep.subr.bf16.mxu1 %v12021_v0  ;;  %v12077_v22 = vld [vmem:[%s13025_s8 + $0x1518] ss:$20 sps:$4 sm:$0xff]   ;;  %v12080_v0 = vld [vmem:[%s13025_s8 + $0x1520] ss:$20 sps:$4 sm:$0xff]  }
 0x22e   : > { %7174 = vmatpush1.bf16.msra.mxu0 %v12016_v1  ;;  %7707 = vmatpush1.bf16.msra.mxu1 %v12019_v42  ;;  %v12085_v1 = vld [vmem:[%s13025_s8 + $0x1544] ss:$20 sps:$4 sm:$0xff]   ;;  %v12088_v42 = vld [vmem:[%s13025_s8 + $0x154c] ss:$20 sps:$4 sm:$0xff]  }
 0x22f   : > { %7175 = vmatprep.subr.bf16.mxu0 %v12024_v3  ;;  %7708 = vmatprep.subr.bf16.mxu1 %v12027_v4  ;;  %v12083_v3 = vld [vmem:[%s13025_s8 + $0x1540] ss:$20 sps:$4 sm:$0xff]   ;;  %v12086_v4 = vld [vmem:[%s13025_s8 + $0x1548] ss:$20 sps:$4 sm:$0xff]  }
 0x232   : > { %7176 = vmatpush1.bf16.msra.mxu0 %v12022_v6  ;;  %7709 = vmatpush1.bf16.msra.mxu1 %v12025_v8  ;;  %v12091_v6 = vld [vmem:[%s13025_s8 + $0x156c] ss:$20 sps:$4 sm:$0xff]   ;;  %v12094_v8 = vld [vmem:[%s13025_s8 + $0x1574] ss:$20 sps:$4 sm:$0xff]  }
 0x233   : > { %7177 = vmatprep.subr.bf16.mxu0 %v12030_v10  ;;  %7710 = vmatprep.subr.bf16.mxu1 %v12033_v11  ;;  %v12089_v10 = vld [vmem:[%s13025_s8 + $0x1568] ss:$20 sps:$4 sm:$0xff]   ;;  %v12092_v11 = vld [vmem:[%s13025_s8 + $0x1570] ss:$20 sps:$4 sm:$0xff]  }
 0x236   : > { %7178 = vmatpush1.bf16.msra.mxu0 %v12028_v47  ;;  %7711 = vmatpush1.bf16.msra.mxu1 %v12031_v14  ;;  %v12097_v47 = vld [vmem:[%s13025_s8 + $0x1594] ss:$20 sps:$4 sm:$0xff]   ;;  %v12100_v14 = vld [vmem:[%s13025_s8 + $0x159c] ss:$20 sps:$4 sm:$0xff]  }
 0x237   : > { %7188 = vmatprep.subr.bf16.mxu0 %v12037_v17  ;;  %7721 = vmatprep.subr.bf16.mxu1 %v12040_v18  ;;  %v12095_v17 = vld [vmem:[%s13025_s8 + $0x1590] ss:$20 sps:$4 sm:$0xff]   ;;  %v12098_v18 = vld [vmem:[%s13025_s8 + $0x1598] ss:$20 sps:$4 sm:$0xff]  }
 0x239   : > { %7180 = vmatmul.mubr.bf16.vlgmr.msra.gmra.mrb[0].mxu0 %v13694_v21  ;;  %7713 = vmatmul.mubr.bf16.vlgmr.msra.gmra.mrb[0].mxu1 %v13694_v21 }
 0x23a   : > { %7189 = vmatpush1.bf16.msra.mxu0 %v12035_v23  ;;  %7722 = vmatpush1.bf16.msra.mxu1 %v12038_v25  ;;  %v12106_v23 = vld [vmem:[%s13025_s8 + $0x15c4] ss:$20 sps:$4 sm:$0xff]  }
 0x23b   : > { %7190 = vmatprep.subr.bf16.mxu0 %v12043_v27  ;;  %7723 = vmatprep.subr.bf16.mxu1 %v12046_v28  ;;  %v12101_v25 = vld [vmem:[%s13025_s8 + $0x15b8] ss:$20 sps:$4 sm:$0xff]   ;;  %v12104_v27 = vld [vmem:[%s13025_s8 + $0x15c0] ss:$20 sps:$4 sm:$0xff]  }
 0x23c   : > { %7220 = vmatprep.mubr.bf16.mxu0 %v13700_v9  ;;  %7753 = vmatprep.mubr.bf16.mxu1 %v13700_v9  ;;  %v12109_v28 = vld [vmem:[%s13025_s8 + $0x15e4] ss:$20 sps:$4 sm:$0xff]  }
 0x23e   : > { %7191 = vmatpush1.bf16.msra.mxu0 %v12041_v51  ;;  %7724 = vmatpush1.bf16.msra.mxu1 %v12044_v31  ;;  %v12112_v51 = vld [vmem:[%s13025_s8 + $0x15ec] ss:$20 sps:$4 sm:$0xff]  }
 0x23f   : > { %7192 = vmatprep.subr.bf16.mxu0 %v12049_v26  ;;  %7725 = vmatprep.subr.bf16.mxu1 %v12052_v33  ;;  %v12107_v31 = vld [vmem:[%s13025_s8 + $0x15e0] ss:$20 sps:$4 sm:$0xff]   ;;  %v12110_v26 = vld [vmem:[%s13025_s8 + $0x15e8] ss:$20 sps:$4 sm:$0xff]  }
 0x240   : > { %v12115_v33 = vld [vmem:[%s13025_s8 + $0x160c] ss:$20 sps:$4 sm:$0xff]  }
 0x242   : > { %7193 = vmatpush1.bf16.msra.mxu0 %v12047_v35  ;;  %7726 = vmatpush1.bf16.msra.mxu1 %v12050_v2  ;;  %v12118_v35 = vld [vmem:[%s13025_s8 + $0x1614] ss:$20 sps:$4 sm:$0xff]  }
 0x243   : > { %7194 = vmatprep.subr.bf16.mxu0 %v12055_v37  ;;  %7727 = vmatprep.subr.bf16.mxu1 %v12058_v39  ;;  %v12113_v2 = vld [vmem:[%s13025_s8 + $0x1608] ss:$20 sps:$4 sm:$0xff]   ;;  %v12116_v37 = vld [vmem:[%s13025_s8 + $0x1610] ss:$20 sps:$4 sm:$0xff]  }
 0x244   : > { %v12121_v39 = vld [vmem:[%s13025_s8 + $0x1634] ss:$20 sps:$4 sm:$0xff]  }
 0x246   : > { %7195 = vmatpush1.bf16.msra.mxu0 %v12053_v40  ;;  %7728 = vmatpush1.bf16.msra.mxu1 %v12056_v41  ;;  %v12124_v40 = vld [vmem:[%s13025_s8 + $0x163c] ss:$20 sps:$4 sm:$0xff]   ;;  %v342_v41 = vcombine.high %v13676_v5, %v13676_v5  ;;  %v12125_v5 = vld [vmem:[%s13025_s8 + $0x1658] ss:$20 sps:$4 sm:$0xff]  }
 0x247   : > { %7196 = vmatprep.subr.bf16.mxu0 %v12061_v29  ;;  %7729 = vmatprep.subr.bf16.mxu1 %v12064_v45  ;;  %v12119_v29 = vld [vmem:[%s13025_s8 + $0x1630] ss:$20 sps:$4 sm:$0xff]   ;;  %v12122_v45 = vld [vmem:[%s13025_s8 + $0x1638] ss:$20 sps:$4 sm:$0xff]  }
 0x24a   : > { %7197 = vmatpush1.bf16.msra.mxu0 %v12059_v46  ;;  %7730 = vmatpush1.bf16.msra.mxu1 %v12062_v48  ;;  %v12127_v46 = vld [vmem:[%s13025_s8 + $0x165c] ss:$20 sps:$4 sm:$0xff]   ;;  %v12130_v48 = vld [vmem:[%s13025_s8 + $0x1664] ss:$20 sps:$4 sm:$0xff]  }
 0x24b   : > { %7198 = vmatprep.subr.bf16.mxu0 %v12067_v50  ;;  %7731 = vmatprep.subr.bf16.mxu1 %v12070_v15  ;;  %v13765_v50 = vrot.slane %v342_v41, %v13074_v49  ;;  %v12128_v15 = vld [vmem:[%s13025_s8 + $0x1660] ss:$20 sps:$4 sm:$0xff]  }
 0x24c   : > { %v12179_v41 = vld [vmem:[%s13025_s8 + $0x17c0] ss:$20 sps:$4 sm:$0xff]  }
 0x24e   : > { %7199 = vmatpush1.bf16.msra.mxu0 %v12065_v52  ;;  %7732 = vmatpush1.bf16.msra.mxu1 %v12068_v53  ;;  %v12133_v52 = vld [vmem:[%s13025_s8 + $0x1684] ss:$20 sps:$4 sm:$0xff]   ;;  %v12136_v53 = vld [vmem:[%s13025_s8 + $0x168c] ss:$20 sps:$4 sm:$0xff]  }
 0x24f   : > { %7200 = vmatprep.subr.bf16.mxu0 %v12073_v54  ;;  %7733 = vmatprep.subr.bf16.mxu1 %v12076_v56  ;;  %v358_v54 = vcombine.high %v13765_v50, %v13765_v50  ;;  %v13775_v56 = vpack.c.bf16 %v13684_v12, %v13684_v12  ;;  %v12137_v12 = vld [vmem:[%s13025_s8 + $0x16a8] ss:$20 sps:$4 sm:$0xff]  }
 0x252   : > { %7201 = vmatpush1.bf16.msra.mxu0 %v12071_v58  ;;  %7734 = vmatpush1.bf16.msra.mxu1 %v12074_v61  ;;  %v12131_v58 = vld [vmem:[%s13025_s8 + $0x1680] ss:$20 sps:$4 sm:$0xff]   ;;  %v12134_v61 = vld [vmem:[%s13025_s8 + $0x1688] ss:$20 sps:$4 sm:$0xff]  }
 0x253   : > { %7202 = vmatprep.subr.bf16.mxu0 %v12079_v32  ;;  %7735 = vmatprep.subr.bf16.mxu1 %v12082_v62  ;;  %v12139_v32 = vld [vmem:[%s13025_s8 + $0x16ac] ss:$20 sps:$4 sm:$0xff]   ;;  %v12142_v62 = vld [vmem:[%s13025_s8 + $0x16b4] ss:$20 sps:$4 sm:$0xff]  }
 0x256   : > { %7203 = vmatpush1.bf16.msra.mxu0 %v12077_v22  ;;  %7736 = vmatpush1.bf16.msra.mxu1 %v12080_v0  ;;  %v13781_v22 = vpack.c.bf16 %v358_v54, %v358_v54  ;;  %v12140_v0 = vld [vmem:[%s13025_s8 + $0x16b0] ss:$20 sps:$4 sm:$0xff]   ;;  %v12194_v54 = vld [vmem:[%s13025_s8 + $0x1818] ss:$20 sps:$4 sm:$0xff]  }
 0x257   : > { %7204 = vmatprep.subr.bf16.mxu0 %v12085_v1  ;;  %7737 = vmatprep.subr.bf16.mxu1 %v12088_v42  ;;  %v12145_v1 = vld [vmem:[%s13025_s8 + $0x16d4] ss:$20 sps:$4 sm:$0xff]   ;;  %v12148_v42 = vld [vmem:[%s13025_s8 + $0x16dc] ss:$20 sps:$4 sm:$0xff]  }
 0x25a   : > { %7205 = vmatpush1.bf16.msra.mxu0 %v12083_v3  ;;  %7738 = vmatpush1.bf16.msra.mxu1 %v12086_v4  ;;  %v12143_v3 = vld [vmem:[%s13025_s8 + $0x16d0] ss:$20 sps:$4 sm:$0xff]   ;;  %v12146_v4 = vld [vmem:[%s13025_s8 + $0x16d8] ss:$20 sps:$4 sm:$0xff]  }
 0x25b   : > { %7206 = vmatprep.subr.bf16.mxu0 %v12091_v6  ;;  %7739 = vmatprep.subr.bf16.mxu1 %v12094_v8  ;;  %v12151_v6 = vld [vmem:[%s13025_s8 + $0x16fc] ss:$20 sps:$4 sm:$0xff]   ;;  %v12154_v8 = vld [vmem:[%s13025_s8 + $0x1704] ss:$20 sps:$4 sm:$0xff]  }
 0x25e   : > { %7207 = vmatpush1.bf16.msra.mxu0 %v12089_v10  ;;  %7740 = vmatpush1.bf16.msra.mxu1 %v12092_v11  ;;  %v12149_v10 = vld [vmem:[%s13025_s8 + $0x16f8] ss:$20 sps:$4 sm:$0xff]   ;;  %v12152_v11 = vld [vmem:[%s13025_s8 + $0x1700] ss:$20 sps:$4 sm:$0xff]  }
 0x25f   : > { %7208 = vmatprep.subr.bf16.mxu0 %v12097_v47  ;;  %7741 = vmatprep.subr.bf16.mxu1 %v12100_v14  ;;  %v12157_v47 = vld [vmem:[%s13025_s8 + $0x1724] ss:$20 sps:$4 sm:$0xff]   ;;  %v12160_v14 = vld [vmem:[%s13025_s8 + $0x172c] ss:$20 sps:$4 sm:$0xff]  }
 0x262   : > { %7209 = vmatpush1.bf16.msra.mxu0 %v12095_v17  ;;  %7742 = vmatpush1.bf16.msra.mxu1 %v12098_v18  ;;  %v12155_v17 = vld [vmem:[%s13025_s8 + $0x1720] ss:$20 sps:$4 sm:$0xff]   ;;  %v12158_v18 = vld [vmem:[%s13025_s8 + $0x1728] ss:$20 sps:$4 sm:$0xff]  }
 0x263   : > { %7210 = vmatprep.subr.bf16.mxu0 %v12103_v19  ;;  %7743 = vmatprep.subr.bf16.mxu1 %v12106_v23  ;;  %v12163_v19 = vld [vmem:[%s13025_s8 + $0x174c] ss:$20 sps:$4 sm:$0xff]   ;;  %v12166_v23 = vld [vmem:[%s13025_s8 + $0x1754] ss:$20 sps:$4 sm:$0xff]  }
 0x266   : > { %7211 = vmatpush1.bf16.msra.mxu0 %v12101_v25  ;;  %7744 = vmatpush1.bf16.msra.mxu1 %v12104_v27  ;;  %v12161_v25 = vld [vmem:[%s13025_s8 + $0x1748] ss:$20 sps:$4 sm:$0xff]   ;;  %v12164_v27 = vld [vmem:[%s13025_s8 + $0x1750] ss:$20 sps:$4 sm:$0xff]  }
 0x267   : > { %7212 = vmatprep.subr.bf16.mxu0 %v12109_v28  ;;  %7745 = vmatprep.subr.bf16.mxu1 %v12112_v51  ;;  %v12169_v28 = vld [vmem:[%s13025_s8 + $0x1774] ss:$20 sps:$4 sm:$0xff]   ;;  %v12172_v51 = vld [vmem:[%s13025_s8 + $0x177c] ss:$20 sps:$4 sm:$0xff]  }
 0x26a   : > { %7213 = vmatpush1.bf16.msra.mxu0 %v12107_v31  ;;  %7746 = vmatpush1.bf16.msra.mxu1 %v12110_v26  ;;  %v12167_v31 = vld [vmem:[%s13025_s8 + $0x1770] ss:$20 sps:$4 sm:$0xff]   ;;  %v12170_v26 = vld [vmem:[%s13025_s8 + $0x1778] ss:$20 sps:$4 sm:$0xff]  }
 0x26b   : > { %7214 = vmatprep.subr.bf16.mxu0 %v12115_v33  ;;  %7747 = vmatprep.subr.bf16.mxu1 %v12118_v35  ;;  %v12175_v33 = vld [vmem:[%s13025_s8 + $0x179c] ss:$20 sps:$4 sm:$0xff]   ;;  %v12178_v35 = vld [vmem:[%s13025_s8 + $0x17a4] ss:$20 sps:$4 sm:$0xff]  }
 0x26e   : > { %7215 = vmatpush1.bf16.msra.mxu0 %v12113_v2  ;;  %7748 = vmatpush1.bf16.msra.mxu1 %v12116_v37  ;;  %v12173_v2 = vld [vmem:[%s13025_s8 + $0x1798] ss:$20 sps:$4 sm:$0xff]   ;;  %v12176_v37 = vld [vmem:[%s13025_s8 + $0x17a0] ss:$20 sps:$4 sm:$0xff]  }
 0x26f   : > { %7216 = vmatprep.subr.bf16.mxu0 %v12121_v39  ;;  %7749 = vmatprep.subr.bf16.mxu1 %v12124_v40  ;;  %v12181_v39 = vld [vmem:[%s13025_s8 + $0x17c4] ss:$20 sps:$4 sm:$0xff]   ;;  %v12184_v40 = vld [vmem:[%s13025_s8 + $0x17cc] ss:$20 sps:$4 sm:$0xff]  }
 0x272   : > { %7217 = vmatpush1.bf16.msra.mxu0 %v12119_v29  ;;  %7750 = vmatpush1.bf16.msra.mxu1 %v12122_v45  ;;  %v12182_v29 = vld [vmem:[%s13025_s8 + $0x17c8] ss:$20 sps:$4 sm:$0xff]   ;;  %v12187_v45 = vld [vmem:[%s13025_s8 + $0x17ec] ss:$20 sps:$4 sm:$0xff]  }
 0x273   : > { %7218 = vmatprep.subr.bf16.mxu0 %v12127_v46  ;;  %7751 = vmatprep.subr.bf16.mxu1 %v12130_v48  ;;  %v12190_v46 = vld [vmem:[%s13025_s8 + $0x17f4] ss:$20 sps:$4 sm:$0xff]  }
 0x274   : > { %v12185_v48 = vld [vmem:[%s13025_s8 + $0x17e8] ss:$20 sps:$4 sm:$0xff]  }
 0x276   : > { %7219 = vmatpush1.bf16.msra.mxu0 %v12125_v5  ;;  %7752 = vmatpush1.bf16.msra.mxu1 %v12128_v15  ;;  %v12188_v5 = vld [vmem:[%s13025_s8 + $0x17f0] ss:$20 sps:$4 sm:$0xff]   ;;  %v12193_v15 = vld [vmem:[%s13025_s8 + $0x1814] ss:$20 sps:$4 sm:$0xff]  }
 0x277   : > { %7229 = vmatprep.subr.bf16.mxu0 %v12133_v52  ;;  %7762 = vmatprep.subr.bf16.mxu1 %v12136_v53  ;;  %v12196_v52 = vld [vmem:[%s13025_s8 + $0x181c] ss:$20 sps:$4 sm:$0xff]  }
 0x278   : > { %v12191_v53 = vld [vmem:[%s13025_s8 + $0x1810] ss:$20 sps:$4 sm:$0xff]  }
 0x279   : > { %7221 = vmatmul.mubr.bf16.vlgmr.msra.gmra.mrb[0].mxu0 %v13775_v56  ;;  %7754 = vmatmul.mubr.bf16.vlgmr.msra.gmra.mrb[0].mxu1 %v13775_v56 }
 0x27a   : > { %7230 = vmatpush1.bf16.msra.mxu0 %v12131_v58  ;;  %7763 = vmatpush1.bf16.msra.mxu1 %v12134_v61  ;;  %v12199_v58 = vld [vmem:[%s13025_s8 + $0x183c] ss:$20 sps:$4 sm:$0xff]   ;;  %v12202_v61 = vld [vmem:[%s13025_s8 + $0x1844] ss:$20 sps:$4 sm:$0xff]  }
 0x27b   : > { %7231 = vmatprep.subr.bf16.mxu0 %v12139_v32  ;;  %7764 = vmatprep.subr.bf16.mxu1 %v12142_v62  ;;  %v12197_v32 = vld [vmem:[%s13025_s8 + $0x1838] ss:$20 sps:$4 sm:$0xff]   ;;  %v12200_v62 = vld [vmem:[%s13025_s8 + $0x1840] ss:$20 sps:$4 sm:$0xff]  }
 0x27c   : > { %7261 = vmatprep.mubr.bf16.mxu0 %v13781_v22  ;;  %7794 = vmatprep.mubr.bf16.mxu1 %v13781_v22 }
 0x27e   : > { %7232 = vmatpush1.bf16.msra.mxu0 %v12137_v12  ;;  %7765 = vmatpush1.bf16.msra.mxu1 %v12140_v0  ;;  %v12205_v12 = vld [vmem:[%s13025_s8 + $0x1864] ss:$20 sps:$4 sm:$0xff]   ;;  %v12208_v0 = vld [vmem:[%s13025_s8 + $0x186c] ss:$20 sps:$4 sm:$0xff]  }
 0x27f   : > { %7233 = vmatprep.subr.bf16.mxu0 %v12145_v1  ;;  %7766 = vmatprep.subr.bf16.mxu1 %v12148_v42  ;;  %v12203_v1 = vld [vmem:[%s13025_s8 + $0x1860] ss:$20 sps:$4 sm:$0xff]   ;;  %v12206_v42 = vld [vmem:[%s13025_s8 + $0x1868] ss:$20 sps:$4 sm:$0xff]  }
 0x282   : > { %7234 = vmatpush1.bf16.msra.mxu0 %v12143_v3  ;;  %7767 = vmatpush1.bf16.msra.mxu1 %v12146_v4  ;;  %v12211_v3 = vld [vmem:[%s13025_s8 + $0x188c] ss:$20 sps:$4 sm:$0xff]   ;;  %v12214_v4 = vld [vmem:[%s13025_s8 + $0x1894] ss:$20 sps:$4 sm:$0xff]  }
 0x283   : > { %7235 = vmatprep.subr.bf16.mxu0 %v12151_v6  ;;  %7768 = vmatprep.subr.bf16.mxu1 %v12154_v8  ;;  %v12209_v6 = vld [vmem:[%s13025_s8 + $0x1888] ss:$20 sps:$4 sm:$0xff]   ;;  %v12212_v8 = vld [vmem:[%s13025_s8 + $0x1890] ss:$20 sps:$4 sm:$0xff]  }
 0x286   : > { %7236 = vmatpush1.bf16.msra.mxu0 %v12149_v10  ;;  %7769 = vmatpush1.bf16.msra.mxu1 %v12152_v11  ;;  %v12217_v10 = vld [vmem:[%s13025_s8 + $0x18b4] ss:$20 sps:$4 sm:$0xff]   ;;  %v12220_v11 = vld [vmem:[%s13025_s8 + $0x18bc] ss:$20 sps:$4 sm:$0xff]  }
 0x287   : > { %7237 = vmatprep.subr.bf16.mxu0 %v12157_v47  ;;  %7770 = vmatprep.subr.bf16.mxu1 %v12160_v14  ;;  %v13842_v47 = vld [vmem:[%s14478_s0 + $0x28] sm:$0xff]  ;;  %v12215_v14 = vld [vmem:[%s13025_s8 + $0x18b0] ss:$20 sps:$4 sm:$0xff]  }
 0x28a   : > { %7238 = vmatpush1.bf16.msra.mxu0 %v12155_v17  ;;  %7771 = vmatpush1.bf16.msra.mxu1 %v12158_v18  ;;  %v12218_v17 = vld [vmem:[%s13025_s8 + $0x18b8] ss:$20 sps:$4 sm:$0xff]   ;;  %v12223_v18 = vld [vmem:[%s13025_s8 + $0x18dc] ss:$20 sps:$4 sm:$0xff]  }
 0x28b   : > { %7239 = vmatprep.subr.bf16.mxu0 %v12163_v19  ;;  %7772 = vmatprep.subr.bf16.mxu1 %v12166_v23  ;;  %v12226_v19 = vld [vmem:[%s13025_s8 + $0x18e4] ss:$20 sps:$4 sm:$0xff]   ;;  %v13850_v23 = vrot.slane %v13842_v47, %v13074_v49 }
 0x28e   : > { %7240 = vmatpush1.bf16.msra.mxu0 %v12161_v25  ;;  %7773 = vmatpush1.bf16.msra.mxu1 %v12164_v27  ;;  %v12221_v25 = vld [vmem:[%s13025_s8 + $0x18d8] ss:$20 sps:$4 sm:$0xff]   ;;  %v12224_v27 = vld [vmem:[%s13025_s8 + $0x18e0] ss:$20 sps:$4 sm:$0xff]  }
 0x28f   : > { %7241 = vmatprep.subr.bf16.mxu0 %v12169_v28  ;;  %7774 = vmatprep.subr.bf16.mxu1 %v12172_v51  ;;  %v12230_v28 = vld [vmem:[%s13025_s8 + $0x1904] ss:$20 sps:$4 sm:$0xff]   ;;  %v12233_v51 = vld [vmem:[%s13025_s8 + $0x190c] ss:$20 sps:$4 sm:$0xff]  }
 0x292   : > { %7242 = vmatpush1.bf16.msra.mxu0 %v12167_v31  ;;  %7775 = vmatpush1.bf16.msra.mxu1 %v12170_v26  ;;  %v374_v31 = vcombine.high %v13850_v23, %v13850_v23  ;;  %v13860_v26 = vpack.c.bf16 %v13765_v50, %v13765_v50  ;;  %v12234_v50 = vld [vmem:[%s13025_s8 + $0x1928] ss:$20 sps:$4 sm:$0xff]  }
 0x293   : > { %7243 = vmatprep.subr.bf16.mxu0 %v12175_v33  ;;  %7776 = vmatprep.subr.bf16.mxu1 %v12178_v35  ;;  %v12228_v33 = vld [vmem:[%s13025_s8 + $0x1900] ss:$20 sps:$4 sm:$0xff]   ;;  %v12231_v35 = vld [vmem:[%s13025_s8 + $0x1908] ss:$20 sps:$4 sm:$0xff]  }
 0x296   : > { %7244 = vmatpush1.bf16.msra.mxu0 %v12173_v2  ;;  %7777 = vmatpush1.bf16.msra.mxu1 %v12176_v37  ;;  %v12236_v2 = vld [vmem:[%s13025_s8 + $0x192c] ss:$20 sps:$4 sm:$0xff]   ;;  %v12239_v37 = vld [vmem:[%s13025_s8 + $0x1934] ss:$20 sps:$4 sm:$0xff]  }
 0x297   : > { %7245 = vmatprep.subr.bf16.mxu0 %v12181_v39  ;;  %7778 = vmatprep.subr.bf16.mxu1 %v12184_v40  ;;  %v13866_v39 = vpack.c.bf16 %v374_v31, %v374_v31  ;;  %v12237_v40 = vld [vmem:[%s13025_s8 + $0x1930] ss:$20 sps:$4 sm:$0xff]   ;;  %v12290_v31 = vld [vmem:[%s13025_s8 + $0x1a94] ss:$20 sps:$4 sm:$0xff]  }
 0x29a   : > { %7246 = vmatpush1.bf16.msra.mxu0 %v12179_v41  ;;  %7779 = vmatpush1.bf16.msra.mxu1 %v12182_v29  ;;  %v12242_v41 = vld [vmem:[%s13025_s8 + $0x1954] ss:$20 sps:$4 sm:$0xff]   ;;  %v12245_v29 = vld [vmem:[%s13025_s8 + $0x195c] ss:$20 sps:$4 sm:$0xff]  }
 0x29b   : > { %7247 = vmatprep.subr.bf16.mxu0 %v12187_v45  ;;  %7780 = vmatprep.subr.bf16.mxu1 %v12190_v46  ;;  %v12240_v45 = vld [vmem:[%s13025_s8 + $0x1950] ss:$20 sps:$4 sm:$0xff]   ;;  %v12243_v46 = vld [vmem:[%s13025_s8 + $0x1958] ss:$20 sps:$4 sm:$0xff]  }
 0x29e   : > { %7248 = vmatpush1.bf16.msra.mxu0 %v12185_v48  ;;  %7781 = vmatpush1.bf16.msra.mxu1 %v12188_v5  ;;  %v12248_v48 = vld [vmem:[%s13025_s8 + $0x197c] ss:$20 sps:$4 sm:$0xff]   ;;  %v12251_v5 = vld [vmem:[%s13025_s8 + $0x1984] ss:$20 sps:$4 sm:$0xff]  }
 0x29f   : > { %7249 = vmatprep.subr.bf16.mxu0 %v12193_v15  ;;  %7782 = vmatprep.subr.bf16.mxu1 %v12196_v52  ;;  %v12246_v15 = vld [vmem:[%s13025_s8 + $0x1978] ss:$20 sps:$4 sm:$0xff]   ;;  %v12249_v52 = vld [vmem:[%s13025_s8 + $0x1980] ss:$20 sps:$4 sm:$0xff]  }
 0x2a2   : > { %7250 = vmatpush1.bf16.msra.mxu0 %v12191_v53  ;;  %7783 = vmatpush1.bf16.msra.mxu1 %v12194_v54  ;;  %v12254_v53 = vld [vmem:[%s13025_s8 + $0x19a4] ss:$20 sps:$4 sm:$0xff]   ;;  %v12257_v54 = vld [vmem:[%s13025_s8 + $0x19ac] ss:$20 sps:$4 sm:$0xff]  }
 0x2a3   : > { %7251 = vmatprep.subr.bf16.mxu0 %v12199_v58  ;;  %7784 = vmatprep.subr.bf16.mxu1 %v12202_v61  ;;  %v12252_v58 = vld [vmem:[%s13025_s8 + $0x19a0] ss:$20 sps:$4 sm:$0xff]   ;;  %v12255_v61 = vld [vmem:[%s13025_s8 + $0x19a8] ss:$20 sps:$4 sm:$0xff]  }
 0x2a6   : > { %7252 = vmatpush1.bf16.msra.mxu0 %v12197_v32  ;;  %7785 = vmatpush1.bf16.msra.mxu1 %v12200_v62  ;;  %v12260_v32 = vld [vmem:[%s13025_s8 + $0x19cc] ss:$20 sps:$4 sm:$0xff]   ;;  %v12263_v62 = vld [vmem:[%s13025_s8 + $0x19d4] ss:$20 sps:$4 sm:$0xff]  }
 0x2a7   : > { %7253 = vmatprep.subr.bf16.mxu0 %v12205_v12  ;;  %7786 = vmatprep.subr.bf16.mxu1 %v12208_v0  ;;  %v12258_v12 = vld [vmem:[%s13025_s8 + $0x19c8] ss:$20 sps:$4 sm:$0xff]   ;;  %v12261_v0 = vld [vmem:[%s13025_s8 + $0x19d0] ss:$20 sps:$4 sm:$0xff]  }
 0x2aa   : > { %7254 = vmatpush1.bf16.msra.mxu0 %v12203_v1  ;;  %7787 = vmatpush1.bf16.msra.mxu1 %v12206_v42  ;;  %v12266_v1 = vld [vmem:[%s13025_s8 + $0x19f4] ss:$20 sps:$4 sm:$0xff]   ;;  %v12269_v42 = vld [vmem:[%s13025_s8 + $0x19fc] ss:$20 sps:$4 sm:$0xff]  }
 0x2ab   : > { %7255 = vmatprep.subr.bf16.mxu0 %v12211_v3  ;;  %7788 = vmatprep.subr.bf16.mxu1 %v12214_v4  ;;  %v12264_v3 = vld [vmem:[%s13025_s8 + $0x19f0] ss:$20 sps:$4 sm:$0xff]   ;;  %v12267_v4 = vld [vmem:[%s13025_s8 + $0x19f8] ss:$20 sps:$4 sm:$0xff]  }
 0x2ae   : > { %7256 = vmatpush1.bf16.msra.mxu0 %v12209_v6  ;;  %7789 = vmatpush1.bf16.msra.mxu1 %v12212_v8  ;;  %v12272_v6 = vld [vmem:[%s13025_s8 + $0x1a1c] ss:$20 sps:$4 sm:$0xff]   ;;  %v12275_v8 = vld [vmem:[%s13025_s8 + $0x1a24] ss:$20 sps:$4 sm:$0xff]  }
 0x2af   : > { %7257 = vmatprep.subr.bf16.mxu0 %v12217_v10  ;;  %7790 = vmatprep.subr.bf16.mxu1 %v12220_v11  ;;  %v12270_v10 = vld [vmem:[%s13025_s8 + $0x1a18] ss:$20 sps:$4 sm:$0xff]   ;;  %v12273_v11 = vld [vmem:[%s13025_s8 + $0x1a20] ss:$20 sps:$4 sm:$0xff]  }
 0x2b2   : > { %7258 = vmatpush1.bf16.msra.mxu0 %v12215_v14  ;;  %7791 = vmatpush1.bf16.msra.mxu1 %v12218_v17  ;;  %v12278_v14 = vld [vmem:[%s13025_s8 + $0x1a44] ss:$20 sps:$4 sm:$0xff]   ;;  %v12281_v17 = vld [vmem:[%s13025_s8 + $0x1a4c] ss:$20 sps:$4 sm:$0xff]  }
 0x2b3   : > { %7259 = vmatprep.subr.bf16.mxu0 %v12223_v18  ;;  %7792 = vmatprep.subr.bf16.mxu1 %v12226_v19  ;;  %v12276_v18 = vld [vmem:[%s13025_s8 + $0x1a40] ss:$20 sps:$4 sm:$0xff]   ;;  %v12279_v19 = vld [vmem:[%s13025_s8 + $0x1a48] ss:$20 sps:$4 sm:$0xff]  }
 0x2b6   : > { %7260 = vmatpush1.bf16.msra.mxu0 %v12221_v25  ;;  %7793 = vmatpush1.bf16.msra.mxu1 %v12224_v27  ;;  %v12284_v25 = vld [vmem:[%s13025_s8 + $0x1a6c] ss:$20 sps:$4 sm:$0xff]   ;;  %v12287_v27 = vld [vmem:[%s13025_s8 + $0x1a74] ss:$20 sps:$4 sm:$0xff]  }
 0x2b7   : > { %7270 = vmatprep.subr.bf16.mxu0 %v12230_v28  ;;  %7803 = vmatprep.subr.bf16.mxu1 %v12233_v51  ;;  %v12282_v28 = vld [vmem:[%s13025_s8 + $0x1a68] ss:$20 sps:$4 sm:$0xff]   ;;  %v12285_v51 = vld [vmem:[%s13025_s8 + $0x1a70] ss:$20 sps:$4 sm:$0xff]  }
 0x2b9   : > { %7262 = vmatmul.mubr.bf16.vlgmr.msra.gmra.mrb[0].mxu0 %v13860_v26  ;;  %7795 = vmatmul.mubr.bf16.vlgmr.msra.gmra.mrb[0].mxu1 %v13860_v26 }
 0x2ba   : > { %7271 = vmatpush1.bf16.msra.mxu0 %v12228_v33  ;;  %7804 = vmatpush1.bf16.msra.mxu1 %v12231_v35  ;;  %v12293_v33 = vld [vmem:[%s13025_s8 + $0x1a9c] ss:$20 sps:$4 sm:$0xff]  }
 0x2bb   : > { %7272 = vmatprep.subr.bf16.mxu0 %v12236_v2  ;;  %7805 = vmatprep.subr.bf16.mxu1 %v12239_v37  ;;  %v12288_v35 = vld [vmem:[%s13025_s8 + $0x1a90] ss:$20 sps:$4 sm:$0xff]   ;;  %v12291_v2 = vld [vmem:[%s13025_s8 + $0x1a98] ss:$20 sps:$4 sm:$0xff]  }
 0x2bc   : > { %7302 = vmatprep.mubr.bf16.mxu0 %v13866_v39  ;;  %7835 = vmatprep.mubr.bf16.mxu1 %v13866_v39  ;;  %v12296_v37 = vld [vmem:[%s13025_s8 + $0x1abc] ss:$20 sps:$4 sm:$0xff]  }
 0x2be   : > { %7273 = vmatpush1.bf16.msra.mxu0 %v12234_v50  ;;  %7806 = vmatpush1.bf16.msra.mxu1 %v12237_v40  ;;  %v12299_v50 = vld [vmem:[%s13025_s8 + $0x1ac4] ss:$20 sps:$4 sm:$0xff]  }
 0x2bf   : > { %7274 = vmatprep.subr.bf16.mxu0 %v12242_v41  ;;  %7807 = vmatprep.subr.bf16.mxu1 %v12245_v29  ;;  %v12294_v40 = vld [vmem:[%s13025_s8 + $0x1ab8] ss:$20 sps:$4 sm:$0xff]   ;;  %v12297_v41 = vld [vmem:[%s13025_s8 + $0x1ac0] ss:$20 sps:$4 sm:$0xff]  }
 0x2c0   : > { %v12302_v29 = vld [vmem:[%s13025_s8 + $0x1ae4] ss:$20 sps:$4 sm:$0xff]  }
 0x2c2   : > { %7275 = vmatpush1.bf16.msra.mxu0 %v12240_v45  ;;  %7808 = vmatpush1.bf16.msra.mxu1 %v12243_v46  ;;  %v12305_v45 = vld [vmem:[%s13025_s8 + $0x1aec] ss:$20 sps:$4 sm:$0xff]  }
 0x2c3   : > { %7276 = vmatprep.subr.bf16.mxu0 %v12248_v48  ;;  %7809 = vmatprep.subr.bf16.mxu1 %v12251_v5  ;;  %v12300_v46 = vld [vmem:[%s13025_s8 + $0x1ae0] ss:$20 sps:$4 sm:$0xff]   ;;  %v12303_v48 = vld [vmem:[%s13025_s8 + $0x1ae8] ss:$20 sps:$4 sm:$0xff]  }
 0x2c4   : > { %v12308_v5 = vld [vmem:[%s13025_s8 + $0x1b0c] ss:$20 sps:$4 sm:$0xff]  }
 0x2c6   : > { %7277 = vmatpush1.bf16.msra.mxu0 %v12246_v15  ;;  %7810 = vmatpush1.bf16.msra.mxu1 %v12249_v52  ;;  %v12311_v15 = vld [vmem:[%s13025_s8 + $0x1b14] ss:$20 sps:$4 sm:$0xff]  }
 0x2c7   : > { %7278 = vmatprep.subr.bf16.mxu0 %v12254_v53  ;;  %7811 = vmatprep.subr.bf16.mxu1 %v12257_v54  ;;  %v12306_v52 = vld [vmem:[%s13025_s8 + $0x1b08] ss:$20 sps:$4 sm:$0xff]   ;;  %v12309_v53 = vld [vmem:[%s13025_s8 + $0x1b10] ss:$20 sps:$4 sm:$0xff]  }
 0x2c8   : > { %v12314_v54 = vld [vmem:[%s13025_s8 + $0x1b34] ss:$20 sps:$4 sm:$0xff]  }
 0x2ca   : > { %7279 = vmatpush1.bf16.msra.mxu0 %v12252_v58  ;;  %7812 = vmatpush1.bf16.msra.mxu1 %v12255_v61  ;;  %v12317_v58 = vld [vmem:[%s13025_s8 + $0x1b3c] ss:$20 sps:$4 sm:$0xff]  }
 0x2cb   : > { %7280 = vmatprep.subr.bf16.mxu0 %v12260_v32  ;;  %7813 = vmatprep.subr.bf16.mxu1 %v12263_v62  ;;  %v12312_v61 = vld [vmem:[%s13025_s8 + $0x1b30] ss:$20 sps:$4 sm:$0xff]   ;;  %v359_v32 = vcombine.high %v13842_v47, %v13842_v47  ;;  %v12315_v62 = vld [vmem:[%s13025_s8 + $0x1b38] ss:$20 sps:$4 sm:$0xff]   ;;  %v12321_v47 = vld [vmem:[%s13025_s8 + $0x1b60] ss:$20 sps:$4 sm:$0xff]  }
 0x2ce   : > { %7281 = vmatpush1.bf16.msra.mxu0 %v12258_v12  ;;  %7814 = vmatpush1.bf16.msra.mxu1 %v12261_v0  ;;  %v12320_v12 = vld [vmem:[%s13025_s8 + $0x1b5c] ss:$20 sps:$4 sm:$0xff]   ;;  %v12323_v0 = vld [vmem:[%s13025_s8 + $0x1b64] ss:$20 sps:$4 sm:$0xff]  }
 0x2cf   : > { %7282 = vmatprep.subr.bf16.mxu0 %v12266_v1  ;;  %7815 = vmatprep.subr.bf16.mxu1 %v12269_v42  ;;  %v12318_v1 = vld [vmem:[%s13025_s8 + $0x1b58] ss:$20 sps:$4 sm:$0xff]   ;;  %v13932_v42 = vrot.slane %v359_v32, %v13074_v49  ;;  %v12369_v32 = vld [vmem:[%s13025_s8 + $0x1ca0] ss:$20 sps:$4 sm:$0xff]  }
 0x2d2   : > { %7283 = vmatpush1.bf16.msra.mxu0 %v12264_v3  ;;  %7816 = vmatpush1.bf16.msra.mxu1 %v12267_v4  ;;  %v12326_v3 = vld [vmem:[%s13025_s8 + $0x1b84] ss:$20 sps:$4 sm:$0xff]   ;;  %v12329_v4 = vld [vmem:[%s13025_s8 + $0x1b8c] ss:$20 sps:$4 sm:$0xff]  }
 0x2d3   : > { %7284 = vmatprep.subr.bf16.mxu0 %v12272_v6  ;;  %7817 = vmatprep.subr.bf16.mxu1 %v12275_v8  ;;  %v12324_v6 = vld [vmem:[%s13025_s8 + $0x1b80] ss:$20 sps:$4 sm:$0xff]   ;;  %v12327_v8 = vld [vmem:[%s13025_s8 + $0x1b88] ss:$20 sps:$4 sm:$0xff]  }
 0x2d6   : > { %7285 = vmatpush1.bf16.msra.mxu0 %v12270_v10  ;;  %7818 = vmatpush1.bf16.msra.mxu1 %v12273_v11  ;;  %v375_v10 = vcombine.high %v13932_v42, %v13932_v42  ;;  %v13943_v11 = vpack.c.bf16 %v13850_v23, %v13850_v23  ;;  %v12333_v23 = vld [vmem:[%s13025_s8 + $0x1bb0] ss:$20 sps:$4 sm:$0xff]  }
 0x2d7   : > { %7286 = vmatprep.subr.bf16.mxu0 %v12278_v14  ;;  %7819 = vmatprep.subr.bf16.mxu1 %v12281_v17  ;;  %v12332_v14 = vld [vmem:[%s13025_s8 + $0x1bac] ss:$20 sps:$4 sm:$0xff]   ;;  %v12335_v17 = vld [vmem:[%s13025_s8 + $0x1bb4] ss:$20 sps:$4 sm:$0xff]  }
 0x2da   : > { %7287 = vmatpush1.bf16.msra.mxu0 %v12276_v18  ;;  %7820 = vmatpush1.bf16.msra.mxu1 %v12279_v19  ;;  %v12330_v18 = vld [vmem:[%s13025_s8 + $0x1ba8] ss:$20 sps:$4 sm:$0xff]   ;;  %v13948_v19 = vpack.c.bf16 %v375_v10, %v375_v10 }
 0x2db   : > { %7288 = vmatprep.subr.bf16.mxu0 %v12284_v25  ;;  %7821 = vmatprep.subr.bf16.mxu1 %v12287_v27  ;;  %v12338_v25 = vld [vmem:[%s13025_s8 + $0x1bd4] ss:$20 sps:$4 sm:$0xff]   ;;  %v12341_v27 = vld [vmem:[%s13025_s8 + $0x1bdc] ss:$20 sps:$4 sm:$0xff]  }
 0x2dc   : > { %v12389_v10 = vld [vmem:[%s13025_s8 + $0x1d1c] ss:$20 sps:$4 sm:$0xff]  }
 0x2de   : > { %7289 = vmatpush1.bf16.msra.mxu0 %v12282_v28  ;;  %7822 = vmatpush1.bf16.msra.mxu1 %v12285_v51  ;;  %v12336_v28 = vld [vmem:[%s13025_s8 + $0x1bd0] ss:$20 sps:$4 sm:$0xff]   ;;  %v12339_v51 = vld [vmem:[%s13025_s8 + $0x1bd8] ss:$20 sps:$4 sm:$0xff]  }
 0x2df   : > { %7290 = vmatprep.subr.bf16.mxu0 %v12290_v31  ;;  %7823 = vmatprep.subr.bf16.mxu1 %v12293_v33  ;;  %v12344_v31 = vld [vmem:[%s13025_s8 + $0x1bfc] ss:$20 sps:$4 sm:$0xff]   ;;  %v12347_v33 = vld [vmem:[%s13025_s8 + $0x1c04] ss:$20 sps:$4 sm:$0xff]  }
 0x2e2   : > { %7291 = vmatpush1.bf16.msra.mxu0 %v12288_v35  ;;  %7824 = vmatpush1.bf16.msra.mxu1 %v12291_v2  ;;  %v12342_v35 = vld [vmem:[%s13025_s8 + $0x1bf8] ss:$20 sps:$4 sm:$0xff]   ;;  %v12345_v2 = vld [vmem:[%s13025_s8 + $0x1c00] ss:$20 sps:$4 sm:$0xff]  }
 0x2e3   : > { %7292 = vmatprep.subr.bf16.mxu0 %v12296_v37  ;;  %7825 = vmatprep.subr.bf16.mxu1 %v12299_v50  ;;  %v12350_v37 = vld [vmem:[%s13025_s8 + $0x1c24] ss:$20 sps:$4 sm:$0xff]   ;;  %v12353_v50 = vld [vmem:[%s13025_s8 + $0x1c2c] ss:$20 sps:$4 sm:$0xff]  }
 0x2e6   : > { %7293 = vmatpush1.bf16.msra.mxu0 %v12294_v40  ;;  %7826 = vmatpush1.bf16.msra.mxu1 %v12297_v41  ;;  %v12348_v40 = vld [vmem:[%s13025_s8 + $0x1c20] ss:$20 sps:$4 sm:$0xff]   ;;  %v12351_v41 = vld [vmem:[%s13025_s8 + $0x1c28] ss:$20 sps:$4 sm:$0xff]  }
 0x2e7   : > { %7294 = vmatprep.subr.bf16.mxu0 %v12302_v29  ;;  %7827 = vmatprep.subr.bf16.mxu1 %v12305_v45  ;;  %v12356_v29 = vld [vmem:[%s13025_s8 + $0x1c4c] ss:$20 sps:$4 sm:$0xff]   ;;  %v12359_v45 = vld [vmem:[%s13025_s8 + $0x1c54] ss:$20 sps:$4 sm:$0xff]  }
 0x2ea   : > { %7295 = vmatpush1.bf16.msra.mxu0 %v12300_v46  ;;  %7828 = vmatpush1.bf16.msra.mxu1 %v12303_v48  ;;  %v12354_v46 = vld [vmem:[%s13025_s8 + $0x1c48] ss:$20 sps:$4 sm:$0xff]   ;;  %v12357_v48 = vld [vmem:[%s13025_s8 + $0x1c50] ss:$20 sps:$4 sm:$0xff]  }
 0x2eb   : > { %7296 = vmatprep.subr.bf16.mxu0 %v12308_v5  ;;  %7829 = vmatprep.subr.bf16.mxu1 %v12311_v15  ;;  %v12362_v5 = vld [vmem:[%s13025_s8 + $0x1c74] ss:$20 sps:$4 sm:$0xff]   ;;  %v12365_v15 = vld [vmem:[%s13025_s8 + $0x1c7c] ss:$20 sps:$4 sm:$0xff]  }
 0x2ee   : > { %7297 = vmatpush1.bf16.msra.mxu0 %v12306_v52  ;;  %7830 = vmatpush1.bf16.msra.mxu1 %v12309_v53  ;;  %v12360_v52 = vld [vmem:[%s13025_s8 + $0x1c70] ss:$20 sps:$4 sm:$0xff]   ;;  %v12363_v53 = vld [vmem:[%s13025_s8 + $0x1c78] ss:$20 sps:$4 sm:$0xff]  }
 0x2ef   : > { %7298 = vmatprep.subr.bf16.mxu0 %v12314_v54  ;;  %7831 = vmatprep.subr.bf16.mxu1 %v12317_v58  ;;  %v12368_v54 = vld [vmem:[%s13025_s8 + $0x1c9c] ss:$20 sps:$4 sm:$0xff]   ;;  %v12371_v58 = vld [vmem:[%s13025_s8 + $0x1ca4] ss:$20 sps:$4 sm:$0xff]  }
 0x2f2   : > { %7299 = vmatpush1.bf16.msra.mxu0 %v12312_v61  ;;  %7832 = vmatpush1.bf16.msra.mxu1 %v12315_v62  ;;  %v12366_v61 = vld [vmem:[%s13025_s8 + $0x1c98] ss:$20 sps:$4 sm:$0xff]  }
 0x2f3   : > { %7300 = vmatprep.subr.bf16.mxu0 %v12320_v12  ;;  %7833 = vmatprep.subr.bf16.mxu1 %v12323_v0  ;;  %v12374_v62 = vld [vmem:[%s13025_s8 + $0x1cc4] ss:$20 sps:$4 sm:$0xff]   ;;  %v12377_v12 = vld [vmem:[%s13025_s8 + $0x1ccc] ss:$20 sps:$4 sm:$0xff]  }
 0x2f4   : > { %v12372_v0 = vld [vmem:[%s13025_s8 + $0x1cc0] ss:$20 sps:$4 sm:$0xff]  }
 0x2f6   : > { %7301 = vmatpush1.bf16.msra.mxu0 %v12318_v1  ;;  %7834 = vmatpush1.bf16.msra.mxu1 %v12321_v47  ;;  %v12375_v1 = vld [vmem:[%s13025_s8 + $0x1cc8] ss:$20 sps:$4 sm:$0xff]   ;;  %v12380_v47 = vld [vmem:[%s13025_s8 + $0x1cec] ss:$20 sps:$4 sm:$0xff]  }
 0x2f7   : > { %7311 = vmatprep.subr.bf16.mxu0 %v12326_v3  ;;  %7844 = vmatprep.subr.bf16.mxu1 %v12329_v4  ;;  %v12383_v3 = vld [vmem:[%s13025_s8 + $0x1cf4] ss:$20 sps:$4 sm:$0xff]  }
 0x2f8   : > { %v12378_v4 = vld [vmem:[%s13025_s8 + $0x1ce8] ss:$20 sps:$4 sm:$0xff]  }
 0x2f9   : > { %7303 = vmatmul.mubr.bf16.vlgmr.msra.gmra.mrb[0].mxu0 %v13943_v11  ;;  %7836 = vmatmul.mubr.bf16.vlgmr.msra.gmra.mrb[0].mxu1 %v13943_v11 }
 0x2fa   : > { %7312 = vmatpush1.bf16.msra.mxu0 %v12324_v6  ;;  %7845 = vmatpush1.bf16.msra.mxu1 %v12327_v8  ;;  %v12381_v6 = vld [vmem:[%s13025_s8 + $0x1cf0] ss:$20 sps:$4 sm:$0xff]   ;;  %v12386_v8 = vld [vmem:[%s13025_s8 + $0x1d14] ss:$20 sps:$4 sm:$0xff]  }
 0x2fb   : > { %7313 = vmatprep.subr.bf16.mxu0 %v12332_v14  ;;  %7846 = vmatprep.subr.bf16.mxu1 %v12335_v17  ;;  %v12384_v14 = vld [vmem:[%s13025_s8 + $0x1d10] ss:$20 sps:$4 sm:$0xff]   ;;  %v12387_v17 = vld [vmem:[%s13025_s8 + $0x1d18] ss:$20 sps:$4 sm:$0xff]  }
 0x2fc   : > { %7343 = vmatprep.mubr.bf16.mxu0 %v13948_v19  ;;  %7876 = vmatprep.mubr.bf16.mxu1 %v13948_v19 }
 0x2fe   : > { %7314 = vmatpush1.bf16.msra.mxu0 %v12330_v18  ;;  %7847 = vmatpush1.bf16.msra.mxu1 %v12333_v23  ;;  %v12392_v18 = vld [vmem:[%s13025_s8 + $0x1d3c] ss:$20 sps:$4 sm:$0xff]   ;;  %v12395_v23 = vld [vmem:[%s13025_s8 + $0x1d44] ss:$20 sps:$4 sm:$0xff]  }
 0x2ff   : > { %7315 = vmatprep.subr.bf16.mxu0 %v12338_v25  ;;  %7848 = vmatprep.subr.bf16.mxu1 %v12341_v27  ;;  %v12390_v25 = vld [vmem:[%s13025_s8 + $0x1d38] ss:$20 sps:$4 sm:$0xff]   ;;  %v12393_v27 = vld [vmem:[%s13025_s8 + $0x1d40] ss:$20 sps:$4 sm:$0xff]  }
 0x302   : > { %7316 = vmatpush1.bf16.msra.mxu0 %v12336_v28  ;;  %7849 = vmatpush1.bf16.msra.mxu1 %v12339_v51  ;;  %v12398_v28 = vld [vmem:[%s13025_s8 + $0x1d64] ss:$20 sps:$4 sm:$0xff]   ;;  %v12401_v51 = vld [vmem:[%s13025_s8 + $0x1d6c] ss:$20 sps:$4 sm:$0xff]  }
 0x303   : > { %7317 = vmatprep.subr.bf16.mxu0 %v12344_v31  ;;  %7850 = vmatprep.subr.bf16.mxu1 %v12347_v33  ;;  %v12396_v31 = vld [vmem:[%s13025_s8 + $0x1d60] ss:$20 sps:$4 sm:$0xff]   ;;  %v12399_v33 = vld [vmem:[%s13025_s8 + $0x1d68] ss:$20 sps:$4 sm:$0xff]  }
 0x306   : > { %7318 = vmatpush1.bf16.msra.mxu0 %v12342_v35  ;;  %7851 = vmatpush1.bf16.msra.mxu1 %v12345_v2  ;;  %v12404_v35 = vld [vmem:[%s13025_s8 + $0x1d8c] ss:$20 sps:$4 sm:$0xff]   ;;  %v12407_v2 = vld [vmem:[%s13025_s8 + $0x1d94] ss:$20 sps:$4 sm:$0xff]  }
 0x307   : > { %7319 = vmatprep.subr.bf16.mxu0 %v12350_v37  ;;  %7852 = vmatprep.subr.bf16.mxu1 %v12353_v50  ;;  %v12402_v37 = vld [vmem:[%s13025_s8 + $0x1d88] ss:$20 sps:$4 sm:$0xff]   ;;  %v12405_v50 = vld [vmem:[%s13025_s8 + $0x1d90] ss:$20 sps:$4 sm:$0xff]  }
 0x30a   : > { %7320 = vmatpush1.bf16.msra.mxu0 %v12348_v40  ;;  %7853 = vmatpush1.bf16.msra.mxu1 %v12351_v41  ;;  %v12410_v40 = vld [vmem:[%s13025_s8 + $0x1db4] ss:$20 sps:$4 sm:$0xff]   ;;  %v12413_v41 = vld [vmem:[%s13025_s8 + $0x1dbc] ss:$20 sps:$4 sm:$0xff]  }
 0x30b   : > { %7321 = vmatprep.subr.bf16.mxu0 %v12356_v29  ;;  %7854 = vmatprep.subr.bf16.mxu1 %v12359_v45  ;;  %v12408_v29 = vld [vmem:[%s13025_s8 + $0x1db0] ss:$20 sps:$4 sm:$0xff]   ;;  %v12411_v45 = vld [vmem:[%s13025_s8 + $0x1db8] ss:$20 sps:$4 sm:$0xff]  }
 0x30e   : > { %7322 = vmatpush1.bf16.msra.mxu0 %v12354_v46  ;;  %7855 = vmatpush1.bf16.msra.mxu1 %v12357_v48  ;;  %v12416_v46 = vld [vmem:[%s13025_s8 + $0x1ddc] ss:$20 sps:$4 sm:$0xff]   ;;  %v12419_v48 = vld [vmem:[%s13025_s8 + $0x1de4] ss:$20 sps:$4 sm:$0xff]  }
 0x30f   : > { %7323 = vmatprep.subr.bf16.mxu0 %v12362_v5  ;;  %7856 = vmatprep.subr.bf16.mxu1 %v12365_v15  ;;  %v12414_v5 = vld [vmem:[%s13025_s8 + $0x1dd8] ss:$20 sps:$4 sm:$0xff]   ;;  %v12417_v15 = vld [vmem:[%s13025_s8 + $0x1de0] ss:$20 sps:$4 sm:$0xff]  }
 0x312   : > { %7324 = vmatpush1.bf16.msra.mxu0 %v12360_v52  ;;  %7857 = vmatpush1.bf16.msra.mxu1 %v12363_v53  ;;  %v12423_v52 = vld [vmem:[%s13025_s8 + $0x1e04] ss:$20 sps:$4 sm:$0xff]   ;;  %v12426_v53 = vld [vmem:[%s13025_s8 + $0x1e0c] ss:$20 sps:$4 sm:$0xff]  }
 0x313   : > { %7325 = vmatprep.subr.bf16.mxu0 %v12368_v54  ;;  %7858 = vmatprep.subr.bf16.mxu1 %v12371_v58  ;;  %v14015_v54 = vpack.c.bf16 %v13932_v42, %v13932_v42  ;;  %v12421_v58 = vld [vmem:[%s13025_s8 + $0x1e00] ss:$20 sps:$4 sm:$0xff]   ;;  %v12427_v42 = vld [vmem:[%s13025_s8 + $0x1e28] ss:$20 sps:$4 sm:$0xff]  }
 0x316   : > { %7326 = vmatpush1.bf16.msra.mxu0 %v12366_v61  ;;  %7859 = vmatpush1.bf16.msra.mxu1 %v12369_v32  ;;  %v12424_v61 = vld [vmem:[%s13025_s8 + $0x1e08] ss:$20 sps:$4 sm:$0xff]   ;;  %v12429_v32 = vld [vmem:[%s13025_s8 + $0x1e2c] ss:$20 sps:$4 sm:$0xff]  }
 0x317   : > { %7327 = vmatprep.subr.bf16.mxu0 %v12374_v62  ;;  %7860 = vmatprep.subr.bf16.mxu1 %v12377_v12  ;;  %v12432_v62 = vld [vmem:[%s13025_s8 + $0x1e34] ss:$20 sps:$4 sm:$0xff]   ;;  %v12430_v12 = vld [vmem:[%s13025_s8 + $0x1e30] ss:$20 sps:$4 sm:$0xff]  }
 0x31a   : > { %7328 = vmatpush1.bf16.msra.mxu0 %v12372_v0  ;;  %7861 = vmatpush1.bf16.msra.mxu1 %v12375_v1  ;;  %v12435_v0 = vld [vmem:[%s13025_s8 + $0x1e54] ss:$20 sps:$4 sm:$0xff]   ;;  %v12438_v1 = vld [vmem:[%s13025_s8 + $0x1e5c] ss:$20 sps:$4 sm:$0xff]  }
 0x31b   : > { %7329 = vmatprep.subr.bf16.mxu0 %v12380_v47  ;;  %7862 = vmatprep.subr.bf16.mxu1 %v12383_v3  ;;  %v12899_v47 = vmov 0   ;;  %v12433_v3 = vld [vmem:[%s13025_s8 + $0x1e50] ss:$20 sps:$4 sm:$0xff]  }
 0x31e   : > { %7330 = vmatpush1.bf16.msra.mxu0 %v12378_v4  ;;  %7863 = vmatpush1.bf16.msra.mxu1 %v12381_v6  ;;  %v12436_v4 = vld [vmem:[%s13025_s8 + $0x1e58] ss:$20 sps:$4 sm:$0xff]   ;;  %v12441_v6 = vld [vmem:[%s13025_s8 + $0x1e7c] ss:$20 sps:$4 sm:$0xff]  }
 0x31f   : > { %7331 = vmatprep.subr.bf16.mxu0 %v12386_v8  ;;  %7864 = vmatprep.subr.bf16.mxu1 %v12389_v10  ;;  %v12444_v8 = vld [vmem:[%s13025_s8 + $0x1e84] ss:$20 sps:$4 sm:$0xff]  }
 0x320   : > { %v12439_v10 = vld [vmem:[%s13025_s8 + $0x1e78] ss:$20 sps:$4 sm:$0xff]  }
 0x322   : > { %7332 = vmatpush1.bf16.msra.mxu0 %v12384_v14  ;;  %7865 = vmatpush1.bf16.msra.mxu1 %v12387_v17  ;;  %v12442_v14 = vld [vmem:[%s13025_s8 + $0x1e80] ss:$20 sps:$4 sm:$0xff]   ;;  %v12447_v17 = vld [vmem:[%s13025_s8 + $0x1ea4] ss:$20 sps:$4 sm:$0xff]  }
 0x323   : > { %7333 = vmatprep.subr.bf16.mxu0 %v12392_v18  ;;  %7866 = vmatprep.subr.bf16.mxu1 %v12395_v23  ;;  %v12450_v18 = vld [vmem:[%s13025_s8 + $0x1eac] ss:$20 sps:$4 sm:$0xff]  }
 0x324   : > { %v12445_v23 = vld [vmem:[%s13025_s8 + $0x1ea0] ss:$20 sps:$4 sm:$0xff]  }
 0x326   : > { %7334 = vmatpush1.bf16.msra.mxu0 %v12390_v25  ;;  %7867 = vmatpush1.bf16.msra.mxu1 %v12393_v27  ;;  %v12448_v25 = vld [vmem:[%s13025_s8 + $0x1ea8] ss:$20 sps:$4 sm:$0xff]   ;;  %v12453_v27 = vld [vmem:[%s13025_s8 + $0x1ecc] ss:$20 sps:$4 sm:$0xff]  }
 0x327   : > { %7335 = vmatprep.subr.bf16.mxu0 %v12398_v28  ;;  %7868 = vmatprep.subr.bf16.mxu1 %v12401_v51  ;;  %v12456_v28 = vld [vmem:[%s13025_s8 + $0x1ed4] ss:$20 sps:$4 sm:$0xff]  }
 0x328   : > { %v12451_v51 = vld [vmem:[%s13025_s8 + $0x1ec8] ss:$20 sps:$4 sm:$0xff]  }
 0x32a   : > { %7336 = vmatpush1.bf16.msra.mxu0 %v12396_v31  ;;  %7869 = vmatpush1.bf16.msra.mxu1 %v12399_v33  ;;  %v12454_v31 = vld [vmem:[%s13025_s8 + $0x1ed0] ss:$20 sps:$4 sm:$0xff]   ;;  %v12459_v33 = vld [vmem:[%s13025_s8 + $0x1ef4] ss:$20 sps:$4 sm:$0xff]  }
 0x32b   : > { %7337 = vmatprep.subr.bf16.mxu0 %v12404_v35  ;;  %7870 = vmatprep.subr.bf16.mxu1 %v12407_v2  ;;  %v12462_v35 = vld [vmem:[%s13025_s8 + $0x1efc] ss:$20 sps:$4 sm:$0xff]  }
 0x32c   : > { %v12457_v2 = vld [vmem:[%s13025_s8 + $0x1ef0] ss:$20 sps:$4 sm:$0xff]  }
 0x32e   : > { %7338 = vmatpush1.bf16.msra.mxu0 %v12402_v37  ;;  %7871 = vmatpush1.bf16.msra.mxu1 %v12405_v50  ;;  %v12460_v37 = vld [vmem:[%s13025_s8 + $0x1ef8] ss:$20 sps:$4 sm:$0xff]   ;;  %v12465_v50 = vld [vmem:[%s13025_s8 + $0x1f1c] ss:$20 sps:$4 sm:$0xff]  }
 0x32f   : > { %7339 = vmatprep.subr.bf16.mxu0 %v12410_v40  ;;  %7872 = vmatprep.subr.bf16.mxu1 %v12413_v41  ;;  %v12468_v40 = vld [vmem:[%s13025_s8 + $0x1f24] ss:$20 sps:$4 sm:$0xff]  }
 0x330   : > { %v12463_v41 = vld [vmem:[%s13025_s8 + $0x1f18] ss:$20 sps:$4 sm:$0xff]  }
 0x332   : > { %7340 = vmatpush1.bf16.msra.mxu0 %v12408_v29  ;;  %7873 = vmatpush1.bf16.msra.mxu1 %v12411_v45  ;;  %v12466_v29 = vld [vmem:[%s13025_s8 + $0x1f20] ss:$20 sps:$4 sm:$0xff]   ;;  %v9615_v45 = vld.sshfl [vmem:[%s14478_s0 + $0x30] sm:$0x3 pattern:$0x76325410] }
 0x333   : > { %7341 = vmatprep.subr.bf16.mxu0 %v12416_v46  ;;  %7874 = vmatprep.subr.bf16.mxu1 %v12419_v48  ;;  %v12469_v46 = vld [vmem:[%s13025_s8 + $0x150] ss:$20 sps:$4 sm:$0xff]  }
 0x334   : > { %v12470_v48 = vld [vmem:[%s13025_s8 + $0x3d0] ss:$20 sps:$4 sm:$0xff]  }
 0x336   : > { %7342 = vmatpush1.bf16.msra.mxu0 %v12414_v5  ;;  %7875 = vmatpush1.bf16.msra.mxu1 %v12417_v15  ;;  %v14056_v5 = vpack.c.bf16 %v9615_v45, %v9615_v45  ;;  %v12471_v15 = vld [vmem:[%s13025_s8 + $0x10] ss:$20 sps:$4 sm:$0xff]   ;;  %v12506_v45 = vld [vmem:[%s13025_s8 + $0x8f8] ss:$20 sps:$4 sm:$0xff]  }
 0x337   : > { %7352 = vmatprep.subr.bf16.mxu0 %v12423_v52  ;;  %7885 = vmatprep.subr.bf16.mxu1 %v12426_v53  ;;  %v12472_v52 = vld [vmem:[%s13025_s8 + $0x290] ss:$20 sps:$4 sm:$0xff]   ;;  %v12473_v53 = vld [vmem:[%s13025_s8 + $0x178] ss:$20 sps:$4 sm:$0xff]  }
 0x339   : > { %7344 = vmatmul.mubr.bf16.vlgmr.msra.gmra.mrb[0].mxu0 %v14015_v54  ;;  %7877 = vmatmul.mubr.bf16.vlgmr.msra.gmra.mrb[0].mxu1 %v14015_v54 }
 0x33a   : > { %7353 = vmatpush1.bf16.msra.mxu0 %v12421_v58  ;;  %7886 = vmatpush1.bf16.msra.mxu1 %v12424_v61  ;;  %v12474_v58 = vld [vmem:[%s13025_s8 + $0x3f8] ss:$20 sps:$4 sm:$0xff]  }
 0x33b   : > { %7354 = vmatprep.subr.bf16.mxu0 %v12429_v32  ;;  %7887 = vmatprep.subr.bf16.mxu1 %v12432_v62  ;;  %v12475_v61 = vld [vmem:[%s13025_s8 + $0x38] ss:$20 sps:$4 sm:$0xff]   ;;  %v12477_v62 = vld [vmem:[%s13025_s8 + $0x1a0] ss:$20 sps:$4 sm:$0xff]  }
 0x33c   : > { %7384 = vmatprep.mubr.bf16.mxu0 %v12899_v47  ;;  %7917 = vmatprep.mubr.bf16.mxu1 %v12899_v47  ;;  %v12476_v32 = vld [vmem:[%s13025_s8 + $0x2b8] ss:$20 sps:$4 sm:$0xff]  }
 0x33e   : > { %7355 = vmatpush1.bf16.msra.mxu0 %v12427_v42  ;;  %7888 = vmatpush1.bf16.msra.mxu1 %v12430_v12  ;;  %v12478_v42 = vld [vmem:[%s13025_s8 + $0x420] ss:$20 sps:$4 sm:$0xff]  }
 0x33f   : > { %7356 = vmatprep.subr.bf16.mxu0 %v12435_v0  ;;  %7889 = vmatprep.subr.bf16.mxu1 %v12438_v1  ;;  %v12479_v12 = vld [vmem:[%s13025_s8 + $0x60] ss:$20 sps:$4 sm:$0xff]   ;;  %v12481_v1 = vld [vmem:[%s13025_s8 + $0x1c8] ss:$20 sps:$4 sm:$0xff]  }
 0x340   : > { %v12480_v0 = vld [vmem:[%s13025_s8 + $0x2e0] ss:$20 sps:$4 sm:$0xff]  }
 0x342   : > { %7357 = vmatpush1.bf16.msra.mxu0 %v12433_v3  ;;  %7890 = vmatpush1.bf16.msra.mxu1 %v12436_v4  ;;  %v12482_v3 = vld [vmem:[%s13025_s8 + $0x448] ss:$20 sps:$4 sm:$0xff]  }
 0x343   : > { %7358 = vmatprep.subr.bf16.mxu0 %v12441_v6  ;;  %7891 = vmatprep.subr.bf16.mxu1 %v12444_v8  ;;  %v12483_v4 = vld [vmem:[%s13025_s8 + $0x88] ss:$20 sps:$4 sm:$0xff]   ;;  %v12486_v6 = vld [vmem:[%s13025_s8 + $0x470] ss:$20 sps:$4 sm:$0xff]  }
 0x344   : > { %v12487_v8 = vld [vmem:[%s13025_s8 + $0xb0] ss:$20 sps:$4 sm:$0xff]  }
 0x346   : > { %7359 = vmatpush1.bf16.msra.mxu0 %v12439_v10  ;;  %7892 = vmatpush1.bf16.msra.mxu1 %v12442_v14  ;;  %v12488_v10 = vld [vmem:[%s13025_s8 + $0x330] ss:$20 sps:$4 sm:$0xff]   ;;  %v12489_v14 = vld [vmem:[%s13025_s8 + $0x218] ss:$20 sps:$4 sm:$0xff]  }
 0x347   : > { %7360 = vmatprep.subr.bf16.mxu0 %v12447_v17  ;;  %7893 = vmatprep.subr.bf16.mxu1 %v12450_v18  ;;  %v12490_v17 = vld [vmem:[%s13025_s8 + $0x498] ss:$20 sps:$4 sm:$0xff]  }
 0x348   : > { %v12491_v18 = vld [vmem:[%s13025_s8 + $0xd8] ss:$20 sps:$4 sm:$0xff]  }
 0x34a   : > { %7361 = vmatpush1.bf16.msra.mxu0 %v12445_v23  ;;  %7894 = vmatpush1.bf16.msra.mxu1 %v12448_v25  ;;  %v12492_v23 = vld [vmem:[%s13025_s8 + $0x358] ss:$20 sps:$4 sm:$0xff]   ;;  %v12493_v25 = vld [vmem:[%s13025_s8 + $0x240] ss:$20 sps:$4 sm:$0xff]  }
 0x34b   : > { %7362 = vmatprep.subr.bf16.mxu0 %v12453_v27  ;;  %7895 = vmatprep.subr.bf16.mxu1 %v12456_v28  ;;  %v12494_v27 = vld [vmem:[%s13025_s8 + $0x4c0] ss:$20 sps:$4 sm:$0xff]  }
 0x34c   : > { %v12495_v28 = vld [vmem:[%s13025_s8 + $0x100] ss:$20 sps:$4 sm:$0xff]  }
 0x34e   : > { %7363 = vmatpush1.bf16.msra.mxu0 %v12451_v51  ;;  %7896 = vmatpush1.bf16.msra.mxu1 %v12454_v31  ;;  %v12496_v51 = vld [vmem:[%s13025_s8 + $0x380] ss:$20 sps:$4 sm:$0xff]   ;;  %v12497_v31 = vld [vmem:[%s13025_s8 + $0x268] ss:$20 sps:$4 sm:$0xff]  }
 0x34f   : > { %7364 = vmatprep.subr.bf16.mxu0 %v12459_v33  ;;  %7897 = vmatprep.subr.bf16.mxu1 %v12462_v35  ;;  %v12498_v33 = vld [vmem:[%s13025_s8 + $0x4e8] ss:$20 sps:$4 sm:$0xff]  }
 0x350   : > { %v12499_v35 = vld [vmem:[%s13025_s8 + $0x128] ss:$20 sps:$4 sm:$0xff]  }
 0x352   : > { %7365 = vmatpush1.bf16.msra.mxu0 %v12457_v2  ;;  %7898 = vmatpush1.bf16.msra.mxu1 %v12460_v37  ;;  %v12500_v2 = vld [vmem:[%s13025_s8 + $0x3a8] ss:$20 sps:$4 sm:$0xff]   ;;  %v12501_v37 = vld [vmem:[%s13025_s8 + $0x650] ss:$20 sps:$4 sm:$0xff]  }
 0x353   : > { %7366 = vmatprep.subr.bf16.mxu0 %v12465_v50  ;;  %7899 = vmatprep.subr.bf16.mxu1 %v12468_v40  ;;  %v12502_v50 = vld [vmem:[%s13025_s8 + $0x8d0] ss:$20 sps:$4 sm:$0xff]  }
 0x354   : > { %v12503_v40 = vld [vmem:[%s13025_s8 + $0x510] ss:$20 sps:$4 sm:$0xff]  }
 0x356   : > { %7367 = vmatpush1.bf16.msra.mxu0 %v12463_v41  ;;  %7900 = vmatpush1.bf16.msra.mxu1 %v12466_v29  ;;  %v12504_v41 = vld [vmem:[%s13025_s8 + $0x790] ss:$20 sps:$4 sm:$0xff]   ;;  %v12505_v29 = vld [vmem:[%s13025_s8 + $0x678] ss:$20 sps:$4 sm:$0xff]  }
 0x357   : > { %10738 = vmatprep.subr.bf16.mxu0 %v12469_v46  ;;  %10760 = vmatprep.subr.bf16.mxu1 %v12470_v48  ;;  %v12507_v46 = vld [vmem:[%s13025_s8 + $0x538] ss:$20 sps:$4 sm:$0xff]  }
 0x358   : > { %v12508_v48 = vld [vmem:[%s13025_s8 + $0x7b8] ss:$20 sps:$4 sm:$0xff]  }
 0x359   : > { %7385 = vmatmul.mubr.bf16.vlgmr.msra.gmra.mrb[0].mxu0 %v14056_v5  ;;  %7918 = vmatmul.mubr.bf16.vlgmr.msra.gmra.mrb[0].mxu1 %v14056_v5 }
 0x35a   : > { %10739 = vmatpush3.bf16.msra.mxu0 %v12471_v15  ;;  %10761 = vmatpush3.bf16.msra.mxu1 %v12472_v52  ;;  %v12509_v15 = vld [vmem:[%s13025_s8 + $0x6a0] ss:$20 sps:$4 sm:$0xff]  }
 0x35b   : > { %10740 = vmatprep.subr.bf16.mxu0 %v12473_v53  ;;  %10762 = vmatprep.subr.bf16.mxu1 %v12474_v58  ;;  %v12510_v52 = vld [vmem:[%s13025_s8 + $0x920] ss:$20 sps:$4 sm:$0xff]   ;;  %v12513_v53 = vld [vmem:[%s13025_s8 + $0x6c8] ss:$20 sps:$4 sm:$0xff]  }
 0x35c   : > { %7958 = vmatprep.mubr.bf16.mxu0 %v13087_v60  ;;  %7998 = vmatprep.mubr.bf16.mxu1 %v13117_v20  ;;  %v12484_v60 = vld [vmem:[%s13025_s8 + $0x308] ss:$20 sps:$4 sm:$0xff]   ;;  %v12485_v20 = vld [vmem:[%s13025_s8 + $0x1f0] ss:$20 sps:$4 sm:$0xff]  }
 0x35d   : > { %v12514_v58 = vld [vmem:[%s13025_s8 + $0x948] ss:$20 sps:$4 sm:$0xff]  }
 0x35e   : > { %10741 = vmatpush3.bf16.msra.mxu0 %v12475_v61  ;;  %10763 = vmatpush3.bf16.msra.mxu1 %v12476_v32  ;;  %v12515_v61 = vld [vmem:[%s13025_s8 + $0x588] ss:$20 sps:$4 sm:$0xff]   ;;  %v12518_v32 = vld [vmem:[%s13025_s8 + $0x970] ss:$20 sps:$4 sm:$0xff]  }
 0x35f   : > { %10742 = vmatprep.subr.bf16.mxu0 %v12477_v62  ;;  %10764 = vmatprep.subr.bf16.mxu1 %v12478_v42  ;;  %v12519_v62 = vld [vmem:[%s13025_s8 + $0x5b0] ss:$20 sps:$4 sm:$0xff]  }
 0x360   : > { %v12520_v42 = vld [vmem:[%s13025_s8 + $0x830] ss:$20 sps:$4 sm:$0xff]  }
 0x362   : > { %10743 = vmatpush3.bf16.msra.mxu0 %v12479_v12  ;;  %10765 = vmatpush3.bf16.msra.mxu1 %v12480_v0  ;;  %v12521_v12 = vld [vmem:[%s13025_s8 + $0x718] ss:$20 sps:$4 sm:$0xff]  }
 0x363   : > { %10744 = vmatprep.subr.bf16.mxu0 %v12481_v1  ;;  %10766 = vmatprep.subr.bf16.mxu1 %v12482_v3  ;;  %v12522_v0 = vld [vmem:[%s13025_s8 + $0x998] ss:$20 sps:$4 sm:$0xff]  }
 0x364   : > { %v12523_v1 = vld [vmem:[%s13025_s8 + $0x5d8] ss:$20 sps:$4 sm:$0xff]  }
 0x365   : > { %v12524_v3 = vld [vmem:[%s13025_s8 + $0x858] ss:$20 sps:$4 sm:$0xff]  }
 0x366   : > { %10745 = vmatpush3.bf16.msra.mxu0 %v12483_v4  ;;  %10767 = vmatpush3.bf16.msra.mxu1 %v12484_v60  ;;  %v12525_v4 = vld [vmem:[%s13025_s8 + $0x740] ss:$20 sps:$4 sm:$0xff]  }
 0x367   : > { %10746 = vmatprep.subr.bf16.mxu0 %v12485_v20  ;;  %10768 = vmatprep.subr.bf16.mxu1 %v12486_v6  ;;  %v12526_v60 = vld [vmem:[%s13025_s8 + $0x9c0] ss:$20 sps:$4 sm:$0xff]  }
 0x368   : > { %v12527_v20 = vld [vmem:[%s13025_s8 + $0x600] ss:$20 sps:$4 sm:$0xff]  }
 0x369   : > { %v12528_v6 = vld [vmem:[%s13025_s8 + $0x880] ss:$20 sps:$4 sm:$0xff]  }
 0x36a   : > { %10747 = vmatpush3.bf16.msra.mxu0 %v12487_v8  ;;  %10769 = vmatpush3.bf16.msra.mxu1 %v12488_v10  ;;  %v12529_v8 = vld [vmem:[%s13025_s8 + $0x768] ss:$20 sps:$4 sm:$0xff]  }
 0x36b   : > { %10748 = vmatprep.subr.bf16.mxu0 %v12489_v14  ;;  %10770 = vmatprep.subr.bf16.mxu1 %v12490_v17  ;;  %v12530_v10 = vld [vmem:[%s13025_s8 + $0x9e8] ss:$20 sps:$4 sm:$0xff]  }
 0x36c   : > { %v12531_v14 = vld [vmem:[%s13025_s8 + $0x628] ss:$20 sps:$4 sm:$0xff]  }
 0x36d   : > { %v12532_v17 = vld [vmem:[%s13025_s8 + $0x8a8] ss:$20 sps:$4 sm:$0xff]  }
 0x36e   : > { %10749 = vmatpush3.bf16.msra.mxu0 %v12491_v18  ;;  %10771 = vmatpush3.bf16.msra.mxu1 %v12492_v23  ;;  %v12533_v18 = vld [vmem:[%s13025_s8 + $0xb50] ss:$20 sps:$4 sm:$0xff]  }
 0x36f   : > { %10750 = vmatprep.subr.bf16.mxu0 %v12493_v25  ;;  %10772 = vmatprep.subr.bf16.mxu1 %v12494_v27  ;;  %v12534_v23 = vld [vmem:[%s13025_s8 + $0xdd0] ss:$20 sps:$4 sm:$0xff]  }
 0x370   : > { %v12535_v25 = vld [vmem:[%s13025_s8 + $0xa10] ss:$20 sps:$4 sm:$0xff]  }
 0x371   : > { %v12536_v27 = vld [vmem:[%s13025_s8 + $0xc90] ss:$20 sps:$4 sm:$0xff]  }
 0x372   : > { %10751 = vmatpush3.bf16.msra.mxu0 %v12495_v28  ;;  %10773 = vmatpush3.bf16.msra.mxu1 %v12496_v51  ;;  %v12537_v28 = vld [vmem:[%s13025_s8 + $0xb78] ss:$20 sps:$4 sm:$0xff]  }
 0x373   : > { %10752 = vmatprep.subr.bf16.mxu0 %v12497_v31  ;;  %10774 = vmatprep.subr.bf16.mxu1 %v12498_v33  ;;  %v12538_v51 = vld [vmem:[%s13025_s8 + $0xdf8] ss:$20 sps:$4 sm:$0xff]  }
 0x374   : > { %v12539_v31 = vld [vmem:[%s13025_s8 + $0xa38] ss:$20 sps:$4 sm:$0xff]  }
 0x375   : > { %v12540_v33 = vld [vmem:[%s13025_s8 + $0xcb8] ss:$20 sps:$4 sm:$0xff]  }
 0x376   : > { %10753 = vmatpush3.bf16.msra.mxu0 %v12499_v35  ;;  %10775 = vmatpush3.bf16.msra.mxu1 %v12500_v2  ;;  %v12541_v35 = vld [vmem:[%s13025_s8 + $0xba0] ss:$20 sps:$4 sm:$0xff]  }
 0x377   : > { %10782 = vmatprep.subr.bf16.mxu0 %v12501_v37  ;;  %10804 = vmatprep.subr.bf16.mxu1 %v12502_v50  ;;  %v12542_v2 = vld [vmem:[%s13025_s8 + $0xe20] ss:$20 sps:$4 sm:$0xff]   ;;  %v12545_v37 = vld [vmem:[%s13025_s8 + $0xbc8] ss:$20 sps:$4 sm:$0xff]  }
 0x378   : > { %v12546_v50 = vld [vmem:[%s13025_s8 + $0xe48] ss:$20 sps:$4 sm:$0xff]  }
 0x379   : > { %7959 = vmatmul.mubr.bf16.vlgmr.msra.gmra.mrb[4].mxu0 %v13112_v16  ;;  %7999 = vmatmul.mubr.bf16.vlgmr.msra.gmra.mrb[4].mxu1 %v13186_v24  ;;  %v12511_v16 = vld [vmem:[%s13025_s8 + $0x560] ss:$20 sps:$4 sm:$0xff]  }
 0x37a   : > { %10783 = vmatpush3.bf16.msra.mxu0 %v12503_v40  ;;  %10805 = vmatpush3.bf16.msra.mxu1 %v12504_v41  ;;  %v12512_v24 = vld [vmem:[%s13025_s8 + $0x7e0] ss:$20 sps:$4 sm:$0xff]   ;;  %v12547_v40 = vld [vmem:[%s13025_s8 + $0xa88] ss:$20 sps:$4 sm:$0xff]   ;;  %v12550_v41 = vld [vmem:[%s13025_s8 + $0xe70] ss:$20 sps:$4 sm:$0xff]  }
 0x37b   : > { %10784 = vmatprep.subr.bf16.mxu0 %v12505_v29  ;;  %10806 = vmatprep.subr.bf16.mxu1 %v12506_v45  ;;  %v12551_v29 = vld [vmem:[%s13025_s8 + $0xab0] ss:$20 sps:$4 sm:$0xff]  }
 0x37c   : > { %8038 = vmatprep.mubr.bf16.mxu0 %v13208_v34  ;;  %8078 = vmatprep.mubr.bf16.mxu1 %v13283_v44  ;;  %v12516_v34 = vld [vmem:[%s13025_s8 + $0x808] ss:$20 sps:$4 sm:$0xff]   ;;  %v12517_v44 = vld [vmem:[%s13025_s8 + $0x6f0] ss:$20 sps:$4 sm:$0xff]  }
 0x37d   : > { %v12552_v45 = vld [vmem:[%s13025_s8 + $0xd30] ss:$20 sps:$4 sm:$0xff]  }
 0x37e   : > { %10785 = vmatpush3.bf16.msra.mxu0 %v12507_v46  ;;  %10807 = vmatpush3.bf16.msra.mxu1 %v12508_v48  ;;  %v12553_v46 = vld [vmem:[%s13025_s8 + $0xc18] ss:$20 sps:$4 sm:$0xff]  }
 0x37f   : > { %10786 = vmatprep.subr.bf16.mxu0 %v12509_v15  ;;  %10808 = vmatprep.subr.bf16.mxu1 %v12510_v52  ;;  %v12554_v48 = vld [vmem:[%s13025_s8 + $0xe98] ss:$20 sps:$4 sm:$0xff]  }
 0x380   : > { %v12555_v15 = vld [vmem:[%s13025_s8 + $0xad8] ss:$20 sps:$4 sm:$0xff]  }
 0x381   : > { %v12556_v52 = vld [vmem:[%s13025_s8 + $0xd58] ss:$20 sps:$4 sm:$0xff]  }
 0x382   : > { %10787 = vmatpush3.bf16.msra.mxu0 %v12511_v16  ;;  %10809 = vmatpush3.bf16.msra.mxu1 %v12512_v24  ;;  %v12557_v16 = vld [vmem:[%s13025_s8 + $0xc40] ss:$20 sps:$4 sm:$0xff]  }
 0x383   : > { %10788 = vmatprep.subr.bf16.mxu0 %v12513_v53  ;;  %10810 = vmatprep.subr.bf16.mxu1 %v12514_v58  ;;  %v12558_v24 = vld [vmem:[%s13025_s8 + $0xec0] ss:$20 sps:$4 sm:$0xff]  }
 0x384   : > { %v12559_v53 = vld [vmem:[%s13025_s8 + $0xb00] ss:$20 sps:$4 sm:$0xff]  }
 0x385   : > { %v12560_v58 = vld [vmem:[%s13025_s8 + $0xd80] ss:$20 sps:$4 sm:$0xff]  }
 0x386   : > { %10789 = vmatpush3.bf16.msra.mxu0 %v12515_v61  ;;  %10811 = vmatpush3.bf16.msra.mxu1 %v12516_v34  ;;  %v12561_v61 = vld [vmem:[%s13025_s8 + $0xc68] ss:$20 sps:$4 sm:$0xff]  }
 0x387   : > { %10790 = vmatprep.subr.bf16.mxu0 %v12517_v44  ;;  %10812 = vmatprep.subr.bf16.mxu1 %v12518_v32  ;;  %v12562_v34 = vld [vmem:[%s13025_s8 + $0xee8] ss:$20 sps:$4 sm:$0xff]  }
 0x388   : > { %v12563_v44 = vld [vmem:[%s13025_s8 + $0xb28] ss:$20 sps:$4 sm:$0xff]  }
 0x389   : > { %v12564_v32 = vld [vmem:[%s13025_s8 + $0xda8] ss:$20 sps:$4 sm:$0xff]  }
 0x38a   : > { %10791 = vmatpush3.bf16.msra.mxu0 %v12519_v62  ;;  %10813 = vmatpush3.bf16.msra.mxu1 %v12520_v42  ;;  %v12565_v62 = vld [vmem:[%s13025_s8 + $0x1050] ss:$20 sps:$4 sm:$0xff]  }
 0x38b   : > { %10792 = vmatprep.subr.bf16.mxu0 %v12521_v12  ;;  %10814 = vmatprep.subr.bf16.mxu1 %v12522_v0  ;;  %v12566_v42 = vld [vmem:[%s13025_s8 + $0x12d0] ss:$20 sps:$4 sm:$0xff]  }
 0x38c   : > { %v12567_v12 = vld [vmem:[%s13025_s8 + $0xf10] ss:$20 sps:$4 sm:$0xff]  }
 0x38d   : > { %v12568_v0 = vld [vmem:[%s13025_s8 + $0x1190] ss:$20 sps:$4 sm:$0xff]  }
 0x38e   : > { %10793 = vmatpush3.bf16.msra.mxu0 %v12523_v1  ;;  %10815 = vmatpush3.bf16.msra.mxu1 %v12524_v3  ;;  %v12569_v1 = vld [vmem:[%s13025_s8 + $0x1078] ss:$20 sps:$4 sm:$0xff]  }
 0x38f   : > { %10794 = vmatprep.subr.bf16.mxu0 %v12525_v4  ;;  %10816 = vmatprep.subr.bf16.mxu1 %v12526_v60  ;;  %v12570_v3 = vld [vmem:[%s13025_s8 + $0x12f8] ss:$20 sps:$4 sm:$0xff]  }
 0x390   : > { %v12571_v4 = vld [vmem:[%s13025_s8 + $0xf38] ss:$20 sps:$4 sm:$0xff]  }
 0x391   : > { %v12572_v60 = vld [vmem:[%s13025_s8 + $0x11b8] ss:$20 sps:$4 sm:$0xff]  }
 0x392   : > { %10795 = vmatpush3.bf16.msra.mxu0 %v12527_v20  ;;  %10817 = vmatpush3.bf16.msra.mxu1 %v12528_v6  ;;  %v12573_v20 = vld [vmem:[%s13025_s8 + $0x10a0] ss:$20 sps:$4 sm:$0xff]  }
 0x393   : > { %10796 = vmatprep.subr.bf16.mxu0 %v12529_v8  ;;  %10818 = vmatprep.subr.bf16.mxu1 %v12530_v10  ;;  %v12574_v6 = vld [vmem:[%s13025_s8 + $0x1320] ss:$20 sps:$4 sm:$0xff]   ;;  %v12577_v8 = vld [vmem:[%s13025_s8 + $0x10c8] ss:$20 sps:$4 sm:$0xff]  }
 0x394   : > { %v12578_v10 = vld [vmem:[%s13025_s8 + $0x1348] ss:$20 sps:$4 sm:$0xff]  }
 0x396   : > { %10797 = vmatpush3.bf16.msra.mxu0 %v12531_v14  ;;  %10819 = vmatpush3.bf16.msra.mxu1 %v12532_v17  ;;  %v12579_v14 = vld [vmem:[%s13025_s8 + $0xf88] ss:$20 sps:$4 sm:$0xff]   ;;  %v12582_v17 = vld [vmem:[%s13025_s8 + $0x1370] ss:$20 sps:$4 sm:$0xff]  }
 0x397   : > { %10826 = vmatprep.subr.bf16.mxu0 %v12533_v18  ;;  %10848 = vmatprep.subr.bf16.mxu1 %v12534_v23  ;;  %v12583_v18 = vld [vmem:[%s13025_s8 + $0xfb0] ss:$20 sps:$4 sm:$0xff]  }
 0x398   : > { %v12584_v23 = vld [vmem:[%s13025_s8 + $0x1230] ss:$20 sps:$4 sm:$0xff]  }
 0x399   : > { %8039 = vmatmul.mubr.bf16.vlgmr.msra.gmra.mrb[8].mxu0 %v13277_v38  ;;  %8079 = vmatmul.mubr.bf16.vlgmr.msra.gmra.mrb[8].mxu1 %v13363_v55  ;;  %v12543_v38 = vld [vmem:[%s13025_s8 + $0xa60] ss:$20 sps:$4 sm:$0xff]  }
 0x39a   : > { %10827 = vmatpush3.bf16.msra.mxu0 %v12535_v25  ;;  %10849 = vmatpush3.bf16.msra.mxu1 %v12536_v27  ;;  %v12544_v55 = vld [vmem:[%s13025_s8 + $0xce0] ss:$20 sps:$4 sm:$0xff]   ;;  %v12585_v25 = vld [vmem:[%s13025_s8 + $0x1118] ss:$20 sps:$4 sm:$0xff]  }
 0x39b   : > { %10828 = vmatprep.subr.bf16.mxu0 %v12537_v28  ;;  %10850 = vmatprep.subr.bf16.mxu1 %v12538_v51  ;;  %v12586_v27 = vld [vmem:[%s13025_s8 + $0x1398] ss:$20 sps:$4 sm:$0xff]  }
 0x39c   : > { %8118 = vmatprep.mubr.bf16.mxu0 %v13368_v59  ;;  %8158 = vmatprep.mubr.bf16.mxu1 %v13449_v13  ;;  %v12548_v59 = vld [vmem:[%s13025_s8 + $0xd08] ss:$20 sps:$4 sm:$0xff]   ;;  %v12549_v13 = vld [vmem:[%s13025_s8 + $0xbf0] ss:$20 sps:$4 sm:$0xff]   ;;  %v12587_v28 = vld [vmem:[%s13025_s8 + $0xfd8] ss:$20 sps:$4 sm:$0xff]  }
 0x39d   : > { %v12588_v51 = vld [vmem:[%s13025_s8 + $0x1258] ss:$20 sps:$4 sm:$0xff]  }
 0x39e   : > { %10829 = vmatpush3.bf16.msra.mxu0 %v12539_v31  ;;  %10851 = vmatpush3.bf16.msra.mxu1 %v12540_v33  ;;  %v12589_v31 = vld [vmem:[%s13025_s8 + $0x1140] ss:$20 sps:$4 sm:$0xff]  }
 0x39f   : > { %10830 = vmatprep.subr.bf16.mxu0 %v12541_v35  ;;  %10852 = vmatprep.subr.bf16.mxu1 %v12542_v2  ;;  %v12590_v33 = vld [vmem:[%s13025_s8 + $0x13c0] ss:$20 sps:$4 sm:$0xff]  }
 0x3a0   : > { %v12591_v35 = vld [vmem:[%s13025_s8 + $0x1000] ss:$20 sps:$4 sm:$0xff]  }
 0x3a1   : > { %v12592_v2 = vld [vmem:[%s13025_s8 + $0x1280] ss:$20 sps:$4 sm:$0xff]  }
 0x3a2   : > { %10831 = vmatpush3.bf16.msra.mxu0 %v12543_v38  ;;  %10853 = vmatpush3.bf16.msra.mxu1 %v12544_v55  ;;  %v12593_v38 = vld [vmem:[%s13025_s8 + $0x1168] ss:$20 sps:$4 sm:$0xff]  }
 0x3a3   : > { %10832 = vmatprep.subr.bf16.mxu0 %v12545_v37  ;;  %10854 = vmatprep.subr.bf16.mxu1 %v12546_v50  ;;  %v12594_v55 = vld [vmem:[%s13025_s8 + $0x13e8] ss:$20 sps:$4 sm:$0xff]  }
 0x3a4   : > { %v12595_v37 = vld [vmem:[%s13025_s8 + $0x1028] ss:$20 sps:$4 sm:$0xff]  }
 0x3a5   : > { %v12596_v50 = vld [vmem:[%s13025_s8 + $0x12a8] ss:$20 sps:$4 sm:$0xff]  }
 0x3a6   : > { %10833 = vmatpush3.bf16.msra.mxu0 %v12547_v40  ;;  %10855 = vmatpush3.bf16.msra.mxu1 %v12548_v59  ;;  %v12597_v40 = vld [vmem:[%s13025_s8 + $0x1550] ss:$20 sps:$4 sm:$0xff]  }
 0x3a7   : > { %10834 = vmatprep.subr.bf16.mxu0 %v12549_v13  ;;  %10856 = vmatprep.subr.bf16.mxu1 %v12550_v41  ;;  %v12598_v59 = vld [vmem:[%s13025_s8 + $0x17d0] ss:$20 sps:$4 sm:$0xff]  }
 0x3a8   : > { %v12599_v13 = vld [vmem:[%s13025_s8 + $0x1410] ss:$20 sps:$4 sm:$0xff]  }
 0x3a9   : > { %v12600_v41 = vld [vmem:[%s13025_s8 + $0x1690] ss:$20 sps:$4 sm:$0xff]  }
 0x3aa   : > { %10835 = vmatpush3.bf16.msra.mxu0 %v12551_v29  ;;  %10857 = vmatpush3.bf16.msra.mxu1 %v12552_v45  ;;  %v12601_v29 = vld [vmem:[%s13025_s8 + $0x1578] ss:$20 sps:$4 sm:$0xff]  }
 0x3ab   : > { %10836 = vmatprep.subr.bf16.mxu0 %v12553_v46  ;;  %10858 = vmatprep.subr.bf16.mxu1 %v12554_v48  ;;  %v12602_v45 = vld [vmem:[%s13025_s8 + $0x17f8] ss:$20 sps:$4 sm:$0xff]  }
 0x3ac   : > { %v12603_v46 = vld [vmem:[%s13025_s8 + $0x1438] ss:$20 sps:$4 sm:$0xff]  }
 0x3ad   : > { %v12604_v48 = vld [vmem:[%s13025_s8 + $0x16b8] ss:$20 sps:$4 sm:$0xff]  }
 0x3ae   : > { %10837 = vmatpush3.bf16.msra.mxu0 %v12555_v15  ;;  %10859 = vmatpush3.bf16.msra.mxu1 %v12556_v52  ;;  %v12605_v15 = vld [vmem:[%s13025_s8 + $0x15a0] ss:$20 sps:$4 sm:$0xff]  }
 0x3af   : > { %10838 = vmatprep.subr.bf16.mxu0 %v12557_v16  ;;  %10860 = vmatprep.subr.bf16.mxu1 %v12558_v24  ;;  %v12606_v52 = vld [vmem:[%s13025_s8 + $0x1820] ss:$20 sps:$4 sm:$0xff]   ;;  %v12609_v16 = vld [vmem:[%s13025_s8 + $0x15c8] ss:$20 sps:$4 sm:$0xff]  }
 0x3b0   : > { %v12610_v24 = vld [vmem:[%s13025_s8 + $0x1848] ss:$20 sps:$4 sm:$0xff]  }
 0x3b2   : > { %10839 = vmatpush3.bf16.msra.mxu0 %v12559_v53  ;;  %10861 = vmatpush3.bf16.msra.mxu1 %v12560_v58  ;;  %v12611_v53 = vld [vmem:[%s13025_s8 + $0x1488] ss:$20 sps:$4 sm:$0xff]   ;;  %v12614_v58 = vld [vmem:[%s13025_s8 + $0x1870] ss:$20 sps:$4 sm:$0xff]  }
 0x3b3   : > { %10840 = vmatprep.subr.bf16.mxu0 %v12561_v61  ;;  %10862 = vmatprep.subr.bf16.mxu1 %v12562_v34  ;;  %v12615_v61 = vld [vmem:[%s13025_s8 + $0x14b0] ss:$20 sps:$4 sm:$0xff]  }
 0x3b4   : > { %v12616_v34 = vld [vmem:[%s13025_s8 + $0x1730] ss:$20 sps:$4 sm:$0xff]  }
 0x3b6   : > { %10841 = vmatpush3.bf16.msra.mxu0 %v12563_v44  ;;  %10863 = vmatpush3.bf16.msra.mxu1 %v12564_v32  ;;  %v12617_v44 = vld [vmem:[%s13025_s8 + $0x1618] ss:$20 sps:$4 sm:$0xff]  }
 0x3b7   : > { %10870 = vmatprep.subr.bf16.mxu0 %v12565_v62  ;;  %10892 = vmatprep.subr.bf16.mxu1 %v12566_v42  ;;  %v12618_v32 = vld [vmem:[%s13025_s8 + $0x1898] ss:$20 sps:$4 sm:$0xff]  }
 0x3b8   : > { %v12619_v62 = vld [vmem:[%s13025_s8 + $0x14d8] ss:$20 sps:$4 sm:$0xff]  }
 0x3b9   : > { %8119 = vmatmul.mubr.bf16.vlgmr.msra.gmra.mrb[12].mxu0 %v13443_v7  ;;  %8159 = vmatmul.mubr.bf16.vlgmr.msra.gmra.mrb[12].mxu1 %v13528_v30  ;;  %v12575_v7 = vld [vmem:[%s13025_s8 + $0xf60] ss:$20 sps:$4 sm:$0xff]   ;;  %v12620_v42 = vld [vmem:[%s13025_s8 + $0x1758] ss:$20 sps:$4 sm:$0xff]  }
 0x3ba   : > { %10871 = vmatpush3.bf16.msra.mxu0 %v12567_v12  ;;  %10893 = vmatpush3.bf16.msra.mxu1 %v12568_v0  ;;  %v12576_v30 = vld [vmem:[%s13025_s8 + $0x11e0] ss:$20 sps:$4 sm:$0xff]  }
 0x3bb   : > { %10872 = vmatprep.subr.bf16.mxu0 %v12569_v1  ;;  %10894 = vmatprep.subr.bf16.mxu1 %v12570_v3  ;;  %v12621_v12 = vld [vmem:[%s13025_s8 + $0x1640] ss:$20 sps:$4 sm:$0xff]  }
 0x3bc   : > { %8198 = vmatprep.mubr.bf16.mxu0 %v13534_v36  ;;  %8238 = vmatprep.mubr.bf16.mxu1 %v13615_v63  ;;  %v12580_v36 = vld [vmem:[%s13025_s8 + $0x1208] ss:$20 sps:$4 sm:$0xff]   ;;  %v12581_v63 = vld [vmem:[%s13025_s8 + $0x10f0] ss:$20 sps:$4 sm:$0xff]   ;;  %v12622_v0 = vld [vmem:[%s13025_s8 + $0x18c0] ss:$20 sps:$4 sm:$0xff]  }
 0x3bd   : > { %v12623_v1 = vld [vmem:[%s13025_s8 + $0x1500] ss:$20 sps:$4 sm:$0xff]  }
 0x3be   : > { %10873 = vmatpush3.bf16.msra.mxu0 %v12571_v4  ;;  %10895 = vmatpush3.bf16.msra.mxu1 %v12572_v60  ;;  %v12624_v3 = vld [vmem:[%s13025_s8 + $0x1780] ss:$20 sps:$4 sm:$0xff]   ;;  %v12625_v4 = vld [vmem:[%s13025_s8 + $0x1668] ss:$20 sps:$4 sm:$0xff]  }
 0x3bf   : > { %10874 = vmatprep.subr.bf16.mxu0 %v12573_v20  ;;  %10896 = vmatprep.subr.bf16.mxu1 %v12574_v6  ;;  %v12626_v60 = vld [vmem:[%s13025_s8 + $0x18e8] ss:$20 sps:$4 sm:$0xff]  }
 0x3c0   : > { %v12627_v20 = vld [vmem:[%s13025_s8 + $0x1528] ss:$20 sps:$4 sm:$0xff]  }
 0x3c1   : > { %v12628_v6 = vld [vmem:[%s13025_s8 + $0x17a8] ss:$20 sps:$4 sm:$0xff]  }
 0x3c2   : > { %10875 = vmatpush3.bf16.msra.mxu0 %v12575_v7  ;;  %10897 = vmatpush3.bf16.msra.mxu1 %v12576_v30  ;;  %v12629_v7 = vld [vmem:[%s13025_s8 + $0x1a50] ss:$20 sps:$4 sm:$0xff]  }
 0x3c3   : > { %10876 = vmatprep.subr.bf16.mxu0 %v12577_v8  ;;  %10898 = vmatprep.subr.bf16.mxu1 %v12578_v10  ;;  %v12630_v30 = vld [vmem:[%s13025_s8 + $0x1cd0] ss:$20 sps:$4 sm:$0xff]  }
 0x3c4   : > { %v12631_v8 = vld [vmem:[%s13025_s8 + $0x1910] ss:$20 sps:$4 sm:$0xff]  }
 0x3c5   : > { %v12632_v10 = vld [vmem:[%s13025_s8 + $0x1b90] ss:$20 sps:$4 sm:$0xff]  }
 0x3c6   : > { %10877 = vmatpush3.bf16.msra.mxu0 %v12579_v14  ;;  %10899 = vmatpush3.bf16.msra.mxu1 %v12580_v36  ;;  %v12633_v14 = vld [vmem:[%s13025_s8 + $0x1a78] ss:$20 sps:$4 sm:$0xff]  }
 0x3c7   : > { %10878 = vmatprep.subr.bf16.mxu0 %v12581_v63  ;;  %10900 = vmatprep.subr.bf16.mxu1 %v12582_v17  ;;  %v12634_v36 = vld [vmem:[%s13025_s8 + $0x1cf8] ss:$20 sps:$4 sm:$0xff]  }
 0x3c8   : > { %v12635_v63 = vld [vmem:[%s13025_s8 + $0x1938] ss:$20 sps:$4 sm:$0xff]  }
 0x3c9   : > { %v12636_v17 = vld [vmem:[%s13025_s8 + $0x1bb8] ss:$20 sps:$4 sm:$0xff]  }
 0x3ca   : > { %10879 = vmatpush3.bf16.msra.mxu0 %v12583_v18  ;;  %10901 = vmatpush3.bf16.msra.mxu1 %v12584_v23  ;;  %v12637_v18 = vld [vmem:[%s13025_s8 + $0x1aa0] ss:$20 sps:$4 sm:$0xff]  }
 0x3cb   : > { %10880 = vmatprep.subr.bf16.mxu0 %v12585_v25  ;;  %10902 = vmatprep.subr.bf16.mxu1 %v12586_v27  ;;  %v12638_v23 = vld [vmem:[%s13025_s8 + $0x1d20] ss:$20 sps:$4 sm:$0xff]   ;;  %v12641_v25 = vld [vmem:[%s13025_s8 + $0x1ac8] ss:$20 sps:$4 sm:$0xff]  }
 0x3cc   : > { %v12642_v27 = vld [vmem:[%s13025_s8 + $0x1d48] ss:$20 sps:$4 sm:$0xff]  }
 0x3ce   : > { %10881 = vmatpush3.bf16.msra.mxu0 %v12587_v28  ;;  %10903 = vmatpush3.bf16.msra.mxu1 %v12588_v51  ;;  %v12643_v28 = vld [vmem:[%s13025_s8 + $0x1988] ss:$20 sps:$4 sm:$0xff]   ;;  %v12646_v51 = vld [vmem:[%s13025_s8 + $0x1d70] ss:$20 sps:$4 sm:$0xff]  }
 0x3cf   : > { %10882 = vmatprep.subr.bf16.mxu0 %v12589_v31  ;;  %10904 = vmatprep.subr.bf16.mxu1 %v12590_v33  ;;  %v12647_v31 = vld [vmem:[%s13025_s8 + $0x19b0] ss:$20 sps:$4 sm:$0xff]  }
 0x3d0   : > { %v12648_v33 = vld [vmem:[%s13025_s8 + $0x1c30] ss:$20 sps:$4 sm:$0xff]  }
 0x3d2   : > { %10883 = vmatpush3.bf16.msra.mxu0 %v12591_v35  ;;  %10905 = vmatpush3.bf16.msra.mxu1 %v12592_v2  ;;  %v12649_v35 = vld [vmem:[%s13025_s8 + $0x1b18] ss:$20 sps:$4 sm:$0xff]  }
 0x3d3   : > { %10884 = vmatprep.subr.bf16.mxu0 %v12593_v38  ;;  %10906 = vmatprep.subr.bf16.mxu1 %v12594_v55  ;;  %v12650_v2 = vld [vmem:[%s13025_s8 + $0x1d98] ss:$20 sps:$4 sm:$0xff]  }
 0x3d4   : > { %v12651_v38 = vld [vmem:[%s13025_s8 + $0x19d8] ss:$20 sps:$4 sm:$0xff]  }
 0x3d5   : > { %v12652_v55 = vld [vmem:[%s13025_s8 + $0x1c58] ss:$20 sps:$4 sm:$0xff]  }
 0x3d6   : > { %10885 = vmatpush3.bf16.msra.mxu0 %v12595_v37  ;;  %10907 = vmatpush3.bf16.msra.mxu1 %v12596_v50  ;;  %v12653_v37 = vld [vmem:[%s13025_s8 + $0x1b40] ss:$20 sps:$4 sm:$0xff]  }
 0x3d7   : > { %10914 = vmatprep.subr.bf16.mxu0 %v12597_v40  ;;  %10936 = vmatprep.subr.bf16.mxu1 %v12598_v59  ;;  %v12654_v50 = vld [vmem:[%s13025_s8 + $0x1dc0] ss:$20 sps:$4 sm:$0xff]  }
 0x3d8   : > { %v12655_v40 = vld [vmem:[%s13025_s8 + $0x1a00] ss:$20 sps:$4 sm:$0xff]  }
 0x3d9   : > { %8199 = vmatmul.mubr.bf16.vlgmr.msra.gmra.mrb[16].mxu0 %v13609_v57  ;;  %8239 = vmatmul.mubr.bf16.vlgmr.msra.gmra.mrb[16].mxu1 %v13694_v21  ;;  %v12607_v57 = vld [vmem:[%s13025_s8 + $0x1460] ss:$20 sps:$4 sm:$0xff]  }
 0x3da   : > { %10915 = vmatpush3.bf16.msra.mxu0 %v12599_v13  ;;  %10937 = vmatpush3.bf16.msra.mxu1 %v12600_v41  ;;  %v12608_v21 = vld [vmem:[%s13025_s8 + $0x16e0] ss:$20 sps:$4 sm:$0xff]   ;;  %v12657_v13 = vld [vmem:[%s13025_s8 + $0x1b68] ss:$20 sps:$4 sm:$0xff]  }
 0x3db   : > { %10916 = vmatprep.subr.bf16.mxu0 %v12601_v29  ;;  %10938 = vmatprep.subr.bf16.mxu1 %v12602_v45  ;;  %v12656_v59 = vld [vmem:[%s13025_s8 + $0x1c80] ss:$20 sps:$4 sm:$0xff]   ;;  %v12658_v41 = vld [vmem:[%s13025_s8 + $0x1de8] ss:$20 sps:$4 sm:$0xff]  }
 0x3dc   : > { %8278 = vmatprep.mubr.bf16.mxu0 %v13700_v9  ;;  %8318 = vmatprep.mubr.bf16.mxu1 %v13781_v22  ;;  %v12612_v9 = vld [vmem:[%s13025_s8 + $0x1708] ss:$20 sps:$4 sm:$0xff]   ;;  %v12613_v22 = vld [vmem:[%s13025_s8 + $0x15f0] ss:$20 sps:$4 sm:$0xff]  }
 0x3dd   : > { %v12659_v29 = vld [vmem:[%s13025_s8 + $0x1a28] ss:$20 sps:$4 sm:$0xff]  }
 0x3de   : > { %10917 = vmatpush3.bf16.msra.mxu0 %v12603_v46  ;;  %10939 = vmatpush3.bf16.msra.mxu1 %v12604_v48  ;;  %v12660_v45 = vld [vmem:[%s13025_s8 + $0x1ca8] ss:$20 sps:$4 sm:$0xff]   ;;  %v12663_v46 = vld [vmem:[%s13011_s9 + $0x4] ss:$12 sps:$4 sm:$0xff]  }
 0x3df   : > { %10918 = vmatprep.subr.bf16.mxu0 %v12605_v15  ;;  %10940 = vmatprep.subr.bf16.mxu1 %v12606_v52  ;;  %v12661_v48 = vld [vmem:[%s13011_s9] ss:$12 sps:$4 sm:$0xff]   ;;  %v12664_v15 = vld [vmem:[%s13025_s8 + $0x1e10] ss:$20 sps:$4 sm:$0xff]   ;;  %v12900_v52 = vmov 0.0  }
 0x3e2   : > { %10919 = vmatpush3.bf16.msra.mxu0 %v12607_v57  ;;  %10941 = vmatpush3.bf16.msra.mxu1 %v12608_v21  ;;  %v12667_v57 = vld [vmem:[%s13011_s9 + $0x1c] ss:$12 sps:$4 sm:$0xff]   ;;  %v12665_v21 = vld [vmem:[%s13011_s9 + $0x18] ss:$12 sps:$4 sm:$0xff]  }
 0x3e3   : > { %10920 = vmatprep.subr.bf16.mxu0 %v12609_v16  ;;  %10942 = vmatprep.subr.bf16.mxu1 %v12610_v24  ;;  %v12668_v16 = vld [vmem:[%s13025_s8 + $0x1e38] ss:$20 sps:$4 sm:$0xff]   ;;  %v12671_v24 = vld [vmem:[%s13011_s9 + $0x34] ss:$12 sps:$4 sm:$0xff]  }
 0x3e6   : > { %10921 = vmatpush3.bf16.msra.mxu0 %v12611_v53  ;;  %10943 = vmatpush3.bf16.msra.mxu1 %v12612_v9  ;;  %v12675_v53 = vld [vmem:[%s13011_s9 + $0x4c] ss:$12 sps:$4 sm:$0xff]   ;;  %v12673_v9 = vld [vmem:[%s13011_s9 + $0x48] ss:$12 sps:$4 sm:$0xff]  }
 0x3e7   : > { %10922 = vmatprep.subr.bf16.mxu0 %v12613_v22  ;;  %10944 = vmatprep.subr.bf16.mxu1 %v12614_v58  ;;  %v12676_v22 = vld [vmem:[%s13025_s8 + $0x1e88] ss:$20 sps:$4 sm:$0xff]   ;;  %v12679_v58 = vld [vmem:[%s13011_s9 + $0x64] ss:$12 sps:$4 sm:$0xff]  }
 0x3ea   : > { %10923 = vmatpush3.bf16.msra.mxu0 %v12615_v61  ;;  %10945 = vmatpush3.bf16.msra.mxu1 %v12616_v34  ;;  %v12677_v61 = vld [vmem:[%s13011_s9 + $0x60] ss:$12 sps:$4 sm:$0xff]   ;;  %v1645_v34 = vsub.s32 2, %v13066_v43 }
 0x3eb   : > { %10924 = vmatprep.subr.bf16.mxu0 %v12617_v44  ;;  %10946 = vmatprep.subr.bf16.mxu1 %v12618_v32  ;;  %v12680_v44 = vld [vmem:[%s13025_s8 + $0x1eb0] ss:$20 sps:$4 sm:$0xff]  }
 0x3ec   : > { %v14300_v32 = vld [vmem:[%s251_s30] sm:$0x1f] }
 0x3ee   : > { %10925 = vmatpush3.bf16.msra.mxu0 %v12619_v62  ;;  %10947 = vmatpush3.bf16.msra.mxu1 %v12620_v42  ;;  %v1641_v62 = vsub.s32 1, %v13066_v43  ;;  %v12683_v42 = vld [vmem:[%s13011_s9 + $0x7c] ss:$12 sps:$4 sm:$0xff]  }
 0x3ef   : > { %10926 = vmatprep.subr.bf16.mxu0 %v12621_v12  ;;  %10948 = vmatprep.subr.bf16.mxu1 %v12622_v0  ;;  %v1646_v12 = vrot.slane %v14300_v32, %v1645_v34 }
 0x3f0   : > { %v1642_v0 = vrot.slane %v14300_v32, %v1641_v62 }
 0x3f2   : > { %10927 = vmatpush3.bf16.msra.mxu0 %v12623_v1  ;;  %10949 = vmatpush3.bf16.msra.mxu1 %v12624_v3  ;;  %v12681_v1 = vld [vmem:[%s13011_s9 + $0x78] ss:$12 sps:$4 sm:$0xff]  }
 0x3f3   : > { %10928 = vmatprep.subr.bf16.mxu0 %v12625_v4  ;;  %10950 = vmatprep.subr.bf16.mxu1 %v12626_v60  ;;  %v12684_v3 = vld [vmem:[%s13025_s8 + $0x1ed8] ss:$20 sps:$4 sm:$0xff]   ;;  %v12687_v4 = vld [vmem:[%s13011_s9 + $0x94] ss:$12 sps:$4 sm:$0xff]  }
 0x3f6   : > { %10929 = vmatpush3.bf16.msra.mxu0 %v12627_v20  ;;  %10951 = vmatpush3.bf16.msra.mxu1 %v12628_v6 }
 0x3f7   : > { %10958 = vmatprep.subr.bf16.mxu0 %v12629_v7  ;;  %10980 = vmatprep.subr.bf16.mxu1 %v12630_v30 }
 0x3f9   : > { %8279 = vmatmul.mubr.bf16.vlgmr.msra.gmra.mrb[20].mxu0 %v13775_v56  ;;  %8319 = vmatmul.mubr.bf16.vlgmr.msra.gmra.mrb[20].mxu1 %v13860_v26  ;;  %v12639_v56 = vld [vmem:[%s13025_s8 + $0x1960] ss:$20 sps:$4 sm:$0xff]  }
 0x3fa   : > { %10959 = vmatpush3.bf16.msra.mxu0 %v12631_v8  ;;  %10981 = vmatpush3.bf16.msra.mxu1 %v12632_v10  ;;  %v12640_v26 = vld [vmem:[%s13025_s8 + $0x1be0] ss:$20 sps:$4 sm:$0xff]  }
 0x3fb   : > { %10960 = vmatprep.subr.bf16.mxu0 %v12633_v14  ;;  %10982 = vmatprep.subr.bf16.mxu1 %v12634_v36  ;;  %v12685_v36 = vld [vmem:[%s13011_s9 + $0x90] ss:$12 sps:$4 sm:$0xff]  }
 0x3fc   : > { %8358 = vmatprep.mubr.bf16.mxu0 %v13866_v39  ;;  %8398 = vmatprep.mubr.bf16.mxu1 %v13948_v19  ;;  %v12644_v39 = vld [vmem:[%s13025_s8 + $0x1c08] ss:$20 sps:$4 sm:$0xff]   ;;  %v12645_v19 = vld [vmem:[%s13025_s8 + $0x1af0] ss:$20 sps:$4 sm:$0xff]  }
 0x3fe   : > { %10961 = vmatpush3.bf16.msra.mxu0 %v12635_v63  ;;  %10983 = vmatpush3.bf16.msra.mxu1 %v12636_v17  ;;  %v12688_v63 = vld [vmem:[%s13025_s8 + $0x1f00] ss:$20 sps:$4 sm:$0xff]  }
 0x3ff   : > { %10962 = vmatprep.subr.bf16.mxu0 %v12637_v18  ;;  %10984 = vmatprep.subr.bf16.mxu1 %v12638_v23  ;;  %v12691_v23 = vld [vmem:[%s13011_s9 + $0xac] ss:$12 sps:$4 sm:$0xff]  }
 0x402   : > { %10963 = vmatpush3.bf16.msra.mxu0 %v12639_v56  ;;  %10985 = vmatpush3.bf16.msra.mxu1 %v12640_v26 }
 0x403   : > { %10964 = vmatprep.subr.bf16.mxu0 %v12641_v25  ;;  %10986 = vmatprep.subr.bf16.mxu1 %v12642_v27  ;;  %v12689_v25 = vld [vmem:[%s13011_s9 + $0xa8] ss:$12 sps:$4 sm:$0xff]  }
 0x404   : > { %v12692_v27 = vld [vmem:[%s13025_s8 + $0x1f28] ss:$20 sps:$4 sm:$0xff]  }
 0x406   : > { %10965 = vmatpush3.bf16.msra.mxu0 %v12643_v28  ;;  %10987 = vmatpush3.bf16.msra.mxu1 %v12644_v39  ;;  %v12695_v28 = vld [vmem:[%s13011_s9 + $0xc4] ss:$12 sps:$4 sm:$0xff]   ;;  %v12696_v39 = vld [vmem:[%s13011_s9 + $0xc8] ss:$12 sps:$4 sm:$0xff]  }
 0x407   : > { %10966 = vmatprep.subr.bf16.mxu0 %v12645_v19  ;;  %10988 = vmatprep.subr.bf16.mxu1 %v12646_v51  ;;  %v12693_v19 = vld [vmem:[%s13011_s9 + $0xc0] ss:$12 sps:$4 sm:$0xff]   ;;  %v12697_v51 = vld [vmem:[%s13011_s9 + $0x8] ss:$12 sps:$4 sm:$0xff]  }
 0x40a   : > { %10967 = vmatpush3.bf16.msra.mxu0 %v12647_v31  ;;  %10989 = vmatpush3.bf16.msra.mxu1 %v12648_v33  ;;  %v12700_v31 = vld [vmem:[%s13011_s9 + $0xdc] ss:$12 sps:$4 sm:$0xff]   ;;  %v12701_v33 = vld [vmem:[%s13011_s9 + $0xe0] ss:$12 sps:$4 sm:$0xff]  }
 0x40b   : > { %10968 = vmatprep.subr.bf16.mxu0 %v12649_v35  ;;  %10990 = vmatprep.subr.bf16.mxu1 %v12650_v2  ;;  %v12698_v35 = vld [vmem:[%s13011_s9 + $0xd8] ss:$12 sps:$4 sm:$0xff]   ;;  %v12702_v2 = vld [vmem:[%s13011_s9 + $0x20] ss:$12 sps:$4 sm:$0xff]  }
 0x40e   : > { %10969 = vmatpush3.bf16.msra.mxu0 %v12651_v38  ;;  %10991 = vmatpush3.bf16.msra.mxu1 %v12652_v55  ;;  %v12705_v38 = vld [vmem:[%s13011_s9 + $0xf4] ss:$12 sps:$4 sm:$0xff]   ;;  %v12706_v55 = vld [vmem:[%s13011_s9 + $0xf8] ss:$12 sps:$4 sm:$0xff]  }
 0x40f   : > { %10970 = vmatprep.subr.bf16.mxu0 %v12653_v37  ;;  %10992 = vmatprep.subr.bf16.mxu1 %v12654_v50  ;;  %v12703_v37 = vld [vmem:[%s13011_s9 + $0xf0] ss:$12 sps:$4 sm:$0xff]   ;;  %v12710_v50 = vld [vmem:[%s13011_s9 + $0x10c] ss:$12 sps:$4 sm:$0xff]  }
 0x412   : > { %10971 = vmatpush3.bf16.msra.mxu0 %v12655_v40  ;;  %10993 = vmatpush3.bf16.msra.mxu1 %v12656_v59  ;;  %v12711_v40 = vld [vmem:[%s13011_s9 + $0x110] ss:$12 sps:$4 sm:$0xff]   ;;  %v12708_v59 = vld [vmem:[%s13011_s9 + $0x108] ss:$12 sps:$4 sm:$0xff]  }
 0x413   : > { %10972 = vmatprep.subr.bf16.mxu0 %v12657_v13  ;;  %10994 = vmatprep.subr.bf16.mxu1 %v12658_v41  ;;  %v12712_v13 = vld [vmem:[%s13011_s9 + $0x50] ss:$12 sps:$4 sm:$0xff]  }
 0x414   : > { %v12715_v41 = vld [vmem:[%s13011_s9 + $0x124] ss:$12 sps:$4 sm:$0xff]  }
 0x416   : > { %10973 = vmatpush3.bf16.msra.mxu0 %v12659_v29  ;;  %10995 = vmatpush3.bf16.msra.mxu1 %v12660_v45  ;;  %v12716_v29 = vld [vmem:[%s13011_s9 + $0x128] ss:$12 sps:$4 sm:$0xff]   ;;  %v12713_v45 = vld [vmem:[%s13011_s9 + $0x120] ss:$12 sps:$4 sm:$0xff]  }
 0x417   : > { %11064 = vmatprep.subr.bf16.mxu0 %v12900_v52  ;;  %9256 = vmatprep.subr.bf16.mxu1 %v12663_v46  ;;  %v12717_v46 = vld [vmem:[%s13011_s9 + $0x68] ss:$12 sps:$4 sm:$0xff]  }
 0x419   : > { %8359 = vmatmul.mubr.bf16.vlgmr.msra.gmra.mrb[24].mxu0 %v13943_v11  ;;  %8399 = vmatmul.mubr.bf16.vlgmr.msra.gmra.mrb[24].mxu1 %v14015_v54  ;;  %v12669_v11 = vld [vmem:[%s13011_s9 + $0x30] ss:$12 sps:$4 sm:$0xff]   ;;  %v12672_v54 = vld [vmem:[%s13025_s8 + $0x1e60] ss:$20 sps:$4 sm:$0xff]  }
 0x41a   : > { %11065 = vmatpush3.bf16.msra.mxu0 %v12664_v15  ;;  %9257 = vmatpush1.bf16.msra.mxu1 %v12661_v48  ;;  %v1637_v48 = vsub.s32 0, %v13066_v43  ;;  %v12720_v15 = vld [vmem:[%s13011_s9 + $0x13c] ss:$12 sps:$4 sm:$0xff]  }
 0x41b   : > { %11066 = vmatprep.subr.bf16.mxu0 %v12900_v52  ;;  %9258 = vmatprep.subr.bf16.mxu1 %v12667_v57  ;;  %v12721_v57 = vld [vmem:[%s13011_s9 + $0x140] ss:$12 sps:$4 sm:$0xff]  }
 0x41c   : > { %11080 = vmatprep.mubr.msk.bf16.mxu0 %vm12901_vm0, %v12900_v52 }
 0x41e   : > { %11067 = vmatpush3.bf16.msra.mxu0 %v12668_v16  ;;  %9259 = vmatpush1.bf16.msra.mxu1 %v12665_v21  ;;  %v1649_v21 = vsub.s32 3, %v13066_v43  ;;  %v1653_v16 = vsub.s32 4, %v13066_v43 }
 0x41f   : > { %11068 = vmatprep.subr.bf16.mxu0 %v12900_v52  ;;  %9260 = vmatprep.subr.bf16.mxu1 %v12671_v24  ;;  %v12718_v24 = vld [vmem:[%s13011_s9 + $0x138] ss:$12 sps:$4 sm:$0xff]  }
 0x422   : > { %11069 = vmatpush3.bf16.msra.mxu0 %v12672_v54  ;;  %9261 = vmatpush1.bf16.msra.mxu1 %v12669_v11  ;;  %v12722_v11 = vld [vmem:[%s13011_s9 + $0x80] ss:$12 sps:$4 sm:$0xff]   ;;  %v1638_v54 = vrot.slane %v14300_v32, %v1637_v48 }
 0x423   : > { %11070 = vmatprep.subr.bf16.mxu0 %v12900_v52  ;;  %9262 = vmatprep.subr.bf16.mxu1 %v12675_v53  ;;  %v12725_v53 = vld [vmem:[%s13011_s9 + $0x154] ss:$12 sps:$4 sm:$0xff]  }
 0x424   : > { %v12765_v48 = vld [vmem:[%s13011_s9 + $0x214] ss:$12 sps:$4 sm:$0xff]  }
 0x426   : > { %11071 = vmatpush3.bf16.msra.mxu0 %v12676_v22  ;;  %9263 = vmatpush1.bf16.msra.mxu1 %v12673_v9  ;;  %v12726_v9 = vld [vmem:[%s13011_s9 + $0x158] ss:$12 sps:$4 sm:$0xff]   ;;  %v1650_v22 = vrot.slane %v14300_v32, %v1649_v21 }
 0x427   : > { %11072 = vmatprep.subr.bf16.mxu0 %v12900_v52  ;;  %9264 = vmatprep.subr.bf16.mxu1 %v12679_v58  ;;  %v12766_v21 = vld [vmem:[%s13011_s9 + $0x2d8] ss:$12 sps:$4 sm:$0xff]  }
 0x42a   : > { %11073 = vmatpush3.bf16.msra.mxu0 %v12680_v44  ;;  %9265 = vmatpush1.bf16.msra.mxu1 %v12677_v61  ;;  %v1654_v61 = vrot.slane %v14300_v32, %v1653_v16  ;;  %v12730_v32 = vld [vmem:[%s13011_s9 + $0x16c] ss:$12 sps:$4 sm:$0xff]  }
 0x42b   : > { %11074 = vmatprep.subr.bf16.mxu0 %v12900_v52  ;;  %9266 = vmatprep.subr.bf16.mxu1 %v12683_v42 }
 0x42c   : > { %v14311_v60 = vpop.f32.mrb[0].mxu0  ;;  %v7919_v20 = vpop.f32.mrb[0].mxu1 }
 0x42d   : > { %v14313_v6 = vadd.f32 %v7919_v20, %v1646_v12  ;;  %v7388_v7 = vpop.f32.mrb[1].mxu0  ;;  %v14315_v30 = vpop.f32.mrb[1].mxu1 }
 0x42e   : > { %v11105_v8 = vadd.f32 %v7388_v7, %v1642_v0  ;;  %v7390_v10 = vpop.f32.mrb[2].mxu0  ;;  %v7923_v14 = vpop.f32.mrb[2].mxu1  ;;  %11075 = vmatpush3.bf16.msra.mxu0 %v12684_v3  ;;  %9267 = vmatpush1.bf16.msra.mxu1 %v12681_v1  ;;  %v12723_v0 = vld [vmem:[%s13011_s9 + $0x150] ss:$12 sps:$4 sm:$0xff]   ;;  %v12727_v1 = vld [vmem:[%s13011_s9 + $0x98] ss:$12 sps:$4 sm:$0xff]  }
 0x42f   : > { %v7391_v17 = vpop.f32.mrb[3].mxu0  ;;  %v7924_v18 = vpop.f32.mrb[3].mxu1  ;;  %11076 = vmatprep.subr.bf16.mxu0 %v12900_v52  ;;  %9268 = vmatprep.subr.bf16.mxu1 %v12687_v4  ;;  %v11104_v4 = vadd.f32 %v14311_v60, %v1638_v54  ;;  %v12731_v7 = vld [vmem:[%s13011_s9 + $0x170] ss:$12 sps:$4 sm:$0xff]   ;;  %v11107_v10 = vadd.f32 %v14315_v30, %v1650_v22  ;;  %v12733_v30 = vld [vmem:[%s13011_s9 + $0x180] ss:$12 sps:$4 sm:$0xff]  }
 0x430   : > { %v8447_v56 = vmax.f32 %v11105_v8, 0.0  ;;  %v12732_v60 = vld [vmem:[%s13011_s9 + $0xb0] ss:$12 sps:$4 sm:$0xff]  }
 0x431   : > { %v8446_v17 = vmax.f32 %v11104_v4, 0.0  ;;  %v12735_v18 = vld [vmem:[%s13011_s9 + $0x184] ss:$12 sps:$4 sm:$0xff]   ;;  %v12773_v4 = vld [vmem:[%s13011_s9 + $0x240] ss:$12 sps:$4 sm:$0xff]  }
 0x432   : > { %v8452_v26 = vpack.c.bf16 %v8447_v56, %v8447_v56  ;;  %11077 = vmatpush3.bf16.msra.mxu0 %v12688_v63  ;;  %9269 = vmatpush1.bf16.msra.mxu1 %v12685_v36  ;;  %v12728_v63 = vld [vmem:[%s13011_s9 + $0x168] ss:$12 sps:$4 sm:$0xff]   ;;  %v8449_v56 = vmax.f32 %v11107_v10, 0.0  ;;  %v12804_v10 = vld [vmem:[%s13011_s9 + $0x320] ss:$12 sps:$4 sm:$0xff]  }
 0x433   : > { %11078 = vmatprep.subr.bf16.mxu0 %v12900_v52  ;;  %9270 = vmatprep.subr.bf16.mxu1 %v12691_v23  ;;  %v12736_v23 = vld [vmem:[%s13011_s9 + $0x248] ss:$12 sps:$4 sm:$0xff]  }
 0x434   : > { %9288 = vmatprep.mubr.bf16.mxu1 %v8452_v26 }
 0x436   : > { %11079 = vmatpush3.bf16.msra.mxu0 %v12692_v27  ;;  %9271 = vmatpush1.bf16.msra.mxu1 %v12689_v25  ;;  %v12737_v25 = vld [vmem:[%s13011_s9 + $0x188] ss:$12 sps:$4 sm:$0xff]   ;;  %v8454_v27 = vpack.c.bf16 %v8449_v56, %v8449_v56 }
 0x437   : > { %9272 = vmatprep.subr.bf16.mxu1 %v12695_v28  ;;  %11011 = vmatprep.subr.bf16.mxu0 %v12696_v39  ;;  %v12740_v28 = vld [vmem:[%s13011_s9 + $0x19c] ss:$12 sps:$4 sm:$0xff]   ;;  %v12741_v39 = vld [vmem:[%s13011_s9 + $0x260] ss:$12 sps:$4 sm:$0xff]  }
 0x438   : > { %v12790_v56 = vld [vmem:[%s13011_s9 + $0x2bc] ss:$12 sps:$4 sm:$0xff]  }
 0x439   : > { %11081 = vmatmul.mubr.bf16.vlgmr.msra.gmra.mrb[28].mxu0 %v14056_v5  ;;  %v12707_v5 = vld [vmem:[%s13011_s9 + $0x38] ss:$12 sps:$4 sm:$0xff]  }
 0x43a   : > { %9273 = vmatpush1.bf16.msra.mxu1 %v12693_v19  ;;  %11012 = vmatpush3.bf16.msra.mxu0 %v12697_v51  ;;  %v12738_v19 = vld [vmem:[%s13011_s9 + $0x198] ss:$12 sps:$4 sm:$0xff]   ;;  %v12742_v51 = vld [vmem:[%s13011_s9 + $0x1a0] ss:$12 sps:$4 sm:$0xff]  }
 0x43b   : > { %9411 = vmatprep.mubr.bf16.mxu0 %v8452_v26  ;;  %9274 = vmatprep.subr.bf16.mxu1 %v12700_v31  ;;  %v8451_v26 = vpack.c.bf16 %v8446_v17, %v8446_v17  ;;  %v12745_v31 = vld [vmem:[%s13011_s9 + $0x1b4] ss:$12 sps:$4 sm:$0xff]   ;;  %v12787_v17 = vld [vmem:[%s13011_s9 + $0x2a4] ss:$12 sps:$4 sm:$0xff]  }
 0x43c   : > { %11013 = vmatprep.subr.bf16.mxu0 %v12701_v33  ;;  %v12746_v33 = vld [vmem:[%s13011_s9 + $0x278] ss:$12 sps:$4 sm:$0xff]  }
 0x43e   : > { %9275 = vmatpush1.bf16.msra.mxu1 %v12698_v35  ;;  %11014 = vmatpush3.bf16.msra.mxu0 %v12702_v2  ;;  %v12743_v35 = vld [vmem:[%s13011_s9 + $0x1b0] ss:$12 sps:$4 sm:$0xff]   ;;  %v12747_v2 = vld [vmem:[%s13011_s9 + $0x1b8] ss:$12 sps:$4 sm:$0xff]  }
 0x43f   : > { %9276 = vmatprep.subr.bf16.mxu1 %v12705_v38  ;;  %11015 = vmatprep.subr.bf16.mxu0 %v12706_v55  ;;  %v12750_v38 = vld [vmem:[%s13011_s9 + $0x1cc] ss:$12 sps:$4 sm:$0xff]   ;;  %v12751_v55 = vld [vmem:[%s13011_s9 + $0x290] ss:$12 sps:$4 sm:$0xff]  }
 0x442   : > { %9277 = vmatpush1.bf16.msra.mxu1 %v12703_v37  ;;  %11016 = vmatpush3.bf16.msra.mxu0 %v12707_v5  ;;  %v12748_v37 = vld [vmem:[%s13011_s9 + $0x1c8] ss:$12 sps:$4 sm:$0xff]   ;;  %v12752_v5 = vld [vmem:[%s13011_s9 + $0x1d0] ss:$12 sps:$4 sm:$0xff]  }
 0x443   : > { %9278 = vmatprep.subr.bf16.mxu1 %v12710_v50  ;;  %11017 = vmatprep.subr.bf16.mxu0 %v12711_v40  ;;  %v12755_v50 = vld [vmem:[%s13011_s9 + $0x1e4] ss:$12 sps:$4 sm:$0xff]   ;;  %v12756_v40 = vld [vmem:[%s13011_s9 + $0x2a8] ss:$12 sps:$4 sm:$0xff]  }
 0x446   : > { %9279 = vmatpush1.bf16.msra.mxu1 %v12708_v59  ;;  %11018 = vmatpush3.bf16.msra.mxu0 %v12712_v13  ;;  %v12753_v59 = vld [vmem:[%s13011_s9 + $0x1e0] ss:$12 sps:$4 sm:$0xff]   ;;  %v12757_v13 = vld [vmem:[%s13011_s9 + $0x1e8] ss:$12 sps:$4 sm:$0xff]  }
 0x447   : > { %9280 = vmatprep.subr.bf16.mxu1 %v12715_v41  ;;  %11019 = vmatprep.subr.bf16.mxu0 %v12716_v29  ;;  %v12760_v41 = vld [vmem:[%s13011_s9 + $0x1fc] ss:$12 sps:$4 sm:$0xff]   ;;  %v12761_v29 = vld [vmem:[%s13011_s9 + $0x2c0] ss:$12 sps:$4 sm:$0xff]  }
 0x44a   : > { %9281 = vmatpush1.bf16.msra.mxu1 %v12713_v45  ;;  %11020 = vmatpush3.bf16.msra.mxu0 %v12717_v46  ;;  %v12758_v45 = vld [vmem:[%s13011_s9 + $0x1f8] ss:$12 sps:$4 sm:$0xff]   ;;  %v12762_v46 = vld [vmem:[%s13011_s9 + $0x200] ss:$12 sps:$4 sm:$0xff]  }
 0x44b   : > { %9282 = vmatprep.subr.bf16.mxu1 %v12720_v15  ;;  %11021 = vmatprep.subr.bf16.mxu0 %v12721_v57 }
 0x44c   : > { %v10754_v58 = vpop.f32.mrb[4].mxu0  ;;  %v10776_v34 = vpop.f32.mrb[4].mxu1 }
 0x44d   : > { %v10755_v43 = vpop.f32.mrb[5].mxu0  ;;  %v10777_v44 = vpop.f32.mrb[5].mxu1 }
 0x44e   : > { %v10756_v62 = vadd.f32 %v10755_v43, %v10754_v58  ;;  %v10757_v42 = vpop.f32.mrb[6].mxu0  ;;  %9283 = vmatpush1.bf16.msra.mxu1 %v12718_v24  ;;  %11022 = vmatpush3.bf16.msra.mxu0 %v12722_v11  ;;  %v10778_v12 = vadd.f32 %v10777_v44, %v10776_v34  ;;  %v10779_v3 = vpop.f32.mrb[6].mxu1  ;;  %v12770_v34 = vld [vmem:[%s13011_s9 + $0x22c] ss:$12 sps:$4 sm:$0xff]  }
 0x44f   : > { %v10758_v20 = vpop.f32.mrb[7].mxu0  ;;  %9284 = vmatprep.subr.bf16.mxu1 %v12725_v53  ;;  %11023 = vmatprep.subr.bf16.mxu0 %v12726_v9  ;;  %v10780_v8 = vpop.f32.mrb[7].mxu1  ;;  %v12763_v9 = vld [vmem:[%s13011_s9 + $0x210] ss:$12 sps:$4 sm:$0xff]   ;;  %v8448_v3 = vmax.f32 %v14313_v6, 0.0 }
 0x450   : > { %v7961_v14 = vadd.f32 %v10756_v62, %v1654_v61  ;;  %v12767_v61 = vld [vmem:[%s13011_s9 + $0x218] ss:$12 sps:$4 sm:$0xff]   ;;  %v12771_v62 = vld [vmem:[%s13011_s9 + $0x2f0] ss:$12 sps:$4 sm:$0xff]   ;;  %v12781_v8 = vld [vmem:[%s13011_s9 + $0x274] ss:$12 sps:$4 sm:$0xff]  }
 0x451   : > { %v12778_v20 = vld [vmem:[%s13011_s9 + $0x25c] ss:$12 sps:$4 sm:$0xff]   ;;  %v12776_v6 = vld [vmem:[%s13011_s9 + $0x258] ss:$12 sps:$4 sm:$0xff]  }
 0x452   : > { %v14363_v36 = vadd.f32 %v10778_v12, %v7961_v14  ;;  %9285 = vmatpush1.bf16.msra.mxu1 %v12723_v0  ;;  %11024 = vmatpush3.bf16.msra.mxu0 %v12727_v1  ;;  %v12768_v12 = vld [vmem:[%s13011_s9 + $0x228] ss:$12 sps:$4 sm:$0xff]   ;;  %v12772_v0 = vld [vmem:[%s13011_s9 + $0x230] ss:$12 sps:$4 sm:$0xff]  }
 0x453   : > { %9286 = vmatprep.subr.bf16.mxu1 %v12730_v32  ;;  %11025 = vmatprep.subr.bf16.mxu0 %v12731_v7  ;;  %v12775_v1 = vld [vmem:[%s13011_s9 + $0x244] ss:$12 sps:$4 sm:$0xff]   ;;  %v12800_v32 = vld [vmem:[%s13011_s9 + $0x308] ss:$12 sps:$4 sm:$0xff]   ;;  %v14407_v7 = vpack.c.bf16 %v8448_v3, %v8448_v3 }
 0x454   : > { %v12779_v14 = vld [vmem:[%s13011_s9 + $0x270] ss:$12 sps:$4 sm:$0xff]  }
 0x456   : > { %9287 = vmatpush1.bf16.msra.mxu1 %v12728_v63  ;;  %11026 = vmatpush3.bf16.msra.mxu0 %v12732_v60  ;;  %v12808_v63 = vld [vmem:[%s13011_s9 + $0x338] ss:$12 sps:$4 sm:$0xff]   ;;  %v12782_v60 = vld [vmem:[%s13011_s9 + $0x288] ss:$12 sps:$4 sm:$0xff]  }
 0x457   : > { %9297 = vmatprep.subr.bf16.mxu1 %v12735_v18  ;;  %11033 = vmatprep.subr.bf16.mxu0 %v12736_v23  ;;  %v12812_v18 = vld [vmem:[%s13011_s9 + $0x350] ss:$12 sps:$4 sm:$0xff]   ;;  %v12785_v23 = vld [vmem:[%s13011_s9 + $0x2a0] ss:$12 sps:$4 sm:$0xff]  }
 0x459   : > { %9289 = vmatmul.mubr.bf16.vlgmr.msra.gmra.mrb[28].mxu1 %v8451_v26  ;;  %9412 = vmatmul.mubr.bf16.vlgmr.msra.gmra.mrb[32].mxu0 %v8451_v26  ;;  %v12788_v26 = vld [vmem:[%s13011_s9 + $0x2b8] ss:$12 sps:$4 sm:$0xff]  }
 0x45a   : > { %9298 = vmatpush1.bf16.msra.mxu1 %v12733_v30  ;;  %9329 = vmatprep.mubr.bf16.mxu1 %v8454_v27  ;;  %v12816_v30 = vld [vmem:[%s13011_s9 + $0x368] ss:$12 sps:$4 sm:$0xff]  }
 0x45b   : > { %11034 = vmatpush3.bf16.msra.mxu0 %v12737_v25  ;;  %9451 = vmatprep.mubr.bf16.mxu0 %v8454_v27  ;;  %v12793_v25 = vld [vmem:[%s13011_s9 + $0x2d4] ss:$12 sps:$4 sm:$0xff]  }
 0x45c   : > { %9299 = vmatprep.subr.bf16.mxu1 %v12740_v28  ;;  %11035 = vmatprep.subr.bf16.mxu0 %v12741_v39  ;;  %v12820_v27 = vld [vmem:[%s13011_s9 + $0x380] ss:$12 sps:$4 sm:$0xff]  }
 0x45e   : > { %9300 = vmatpush1.bf16.msra.mxu1 %v12738_v19 }
 0x45f   : > { %11036 = vmatpush3.bf16.msra.mxu0 %v12742_v51  ;;  %9301 = vmatprep.subr.bf16.mxu1 %v12745_v31 }
 0x460   : > { %11037 = vmatprep.subr.bf16.mxu0 %v12746_v33 }
 0x462   : > { %9302 = vmatpush1.bf16.msra.mxu1 %v12743_v35 }
 0x463   : > { %11038 = vmatpush3.bf16.msra.mxu0 %v12747_v2  ;;  %9303 = vmatprep.subr.bf16.mxu1 %v12750_v38  ;;  %v12791_v2 = vld [vmem:[%s13011_s9 + $0x2d0] ss:$12 sps:$4 sm:$0xff]  }
 0x464   : > { %11039 = vmatprep.subr.bf16.mxu0 %v12751_v55 }
 0x466   : > { %9304 = vmatpush1.bf16.msra.mxu1 %v12748_v37  ;;  %v12796_v37 = vld [vmem:[%s13011_s9 + $0x2ec] ss:$12 sps:$4 sm:$0xff]  }
 0x467   : > { %11040 = vmatpush3.bf16.msra.mxu0 %v12752_v5  ;;  %9305 = vmatprep.subr.bf16.mxu1 %v12755_v50  ;;  %v12824_v50 = vld [vmem:[%s13011_s9 + $0x398] ss:$12 sps:$4 sm:$0xff]  }
 0x468   : > { %11041 = vmatprep.subr.bf16.mxu0 %v12756_v40 }
 0x46a   : > { %9306 = vmatpush1.bf16.msra.mxu1 %v12753_v59 }
 0x46b   : > { %11042 = vmatpush3.bf16.msra.mxu0 %v12757_v13  ;;  %9307 = vmatprep.subr.bf16.mxu1 %v12760_v41  ;;  %v12794_v13 = vld [vmem:[%s13011_s9 + $0x2e8] ss:$12 sps:$4 sm:$0xff]   ;;  %v12799_v41 = vld [vmem:[%s13011_s9 + $0x304] ss:$12 sps:$4 sm:$0xff]  }
 0x46c   : > { %v10798_v15 = vpop.f32.mrb[8].mxu0  ;;  %11043 = vmatprep.subr.bf16.mxu0 %v12761_v29  ;;  %v10820_v57 = vpop.f32.mrb[8].mxu1  ;;  %v12828_v29 = vld [vmem:[%s13011_s9 + $0x3b0] ss:$12 sps:$4 sm:$0xff]  }
 0x46d   : > { %v10799_v16 = vpop.f32.mrb[9].mxu0  ;;  %v10821_v24 = vpop.f32.mrb[9].mxu1 }
 0x46e   : > { %v10800_v11 = vadd.f32 %v10799_v16, %v10798_v15  ;;  %v10801_v54 = vpop.f32.mrb[10].mxu0  ;;  %9308 = vmatpush1.bf16.msra.mxu1 %v12758_v45  ;;  %v10822_v53 = vadd.f32 %v10821_v24, %v10820_v57  ;;  %v10823_v22 = vpop.f32.mrb[10].mxu1  ;;  %v12797_v45 = vld [vmem:[%s13011_s9 + $0x300] ss:$12 sps:$4 sm:$0xff]   ;;  %v12815_v16 = vld [vmem:[%s13011_s9 + $0x364] ss:$12 sps:$4 sm:$0xff]  }
 0x46f   : > { %11044 = vmatpush3.bf16.msra.mxu0 %v12762_v46  ;;  %v10802_v58 = vpop.f32.mrb[11].mxu0  ;;  %9309 = vmatprep.subr.bf16.mxu1 %v12765_v48  ;;  %v10824_v43 = vpop.f32.mrb[11].mxu1  ;;  %v12803_v46 = vld [vmem:[%s13011_s9 + $0x31c] ss:$12 sps:$4 sm:$0xff]   ;;  %v12801_v48 = vld [vmem:[%s13011_s9 + $0x318] ss:$12 sps:$4 sm:$0xff]  }
 0x470   : > { %v8041_v44 = vadd.f32 %v10800_v11, %v14363_v36  ;;  %11045 = vmatprep.subr.bf16.mxu0 %v12766_v21  ;;  %v12784_v36 = vld [vmem:[%s13011_s9 + $0x28c] ss:$12 sps:$4 sm:$0xff]   ;;  %v12807_v15 = vld [vmem:[%s13011_s9 + $0x334] ss:$12 sps:$4 sm:$0xff]   ;;  %v12819_v11 = vld [vmem:[%s13011_s9 + $0x37c] ss:$12 sps:$4 sm:$0xff]  }
 0x471   : > { %v12811_v57 = vld [vmem:[%s13011_s9 + $0x34c] ss:$12 sps:$4 sm:$0xff]   ;;  %v12809_v21 = vld [vmem:[%s13011_s9 + $0x348] ss:$12 sps:$4 sm:$0xff]  }
 0x472   : > { %v14398_v42 = vadd.f32 %v10822_v53, %v8041_v44  ;;  %9310 = vmatpush1.bf16.msra.mxu1 %v12763_v9  ;;  %v12813_v24 = vld [vmem:[%s13011_s9 + $0x360] ss:$12 sps:$4 sm:$0xff]   ;;  %v12817_v54 = vld [vmem:[%s13011_s9 + $0x378] ss:$12 sps:$4 sm:$0xff]  }
 0x473   : > { %11046 = vmatpush3.bf16.msra.mxu0 %v12767_v61  ;;  %9311 = vmatprep.subr.bf16.mxu1 %v12770_v34 }
 0x474   : > { %11047 = vmatprep.subr.bf16.mxu0 %v12771_v62  ;;  %v12821_v62 = vld [vmem:[%s13011_s9 + $0x390] ss:$12 sps:$4 sm:$0xff]  }
 0x476   : > { %9312 = vmatpush1.bf16.msra.mxu1 %v12768_v12 }
 0x477   : > { %11048 = vmatpush3.bf16.msra.mxu0 %v12772_v0  ;;  %9313 = vmatprep.subr.bf16.mxu1 %v12775_v1  ;;  %v12827_v0 = vld [vmem:[%s13011_s9 + $0x3ac] ss:$12 sps:$4 sm:$0xff]  }
 0x478   : > { %11084 = vmatprep.subr.bf16.mxu0 %v12900_v52 }
 0x47a   : > { %9452 = vmatmul.mubr.bf16.vlgmr.msra.gmra.mrb[36].mxu0 %v14407_v7  ;;  %9314 = vmatpush1.bf16.msra.mxu1 %v12773_v4  ;;  %v12825_v4 = vld [vmem:[%s13011_s9 + $0x3a8] ss:$12 sps:$4 sm:$0xff]  }
 0x47b   : > { %9315 = vmatprep.subr.bf16.mxu1 %v12778_v20  ;;  %11085 = vmatpush3.bf16.msra.mxu0 %v12800_v32 }
 0x47c   : > { %11086 = vmatprep.subr.bf16.mxu0 %v12900_v52  ;;  %11100 = vmatprep.mubr.msk.bf16.mxu0 %vm12901_vm0, %v12900_v52 }
 0x47e   : > { %9316 = vmatpush1.bf16.msra.mxu1 %v12776_v6 }
 0x47f   : > { %9317 = vmatprep.subr.bf16.mxu1 %v12781_v8  ;;  %11087 = vmatpush3.bf16.msra.mxu0 %v12804_v10 }
 0x480   : > { %11088 = vmatprep.subr.bf16.mxu0 %v12900_v52 }
 0x482   : > { %9318 = vmatpush1.bf16.msra.mxu1 %v12779_v14 }
 0x483   : > { %9319 = vmatprep.subr.bf16.mxu1 %v12784_v36  ;;  %11089 = vmatpush3.bf16.msra.mxu0 %v12808_v63 }
 0x484   : > { %11090 = vmatprep.subr.bf16.mxu0 %v12900_v52 }
 0x486   : > { %9320 = vmatpush1.bf16.msra.mxu1 %v12782_v60 }
 0x487   : > { %9321 = vmatprep.subr.bf16.mxu1 %v12787_v17  ;;  %11091 = vmatpush3.bf16.msra.mxu0 %v12812_v18 }
 0x488   : > { %11092 = vmatprep.subr.bf16.mxu0 %v12900_v52 }
 0x48a   : > { %9322 = vmatpush1.bf16.msra.mxu1 %v12785_v23 }
 0x48b   : > { %9323 = vmatprep.subr.bf16.mxu1 %v12790_v56  ;;  %11093 = vmatpush3.bf16.msra.mxu0 %v12816_v30 }
 0x48c   : > { %v10842_v28 = vpop.f32.mrb[12].mxu0  ;;  %v10864_v39 = vpop.f32.mrb[12].mxu1  ;;  %11094 = vmatprep.subr.bf16.mxu0 %v12900_v52 }
 0x48d   : > { %v10843_v19 = vpop.f32.mrb[13].mxu0  ;;  %v10865_v51 = vpop.f32.mrb[13].mxu1 }
 0x48e   : > { %v10844_v31 = vadd.f32 %v10843_v19, %v10842_v28  ;;  %v10845_v33 = vpop.f32.mrb[14].mxu0  ;;  %9324 = vmatpush1.bf16.msra.mxu1 %v12788_v26  ;;  %v10866_v35 = vadd.f32 %v10865_v51, %v10864_v39  ;;  %v10867_v38 = vpop.f32.mrb[14].mxu1 }
 0x48f   : > { %v10846_v55 = vpop.f32.mrb[15].mxu0  ;;  %9325 = vmatprep.subr.bf16.mxu1 %v12793_v25  ;;  %v10868_v5 = vpop.f32.mrb[15].mxu1  ;;  %11095 = vmatpush3.bf16.msra.mxu0 %v12820_v27 }
 0x490   : > { %v8121_v40 = vadd.f32 %v10844_v31, %v14398_v42  ;;  %11096 = vmatprep.subr.bf16.mxu0 %v12900_v52 }
 0x492   : > { %v8161_v59 = vadd.f32 %v10866_v35, %v8121_v40  ;;  %9326 = vmatpush1.bf16.msra.mxu1 %v12791_v2 }
 0x493   : > { %9327 = vmatprep.subr.bf16.mxu1 %v12796_v37  ;;  %11097 = vmatpush3.bf16.msra.mxu0 %v12824_v50 }
 0x494   : > { %11098 = vmatprep.subr.bf16.mxu0 %v12900_v52  ;;  %v12805_v52 = vld [vmem:[%s13011_s9 + $0x330] ss:$12 sps:$4 sm:$0xff]  }
 0x496   : > { %9328 = vmatpush1.bf16.msra.mxu1 %v12794_v13 }
 0x497   : > { %9338 = vmatprep.subr.bf16.mxu1 %v12799_v41  ;;  %11099 = vmatpush3.bf16.msra.mxu0 %v12828_v29 }
 0x499   : > { %9330 = vmatmul.mubr.bf16.vlgmr.msra.gmra.mrb[28].mxu1 %v14407_v7 }
 0x49a   : > { %9339 = vmatpush1.bf16.msra.mxu1 %v12797_v45  ;;  %9370 = vmatprep.mubr.bf16.mxu1 %v12899_v47  ;;  %v12823_v47 = vld [vmem:[%s13011_s9 + $0x394] ss:$12 sps:$4 sm:$0xff]   ;;  %s11216_s9 = smul.u32 6, %s13019_s27 }
 0x49b   : > { %9340 = vmatprep.subr.bf16.mxu1 %v12803_v46 }
 0x49c   : > { %s258_s24 = scalar_lea.vmem %s14482_s4, %s11216_s9 }
 0x49e   : > { %9341 = vmatpush1.bf16.msra.mxu1 %v12801_v48 }
 0x49f   : > { %9342 = vmatprep.subr.bf16.mxu1 %v12807_v15 }
 0x4a2   : > { %9343 = vmatpush1.bf16.msra.mxu1 %v12805_v52 }
 0x4a3   : > { %9344 = vmatprep.subr.bf16.mxu1 %v12811_v57 }
 0x4a6   : > { %9345 = vmatpush1.bf16.msra.mxu1 %v12809_v21 }
 0x4a7   : > { %9346 = vmatprep.subr.bf16.mxu1 %v12815_v16 }
 0x4aa   : > { %9347 = vmatpush1.bf16.msra.mxu1 %v12813_v24 }
 0x4ab   : > { %9348 = vmatprep.subr.bf16.mxu1 %v12819_v11 }
 0x4ac   : > { %v10886_v53 = vpop.f32.mrb[16].mxu0  ;;  %v10908_v9 = vpop.f32.mrb[16].mxu1 }
 0x4ad   : > { %v10887_v22 = vpop.f32.mrb[17].mxu0  ;;  %v10909_v58 = vpop.f32.mrb[17].mxu1 }
 0x4ae   : > { %v10888_v61 = vadd.f32 %v10887_v22, %v10886_v53  ;;  %v10889_v34 = vpop.f32.mrb[18].mxu0  ;;  %v10910_v43 = vadd.f32 %v10909_v58, %v10908_v9  ;;  %v10911_v44 = vpop.f32.mrb[18].mxu1  ;;  %9349 = vmatpush1.bf16.msra.mxu1 %v12817_v54 }
 0x4af   : > { %v10890_v42 = vpop.f32.mrb[19].mxu0  ;;  %v10912_v12 = vpop.f32.mrb[19].mxu1  ;;  %9350 = vmatprep.subr.bf16.mxu1 %v12823_v47 }
 0x4b0   : > { %v8201_v1 = vadd.f32 %v10888_v61, %v8161_v59 }
 0x4b2   : > { %v8241_v3 = vadd.f32 %v10910_v43, %v8201_v1  ;;  %9351 = vmatpush1.bf16.msra.mxu1 %v12821_v62 }
 0x4b3   : > { %9352 = vmatprep.subr.bf16.mxu1 %v12827_v0 }
 0x4b6   : > { %9353 = vmatpush1.bf16.msra.mxu1 %v12825_v4 }
 0x4cc   : > { %v10930_v20 = vpop.f32.mrb[20].mxu0  ;;  %v10952_v32 = vpop.f32.mrb[20].mxu1 }
 0x4cd   : > { %v10931_v7 = vpop.f32.mrb[21].mxu0  ;;  %v10953_v6 = vpop.f32.mrb[21].mxu1 }
 0x4ce   : > { %v10932_v8 = vadd.f32 %v10931_v7, %v10930_v20  ;;  %v10933_v10 = vpop.f32.mrb[22].mxu0  ;;  %v10954_v14 = vadd.f32 %v10953_v6, %v10952_v32  ;;  %v10955_v36 = vpop.f32.mrb[22].mxu1 }
 0x4cf   : > { %v10934_v63 = vpop.f32.mrb[23].mxu0  ;;  %v10956_v60 = vpop.f32.mrb[23].mxu1 }
 0x4d0   : > { %v8281_v17 = vadd.f32 %v10932_v8, %v8241_v3 }
 0x4d2   : > { %v8321_v18 = vadd.f32 %v10954_v14, %v8281_v17 }
 0x4ec   : > { %v10974_v23 = vpop.f32.mrb[24].mxu0  ;;  %v10996_v56 = vpop.f32.mrb[24].mxu1 }
 0x4ed   : > { %v10975_v30 = vpop.f32.mrb[25].mxu0  ;;  %v10997_v26 = vpop.f32.mrb[25].mxu1 }
 0x4ee   : > { %v10976_v25 = vadd.f32 %v10975_v30, %v10974_v23  ;;  %v10977_v27 = vpop.f32.mrb[26].mxu0  ;;  %v10998_v28 = vadd.f32 %v10997_v26, %v10996_v56  ;;  %v10999_v39 = vpop.f32.mrb[26].mxu1 }
 0x4ef   : > { %v10978_v19 = vpop.f32.mrb[27].mxu0  ;;  %v11000_v51 = vpop.f32.mrb[27].mxu1 }
 0x4f0   : > { %v8361_v31 = vadd.f32 %v10976_v25, %v8321_v18 }
 0x4f2   : > { %v8401_v33 = vadd.f32 %v10998_v28, %v8361_v31 }
 0x50c   : > { %v8440_v35 = vpop.f32.mrb[28].mxu0 }
 0x50d   : > { %v8441_v2 = vadd.f32 %v8440_v35, %v8401_v33  ;;  %v11082_v38 = vpop.f32.mrb[29].mxu0 }
 0x50e   : > { %v8443_v55 = vpop.f32.mrb[30].mxu0 }
 0x50f   : > { %v8450_v37 = vmax.f32 %v8441_v2, 0.0  ;;  %v11083_v5 = vpop.f32.mrb[31].mxu0 }
 0x511   : > { %v8455_v50 = vpack.c.bf16 %v8450_v37, %v8450_v37 }
 0x513   : > { %9371 = vmatmul.mubr.bf16.vlgmr.msra.gmra.mrb[28].mxu1 %v8455_v50  ;;  %11101 = vmatmul.mubr.bf16.vlgmr.msra.gmra.mrb[40].mxu0 %v8455_v50 }
 0x52c   : > { %v11027_v40 = vpop.f32.mrb[32].mxu0 }
 0x52d   : > { %v11028_v59 = vpop.f32.mrb[33].mxu0 }
 0x52e   : > { %v11029_v13 = vadd.f32 %v11028_v59, %v11027_v40  ;;  %v11030_v41 = vpop.f32.mrb[34].mxu0 }
 0x52f   : > { %v11031_v29 = vpop.f32.mrb[35].mxu0 }
 0x54d   : > { %v11049_v45 = vpop.f32.mrb[36].mxu0 }
 0x54e   : > { %v11050_v46 = vpop.f32.mrb[37].mxu0 }
 0x54f   : > { %v11051_v48 = vadd.f32 %v11050_v46, %v11049_v45  ;;  %v11052_v15 = vpop.f32.mrb[38].mxu0 }
 0x550   : > { %v11053_v52 = vpop.f32.mrb[39].mxu0 }
 0x551   : > { %v9454_v57 = vadd.f32 %v11051_v48, %v11029_v13 }
 0x5e6   : > { %v9372_v21 = vpop.f32.mrb[28].mxu1  ;;  %v9493_v16 = vpop.f32.mrb[40].mxu0 }
 0x5e7   : > { %v9494_v24 = vadd.f32 %v9493_v16, %v9454_v57  ;;  %v9374_v11 = vpop.f32.mrb[29].mxu1  ;;  %v11102_v54 = vpop.f32.mrb[41].mxu0 }
 0x5e8   : > { %v9502_v47 = vcombine.low %v9372_v21, %v9374_v11  ;;  %v9376_v53 = vpop.f32.mrb[30].mxu1  ;;  %v9496_v9 = vpop.f32.mrb[42].mxu0 }
 0x5e9   : > { %v9516_v22 = vrot.slane %v9494_v24, %v13074_v49  ;;  %v9377_v58 = vpop.f32.mrb[31].mxu1  ;;  %v11103_v61 = vpop.f32.mrb[43].mxu0 }
 0x5ea   : > { %v9509_v34 = vrot.slane %v9502_v47, %v13074_v49 }
 0x5ec   : > { %v9517_v43 = vcombine.low %v9509_v34, %v9516_v22 }
 0x5ee   : > { %9519 = vst [vmem:[%s258_s24] sm:$0x3f] %v9517_v43 }
 0x5ef PF: > { %p14_p8 = scmp.ge.s32.totalorder %s12949_s20, 7   ;;  %s14485_s15 = smov %s12885_s16 }
 0x5f0   : > { %s14486_s16 = smov %s12889_s17  ;;  %s14487_s17 = smov %s12959_s23 }
 0x5f1   : > { %s14488_s18 = smov %s12949_s20  ;;  %16 = sbr.rel (!%p14_p8) target bundleno = 3 (0x3), region = 82 }
 0x5f8   :  { %9541 = vsyncpa [#allocation3], 1 }
 0x5f9   :  { %9543 = vsyncpa [#allocation3 + $0x1], 1 }

</bundles_post_ra>
